<compile_context>
chip_gen: v7x
topology: tpu7x:2x2x1
jax: 0.10.0
libtpu: 0.0.40
codegen_flags: <defaults>
</compile_context>

<pallas_src>
import jax
import jax.numpy as jnp
from jax import lax
from jax.experimental import pallas as pl
from jax.experimental.pallas import tpu as pltpu

EPS = 1e-5  # nn.BatchNorm2d default eps


def _derive_vmem_limit():
    try:
        cap = int(pltpu.get_tpu_info().vmem_capacity_bytes)
    except Exception:
        cap = 64 * 1024 * 1024  # conservative fallback (v7x-sized)
    return int(min(cap // 2, 96 * 1024 * 1024))


_VMEM_LIMIT = _derive_vmem_limit()


def _round_up(x, m):
    return ((x + m - 1) // m) * m


def _pick_tile_h(H, W, cin, cpad):
    """Largest divisor of H whose double-buffered tile fits well inside VMEM."""
    best = 1
    for th in range(1, H + 1):
        if H % th:
            continue
        tile_bytes = 2 * ((th + 2) * (W + 2) * cin * 2   # bf16 input block (x2 buffers)
                          + th * W * cpad * 4)           # f32 conv-out block (x2 buffers)
        if tile_bytes <= _VMEM_LIMIT // 4 and th <= 128:
            best = th
    return best


# ----------------------------------------------------------------------------
# Pass 1: conv (in-kernel 3x3 gather, 9 shifted MXU dots) + per-tile channel
#         sum / sum-of-squares for the BatchNorm reduction.
# ----------------------------------------------------------------------------
def _conv_stats_kernel(x_ref, w_ref, y_ref, s_ref):
    # x_ref: (TH+2, W+2, Cin)   bf16  (spatially padded row-tile with halo)
    # w_ref: (9, Cin, Cpad)     bf16  (tap-major weights, channels zero-padded)
    # y_ref: (TH*W, Cpad)       f32   conv output tile
    # s_ref: (2, Cpad)          f32   per-tile [sum; sum of squares]
    thp2, wp2, cin = x_ref.shape
    th, w = thp2 - 2, wp2 - 2
    cpad = y_ref.shape[-1]

    acc = jnp.zeros((th * w, cpad), jnp.float32)
    tap = 0
    for ky in range(3):
        for kx in range(3):
            xs = x_ref[ky:ky + th, kx:kx + w, :].reshape(th * w, cin)
            acc = acc + jnp.dot(xs, w_ref[tap],
                                preferred_element_type=jnp.float32)
            tap += 1

    y_ref[...] = acc
    s_ref[...] = jnp.concatenate(
        [jnp.sum(acc, axis=0, keepdims=True),
         jnp.sum(acc * acc, axis=0, keepdims=True)], axis=0)


# ----------------------------------------------------------------------------
# Pass 2: apply folded BatchNorm (scale/shift) + ReLU, lane-dense store.
# ----------------------------------------------------------------------------
def _bn_relu_kernel(y_ref, scale_ref, shift_ref, o_ref):
    y = y_ref[...].astype(jnp.float32)
    out = jnp.maximum(y * scale_ref[...] + shift_ref[...], 0.0)
    o_ref[...] = out.astype(o_ref.dtype)


def _conv_bn_relu_block(x_nhwc, w_hwio, gamma, beta, out_dtype):
    """One Conv2d(3x3, pad=1) + BatchNorm2d(train stats) + ReLU block.

    x_nhwc: (N, H, W, Cin_x) -- Cin_x may already be channel-padded.
    w_hwio: (3, 3, Cin_w, Cout) with Cin_w <= Cin_x.
    Returns (y_nhwc_padded (N, H, W, Cpad), Cout).
    """
    N, H, W, cin_x = x_nhwc.shape
    kh, kw, cin_w, cout = w_hwio.shape
    assert (kh, kw) == (3, 3)
    cpad = _round_up(max(cout, 1), 128)

    th = _pick_tile_h(H, W, cin_x, cpad)
    T = H // th
    M = N * H * W

    # Weights: pad in-channels to Cin_x and out-channels to Cpad with zeros,
    # reorder to (tap, Cin_x, Cpad), cast to bf16.
    w = jnp.pad(w_hwio, ((0, 0), (0, 0), (0, cin_x - cin_w), (0, cpad - cout)))
    w = w.reshape(9, cin_x, cpad).astype(jnp.bfloat16)

    # Spatial zero-pad + overlapping row tiles (1-row halo).  Duplication is
    # (TH+2)/TH of the input -- cheap compared with a 9x materialized im2col.
    xpad = jnp.pad(x_nhwc, ((0, 0), (1, 1), (1, 1), (0, 0))).astype(jnp.bfloat16)
    x_tiles = jnp.stack(
        [xpad[:, t * th: t * th + th + 2] for t in range(T)], axis=1)
    # x_tiles: (N, T, TH+2, W+2, Cin_x)

    flops = 2 * M * 9 * cin_x * cpad
    bytes_accessed = (x_tiles.size * 2 + w.size * 2
                      + N * T * th * W * cpad * 4 + N * T * 2 * cpad * 4)

    conv_out, stats = pl.pallas_call(
        _conv_stats_kernel,
        out_shape=(
            jax.ShapeDtypeStruct((N, T, th * W, cpad), jnp.float32),
            jax.ShapeDtypeStruct((N, T, 2, cpad), jnp.float32),
        ),
        grid=(N, T),
        in_specs=[
            pl.BlockSpec((None, None, th + 2, W + 2, cin_x),
                         lambda n, t: (n, t, 0, 0, 0)),
            pl.BlockSpec((9, cin_x, cpad), lambda n, t: (0, 0, 0)),
        ],
        out_specs=(
            pl.BlockSpec((None, None, th * W, cpad), lambda n, t: (n, t, 0, 0)),
            pl.BlockSpec((None, None, 2, cpad), lambda n, t: (n, t, 0, 0)),
        ),
        compiler_params=pltpu.CompilerParams(
            dimension_semantics=("parallel", "parallel"),
            vmem_limit_bytes=_VMEM_LIMIT),
        cost_estimate=pl.CostEstimate(
            flops=int(flops), transcendentals=0,
            bytes_accessed=int(bytes_accessed)),
    )(x_tiles, w)

    # Global BatchNorm statistics (training mode) from the per-tile partials.
    tot = jnp.sum(stats, axis=(0, 1))              # (2, Cpad), f32
    mean = tot[0] / M
    var = jnp.maximum(tot[1] / M - mean * mean, 0.0)
    gamma_p = jnp.pad(gamma.astype(jnp.float32), (0, cpad - cout))
    beta_p = jnp.pad(beta.astype(jnp.float32), (0, cpad - cout))
    scale = (gamma_p * lax.rsqrt(var + EPS)).reshape(1, cpad)
    shift = (beta_p - mean * gamma_p * lax.rsqrt(var + EPS)).reshape(1, cpad)
    # Padded channels: conv output is identically 0 and gamma_p=beta_p=0, so
    # scale=shift=0 and the padded lanes stay exactly 0 after ReLU.

    out = pl.pallas_call(
        _bn_relu_kernel,
        out_shape=jax.ShapeDtypeStruct((N, T, th * W, cpad), out_dtype),
        grid=(N, T),
        in_specs=[
            pl.BlockSpec((None, None, th * W, cpad), lambda n, t: (n, t, 0, 0)),
            pl.BlockSpec((1, cpad), lambda n, t: (0, 0)),
            pl.BlockSpec((1, cpad), lambda n, t: (0, 0)),
        ],
        out_specs=pl.BlockSpec((None, None, th * W, cpad),
                               lambda n, t: (n, t, 0, 0)),
        compiler_params=pltpu.CompilerParams(
            dimension_semantics=("parallel", "parallel"),
            vmem_limit_bytes=_VMEM_LIMIT),
    )(conv_out, scale, shift)

    return out.reshape(N, H, W, cpad), cout


def double_conv(x_nchw, params):
    """DoubleConv forward. Input/output layout: NCHW (PyTorch convention)."""
    w1, b1, g1, be1, w2, b2, g2, be2 = params
    del b1, b2  # conv bias is cancelled exactly by training-mode BatchNorm.

    w1_hwio = jnp.transpose(w1, (2, 3, 1, 0))   # OIHW -> HWIO
    w2_hwio = jnp.transpose(w2, (2, 3, 1, 0))

    x = jnp.transpose(x_nchw, (0, 2, 3, 1))     # NCHW -> NHWC
    y, _ = _conv_bn_relu_block(x, w1_hwio, g1, be1, out_dtype=jnp.bfloat16)
    y, c2 = _conv_bn_relu_block(y, w2_hwio, g2, be2, out_dtype=jnp.float32)
    y = y[..., :c2]                              # drop channel padding
    return jnp.transpose(y, (0, 3, 1, 2))        # NHWC -> NCHW


def _ref_double_conv(x_nchw, params):
    """Pure-JAX f32 reference matching PyTorch semantics (training-mode BN,
    conv bias included -- it cancels under BN, which the assert verifies)."""
    w1, b1, g1, be1, w2, b2, g2, be2 = params

    def block(x, w_oihw, b, gamma, beta):
        y = lax.conv_general_dilated(
            x, w_oihw, window_strides=(1, 1), padding=((1, 1), (1, 1)),
            dimension_numbers=("NCHW", "OIHW", "NCHW"))
        y = y + b[None, :, None, None]
        mean = y.mean(axis=(0, 2, 3), keepdims=True)
        var = ((y - mean) ** 2).mean(axis=(0, 2, 3), keepdims=True)
        y = (y - mean) / jnp.sqrt(var + EPS)
        y = y * gamma[None, :, None, None] + beta[None, :, None, None]
        return jnp.maximum(y, 0.0)

    y = block(x_nchw, w1, b1, g1, be1)
    return block(y, w2, b2, g2, be2)


def _make_params(key, in_channels, out_channels):
    ks = jax.random.split(key, 6)
    w1 = 0.1 * jax.random.normal(ks[0], (out_channels, in_channels, 3, 3), jnp.float32)
    b1 = 0.1 * jax.random.normal(ks[1], (out_channels,), jnp.float32)
    w2 = 0.1 * jax.random.normal(ks[2], (out_channels, out_channels, 3, 3), jnp.float32)
    b2 = 0.1 * jax.random.normal(ks[3], (out_channels,), jnp.float32)
    g1 = 1.0 + 0.1 * jax.random.normal(ks[4], (out_channels,), jnp.float32)
    be1 = 0.1 * jax.random.normal(ks[5], (out_channels,), jnp.float32)
    g2 = jnp.ones((out_channels,), jnp.float32)
    be2 = jnp.zeros((out_channels,), jnp.float32)
    return (w1, b1, g1, be1, w2, b2, g2, be2)


if __name__ == "__main__":
    key = jax.random.PRNGKey(0)
    k_x, k_p = jax.random.split(key)

    N, Cin, Cout, H, W = 2, 4, 8, 16, 16
    x = jax.random.normal(k_x, (N, Cin, H, W), jnp.float32)
    params = _make_params(k_p, Cin, Cout)

    out = jax.block_until_ready(jax.jit(double_conv)(x, params))
    ref = jax.block_until_ready(_ref_double_conv(x, params))

    assert out.shape == (N, Cout, H, W)
    # bf16 MXU inputs (f32 accumulate) vs. the pure-f32 reference -> a few e-3
    # of relative error per conv layer; 3e-2 is a comfortable bound.
    max_err = float(jnp.abs(out - ref).max())
    assert jnp.allclose(out, ref, atol=3e-2, rtol=3e-2), max_err

    print("KERNEL_OK")
</pallas_src>

<mosaic_0001>
module attributes {stable_mosaic.version = 11 : i64} {
  func.func @_conv_stats_kernel(%arg0: i32, %arg1: i32, %arg2: memref<1x1x18x18x4xbf16, #tpu.memory_space<vmem>>, %arg3: memref<9x4x128xbf16, #tpu.memory_space<vmem>>, %arg4: memref<1x1x256x128xf32, #tpu.memory_space<vmem>>, %arg5: memref<1x1x2x128xf32, #tpu.memory_space<vmem>>) attributes {dimension_semantics = [#tpu.dimension_semantics<parallel>, #tpu.dimension_semantics<parallel>], iteration_bounds = array<i64: 2, 1>, scalar_prefetch = 0 : i64, scratch_operands = 0 : i64, tpu.core_type = #tpu.core_type<tc>, window_params = [{transform_indices = @transform_0, window_bounds = array<i64: 1, 1, 18, 18, 4>}, {pipeline_mode = #tpu.pipeline_mode<synchronous>, transform_indices = @transform_1, window_bounds = array<i64: 9, 4, 128>}, {transform_indices = @transform_2, window_bounds = array<i64: 1, 1, 256, 128>}, {transform_indices = @transform_3, window_bounds = array<i64: 1, 1, 2, 128>}]} {
    %cst = arith.constant 0.000000e+00 : f32
    %0 = vector.broadcast %cst : f32 to vector<256x128xf32>
    %c0 = arith.constant 0 : index
    %c0_0 = arith.constant 0 : index
    %c0_1 = arith.constant 0 : index
    %c0_2 = arith.constant 0 : index
    %c0_3 = arith.constant 0 : index
    %1 = vector.load %arg2[%c0, %c0_0, %c0_1, %c0_2, %c0_3] : memref<1x1x18x18x4xbf16, #tpu.memory_space<vmem>>, vector<1x1x16x16x4xbf16>
    %2 = vector.shape_cast %1 : vector<1x1x16x16x4xbf16> to vector<16x16x4xbf16>
    %3 = vector.shape_cast %2 : vector<16x16x4xbf16> to vector<256x4xbf16>
    %c0_4 = arith.constant 0 : index
    %c0_5 = arith.constant 0 : index
    %c0_6 = arith.constant 0 : index
    %4 = vector.load %arg3[%c0_4, %c0_5, %c0_6] : memref<9x4x128xbf16, #tpu.memory_space<vmem>>, vector<1x4x128xbf16>
    %5 = vector.shape_cast %4 : vector<1x4x128xbf16> to vector<4x128xbf16>
    %cst_7 = arith.constant dense<0.000000e+00> : vector<256x128xf32>
    %6 = tpu.matmul %3, %5, %cst_7 {dimension_numbers = #tpu.dot_dimension_numbers<[1], [0], [0], [1], [0, 0, 1, 1], [], []>} : vector<256x4xbf16>, vector<4x128xbf16>, vector<256x128xf32> -> vector<256x128xf32>
    %7 = arith.addf %0, %6 : vector<256x128xf32>
    %c0_8 = arith.constant 0 : index
    %c0_9 = arith.constant 0 : index
    %c0_10 = arith.constant 0 : index
    %c1 = arith.constant 1 : index
    %c0_11 = arith.constant 0 : index
    %8 = vector.load %arg2[%c0_8, %c0_9, %c0_10, %c1, %c0_11] : memref<1x1x18x18x4xbf16, #tpu.memory_space<vmem>>, vector<1x1x16x16x4xbf16>
    %9 = vector.shape_cast %8 : vector<1x1x16x16x4xbf16> to vector<16x16x4xbf16>
    %10 = vector.shape_cast %9 : vector<16x16x4xbf16> to vector<256x4xbf16>
    %c1_12 = arith.constant 1 : index
    %c0_13 = arith.constant 0 : index
    %c0_14 = arith.constant 0 : index
    %11 = vector.load %arg3[%c1_12, %c0_13, %c0_14] : memref<9x4x128xbf16, #tpu.memory_space<vmem>>, vector<1x4x128xbf16>
    %12 = vector.shape_cast %11 : vector<1x4x128xbf16> to vector<4x128xbf16>
    %cst_15 = arith.constant dense<0.000000e+00> : vector<256x128xf32>
    %13 = tpu.matmul %10, %12, %cst_15 {dimension_numbers = #tpu.dot_dimension_numbers<[1], [0], [0], [1], [0, 0, 1, 1], [], []>} : vector<256x4xbf16>, vector<4x128xbf16>, vector<256x128xf32> -> vector<256x128xf32>
    %14 = arith.addf %7, %13 : vector<256x128xf32>
    %c0_16 = arith.constant 0 : index
    %c0_17 = arith.constant 0 : index
    %c0_18 = arith.constant 0 : index
    %c2 = arith.constant 2 : index
    %c0_19 = arith.constant 0 : index
    %15 = vector.load %arg2[%c0_16, %c0_17, %c0_18, %c2, %c0_19] : memref<1x1x18x18x4xbf16, #tpu.memory_space<vmem>>, vector<1x1x16x16x4xbf16>
    %16 = vector.shape_cast %15 : vector<1x1x16x16x4xbf16> to vector<16x16x4xbf16>
    %17 = vector.shape_cast %16 : vector<16x16x4xbf16> to vector<256x4xbf16>
    %c2_20 = arith.constant 2 : index
    %c0_21 = arith.constant 0 : index
    %c0_22 = arith.constant 0 : index
    %18 = vector.load %arg3[%c2_20, %c0_21, %c0_22] : memref<9x4x128xbf16, #tpu.memory_space<vmem>>, vector<1x4x128xbf16>
    %19 = vector.shape_cast %18 : vector<1x4x128xbf16> to vector<4x128xbf16>
    %cst_23 = arith.constant dense<0.000000e+00> : vector<256x128xf32>
    %20 = tpu.matmul %17, %19, %cst_23 {dimension_numbers = #tpu.dot_dimension_numbers<[1], [0], [0], [1], [0, 0, 1, 1], [], []>} : vector<256x4xbf16>, vector<4x128xbf16>, vector<256x128xf32> -> vector<256x128xf32>
    %21 = arith.addf %14, %20 : vector<256x128xf32>
    %c0_24 = arith.constant 0 : index
    %c0_25 = arith.constant 0 : index
    %c1_26 = arith.constant 1 : index
    %c0_27 = arith.constant 0 : index
    %c0_28 = arith.constant 0 : index
    %22 = vector.load %arg2[%c0_24, %c0_25, %c1_26, %c0_27, %c0_28] : memref<1x1x18x18x4xbf16, #tpu.memory_space<vmem>>, vector<1x1x16x16x4xbf16>
    %23 = vector.shape_cast %22 : vector<1x1x16x16x4xbf16> to vector<16x16x4xbf16>
    %24 = vector.shape_cast %23 : vector<16x16x4xbf16> to vector<256x4xbf16>
    %c3 = arith.constant 3 : index
    %c0_29 = arith.constant 0 : index
    %c0_30 = arith.constant 0 : index
    %25 = vector.load %arg3[%c3, %c0_29, %c0_30] : memref<9x4x128xbf16, #tpu.memory_space<vmem>>, vector<1x4x128xbf16>
    %26 = vector.shape_cast %25 : vector<1x4x128xbf16> to vector<4x128xbf16>
    %cst_31 = arith.constant dense<0.000000e+00> : vector<256x128xf32>
    %27 = tpu.matmul %24, %26, %cst_31 {dimension_numbers = #tpu.dot_dimension_numbers<[1], [0], [0], [1], [0, 0, 1, 1], [], []>} : vector<256x4xbf16>, vector<4x128xbf16>, vector<256x128xf32> -> vector<256x128xf32>
    %28 = arith.addf %21, %27 : vector<256x128xf32>
    %c0_32 = arith.constant 0 : index
    %c0_33 = arith.constant 0 : index
    %c1_34 = arith.constant 1 : index
    %c1_35 = arith.constant 1 : index
    %c0_36 = arith.constant 0 : index
    %29 = vector.load %arg2[%c0_32, %c0_33, %c1_34, %c1_35, %c0_36] : memref<1x1x18x18x4xbf16, #tpu.memory_space<vmem>>, vector<1x1x16x16x4xbf16>
    %30 = vector.shape_cast %29 : vector<1x1x16x16x4xbf16> to vector<16x16x4xbf16>
    %31 = vector.shape_cast %30 : vector<16x16x4xbf16> to vector<256x4xbf16>
    %c4 = arith.constant 4 : index
    %c0_37 = arith.constant 0 : index
    %c0_38 = arith.constant 0 : index
    %32 = vector.load %arg3[%c4, %c0_37, %c0_38] : memref<9x4x128xbf16, #tpu.memory_space<vmem>>, vector<1x4x128xbf16>
    %33 = vector.shape_cast %32 : vector<1x4x128xbf16> to vector<4x128xbf16>
    %cst_39 = arith.constant dense<0.000000e+00> : vector<256x128xf32>
    %34 = tpu.matmul %31, %33, %cst_39 {dimension_numbers = #tpu.dot_dimension_numbers<[1], [0], [0], [1], [0, 0, 1, 1], [], []>} : vector<256x4xbf16>, vector<4x128xbf16>, vector<256x128xf32> -> vector<256x128xf32>
    %35 = arith.addf %28, %34 : vector<256x128xf32>
    %c0_40 = arith.constant 0 : index
    %c0_41 = arith.constant 0 : index
    %c1_42 = arith.constant 1 : index
    %c2_43 = arith.constant 2 : index
    %c0_44 = arith.constant 0 : index
    %36 = vector.load %arg2[%c0_40, %c0_41, %c1_42, %c2_43, %c0_44] : memref<1x1x18x18x4xbf16, #tpu.memory_space<vmem>>, vector<1x1x16x16x4xbf16>
    %37 = vector.shape_cast %36 : vector<1x1x16x16x4xbf16> to vector<16x16x4xbf16>
    %38 = vector.shape_cast %37 : vector<16x16x4xbf16> to vector<256x4xbf16>
    %c5 = arith.constant 5 : index
    %c0_45 = arith.constant 0 : index
    %c0_46 = arith.constant 0 : index
    %39 = vector.load %arg3[%c5, %c0_45, %c0_46] : memref<9x4x128xbf16, #tpu.memory_space<vmem>>, vector<1x4x128xbf16>
    %40 = vector.shape_cast %39 : vector<1x4x128xbf16> to vector<4x128xbf16>
    %cst_47 = arith.constant dense<0.000000e+00> : vector<256x128xf32>
    %41 = tpu.matmul %38, %40, %cst_47 {dimension_numbers = #tpu.dot_dimension_numbers<[1], [0], [0], [1], [0, 0, 1, 1], [], []>} : vector<256x4xbf16>, vector<4x128xbf16>, vector<256x128xf32> -> vector<256x128xf32>
    %42 = arith.addf %35, %41 : vector<256x128xf32>
    %c0_48 = arith.constant 0 : index
    %c0_49 = arith.constant 0 : index
    %c2_50 = arith.constant 2 : index
    %c0_51 = arith.constant 0 : index
    %c0_52 = arith.constant 0 : index
    %43 = vector.load %arg2[%c0_48, %c0_49, %c2_50, %c0_51, %c0_52] : memref<1x1x18x18x4xbf16, #tpu.memory_space<vmem>>, vector<1x1x16x16x4xbf16>
    %44 = vector.shape_cast %43 : vector<1x1x16x16x4xbf16> to vector<16x16x4xbf16>
    %45 = vector.shape_cast %44 : vector<16x16x4xbf16> to vector<256x4xbf16>
    %c6 = arith.constant 6 : index
    %c0_53 = arith.constant 0 : index
    %c0_54 = arith.constant 0 : index
    %46 = vector.load %arg3[%c6, %c0_53, %c0_54] : memref<9x4x128xbf16, #tpu.memory_space<vmem>>, vector<1x4x128xbf16>
    %47 = vector.shape_cast %46 : vector<1x4x128xbf16> to vector<4x128xbf16>
    %cst_55 = arith.constant dense<0.000000e+00> : vector<256x128xf32>
    %48 = tpu.matmul %45, %47, %cst_55 {dimension_numbers = #tpu.dot_dimension_numbers<[1], [0], [0], [1], [0, 0, 1, 1], [], []>} : vector<256x4xbf16>, vector<4x128xbf16>, vector<256x128xf32> -> vector<256x128xf32>
    %49 = arith.addf %42, %48 : vector<256x128xf32>
    %c0_56 = arith.constant 0 : index
    %c0_57 = arith.constant 0 : index
    %c2_58 = arith.constant 2 : index
    %c1_59 = arith.constant 1 : index
    %c0_60 = arith.constant 0 : index
    %50 = vector.load %arg2[%c0_56, %c0_57, %c2_58, %c1_59, %c0_60] : memref<1x1x18x18x4xbf16, #tpu.memory_space<vmem>>, vector<1x1x16x16x4xbf16>
    %51 = vector.shape_cast %50 : vector<1x1x16x16x4xbf16> to vector<16x16x4xbf16>
    %52 = vector.shape_cast %51 : vector<16x16x4xbf16> to vector<256x4xbf16>
    %c7 = arith.constant 7 : index
    %c0_61 = arith.constant 0 : index
    %c0_62 = arith.constant 0 : index
    %53 = vector.load %arg3[%c7, %c0_61, %c0_62] : memref<9x4x128xbf16, #tpu.memory_space<vmem>>, vector<1x4x128xbf16>
    %54 = vector.shape_cast %53 : vector<1x4x128xbf16> to vector<4x128xbf16>
    %cst_63 = arith.constant dense<0.000000e+00> : vector<256x128xf32>
    %55 = tpu.matmul %52, %54, %cst_63 {dimension_numbers = #tpu.dot_dimension_numbers<[1], [0], [0], [1], [0, 0, 1, 1], [], []>} : vector<256x4xbf16>, vector<4x128xbf16>, vector<256x128xf32> -> vector<256x128xf32>
    %56 = arith.addf %49, %55 : vector<256x128xf32>
    %c0_64 = arith.constant 0 : index
    %c0_65 = arith.constant 0 : index
    %c2_66 = arith.constant 2 : index
    %c2_67 = arith.constant 2 : index
    %c0_68 = arith.constant 0 : index
    %57 = vector.load %arg2[%c0_64, %c0_65, %c2_66, %c2_67, %c0_68] : memref<1x1x18x18x4xbf16, #tpu.memory_space<vmem>>, vector<1x1x16x16x4xbf16>
    %58 = vector.shape_cast %57 : vector<1x1x16x16x4xbf16> to vector<16x16x4xbf16>
    %59 = vector.shape_cast %58 : vector<16x16x4xbf16> to vector<256x4xbf16>
    %c8 = arith.constant 8 : index
    %c0_69 = arith.constant 0 : index
    %c0_70 = arith.constant 0 : index
    %60 = vector.load %arg3[%c8, %c0_69, %c0_70] : memref<9x4x128xbf16, #tpu.memory_space<vmem>>, vector<1x4x128xbf16>
    %61 = vector.shape_cast %60 : vector<1x4x128xbf16> to vector<4x128xbf16>
    %cst_71 = arith.constant dense<0.000000e+00> : vector<256x128xf32>
    %62 = tpu.matmul %59, %61, %cst_71 {dimension_numbers = #tpu.dot_dimension_numbers<[1], [0], [0], [1], [0, 0, 1, 1], [], []>} : vector<256x4xbf16>, vector<4x128xbf16>, vector<256x128xf32> -> vector<256x128xf32>
    %63 = arith.addf %56, %62 : vector<256x128xf32>
    %c0_72 = arith.constant 0 : index
    %c0_73 = arith.constant 0 : index
    %c0_74 = arith.constant 0 : index
    %c0_75 = arith.constant 0 : index
    %64 = vector.load %arg4[%c0_72, %c0_73, %c0_74, %c0_75] : memref<1x1x256x128xf32, #tpu.memory_space<vmem>>, vector<1x1x256x128xf32>
    %65 = vector.shape_cast %64 : vector<1x1x256x128xf32> to vector<256x128xf32>
    %66 = vector.shape_cast %63 : vector<256x128xf32> to vector<1x1x256x128xf32>
    tpu.vector_store %arg4[%c0_72, %c0_73, %c0_74, %c0_75], %66 {strides = array<i32>} : memref<1x1x256x128xf32, #tpu.memory_space<vmem>>, vector<1x1x256x128xf32>,
    %cst_76 = arith.constant dense<0.000000e+00> : vector<128xf32>
    %67 = vector.multi_reduction <add>, %63, %cst_76 [0] : vector<256x128xf32> to vector<128xf32>
    %68 = vector.shape_cast %67 : vector<128xf32> to vector<1x128xf32>
    %69 = arith.mulf %63, %63 : vector<256x128xf32>
    %cst_77 = arith.constant dense<0.000000e+00> : vector<128xf32>
    %70 = vector.multi_reduction <add>, %69, %cst_77 [0] : vector<256x128xf32> to vector<128xf32>
    %71 = vector.shape_cast %70 : vector<128xf32> to vector<1x128xf32>
    %72 = tpu.concatenate %68, %71 in 0 : vector<1x128xf32>, vector<1x128xf32> -> vector<2x128xf32>
    %c0_78 = arith.constant 0 : index
    %c0_79 = arith.constant 0 : index
    %c0_80 = arith.constant 0 : index
    %c0_81 = arith.constant 0 : index
    %73 = vector.load %arg5[%c0_78, %c0_79, %c0_80, %c0_81] : memref<1x1x2x128xf32, #tpu.memory_space<vmem>>, vector<1x1x2x128xf32>
    %74 = vector.shape_cast %73 : vector<1x1x2x128xf32> to vector<2x128xf32>
    %75 = vector.shape_cast %72 : vector<2x128xf32> to vector<1x1x2x128xf32>
    tpu.vector_store %arg5[%c0_78, %c0_79, %c0_80, %c0_81], %75 {strides = array<i32>} : memref<1x1x2x128xf32, #tpu.memory_space<vmem>>, vector<1x1x2x128xf32>,
    return
  }
  func.func @transform_0(%arg0: i32, %arg1: i32) -> (i32, i32, i32, i32, i32) {
    %c0_i32 = arith.constant 0 : i32
    %c0_i32_0 = arith.constant 0 : i32
    %c0_i32_1 = arith.constant 0 : i32
    %c0_i32_2 = arith.constant 0 : i32
    return %arg0, %arg1, %c0_i32, %c0_i32_0, %c0_i32_1 : i32, i32, i32, i32, i32
  }
  func.func @transform_1(%arg0: i32, %arg1: i32) -> (i32, i32, i32) {
    %c0_i32 = arith.constant 0 : i32
    %c0_i32_0 = arith.constant 0 : i32
    %c0_i32_1 = arith.constant 0 : i32
    %c0_i32_2 = arith.constant 0 : i32
    return %c0_i32, %c0_i32_0, %c0_i32_1 : i32, i32, i32
  }
  func.func @transform_2(%arg0: i32, %arg1: i32) -> (i32, i32, i32, i32) {
    %c0_i32 = arith.constant 0 : i32
    %c0_i32_0 = arith.constant 0 : i32
    %c0_i32_1 = arith.constant 0 : i32
    return %arg0, %arg1, %c0_i32, %c0_i32_0 : i32, i32, i32, i32
  }
  func.func @transform_3(%arg0: i32, %arg1: i32) -> (i32, i32, i32, i32) {
    %c0_i32 = arith.constant 0 : i32
    %c0_i32_0 = arith.constant 0 : i32
    %c0_i32_1 = arith.constant 0 : i32
    return %arg0, %arg1, %c0_i32, %c0_i32_0 : i32, i32, i32, i32
  }
}

module attributes {stable_mosaic.version = 11 : i64} {
  func.func @_bn_relu_kernel(%arg0: i32, %arg1: i32, %arg2: memref<1x1x256x128xf32, #tpu.memory_space<vmem>>, %arg3: memref<1x128xf32, #tpu.memory_space<vmem>>, %arg4: memref<1x128xf32, #tpu.memory_space<vmem>>, %arg5: memref<1x1x256x128xbf16, #tpu.memory_space<vmem>>) attributes {dimension_semantics = [#tpu.dimension_semantics<parallel>, #tpu.dimension_semantics<parallel>], iteration_bounds = array<i64: 2, 1>, scalar_prefetch = 0 : i64, scratch_operands = 0 : i64, tpu.core_type = #tpu.core_type<tc>, window_params = [{transform_indices = @transform_0, window_bounds = array<i64: 1, 1, 256, 128>}, {pipeline_mode = #tpu.pipeline_mode<synchronous>, transform_indices = @transform_1, window_bounds = array<i64: 1, 128>}, {pipeline_mode = #tpu.pipeline_mode<synchronous>, transform_indices = @transform_2, window_bounds = array<i64: 1, 128>}, {transform_indices = @transform_3, window_bounds = array<i64: 1, 1, 256, 128>}]} {
    %c0 = arith.constant 0 : index
    %c0_0 = arith.constant 0 : index
    %c0_1 = arith.constant 0 : index
    %c0_2 = arith.constant 0 : index
    %0 = vector.load %arg2[%c0, %c0_0, %c0_1, %c0_2] : memref<1x1x256x128xf32, #tpu.memory_space<vmem>>, vector<1x1x256x128xf32>
    %1 = vector.shape_cast %0 : vector<1x1x256x128xf32> to vector<256x128xf32>
    %c0_3 = arith.constant 0 : index
    %c0_4 = arith.constant 0 : index
    %2 = vector.load %arg3[%c0_3, %c0_4] : memref<1x128xf32, #tpu.memory_space<vmem>>, vector<1x128xf32>
    %3 = vector.broadcast %2 : vector<1x128xf32> to vector<256x128xf32>
    %4 = arith.mulf %1, %3 : vector<256x128xf32>
    %c0_5 = arith.constant 0 : index
    %c0_6 = arith.constant 0 : index
    %5 = vector.load %arg4[%c0_5, %c0_6] : memref<1x128xf32, #tpu.memory_space<vmem>>, vector<1x128xf32>
    %6 = vector.broadcast %5 : vector<1x128xf32> to vector<256x128xf32>
    %7 = arith.addf %4, %6 : vector<256x128xf32>
    %cst = arith.constant 0.000000e+00 : f32
    %8 = vector.broadcast %cst : f32 to vector<256x128xf32>
    %9 = arith.maximumf %7, %8 : vector<256x128xf32>
    %10 = arith.truncf %9 : vector<256x128xf32> to vector<256x128xbf16>
    %c0_7 = arith.constant 0 : index
    %c0_8 = arith.constant 0 : index
    %c0_9 = arith.constant 0 : index
    %c0_10 = arith.constant 0 : index
    %11 = vector.load %arg5[%c0_7, %c0_8, %c0_9, %c0_10] : memref<1x1x256x128xbf16, #tpu.memory_space<vmem>>, vector<1x1x256x128xbf16>
    %12 = vector.shape_cast %11 : vector<1x1x256x128xbf16> to vector<256x128xbf16>
    %13 = vector.shape_cast %10 : vector<256x128xbf16> to vector<1x1x256x128xbf16>
    tpu.vector_store %arg5[%c0_7, %c0_8, %c0_9, %c0_10], %13 {strides = array<i32>} : memref<1x1x256x128xbf16, #tpu.memory_space<vmem>>, vector<1x1x256x128xbf16>,
    return
  }
  func.func @transform_0(%arg0: i32, %arg1: i32) -> (i32, i32, i32, i32) {
    %c0_i32 = arith.constant 0 : i32
    %c0_i32_0 = arith.constant 0 : i32
    %c0_i32_1 = arith.constant 0 : i32
    return %arg0, %arg1, %c0_i32, %c0_i32_0 : i32, i32, i32, i32
  }
  func.func @transform_1(%arg0: i32, %arg1: i32) -> (i32, i32) {
    %c0_i32 = arith.constant 0 : i32
    %c0_i32_0 = arith.constant 0 : i32
    %c0_i32_1 = arith.constant 0 : i32
    return %c0_i32, %c0_i32_0 : i32, i32
  }
  func.func @transform_2(%arg0: i32, %arg1: i32) -> (i32, i32) {
    %c0_i32 = arith.constant 0 : i32
    %c0_i32_0 = arith.constant 0 : i32
    %c0_i32_1 = arith.constant 0 : i32
    return %c0_i32, %c0_i32_0 : i32, i32
  }
  func.func @transform_3(%arg0: i32, %arg1: i32) -> (i32, i32, i32, i32) {
    %c0_i32 = arith.constant 0 : i32
    %c0_i32_0 = arith.constant 0 : i32
    %c0_i32_1 = arith.constant 0 : i32
    return %arg0, %arg1, %c0_i32, %c0_i32_0 : i32, i32, i32, i32
  }
}

module attributes {stable_mosaic.version = 11 : i64} {
  func.func @_conv_stats_kernel(%arg0: i32, %arg1: i32, %arg2: memref<1x1x18x18x128xbf16, #tpu.memory_space<vmem>>, %arg3: memref<9x128x128xbf16, #tpu.memory_space<vmem>>, %arg4: memref<1x1x256x128xf32, #tpu.memory_space<vmem>>, %arg5: memref<1x1x2x128xf32, #tpu.memory_space<vmem>>) attributes {dimension_semantics = [#tpu.dimension_semantics<parallel>, #tpu.dimension_semantics<parallel>], iteration_bounds = array<i64: 2, 1>, scalar_prefetch = 0 : i64, scratch_operands = 0 : i64, tpu.core_type = #tpu.core_type<tc>, window_params = [{transform_indices = @transform_0, window_bounds = array<i64: 1, 1, 18, 18, 128>}, {pipeline_mode = #tpu.pipeline_mode<synchronous>, transform_indices = @transform_1, window_bounds = array<i64: 9, 128, 128>}, {transform_indices = @transform_2, window_bounds = array<i64: 1, 1, 256, 128>}, {transform_indices = @transform_3, window_bounds = array<i64: 1, 1, 2, 128>}]} {
    %cst = arith.constant 0.000000e+00 : f32
    %0 = vector.broadcast %cst : f32 to vector<256x128xf32>
    %c0 = arith.constant 0 : index
    %c0_0 = arith.constant 0 : index
    %c0_1 = arith.constant 0 : index
    %c0_2 = arith.constant 0 : index
    %c0_3 = arith.constant 0 : index
    %1 = vector.load %arg2[%c0, %c0_0, %c0_1, %c0_2, %c0_3] : memref<1x1x18x18x128xbf16, #tpu.memory_space<vmem>>, vector<1x1x16x16x128xbf16>
    %2 = vector.shape_cast %1 : vector<1x1x16x16x128xbf16> to vector<16x16x128xbf16>
    %3 = vector.shape_cast %2 : vector<16x16x128xbf16> to vector<256x128xbf16>
    %c0_4 = arith.constant 0 : index
    %c0_5 = arith.constant 0 : index
    %c0_6 = arith.constant 0 : index
    %4 = vector.load %arg3[%c0_4, %c0_5, %c0_6] : memref<9x128x128xbf16, #tpu.memory_space<vmem>>, vector<1x128x128xbf16>
    %5 = vector.shape_cast %4 : vector<1x128x128xbf16> to vector<128x128xbf16>
    %cst_7 = arith.constant dense<0.000000e+00> : vector<256x128xf32>
    %6 = tpu.matmul %3, %5, %cst_7 {dimension_numbers = #tpu.dot_dimension_numbers<[1], [0], [0], [1], [0, 0, 1, 1], [], []>} : vector<256x128xbf16>, vector<128x128xbf16>, vector<256x128xf32> -> vector<256x128xf32>
    %7 = arith.addf %0, %6 : vector<256x128xf32>
    %c0_8 = arith.constant 0 : index
    %c0_9 = arith.constant 0 : index
    %c0_10 = arith.constant 0 : index
    %c1 = arith.constant 1 : index
    %c0_11 = arith.constant 0 : index
    %8 = vector.load %arg2[%c0_8, %c0_9, %c0_10, %c1, %c0_11] : memref<1x1x18x18x128xbf16, #tpu.memory_space<vmem>>, vector<1x1x16x16x128xbf16>
    %9 = vector.shape_cast %8 : vector<1x1x16x16x128xbf16> to vector<16x16x128xbf16>
    %10 = vector.shape_cast %9 : vector<16x16x128xbf16> to vector<256x128xbf16>
    %c1_12 = arith.constant 1 : index
    %c0_13 = arith.constant 0 : index
    %c0_14 = arith.constant 0 : index
    %11 = vector.load %arg3[%c1_12, %c0_13, %c0_14] : memref<9x128x128xbf16, #tpu.memory_space<vmem>>, vector<1x128x128xbf16>
    %12 = vector.shape_cast %11 : vector<1x128x128xbf16> to vector<128x128xbf16>
    %cst_15 = arith.constant dense<0.000000e+00> : vector<256x128xf32>
    %13 = tpu.matmul %10, %12, %cst_15 {dimension_numbers = #tpu.dot_dimension_numbers<[1], [0], [0], [1], [0, 0, 1, 1], [], []>} : vector<256x128xbf16>, vector<128x128xbf16>, vector<256x128xf32> -> vector<256x128xf32>
    %14 = arith.addf %7, %13 : vector<256x128xf32>
    %c0_16 = arith.constant 0 : index
    %c0_17 = arith.constant 0 : index
    %c0_18 = arith.constant 0 : index
    %c2 = arith.constant 2 : index
    %c0_19 = arith.constant 0 : index
    %15 = vector.load %arg2[%c0_16, %c0_17, %c0_18, %c2, %c0_19] : memref<1x1x18x18x128xbf16, #tpu.memory_space<vmem>>, vector<1x1x16x16x128xbf16>
    %16 = vector.shape_cast %15 : vector<1x1x16x16x128xbf16> to vector<16x16x128xbf16>
    %17 = vector.shape_cast %16 : vector<16x16x128xbf16> to vector<256x128xbf16>
    %c2_20 = arith.constant 2 : index
    %c0_21 = arith.constant 0 : index
    %c0_22 = arith.constant 0 : index
    %18 = vector.load %arg3[%c2_20, %c0_21, %c0_22] : memref<9x128x128xbf16, #tpu.memory_space<vmem>>, vector<1x128x128xbf16>
    %19 = vector.shape_cast %18 : vector<1x128x128xbf16> to vector<128x128xbf16>
    %cst_23 = arith.constant dense<0.000000e+00> : vector<256x128xf32>
    %20 = tpu.matmul %17, %19, %cst_23 {dimension_numbers = #tpu.dot_dimension_numbers<[1], [0], [0], [1], [0, 0, 1, 1], [], []>} : vector<256x128xbf16>, vector<128x128xbf16>, vector<256x128xf32> -> vector<256x128xf32>
    %21 = arith.addf %14, %20 : vector<256x128xf32>
    %c0_24 = arith.constant 0 : index
    %c0_25 = arith.constant 0 : index
    %c1_26 = arith.constant 1 : index
    %c0_27 = arith.constant 0 : index
    %c0_28 = arith.constant 0 : index
    %22 = vector.load %arg2[%c0_24, %c0_25, %c1_26, %c0_27, %c0_28] : memref<1x1x18x18x128xbf16, #tpu.memory_space<vmem>>, vector<1x1x16x16x128xbf16>
    %23 = vector.shape_cast %22 : vector<1x1x16x16x128xbf16> to vector<16x16x128xbf16>
    %24 = vector.shape_cast %23 : vector<16x16x128xbf16> to vector<256x128xbf16>
    %c3 = arith.constant 3 : index
    %c0_29 = arith.constant 0 : index
    %c0_30 = arith.constant 0 : index
    %25 = vector.load %arg3[%c3, %c0_29, %c0_30] : memref<9x128x128xbf16, #tpu.memory_space<vmem>>, vector<1x128x128xbf16>
    %26 = vector.shape_cast %25 : vector<1x128x128xbf16> to vector<128x128xbf16>
    %cst_31 = arith.constant dense<0.000000e+00> : vector<256x128xf32>
    %27 = tpu.matmul %24, %26, %cst_31 {dimension_numbers = #tpu.dot_dimension_numbers<[1], [0], [0], [1], [0, 0, 1, 1], [], []>} : vector<256x128xbf16>, vector<128x128xbf16>, vector<256x128xf32> -> vector<256x128xf32>
    %28 = arith.addf %21, %27 : vector<256x128xf32>
    %c0_32 = arith.constant 0 : index
    %c0_33 = arith.constant 0 : index
    %c1_34 = arith.constant 1 : index
    %c1_35 = arith.constant 1 : index
    %c0_36 = arith.constant 0 : index
    %29 = vector.load %arg2[%c0_32, %c0_33, %c1_34, %c1_35, %c0_36] : memref<1x1x18x18x128xbf16, #tpu.memory_space<vmem>>, vector<1x1x16x16x128xbf16>
    %30 = vector.shape_cast %29 : vector<1x1x16x16x128xbf16> to vector<16x16x128xbf16>
    %31 = vector.shape_cast %30 : vector<16x16x128xbf16> to vector<256x128xbf16>
    %c4 = arith.constant 4 : index
    %c0_37 = arith.constant 0 : index
    %c0_38 = arith.constant 0 : index
    %32 = vector.load %arg3[%c4, %c0_37, %c0_38] : memref<9x128x128xbf16, #tpu.memory_space<vmem>>, vector<1x128x128xbf16>
    %33 = vector.shape_cast %32 : vector<1x128x128xbf16> to vector<128x128xbf16>
    %cst_39 = arith.constant dense<0.000000e+00> : vector<256x128xf32>
    %34 = tpu.matmul %31, %33, %cst_39 {dimension_numbers = #tpu.dot_dimension_numbers<[1], [0], [0], [1], [0, 0, 1, 1], [], []>} : vector<256x128xbf16>, vector<128x128xbf16>, vector<256x128xf32> -> vector<256x128xf32>
    %35 = arith.addf %28, %34 : vector<256x128xf32>
    %c0_40 = arith.constant 0 : index
    %c0_41 = arith.constant 0 : index
    %c1_42 = arith.constant 1 : index
    %c2_43 = arith.constant 2 : index
    %c0_44 = arith.constant 0 : index
    %36 = vector.load %arg2[%c0_40, %c0_41, %c1_42, %c2_43, %c0_44] : memref<1x1x18x18x128xbf16, #tpu.memory_space<vmem>>, vector<1x1x16x16x128xbf16>
    %37 = vector.shape_cast %36 : vector<1x1x16x16x128xbf16> to vector<16x16x128xbf16>
    %38 = vector.shape_cast %37 : vector<16x16x128xbf16> to vector<256x128xbf16>
    %c5 = arith.constant 5 : index
    %c0_45 = arith.constant 0 : index
    %c0_46 = arith.constant 0 : index
    %39 = vector.load %arg3[%c5, %c0_45, %c0_46] : memref<9x128x128xbf16, #tpu.memory_space<vmem>>, vector<1x128x128xbf16>
    %40 = vector.shape_cast %39 : vector<1x128x128xbf16> to vector<128x128xbf16>
    %cst_47 = arith.constant dense<0.000000e+00> : vector<256x128xf32>
    %41 = tpu.matmul %38, %40, %cst_47 {dimension_numbers = #tpu.dot_dimension_numbers<[1], [0], [0], [1], [0, 0, 1, 1], [], []>} : vector<256x128xbf16>, vector<128x128xbf16>, vector<256x128xf32> -> vector<256x128xf32>
    %42 = arith.addf %35, %41 : vector<256x128xf32>
    %c0_48 = arith.constant 0 : index
    %c0_49 = arith.constant 0 : index
    %c2_50 = arith.constant 2 : index
    %c0_51 = arith.constant 0 : index
    %c0_52 = arith.constant 0 : index
    %43 = vector.load %arg2[%c0_48, %c0_49, %c2_50, %c0_51, %c0_52] : memref<1x1x18x18x128xbf16, #tpu.memory_space<vmem>>, vector<1x1x16x16x128xbf16>
    %44 = vector.shape_cast %43 : vector<1x1x16x16x128xbf16> to vector<16x16x128xbf16>
    %45 = vector.shape_cast %44 : vector<16x16x128xbf16> to vector<256x128xbf16>
    %c6 = arith.constant 6 : index
    %c0_53 = arith.constant 0 : index
    %c0_54 = arith.constant 0 : index
    %46 = vector.load %arg3[%c6, %c0_53, %c0_54] : memref<9x128x128xbf16, #tpu.memory_space<vmem>>, vector<1x128x128xbf16>
    %47 = vector.shape_cast %46 : vector<1x128x128xbf16> to vector<128x128xbf16>
    %cst_55 = arith.constant dense<0.000000e+00> : vector<256x128xf32>
    %48 = tpu.matmul %45, %47, %cst_55 {dimension_numbers = #tpu.dot_dimension_numbers<[1], [0], [0], [1], [0, 0, 1, 1], [], []>} : vector<256x128xbf16>, vector<128x128xbf16>, vector<256x128xf32> -> vector<256x128xf32>
    %49 = arith.addf %42, %48 : vector<256x128xf32>
    %c0_56 = arith.constant 0 : index
    %c0_57 = arith.constant 0 : index
    %c2_58 = arith.constant 2 : index
    %c1_59 = arith.constant 1 : index
    %c0_60 = arith.constant 0 : index
    %50 = vector.load %arg2[%c0_56, %c0_57, %c2_58, %c1_59, %c0_60] : memref<1x1x18x18x128xbf16, #tpu.memory_space<vmem>>, vector<1x1x16x16x128xbf16>
    %51 = vector.shape_cast %50 : vector<1x1x16x16x128xbf16> to vector<16x16x128xbf16>
    %52 = vector.shape_cast %51 : vector<16x16x128xbf16> to vector<256x128xbf16>
    %c7 = arith.constant 7 : index
    %c0_61 = arith.constant 0 : index
    %c0_62 = arith.constant 0 : index
    %53 = vector.load %arg3[%c7, %c0_61, %c0_62] : memref<9x128x128xbf16, #tpu.memory_space<vmem>>, vector<1x128x128xbf16>
    %54 = vector.shape_cast %53 : vector<1x128x128xbf16> to vector<128x128xbf16>
    %cst_63 = arith.constant dense<0.000000e+00> : vector<256x128xf32>
    %55 = tpu.matmul %52, %54, %cst_63 {dimension_numbers = #tpu.dot_dimension_numbers<[1], [0], [0], [1], [0, 0, 1, 1], [], []>} : vector<256x128xbf16>, vector<128x128xbf16>, vector<256x128xf32> -> vector<256x128xf32>
    %56 = arith.addf %49, %55 : vector<256x128xf32>
    %c0_64 = arith.constant 0 : index
    %c0_65 = arith.constant 0 : index
    %c2_66 = arith.constant 2 : index
    %c2_67 = arith.constant 2 : index
    %c0_68 = arith.constant 0 : index
    %57 = vector.load %arg2[%c0_64, %c0_65, %c2_66, %c2_67, %c0_68] : memref<1x1x18x18x128xbf16, #tpu.memory_space<vmem>>, vector<1x1x16x16x128xbf16>
    %58 = vector.shape_cast %57 : vector<1x1x16x16x128xbf16> to vector<16x16x128xbf16>
    %59 = vector.shape_cast %58 : vector<16x16x128xbf16> to vector<256x128xbf16>
    %c8 = arith.constant 8 : index
    %c0_69 = arith.constant 0 : index
    %c0_70 = arith.constant 0 : index
    %60 = vector.load %arg3[%c8, %c0_69, %c0_70] : memref<9x128x128xbf16, #tpu.memory_space<vmem>>, vector<1x128x128xbf16>
    %61 = vector.shape_cast %60 : vector<1x128x128xbf16> to vector<128x128xbf16>
    %cst_71 = arith.constant dense<0.000000e+00> : vector<256x128xf32>
    %62 = tpu.matmul %59, %61, %cst_71 {dimension_numbers = #tpu.dot_dimension_numbers<[1], [0], [0], [1], [0, 0, 1, 1], [], []>} : vector<256x128xbf16>, vector<128x128xbf16>, vector<256x128xf32> -> vector<256x128xf32>
    %63 = arith.addf %56, %62 : vector<256x128xf32>
    %c0_72 = arith.constant 0 : index
    %c0_73 = arith.constant 0 : index
    %c0_74 = arith.constant 0 : index
    %c0_75 = arith.constant 0 : index
    %64 = vector.load %arg4[%c0_72, %c0_73, %c0_74, %c0_75] : memref<1x1x256x128xf32, #tpu.memory_space<vmem>>, vector<1x1x256x128xf32>
    %65 = vector.shape_cast %64 : vector<1x1x256x128xf32> to vector<256x128xf32>
    %66 = vector.shape_cast %63 : vector<256x128xf32> to vector<1x1x256x128xf32>
    tpu.vector_store %arg4[%c0_72, %c0_73, %c0_74, %c0_75], %66 {strides = array<i32>} : memref<1x1x256x128xf32, #tpu.memory_space<vmem>>, vector<1x1x256x128xf32>,
    %cst_76 = arith.constant dense<0.000000e+00> : vector<128xf32>
    %67 = vector.multi_reduction <add>, %63, %cst_76 [0] : vector<256x128xf32> to vector<128xf32>
    %68 = vector.shape_cast %67 : vector<128xf32> to vector<1x128xf32>
    %69 = arith.mulf %63, %63 : vector<256x128xf32>
    %cst_77 = arith.constant dense<0.000000e+00> : vector<128xf32>
    %70 = vector.multi_reduction <add>, %69, %cst_77 [0] : vector<256x128xf32> to vector<128xf32>
    %71 = vector.shape_cast %70 : vector<128xf32> to vector<1x128xf32>
    %72 = tpu.concatenate %68, %71 in 0 : vector<1x128xf32>, vector<1x128xf32> -> vector<2x128xf32>
    %c0_78 = arith.constant 0 : index
    %c0_79 = arith.constant 0 : index
    %c0_80 = arith.constant 0 : index
    %c0_81 = arith.constant 0 : index
    %73 = vector.load %arg5[%c0_78, %c0_79, %c0_80, %c0_81] : memref<1x1x2x128xf32, #tpu.memory_space<vmem>>, vector<1x1x2x128xf32>
    %74 = vector.shape_cast %73 : vector<1x1x2x128xf32> to vector<2x128xf32>
    %75 = vector.shape_cast %72 : vector<2x128xf32> to vector<1x1x2x128xf32>
    tpu.vector_store %arg5[%c0_78, %c0_79, %c0_80, %c0_81], %75 {strides = array<i32>} : memref<1x1x2x128xf32, #tpu.memory_space<vmem>>, vector<1x1x2x128xf32>,
    return
  }
  func.func @transform_0(%arg0: i32, %arg1: i32) -> (i32, i32, i32, i32, i32) {
    %c0_i32 = arith.constant 0 : i32
    %c0_i32_0 = arith.constant 0 : i32
    %c0_i32_1 = arith.constant 0 : i32
    %c0_i32_2 = arith.constant 0 : i32
    return %arg0, %arg1, %c0_i32, %c0_i32_0, %c0_i32_1 : i32, i32, i32, i32, i32
  }
  func.func @transform_1(%arg0: i32, %arg1: i32) -> (i32, i32, i32) {
    %c0_i32 = arith.constant 0 : i32
    %c0_i32_0 = arith.constant 0 : i32
    %c0_i32_1 = arith.constant 0 : i32
    %c0_i32_2 = arith.constant 0 : i32
    return %c0_i32, %c0_i32_0, %c0_i32_1 : i32, i32, i32
  }
  func.func @transform_2(%arg0: i32, %arg1: i32) -> (i32, i32, i32, i32) {
    %c0_i32 = arith.constant 0 : i32
    %c0_i32_0 = arith.constant 0 : i32
    %c0_i32_1 = arith.constant 0 : i32
    return %arg0, %arg1, %c0_i32, %c0_i32_0 : i32, i32, i32, i32
  }
  func.func @transform_3(%arg0: i32, %arg1: i32) -> (i32, i32, i32, i32) {
    %c0_i32 = arith.constant 0 : i32
    %c0_i32_0 = arith.constant 0 : i32
    %c0_i32_1 = arith.constant 0 : i32
    return %arg0, %arg1, %c0_i32, %c0_i32_0 : i32, i32, i32, i32
  }
}

module attributes {stable_mosaic.version = 11 : i64} {
  func.func @_bn_relu_kernel(%arg0: i32, %arg1: i32, %arg2: memref<1x1x256x128xf32, #tpu.memory_space<vmem>>, %arg3: memref<1x128xf32, #tpu.memory_space<vmem>>, %arg4: memref<1x128xf32, #tpu.memory_space<vmem>>, %arg5: memref<1x1x256x128xf32, #tpu.memory_space<vmem>>) attributes {dimension_semantics = [#tpu.dimension_semantics<parallel>, #tpu.dimension_semantics<parallel>], iteration_bounds = array<i64: 2, 1>, scalar_prefetch = 0 : i64, scratch_operands = 0 : i64, tpu.core_type = #tpu.core_type<tc>, window_params = [{transform_indices = @transform_0, window_bounds = array<i64: 1, 1, 256, 128>}, {pipeline_mode = #tpu.pipeline_mode<synchronous>, transform_indices = @transform_1, window_bounds = array<i64: 1, 128>}, {pipeline_mode = #tpu.pipeline_mode<synchronous>, transform_indices = @transform_2, window_bounds = array<i64: 1, 128>}, {transform_indices = @transform_3, window_bounds = array<i64: 1, 1, 256, 128>}]} {
    %c0 = arith.constant 0 : index
    %c0_0 = arith.constant 0 : index
    %c0_1 = arith.constant 0 : index
    %c0_2 = arith.constant 0 : index
    %0 = vector.load %arg2[%c0, %c0_0, %c0_1, %c0_2] : memref<1x1x256x128xf32, #tpu.memory_space<vmem>>, vector<1x1x256x128xf32>
    %1 = vector.shape_cast %0 : vector<1x1x256x128xf32> to vector<256x128xf32>
    %c0_3 = arith.constant 0 : index
    %c0_4 = arith.constant 0 : index
    %2 = vector.load %arg3[%c0_3, %c0_4] : memref<1x128xf32, #tpu.memory_space<vmem>>, vector<1x128xf32>
    %3 = vector.broadcast %2 : vector<1x128xf32> to vector<256x128xf32>
    %4 = arith.mulf %1, %3 : vector<256x128xf32>
    %c0_5 = arith.constant 0 : index
    %c0_6 = arith.constant 0 : index
    %5 = vector.load %arg4[%c0_5, %c0_6] : memref<1x128xf32, #tpu.memory_space<vmem>>, vector<1x128xf32>
    %6 = vector.broadcast %5 : vector<1x128xf32> to vector<256x128xf32>
    %7 = arith.addf %4, %6 : vector<256x128xf32>
    %cst = arith.constant 0.000000e+00 : f32
    %8 = vector.broadcast %cst : f32 to vector<256x128xf32>
    %9 = arith.maximumf %7, %8 : vector<256x128xf32>
    %c0_7 = arith.constant 0 : index
    %c0_8 = arith.constant 0 : index
    %c0_9 = arith.constant 0 : index
    %c0_10 = arith.constant 0 : index
    %10 = vector.load %arg5[%c0_7, %c0_8, %c0_9, %c0_10] : memref<1x1x256x128xf32, #tpu.memory_space<vmem>>, vector<1x1x256x128xf32>
    %11 = vector.shape_cast %10 : vector<1x1x256x128xf32> to vector<256x128xf32>
    %12 = vector.shape_cast %9 : vector<256x128xf32> to vector<1x1x256x128xf32>
    tpu.vector_store %arg5[%c0_7, %c0_8, %c0_9, %c0_10], %12 {strides = array<i32>} : memref<1x1x256x128xf32, #tpu.memory_space<vmem>>, vector<1x1x256x128xf32>,
    return
  }
  func.func @transform_0(%arg0: i32, %arg1: i32) -> (i32, i32, i32, i32) {
    %c0_i32 = arith.constant 0 : i32
    %c0_i32_0 = arith.constant 0 : i32
    %c0_i32_1 = arith.constant 0 : i32
    return %arg0, %arg1, %c0_i32, %c0_i32_0 : i32, i32, i32, i32
  }
  func.func @transform_1(%arg0: i32, %arg1: i32) -> (i32, i32) {
    %c0_i32 = arith.constant 0 : i32
    %c0_i32_0 = arith.constant 0 : i32
    %c0_i32_1 = arith.constant 0 : i32
    return %c0_i32, %c0_i32_0 : i32, i32
  }
  func.func @transform_2(%arg0: i32, %arg1: i32) -> (i32, i32) {
    %c0_i32 = arith.constant 0 : i32
    %c0_i32_0 = arith.constant 0 : i32
    %c0_i32_1 = arith.constant 0 : i32
    return %c0_i32, %c0_i32_0 : i32, i32
  }
  func.func @transform_3(%arg0: i32, %arg1: i32) -> (i32, i32, i32, i32) {
    %c0_i32 = arith.constant 0 : i32
    %c0_i32_0 = arith.constant 0 : i32
    %c0_i32_1 = arith.constant 0 : i32
    return %arg0, %arg1, %c0_i32, %c0_i32_0 : i32, i32, i32, i32
  }
}

</mosaic_0001>

<bundles_post_ra>
// kernel: double_conv.7
= control target key start
LH: loop header
LB: loop body
LE: loop exit
PB: predicated region body
PF: predicated region fallthrough
CT: control target
= control target key end

     0   :  { %s556_s12 = smov 0   ;;  %s558_s13 = smov 0   ;;  %s731_s0 = inlined_call_operand.vmem [shape: f32[2,1,256,128], index: 0, kind: input, shape index: {}]   ;;  %s732_s1 = inlined_call_operand.vmem [shape: f32[1,128], index: 1, kind: input, shape index: {}]   ;;  %s733_s2 = inlined_call_operand.vmem [shape: f32[1,128], index: 2, kind: input, shape index: {}]   ;;  %s734_s3 = inlined_call_operand.vmem [shape: f32[2,1,256,128], index: 3, kind: output, shape index: {}]  }
   0x1   :  { %s560_s14 = smov 0  }
   0x2 LB: > { %s25_s15 = sadd.s32 1, %s530_s13  ;;  %p477_p0 = scmp.ge.s32.totalorder %s534_s14, 1  ;;  %s534_s14 = sphi %s560_s14, %s13_s14   ;;  %s530_s13 = sphi %s558_s13, %s736_s13   ;;  %s526_s12 = sphi %s556_s12, %s735_s12  }
   0x3   : > { %p27_p1 = scmp.ge.s32.totalorder %s25_s15, 2  ;;  %p157_p2 = scmp.lt.s32.totalorder %s534_s14, 3 }
   0x5   : > { %s738_s15 = smov (%p27_p1, %s25_s15), 0  ;;  %p158_p3 = pnand %p477_p0, %p157_p2 }
   0x6   : > { %p189_p4 = scmp.lt.s32.totalorder (!%p158_p3), %s526_s12, 1  ;;  %v577_v0 = vld [vmem:[%s732_s1] ss:$0 sm:$0xff] (!%p158_p3) }
   0x7   : > { %161 = sbr.rel (%p158_p3) target bundleno = 47 (0x2f), region = 32  ;;  %v587_v1 = vld [vmem:[%s733_s2] ss:$0 sm:$0xff] (!%p158_p3) }
   0xe   : > { %s740_s12 = smov (!%p189_p4, %s526_s12), 1 }
   0xf   : > { %s486_s16 = sshll.u32 %s740_s12, 8 }
  0x10   : > { %s582_s21 = scalar_lea.vmem %s731_s0, %s486_s16  ;;  %s610_s26 = scalar_lea.vmem %s734_s3, %s486_s16 }
  0x11   : > { %v207_v2 = vld [vmem:[%s582_s21] sm:$0xff]  ;;  %v208_v3 = vld [vmem:[%s582_s21 + $0x8] sm:$0xff]  ;;  %v209_v4 = vld [vmem:[%s582_s21 + $0x10] sm:$0xff] }
  0x12   : > { %v246_v5 = vmul.f32 %v577_v0, %v207_v2  ;;  %v247_v6 = vmul.f32 %v577_v0, %v208_v3  ;;  %v248_v7 = vmul.f32 %v577_v0, %v209_v4  ;;  %v210_v8 = vld [vmem:[%s582_s21 + $0x18] sm:$0xff]  ;;  %v211_v9 = vld [vmem:[%s582_s21 + $0x20] sm:$0xff]  ;;  %v212_v10 = vld [vmem:[%s582_s21 + $0x28] sm:$0xff] }
  0x13   : > { %v249_v11 = vmul.f32 %v577_v0, %v210_v8  ;;  %v250_v12 = vmul.f32 %v577_v0, %v211_v9  ;;  %v251_v13 = vmul.f32 %v577_v0, %v212_v10  ;;  %v213_v14 = vld [vmem:[%s582_s21 + $0x30] sm:$0xff]  ;;  %v214_v15 = vld [vmem:[%s582_s21 + $0x38] sm:$0xff]  ;;  %v215_v24 = vld [vmem:[%s582_s21 + $0x40] sm:$0xff] }
  0x14   : > { %v285_v16 = vadd.f32 %v587_v1, %v246_v5  ;;  %v286_v17 = vadd.f32 %v587_v1, %v247_v6  ;;  %v287_v18 = vadd.f32 %v587_v1, %v248_v7  ;;  %v252_v19 = vmul.f32 %v577_v0, %v213_v14  ;;  %v216_v25 = vld [vmem:[%s582_s21 + $0x48] sm:$0xff]  ;;  %v217_v26 = vld [vmem:[%s582_s21 + $0x50] sm:$0xff]  ;;  %v218_v31 = vld [vmem:[%s582_s21 + $0x58] sm:$0xff] }
  0x15   : > { %v288_v20 = vadd.f32 %v587_v1, %v249_v11  ;;  %v289_v21 = vadd.f32 %v587_v1, %v250_v12  ;;  %v290_v22 = vadd.f32 %v587_v1, %v251_v13  ;;  %v253_v23 = vmul.f32 %v577_v0, %v214_v15  ;;  %v219_v32 = vld [vmem:[%s582_s21 + $0x60] sm:$0xff]  ;;  %v220_v33 = vld [vmem:[%s582_s21 + $0x68] sm:$0xff]  ;;  %v221_v38 = vld [vmem:[%s582_s21 + $0x70] sm:$0xff] }
  0x16   : > { %v317_v27 = vmax.f32 %v285_v16, 0.0  ;;  %v318_v28 = vmax.f32 %v286_v17, 0.0  ;;  %v319_v29 = vmax.f32 %v287_v18, 0.0  ;;  %v291_v30 = vadd.f32 %v587_v1, %v252_v19  ;;  %v222_v43 = vld [vmem:[%s582_s21 + $0x78] sm:$0xff]  ;;  %v223_v56 = vld [vmem:[%s582_s21 + $0x80] sm:$0xff]  ;;  %v224_v57 = vld [vmem:[%s582_s21 + $0x88] sm:$0xff] }
  0x17   : > { %v320_v34 = vmax.f32 %v288_v20, 0.0  ;;  %v321_v35 = vmax.f32 %v289_v21, 0.0  ;;  %v322_v36 = vmax.f32 %v290_v22, 0.0  ;;  %v292_v37 = vadd.f32 %v587_v1, %v253_v23  ;;  %v225_v58 = vld [vmem:[%s582_s21 + $0x90] sm:$0xff]  ;;  %v226_v63 = vld [vmem:[%s582_s21 + $0x98] sm:$0xff]  ;;  %v227_v2 = vld [vmem:[%s582_s21 + $0xa0] sm:$0xff] }
  0x18   : > { %349 = vst [vmem:[%s610_s26] sm:$0xff] %v317_v27  ;;  %350 = vst [vmem:[%s610_s26 + $0x8] sm:$0xff] %v318_v28  ;;  %v323_v39 = vmax.f32 %v291_v30, 0.0  ;;  %v254_v40 = vmul.f32 %v577_v0, %v215_v24  ;;  %v255_v41 = vmul.f32 %v577_v0, %v216_v25  ;;  %v256_v42 = vmul.f32 %v577_v0, %v217_v26  ;;  %v228_v3 = vld [vmem:[%s582_s21 + $0xa8] sm:$0xff]  ;;  %v229_v8 = vld [vmem:[%s582_s21 + $0xb0] sm:$0xff] }
  0x19   : > { %351 = vst [vmem:[%s610_s26 + $0x10] sm:$0xff] %v319_v29  ;;  %352 = vst [vmem:[%s610_s26 + $0x18] sm:$0xff] %v320_v34  ;;  %v324_v44 = vmax.f32 %v292_v37, 0.0  ;;  %v257_v45 = vmul.f32 %v577_v0, %v218_v31  ;;  %v258_v46 = vmul.f32 %v577_v0, %v219_v32  ;;  %v259_v47 = vmul.f32 %v577_v0, %v220_v33  ;;  %v230_v13 = vld [vmem:[%s582_s21 + $0xb8] sm:$0xff]  ;;  %v231_v26 = vld [vmem:[%s582_s21 + $0xc0] sm:$0xff] }
  0x1a   : > { %353 = vst [vmem:[%s610_s26 + $0x20] sm:$0xff] %v321_v35  ;;  %354 = vst [vmem:[%s610_s26 + $0x28] sm:$0xff] %v322_v36  ;;  %v293_v48 = vadd.f32 %v587_v1, %v254_v40  ;;  %v294_v49 = vadd.f32 %v587_v1, %v255_v41  ;;  %v295_v50 = vadd.f32 %v587_v1, %v256_v42  ;;  %v232_v27 = vld [vmem:[%s582_s21 + $0xc8] sm:$0xff]  ;;  %v233_v28 = vld [vmem:[%s582_s21 + $0xd0] sm:$0xff] }
  0x1b   : > { %355 = vst [vmem:[%s610_s26 + $0x30] sm:$0xff] %v323_v39  ;;  %v260_v51 = vmul.f32 %v577_v0, %v221_v38  ;;  %356 = vst [vmem:[%s610_s26 + $0x38] sm:$0xff] %v324_v44  ;;  %v296_v52 = vadd.f32 %v587_v1, %v257_v45  ;;  %v297_v53 = vadd.f32 %v587_v1, %v258_v46  ;;  %v234_v33 = vld [vmem:[%s582_s21 + $0xd8] sm:$0xff]  ;;  %v235_v34 = vld [vmem:[%s582_s21 + $0xe0] sm:$0xff] }
  0x1c   : > { %v298_v54 = vadd.f32 %v587_v1, %v259_v47  ;;  %v261_v55 = vmul.f32 %v577_v0, %v222_v43  ;;  %v325_v59 = vmax.f32 %v293_v48, 0.0  ;;  %v326_v60 = vmax.f32 %v294_v49, 0.0  ;;  %v236_v35 = vld [vmem:[%s582_s21 + $0xe8] sm:$0xff]  ;;  %v237_v40 = vld [vmem:[%s582_s21 + $0xf0] sm:$0xff]  ;;  %v238_v45 = vld [vmem:[%s582_s21 + $0xf8] sm:$0xff] }
  0x1d   : > { %v327_v61 = vmax.f32 %v295_v50, 0.0  ;;  %v299_v62 = vadd.f32 %v587_v1, %v260_v51  ;;  %v328_v4 = vmax.f32 %v296_v52, 0.0  ;;  %v329_v5 = vmax.f32 %v297_v53, 0.0 }
  0x1e   : > { %v330_v6 = vmax.f32 %v298_v54, 0.0  ;;  %v300_v7 = vadd.f32 %v587_v1, %v261_v55  ;;  %357 = vst [vmem:[%s610_s26 + $0x40] sm:$0xff] %v325_v59  ;;  %358 = vst [vmem:[%s610_s26 + $0x48] sm:$0xff] %v326_v60  ;;  %v262_v10 = vmul.f32 %v577_v0, %v223_v56  ;;  %v263_v11 = vmul.f32 %v577_v0, %v224_v57 }
  0x1f   : > { %359 = vst [vmem:[%s610_s26 + $0x50] sm:$0xff] %v327_v61  ;;  %v331_v9 = vmax.f32 %v299_v62, 0.0  ;;  %v264_v12 = vmul.f32 %v577_v0, %v225_v58  ;;  %360 = vst [vmem:[%s610_s26 + $0x58] sm:$0xff] %v328_v4  ;;  %v265_v15 = vmul.f32 %v577_v0, %v226_v63  ;;  %v266_v16 = vmul.f32 %v577_v0, %v227_v2 }
  0x20   : > { %361 = vst [vmem:[%s610_s26 + $0x60] sm:$0xff] %v329_v5  ;;  %362 = vst [vmem:[%s610_s26 + $0x68] sm:$0xff] %v330_v6  ;;  %v332_v14 = vmax.f32 %v300_v7, 0.0  ;;  %v267_v17 = vmul.f32 %v577_v0, %v228_v3  ;;  %v301_v18 = vadd.f32 %v587_v1, %v262_v10  ;;  %v302_v19 = vadd.f32 %v587_v1, %v263_v11 }
  0x21   : > { %363 = vst [vmem:[%s610_s26 + $0x70] sm:$0xff] %v331_v9  ;;  %v303_v20 = vadd.f32 %v587_v1, %v264_v12  ;;  %v268_v21 = vmul.f32 %v577_v0, %v229_v8  ;;  %v304_v22 = vadd.f32 %v587_v1, %v265_v15  ;;  %v305_v23 = vadd.f32 %v587_v1, %v266_v16 }
  0x22   : > { %364 = vst [vmem:[%s610_s26 + $0x78] sm:$0xff] %v332_v14  ;;  %v306_v24 = vadd.f32 %v587_v1, %v267_v17  ;;  %v269_v25 = vmul.f32 %v577_v0, %v230_v13  ;;  %v333_v29 = vmax.f32 %v301_v18, 0.0  ;;  %v334_v30 = vmax.f32 %v302_v19, 0.0 }
  0x23   : > { %v335_v31 = vmax.f32 %v303_v20, 0.0  ;;  %v307_v32 = vadd.f32 %v587_v1, %v268_v21  ;;  %v336_v36 = vmax.f32 %v304_v22, 0.0  ;;  %v337_v37 = vmax.f32 %v305_v23, 0.0 }
  0x24   : > { %v338_v38 = vmax.f32 %v306_v24, 0.0  ;;  %v308_v39 = vadd.f32 %v587_v1, %v269_v25  ;;  %365 = vst [vmem:[%s610_s26 + $0x80] sm:$0xff] %v333_v29  ;;  %366 = vst [vmem:[%s610_s26 + $0x88] sm:$0xff] %v334_v30  ;;  %v270_v42 = vmul.f32 %v577_v0, %v231_v26  ;;  %v271_v43 = vmul.f32 %v577_v0, %v232_v27 }
  0x25   : > { %367 = vst [vmem:[%s610_s26 + $0x90] sm:$0xff] %v335_v31  ;;  %v339_v41 = vmax.f32 %v307_v32, 0.0  ;;  %v272_v44 = vmul.f32 %v577_v0, %v233_v28  ;;  %368 = vst [vmem:[%s610_s26 + $0x98] sm:$0xff] %v336_v36  ;;  %v273_v47 = vmul.f32 %v577_v0, %v234_v33  ;;  %v274_v48 = vmul.f32 %v577_v0, %v235_v34 }
  0x26   : > { %369 = vst [vmem:[%s610_s26 + $0xa0] sm:$0xff] %v337_v37  ;;  %370 = vst [vmem:[%s610_s26 + $0xa8] sm:$0xff] %v338_v38  ;;  %v340_v46 = vmax.f32 %v308_v39, 0.0  ;;  %v275_v49 = vmul.f32 %v577_v0, %v236_v35  ;;  %v309_v50 = vadd.f32 %v587_v1, %v270_v42  ;;  %v310_v51 = vadd.f32 %v587_v1, %v271_v43 }
  0x27   : > { %371 = vst [vmem:[%s610_s26 + $0xb0] sm:$0xff] %v339_v41  ;;  %v311_v52 = vadd.f32 %v587_v1, %v272_v44  ;;  %v276_v53 = vmul.f32 %v577_v0, %v237_v40  ;;  %v312_v54 = vadd.f32 %v587_v1, %v273_v47  ;;  %v313_v55 = vadd.f32 %v587_v1, %v274_v48 }
  0x28   : > { %372 = vst [vmem:[%s610_s26 + $0xb8] sm:$0xff] %v340_v46  ;;  %v314_v56 = vadd.f32 %v587_v1, %v275_v49  ;;  %v277_v57 = vmul.f32 %v577_v0, %v238_v45  ;;  %v341_v58 = vmax.f32 %v309_v50, 0.0  ;;  %v342_v59 = vmax.f32 %v310_v51, 0.0 }
  0x29   : > { %v343_v60 = vmax.f32 %v311_v52, 0.0  ;;  %v315_v61 = vadd.f32 %v587_v1, %v276_v53  ;;  %v344_v62 = vmax.f32 %v312_v54, 0.0  ;;  %v345_v63 = vmax.f32 %v313_v55, 0.0 }
  0x2a   : > { %v346_v2 = vmax.f32 %v314_v56, 0.0  ;;  %v316_v3 = vadd.f32 %v587_v1, %v277_v57  ;;  %373 = vst [vmem:[%s610_s26 + $0xc0] sm:$0xff] %v341_v58  ;;  %374 = vst [vmem:[%s610_s26 + $0xc8] sm:$0xff] %v342_v59 }
  0x2b   : > { %375 = vst [vmem:[%s610_s26 + $0xd0] sm:$0xff] %v343_v60  ;;  %v347_v4 = vmax.f32 %v315_v61, 0.0  ;;  %376 = vst [vmem:[%s610_s26 + $0xd8] sm:$0xff] %v344_v62 }
  0x2c   : > { %377 = vst [vmem:[%s610_s26 + $0xe0] sm:$0xff] %v345_v63  ;;  %378 = vst [vmem:[%s610_s26 + $0xe8] sm:$0xff] %v346_v2  ;;  %v348_v0 = vmax.f32 %v316_v3, 0.0 }
  0x2d   : > { %379 = vst [vmem:[%s610_s26 + $0xf0] sm:$0xff] %v347_v4 }
  0x2e   : > { %380 = vst [vmem:[%s610_s26 + $0xf8] sm:$0xff] %v348_v0 }
  0x2f PF: > { %s13_s14 = sadd.s32 1, %s534_s14   ;;  %s735_s12 = smov %s530_s13 }
  0x30   : > { %p10_p5 = scmp.ge.s32.totalorder %s13_s14, 4   ;;  %s736_s13 = smov %s738_s15 }
  0x32   :  { %12 = sbr.rel (!%p10_p5) target bundleno = 2 (0x2), region = 62 }

// kernel: double_conv.5
= control target key start
LH: loop header
LB: loop body
LE: loop exit
PB: predicated region body
PF: predicated region fallthrough
CT: control target
= control target key end

     0   :  { %s843_s12 = smov 0   ;;  %s845_s13 = smov 0   ;;  %s1006_s0 = inlined_call_operand.vmem [shape: f32[2,1,256,128], index: 0, kind: input, shape index: {}]   ;;  %s1007_s1 = inlined_call_operand.vmem [shape: f32[1,128], index: 1, kind: input, shape index: {}]   ;;  %s1008_s2 = inlined_call_operand.vmem [shape: f32[1,128], index: 2, kind: input, shape index: {}]   ;;  %s1009_s3 = inlined_call_operand.vmem [shape: bf16[2,1,256,128], index: 3, kind: output, shape index: {}]  }
   0x1   :  { %s847_s14 = smov 0  }
   0x2 LB: > { %s25_s15 = sadd.s32 1, %s817_s13  ;;  %p605_p0 = scmp.ge.s32.totalorder %s821_s14, 1  ;;  %s821_s14 = sphi %s847_s14, %s13_s14   ;;  %s817_s13 = sphi %s845_s13, %s1011_s13   ;;  %s813_s12 = sphi %s843_s12, %s1010_s12  }
   0x3   : > { %p27_p1 = scmp.ge.s32.totalorder %s25_s15, 2  ;;  %p157_p2 = scmp.lt.s32.totalorder %s821_s14, 3 }
   0x5   : > { %s1013_s15 = smov (%p27_p1, %s25_s15), 0  ;;  %p158_p3 = pnand %p605_p0, %p157_p2 }
   0x6   : > { %p189_p4 = scmp.lt.s32.totalorder (!%p158_p3), %s813_s12, 1  ;;  %v867_v0 = vld [vmem:[%s1007_s1] ss:$0 sm:$0xff] (!%p158_p3) }
   0x7   : > { %161 = sbr.rel (%p158_p3) target bundleno = 52 (0x34), region = 32  ;;  %v877_v1 = vld [vmem:[%s1008_s2] ss:$0 sm:$0xff] (!%p158_p3) }
   0xe   : > { %s1015_s12 = smov (!%p189_p4, %s813_s12), 1 }
   0xf   : > { %s646_s16 = sshll.u32 %s1015_s12, 8  ;;  %s647_s24 = sshll.u32 %s1015_s12, 7 }
  0x10   : > { %s872_s21 = scalar_lea.vmem %s1006_s0, %s646_s16  ;;  %s909_s27 = scalar_lea.vmem %s1009_s3, %s647_s24 }
  0x11   : > { %v207_v2 = vld [vmem:[%s872_s21] sm:$0xff]  ;;  %v208_v3 = vld [vmem:[%s872_s21 + $0x8] sm:$0xff]  ;;  %v209_v4 = vld [vmem:[%s872_s21 + $0x10] sm:$0xff] }
  0x12   : > { %v246_v5 = vmul.f32 %v867_v0, %v207_v2  ;;  %v247_v6 = vmul.f32 %v867_v0, %v208_v3  ;;  %v210_v7 = vld [vmem:[%s872_s21 + $0x18] sm:$0xff]  ;;  %v248_v8 = vmul.f32 %v867_v0, %v209_v4  ;;  %v211_v9 = vld [vmem:[%s872_s21 + $0x20] sm:$0xff]  ;;  %v212_v10 = vld [vmem:[%s872_s21 + $0x28] sm:$0xff] }
  0x13   : > { %v249_v11 = vmul.f32 %v867_v0, %v210_v7  ;;  %v250_v12 = vmul.f32 %v867_v0, %v211_v9  ;;  %v251_v13 = vmul.f32 %v867_v0, %v212_v10  ;;  %v213_v14 = vld [vmem:[%s872_s21 + $0x30] sm:$0xff]  ;;  %v214_v15 = vld [vmem:[%s872_s21 + $0x38] sm:$0xff]  ;;  %v215_v24 = vld [vmem:[%s872_s21 + $0x40] sm:$0xff] }
  0x14   : > { %v285_v16 = vadd.f32 %v877_v1, %v246_v5  ;;  %v286_v17 = vadd.f32 %v877_v1, %v247_v6  ;;  %v287_v18 = vadd.f32 %v877_v1, %v248_v8  ;;  %v252_v19 = vmul.f32 %v867_v0, %v213_v14  ;;  %v216_v25 = vld [vmem:[%s872_s21 + $0x48] sm:$0xff]  ;;  %v217_v30 = vld [vmem:[%s872_s21 + $0x50] sm:$0xff]  ;;  %v218_v35 = vld [vmem:[%s872_s21 + $0x58] sm:$0xff] }
  0x15   : > { %v288_v20 = vadd.f32 %v877_v1, %v249_v11  ;;  %v289_v21 = vadd.f32 %v877_v1, %v250_v12  ;;  %v290_v22 = vadd.f32 %v877_v1, %v251_v13  ;;  %v253_v23 = vmul.f32 %v867_v0, %v214_v15  ;;  %v219_v36 = vld [vmem:[%s872_s21 + $0x60] sm:$0xff]  ;;  %v220_v41 = vld [vmem:[%s872_s21 + $0x68] sm:$0xff]  ;;  %v221_v42 = vld [vmem:[%s872_s21 + $0x70] sm:$0xff] }
  0x16   : > { %v317_v26 = vmax.f32 %v285_v16, 0.0  ;;  %v318_v27 = vmax.f32 %v286_v17, 0.0  ;;  %v319_v28 = vmax.f32 %v287_v18, 0.0  ;;  %v291_v29 = vadd.f32 %v877_v1, %v252_v19  ;;  %v222_v51 = vld [vmem:[%s872_s21 + $0x78] sm:$0xff]  ;;  %v223_v56 = vld [vmem:[%s872_s21 + $0x80] sm:$0xff]  ;;  %v224_v61 = vld [vmem:[%s872_s21 + $0x88] sm:$0xff] }
  0x17   : > { %v320_v31 = vmax.f32 %v288_v20, 0.0  ;;  %v321_v32 = vmax.f32 %v289_v21, 0.0  ;;  %v322_v33 = vmax.f32 %v290_v22, 0.0  ;;  %v292_v34 = vadd.f32 %v877_v1, %v253_v23  ;;  %v225_v4 = vld [vmem:[%s872_s21 + $0x90] sm:$0xff]  ;;  %v226_v5 = vld [vmem:[%s872_s21 + $0x98] sm:$0xff]  ;;  %v227_v10 = vld [vmem:[%s872_s21 + $0xa0] sm:$0xff] }
  0x18   : > { %v683_v37 = vpack.c.bf16 %v318_v27, %v317_v26  ;;  %v323_v38 = vmax.f32 %v291_v29, 0.0  ;;  %v254_v39 = vmul.f32 %v867_v0, %v215_v24  ;;  %v255_v40 = vmul.f32 %v867_v0, %v216_v25  ;;  %v228_v15 = vld [vmem:[%s872_s21 + $0xa8] sm:$0xff]  ;;  %v229_v20 = vld [vmem:[%s872_s21 + $0xb0] sm:$0xff]  ;;  %v230_v25 = vld [vmem:[%s872_s21 + $0xb8] sm:$0xff] }
  0x19   : > { %v688_v43 = vpack.c.bf16 %v320_v31, %v319_v28  ;;  %v693_v44 = vpack.c.bf16 %v322_v33, %v321_v32  ;;  %v324_v45 = vmax.f32 %v292_v34, 0.0  ;;  %v256_v46 = vmul.f32 %v867_v0, %v217_v30  ;;  %v231_v30 = vld [vmem:[%s872_s21 + $0xc0] sm:$0xff] }
  0x1a   : > { %684 = vst [vmem:[%s909_s27] sm:$0xff] %v683_v37   ;;  %v293_v47 = vadd.f32 %v877_v1, %v254_v39  ;;  %v294_v48 = vadd.f32 %v877_v1, %v255_v40  ;;  %v257_v49 = vmul.f32 %v867_v0, %v218_v35  ;;  %v258_v50 = vmul.f32 %v867_v0, %v219_v36  ;;  %v232_v35 = vld [vmem:[%s872_s21 + $0xc8] sm:$0xff]  ;;  %v233_v40 = vld [vmem:[%s872_s21 + $0xd0] sm:$0xff] }
  0x1b   : > { %760 = vst [vmem:[%s909_s27 + $0x8] sm:$0xff] %v688_v43   ;;  %761 = vst [vmem:[%s909_s27 + $0x10] sm:$0xff] %v693_v44   ;;  %v698_v52 = vpack.c.bf16 %v324_v45, %v323_v38  ;;  %v295_v53 = vadd.f32 %v877_v1, %v256_v46  ;;  %v259_v54 = vmul.f32 %v867_v0, %v220_v41  ;;  %v234_v41 = vld [vmem:[%s872_s21 + $0xd8] sm:$0xff]  ;;  %v235_v46 = vld [vmem:[%s872_s21 + $0xe0] sm:$0xff] }
  0x1c   : > { %v260_v55 = vmul.f32 %v867_v0, %v221_v42  ;;  %v325_v57 = vmax.f32 %v293_v47, 0.0  ;;  %v326_v58 = vmax.f32 %v294_v48, 0.0  ;;  %v296_v59 = vadd.f32 %v877_v1, %v257_v49 }
  0x1d   : > { %v297_v60 = vadd.f32 %v877_v1, %v258_v50  ;;  %762 = vst [vmem:[%s909_s27 + $0x18] sm:$0xff] %v698_v52   ;;  %v327_v62 = vmax.f32 %v295_v53, 0.0  ;;  %v298_v63 = vadd.f32 %v877_v1, %v259_v54  ;;  %v261_v2 = vmul.f32 %v867_v0, %v222_v51  ;;  %v236_v51 = vld [vmem:[%s872_s21 + $0xe8] sm:$0xff] }
  0x1e   : > { %v299_v3 = vadd.f32 %v877_v1, %v260_v55  ;;  %v703_v6 = vpack.c.bf16 %v326_v58, %v325_v57  ;;  %v328_v7 = vmax.f32 %v296_v59, 0.0  ;;  %v262_v9 = vmul.f32 %v867_v0, %v223_v56  ;;  %v237_v56 = vld [vmem:[%s872_s21 + $0xf0] sm:$0xff] }
  0x1f   : > { %v329_v8 = vmax.f32 %v297_v60, 0.0  ;;  %v330_v11 = vmax.f32 %v298_v63, 0.0  ;;  %v300_v12 = vadd.f32 %v877_v1, %v261_v2  ;;  %v263_v14 = vmul.f32 %v867_v0, %v224_v61  ;;  %v238_v61 = vld [vmem:[%s872_s21 + $0xf8] sm:$0xff] }
  0x20   : > { %v331_v13 = vmax.f32 %v299_v3, 0.0  ;;  %763 = vst [vmem:[%s909_s27 + $0x20] sm:$0xff] %v703_v6   ;;  %v708_v16 = vpack.c.bf16 %v328_v7, %v327_v62  ;;  %v301_v17 = vadd.f32 %v877_v1, %v262_v9  ;;  %v264_v18 = vmul.f32 %v867_v0, %v225_v4 }
  0x21   : > { %v265_v19 = vmul.f32 %v867_v0, %v226_v5  ;;  %v713_v21 = vpack.c.bf16 %v330_v11, %v329_v8  ;;  %v332_v22 = vmax.f32 %v300_v12, 0.0  ;;  %v302_v23 = vadd.f32 %v877_v1, %v263_v14 }
  0x22   : > { %v266_v24 = vmul.f32 %v867_v0, %v227_v10  ;;  %764 = vst [vmem:[%s909_s27 + $0x28] sm:$0xff] %v708_v16   ;;  %v333_v26 = vmax.f32 %v301_v17, 0.0  ;;  %v303_v27 = vadd.f32 %v877_v1, %v264_v18  ;;  %v267_v29 = vmul.f32 %v867_v0, %v228_v15 }
  0x23   : > { %v304_v28 = vadd.f32 %v877_v1, %v265_v19  ;;  %765 = vst [vmem:[%s909_s27 + $0x30] sm:$0xff] %v713_v21   ;;  %v718_v31 = vpack.c.bf16 %v332_v22, %v331_v13  ;;  %v334_v32 = vmax.f32 %v302_v23, 0.0  ;;  %v268_v34 = vmul.f32 %v867_v0, %v229_v20 }
  0x24   : > { %v305_v33 = vadd.f32 %v877_v1, %v266_v24  ;;  %v335_v36 = vmax.f32 %v303_v27, 0.0  ;;  %v306_v38 = vadd.f32 %v877_v1, %v267_v29  ;;  %v269_v39 = vmul.f32 %v867_v0, %v230_v25 }
  0x25   : > { %v336_v37 = vmax.f32 %v304_v28, 0.0  ;;  %766 = vst [vmem:[%s909_s27 + $0x38] sm:$0xff] %v718_v31   ;;  %v723_v42 = vpack.c.bf16 %v334_v32, %v333_v26  ;;  %v307_v44 = vadd.f32 %v877_v1, %v268_v34  ;;  %v270_v45 = vmul.f32 %v867_v0, %v231_v30 }
  0x26   : > { %v337_v43 = vmax.f32 %v305_v33, 0.0  ;;  %v338_v48 = vmax.f32 %v306_v38, 0.0  ;;  %v308_v49 = vadd.f32 %v877_v1, %v269_v39  ;;  %v271_v50 = vmul.f32 %v867_v0, %v232_v35 }
  0x27   : > { %v728_v47 = vpack.c.bf16 %v336_v37, %v335_v36  ;;  %767 = vst [vmem:[%s909_s27 + $0x40] sm:$0xff] %v723_v42   ;;  %v339_v52 = vmax.f32 %v307_v44, 0.0  ;;  %v309_v53 = vadd.f32 %v877_v1, %v270_v45  ;;  %v272_v54 = vmul.f32 %v867_v0, %v233_v40 }
  0x28   : > { %v273_v55 = vmul.f32 %v867_v0, %v234_v41  ;;  %v733_v57 = vpack.c.bf16 %v338_v48, %v337_v43  ;;  %v340_v58 = vmax.f32 %v308_v49, 0.0  ;;  %v310_v59 = vadd.f32 %v877_v1, %v271_v50 }
  0x29   : > { %768 = vst [vmem:[%s909_s27 + $0x48] sm:$0xff] %v728_v47   ;;  %v274_v60 = vmul.f32 %v867_v0, %v235_v46  ;;  %v341_v62 = vmax.f32 %v309_v53, 0.0  ;;  %v311_v63 = vadd.f32 %v877_v1, %v272_v54  ;;  %v275_v3 = vmul.f32 %v867_v0, %v236_v51 }
  0x2a   : > { %v312_v2 = vadd.f32 %v877_v1, %v273_v55  ;;  %769 = vst [vmem:[%s909_s27 + $0x50] sm:$0xff] %v733_v57   ;;  %v738_v4 = vpack.c.bf16 %v340_v58, %v339_v52  ;;  %v342_v5 = vmax.f32 %v310_v59, 0.0  ;;  %v276_v7 = vmul.f32 %v867_v0, %v237_v56 }
  0x2b   : > { %v313_v6 = vadd.f32 %v877_v1, %v274_v60  ;;  %v343_v8 = vmax.f32 %v311_v63, 0.0  ;;  %v314_v10 = vadd.f32 %v877_v1, %v275_v3  ;;  %v277_v11 = vmul.f32 %v867_v0, %v238_v61 }
  0x2c   : > { %v344_v9 = vmax.f32 %v312_v2, 0.0  ;;  %770 = vst [vmem:[%s909_s27 + $0x58] sm:$0xff] %v738_v4   ;;  %v743_v12 = vpack.c.bf16 %v342_v5, %v341_v62  ;;  %v315_v14 = vadd.f32 %v877_v1, %v276_v7 }
  0x2d   : > { %v345_v13 = vmax.f32 %v313_v6, 0.0  ;;  %v346_v16 = vmax.f32 %v314_v10, 0.0  ;;  %v316_v17 = vadd.f32 %v877_v1, %v277_v11 }
  0x2e   : > { %v748_v15 = vpack.c.bf16 %v344_v9, %v343_v8  ;;  %771 = vst [vmem:[%s909_s27 + $0x60] sm:$0xff] %v743_v12   ;;  %v347_v18 = vmax.f32 %v315_v14, 0.0 }
  0x2f   : > { %v753_v19 = vpack.c.bf16 %v346_v16, %v345_v13  ;;  %v348_v20 = vmax.f32 %v316_v17, 0.0 }
  0x30   : > { %772 = vst [vmem:[%s909_s27 + $0x68] sm:$0xff] %v748_v15  }
  0x31   : > { %773 = vst [vmem:[%s909_s27 + $0x70] sm:$0xff] %v753_v19   ;;  %v758_v21 = vpack.c.bf16 %v348_v20, %v347_v18 }
  0x33   : > { %774 = vst [vmem:[%s909_s27 + $0x78] sm:$0xff] %v758_v21  }
  0x34 PF: > { %s13_s14 = sadd.s32 1, %s821_s14   ;;  %s1010_s12 = smov %s817_s13 }
  0x35   : > { %p10_p5 = scmp.ge.s32.totalorder %s13_s14, 4   ;;  %s1011_s13 = smov %s1013_s15 }
  0x37   :  { %12 = sbr.rel (!%p10_p5) target bundleno = 2 (0x2), region = 62 }

// kernel: double_conv.4
= control target key start
LH: loop header
LB: loop body
LE: loop exit
PB: predicated region body
PF: predicated region fallthrough
CT: control target
= control target key end

     0   :  { %s6509_s12 = smov 0   ;;  %s6511_s13 = smov 0   ;;  %s8296_s0 = inlined_call_operand.vmem [shape: bf16[2,1,18,18,4], index: 0, kind: input, shape index: {}]   ;;  %s8297_s1 = inlined_call_operand.vmem [shape: bf16[9,4,128], index: 1, kind: input, shape index: {}]   ;;  %s8298_s2 = inlined_call_operand.vmem [shape: f32[2,1,256,128], index: 2, kind: output, shape index: {0}]   ;;  %s8299_s3 = inlined_call_operand.vmem [shape: f32[2,1,2,128], index: 3, kind: output, shape index: {1}]  }
   0x1   :  { %s6513_s14 = smov 0  }
   0x2 LB: > { %s26_s15 = sadd.s32 1, %s6483_s13  ;;  %p5064_p0 = scmp.ge.s32.totalorder %s6487_s14, 1  ;;  %s6487_s14 = sphi %s6513_s14, %s14_s14   ;;  %s6483_s13 = sphi %s6511_s13, %s8368_s13   ;;  %s6479_s12 = sphi %s6509_s12, %s8367_s12  }
   0x3   : > { %p28_p1 = scmp.ge.s32.totalorder %s26_s15, 2  ;;  %p162_p2 = scmp.lt.s32.totalorder %s6487_s14, 3 }
   0x5   : > { %s8370_s15 = smov (%p28_p1, %s26_s15), 0  ;;  %p163_p3 = pnand %p5064_p0, %p162_p2 }
   0x7   : > { %166 = sbr.rel (%p163_p3) target bundleno = 605 (0x25d), region = 28 }
   0xe   : > { %v5069_v0 = vld [vmem:[%s8297_s1 + $0x2] sm:$0x3]  ;;  %vm762_vm0 = vcmask 1041408   ;;  %v5296_v1 = vld [vmem:[%s8297_s1 + $0x8] sm:$0x3]  ;;  %p201_p4 = scmp.lt.s32.totalorder %s6479_s12, 1 }
   0xf   : > { %6325 = vmatprep.subr.msk.bf16.mxu1 %vm762_vm0, %v5069_v0  ;;  %6329 = vmatprep.subr.msk.bf16.mxu0 %vm762_vm0, %v5296_v1  ;;  %v764_v2 = vsel %vm762_vm0, %v5069_v0, 0  ;;  %v6537_v3 = vsel %vm762_vm0, %v5296_v1, 0  ;;  %v259_v4 = vld [vmem:[%s8297_s1] sm:$0x3]  ;;  %v5361_v5 = vld [vmem:[%s8297_s1 + $0xa] sm:$0x3] }
  0x10   : > { %8313 = vst [vmem:[#allocation2_spill] sm:$0xff] %v6537_v3  ;;  %5762 = vmatpush3.bf16.msra.mxu1 %v764_v2  ;;  %5898 = vmatpush3.bf16.msra.mxu0 %v6537_v3  ;;  %s8372_s12 = smov (!%p201_p4, %s6479_s12), 1  ;;  %vm276_vm1 = vsmask.f32 3328  ;;  %vm277_vm2 = vsmask.f32 7440 }
  0x11   : > { %6326 = vmatprep.subr.msk.bf16.mxu1 %vm762_vm0, %v259_v4  ;;  %6331 = vmatprep.subr.msk.bf16.mxu0 %vm762_vm0, %v5361_v5  ;;  %s6335_s24 = smul.u32 216, %s8372_s12  ;;  %vm713_vm3 = vcmask 31744   ;;  %v6567_v17 = vsel %vm762_vm0, %v259_v4, 0  ;;  %v6573_v26 = vld [vmem:[%s8297_s1 + $0xc] sm:$0x3]  ;;  %vm6580_vm4 = vmor %vm276_vm1, %vm277_vm2  ;;  %v6586_v37 = vsel %vm762_vm0, %v5361_v5, 0 }
  0x12   : > { %v6590_v41 = vsel %vm762_vm0, %v6573_v26, 0  ;;  %vm1267_vm5 = vcmask 1042432   ;;  %vm1268_vm6 = vcmask 1046532   ;;  %s5607_s19 = sshll.u32 %s8372_s12, 8  ;;  %s5068_s23 = sshll.u32 %s8372_s12, 1  ;;  %vm4924_vm8 = vcmask 1040384  }
  0x13   : > { %s6554_s27 = scalar_lea.vmem %s8296_s0, %s6335_s24  ;;  %vm6806_vm7 = vmor %vm1267_vm5, %vm1268_vm6  ;;  %s8244_s22 = scalar_lea.vmem %s8298_s2, %s5607_s19 }
  0x14   : > { %v227_v6 = vld [vmem:[%s6554_s27] sm:$0xf]  ;;  %v228_v7 = vld [vmem:[%s6554_s27 + $0x4] sm:$0xf]  ;;  %v260_v8 = vld [vmem:[%s6554_s27 + $0x8] sm:$0x1]  ;;  %s225_s26 = scalar_lea.vmem %s8299_s3, %s5068_s23 }
  0x15   : > { %v280_v9 = vshrl.u32 %v227_v6, 16  ;;  %v283_v10 = vshll.u32 %v227_v6, 16  ;;  %v289_v11 = vshll.u32 %v228_v7, 16  ;;  %v293_v12 = vshrl.u32 %v228_v7, 16  ;;  %v5248_v13 = vld [vmem:[%s6554_s27 + $0xc] sm:$0xf] }
  0x16   : > { %v299_v14 = vshll.u32 %v260_v8, 16  ;;  %v6561_v15 = vld [vmem:[%s6554_s27 + $0x10] sm:$0xf]  ;;  %v6564_v16 = vld [vmem:[%s6554_s27 + $0x14] sm:$0x1]  ;;  %v2084_v23 = vshrl.u32 %v5248_v13, 16 }
  0x17   : > { %v282_v18 = vrot.slane %v280_v9, 4  ;;  %v285_v19 = vrot.slane %v283_v10, 5  ;;  %v291_v20 = vrot.slane %v289_v11, 5  ;;  %v295_v21 = vrot.slane %v293_v12, 4  ;;  %v229_v31 = vld [vmem:[%s6554_s27 + $0xc] sm:$0xf] }
  0x18   : > { %v301_v22 = vrot.slane %v299_v14, 5  ;;  %v2087_v24 = vshll.u32 %v5248_v13, 16  ;;  %v2093_v25 = vshll.u32 %v6561_v15, 16  ;;  %v2097_v29 = vshrl.u32 %v6561_v15, 16  ;;  %v230_v36 = vld [vmem:[%s6554_s27 + $0x10] sm:$0xf] }
  0x19   : > { %v286_v27 = vor.u32 %v285_v19, %v282_v18  ;;  %v296_v28 = vor.u32 %v295_v21, %v291_v20  ;;  %v2103_v30 = vshll.u32 %v6564_v16, 16  ;;  %v2086_v33 = vrot.slane %v2084_v23, 4  ;;  %v261_v44 = vld [vmem:[%s6554_s27 + $0x14] sm:$0x1]  ;;  %v5251_v55 = vld [vmem:[%s6554_s27 + $0x18] sm:$0xf] }
  0x1a   : > { %v2089_v34 = vrot.slane %v2087_v24, 5  ;;  %v2095_v35 = vrot.slane %v2093_v25, 5  ;;  %v2099_v40 = vrot.slane %v2097_v29, 4  ;;  %v304_v45 = vshrl.u32 %v229_v31, 16  ;;  %v6599_v60 = vld [vmem:[%s6554_s27 + $0x1c] sm:$0xf] }
  0x1b   : > { %v287_v38 = vrot.slane %v286_v27, 4  ;;  %v297_v39 = vrot.slane %v296_v28, 4  ;;  %v2105_v43 = vrot.slane %v2103_v30, 5  ;;  %v307_v46 = vshll.u32 %v229_v31, 16  ;;  %v6607_v1 = vld [vmem:[%s6554_s27 + $0x20] sm:$0x1] }
  0x1c   : > { %v2090_v42 = vor.u32 %v2089_v34, %v2086_v33  ;;  %v2100_v49 = vor.u32 %v2099_v40, %v2095_v35  ;;  %v313_v50 = vshll.u32 %v230_v36, 16  ;;  %v306_v53 = vrot.slane %v304_v45, 4  ;;  %v231_v18 = vld [vmem:[%s6554_s27 + $0x18] sm:$0xf]  ;;  %v232_v23 = vld [vmem:[%s6554_s27 + $0x1c] sm:$0xf] }
  0x1d   : > { %v292_v47 = vsel %vm6580_vm4, %v287_v38, %v291_v20  ;;  %v302_v48 = vsel %vm6580_vm4, %v297_v39, %v301_v22  ;;  %v309_v54 = vrot.slane %v307_v46, 5  ;;  %v317_v58 = vshrl.u32 %v230_v36, 16  ;;  %v262_v31 = vld [vmem:[%s6554_s27 + $0x20] sm:$0x1]  ;;  %v5254_v40 = vld [vmem:[%s6554_s27 + $0x24] sm:$0xf] }
  0x1e   : > { %v5070_v51 = vcombine.low %v292_v47, %v302_v48  ;;  %v2091_v52 = vrot.slane %v2090_v42, 4  ;;  %v2101_v56 = vrot.slane %v2100_v49, 4  ;;  %v315_v57 = vrot.slane %v313_v50, 5  ;;  %v6630_v46 = vld [vmem:[%s6554_s27 + $0x28] sm:$0xf] }
  0x1f   : > { %v323_v59 = vshll.u32 %v261_v44, 16  ;;  %v2827_v62 = vrot.slane %v6561_v15, 5  ;;  %v2830_v63 = vrot.slane %v6564_v16, 5  ;;  %v310_v0 = vor.u32 %v309_v54, %v306_v53  ;;  %v6639_v54 = vld [vmem:[%s6554_s27 + $0x2c] sm:$0x1] }
  0x20   : > { %5763 = vmatprep.mubr.msk.bf16.mxu1 %vm713_vm3, %v5070_v51  ;;  %v2096_v61 = vsel %vm6580_vm4, %v2091_v52, %v2095_v35  ;;  %v2106_v2 = vsel %vm6580_vm4, %v2101_v56, %v2105_v43  ;;  %v319_v4 = vrot.slane %v317_v58, 4  ;;  %v2108_v6 = vshrl.u32 %v5251_v55, 16  ;;  %v5150_v51 = vld [vmem:[%s8297_s1 + $0x4] sm:$0x3]  ;;  %v6839_v16 = vld [vmem:[%s6554_s27 + $0x7c] sm:$0xf] }
  0x21   : > { %v325_v5 = vrot.slane %v323_v59, 5  ;;  %v5297_v7 = vcombine.low %v2096_v61, %v2106_v2  ;;  %v311_v8 = vrot.slane %v310_v0, 4  ;;  %v2111_v9 = vshll.u32 %v5251_v55, 16  ;;  %v233_v0 = vld [vmem:[%s6554_s27 + $0x24] sm:$0xf] }
  0x22   : > { %v2117_v10 = vshll.u32 %v6599_v60, 16  ;;  %v320_v11 = vor.u32 %v319_v4, %v315_v57  ;;  %v2110_v12 = vrot.slane %v2108_v6, 4  ;;  %v2121_v13 = vshrl.u32 %v6599_v60, 16 }
  0x23   : > { %v2127_v14 = vshll.u32 %v6607_v1, 16  ;;  %5899 = vmatprep.mubr.msk.bf16.mxu0 %vm713_vm3, %v5297_v7  ;;  %v316_v19 = vsel %vm6580_vm4, %v311_v8, %v315_v57  ;;  %v2113_v20 = vrot.slane %v2111_v9, 5  ;;  %v2834_v22 = vrot.slane %v6599_v60, 5  ;;  %v234_v7 = vld [vmem:[%s6554_s27 + $0x28] sm:$0xf] }
  0x24   : > { %v2119_v21 = vrot.slane %v2117_v10, 5  ;;  %v321_v24 = vrot.slane %v320_v11, 4  ;;  %v2123_v25 = vrot.slane %v2121_v13, 4  ;;  %v2837_v28 = vrot.slane %v6607_v1, 5  ;;  %v263_v13 = vld [vmem:[%s6554_s27 + $0x2c] sm:$0x1] }
  0x25   : > { %v2129_v27 = vrot.slane %v2127_v14, 5  ;;  %v2114_v29 = vor.u32 %v2113_v20, %v2110_v12  ;;  %v6623_v30 = vrot.slane %v2834_v22, 4  ;;  %v328_v33 = vshrl.u32 %v231_v18, 16 }
  0x26   : > { %v331_v34 = vshll.u32 %v231_v18, 16  ;;  %v326_v35 = vsel %vm6580_vm4, %v321_v24, %v325_v5  ;;  %v2124_v36 = vor.u32 %v2123_v25, %v2119_v21  ;;  %v337_v38 = vshll.u32 %v232_v23, 16  ;;  %v5257_v24 = vld [vmem:[%s6554_s27 + $0x30] sm:$0xf] }
  0x27   : > { %v341_v39 = vshrl.u32 %v232_v23, 16  ;;  %v5071_v42 = vcombine.low %v316_v19, %v326_v35  ;;  %v2115_v43 = vrot.slane %v2114_v29, 4  ;;  %v330_v44 = vrot.slane %v328_v33, 4  ;;  %v6659_v33 = vld [vmem:[%s6554_s27 + $0x34] sm:$0xf] }
  0x28   : > { %v333_v45 = vrot.slane %v331_v34, 5  ;;  %v2125_v47 = vrot.slane %v2124_v36, 4  ;;  %v339_v48 = vrot.slane %v337_v38, 5  ;;  %v347_v50 = vshll.u32 %v262_v31, 16 }
  0x29   : > { %v343_v49 = vrot.slane %v341_v39, 4  ;;  %5764 = vmatmul.mubr.msk.bf16.vlgmr.msra.gmra.mrb[0].mxu1 %vm713_vm3, %v5071_v42  ;;  %v2120_v52 = vsel %vm6580_vm4, %v2115_v43, %v2119_v21  ;;  %v2132_v55 = vshrl.u32 %v5254_v40, 16  ;;  %v2135_v56 = vshll.u32 %v5254_v40, 16  ;;  %v6667_v40 = vld [vmem:[%s6554_s27 + $0x38] sm:$0x1] }
  0x2a   : > { %v334_v53 = vor.u32 %v333_v45, %v330_v44  ;;  %5796 = vmatpush3.bf16.msra.mxu1 %v6567_v17  ;;  %v2130_v57 = vsel %vm6580_vm4, %v2125_v47, %v2129_v27  ;;  %v349_v59 = vrot.slane %v347_v50, 5  ;;  %v2141_v61 = vshll.u32 %v6630_v46, 16 }
  0x2b   : > { %v344_v58 = vor.u32 %v343_v49, %v339_v48  ;;  %v5298_v2 = vcombine.low %v2120_v52, %v2130_v57  ;;  %v2134_v5 = vrot.slane %v2132_v55, 4  ;;  %v2137_v6 = vrot.slane %v2135_v56, 5  ;;  %6327 = vmatprep.subr.msk.bf16.mxu1 %vm762_vm0, %v5150_v51  ;;  %v235_v52 = vld [vmem:[%s6554_s27 + $0x30] sm:$0xf] }
  0x2c   : > { %v335_v4 = vrot.slane %v334_v53, 4  ;;  %v2143_v9 = vrot.slane %v2141_v61, 5  ;;  %v2145_v17 = vshrl.u32 %v6630_v46, 16  ;;  %v2151_v10 = vshll.u32 %v6639_v54, 16 }
  0x2d   : > { %v345_v8 = vrot.slane %v344_v58, 4  ;;  %5900 = vmatmul.mubr.msk.bf16.vlgmr.msra.gmra.mrb[0].mxu0 %vm713_vm3, %v5298_v2  ;;  %v2138_v12 = vor.u32 %v2137_v6, %v2134_v5  ;;  %v352_v14 = vshrl.u32 %v233_v0, 16  ;;  %v355_v18 = vshll.u32 %v233_v0, 16  ;;  %v236_v58 = vld [vmem:[%s6554_s27 + $0x34] sm:$0xf] }
  0x2e   : > { %v340_v11 = vsel %vm6580_vm4, %v335_v4, %v339_v48  ;;  %5932 = vmatpush3.bf16.msra.mxu0 %v6586_v37  ;;  %v2147_v20 = vrot.slane %v2145_v17, 4  ;;  %v2153_v21 = vrot.slane %v2151_v10, 5  ;;  %v361_v23 = vshll.u32 %v234_v7, 16  ;;  %v264_v4 = vld [vmem:[%s6554_s27 + $0x38] sm:$0x1] }
  0x2f   : > { %v350_v19 = vsel %vm6580_vm4, %v345_v8, %v349_v59  ;;  %v2139_v27 = vrot.slane %v2138_v12, 4  ;;  %v354_v29 = vrot.slane %v352_v14, 4  ;;  %v357_v31 = vrot.slane %v355_v18, 5  ;;  %6332 = vmatprep.subr.msk.bf16.mxu0 %vm762_vm0, %v6573_v26  ;;  %v5260_v12 = vld [vmem:[%s6554_s27 + $0x3c] sm:$0xf] }
  0x30   : > { %v5072_v25 = vcombine.low %v340_v11, %v350_v19  ;;  %v2148_v34 = vor.u32 %v2147_v20, %v2143_v9  ;;  %v363_v35 = vrot.slane %v361_v23, 5  ;;  %v365_v37 = vshrl.u32 %v234_v7, 16  ;;  %v6684_v20 = vld [vmem:[%s6554_s27 + $0x40] sm:$0xf] }
  0x31   : > { %v371_v36 = vshll.u32 %v263_v13, 16  ;;  %v2144_v38 = vsel %vm6580_vm4, %v2139_v27, %v2143_v9  ;;  %v358_v39 = vor.u32 %v357_v31, %v354_v29  ;;  %v2156_v42 = vshrl.u32 %v5257_v24, 16 }
  0x32   : > { %5767 = vmatprep.mubr.msk.bf16.mxu1 %vm713_vm3, %v5072_v25  ;;  %v2159_v43 = vshll.u32 %v5257_v24, 16  ;;  %v2149_v44 = vrot.slane %v2148_v34, 4  ;;  %v367_v45 = vrot.slane %v365_v37, 4  ;;  %v2165_v26 = vshll.u32 %v6659_v33, 16  ;;  %v6689_v34 = vld [vmem:[%s6554_s27 + $0x44] sm:$0x1] }
  0x33   : > { %v373_v47 = vrot.slane %v371_v36, 5  ;;  %v359_v48 = vrot.slane %v358_v39, 4  ;;  %v2158_v49 = vrot.slane %v2156_v42, 4  ;;  %v2169_v51 = vshrl.u32 %v6659_v33, 16  ;;  %v237_v42 = vld [vmem:[%s6554_s27 + $0x3c] sm:$0xf] }
  0x34   : > { %v2161_v50 = vrot.slane %v2159_v43, 5  ;;  %v2154_v53 = vsel %vm6580_vm4, %v2149_v44, %v2153_v21  ;;  %v368_v55 = vor.u32 %v367_v45, %v363_v35  ;;  %v2167_v56 = vrot.slane %v2165_v26, 5  ;;  %v238_v26 = vld [vmem:[%s6554_s27 + $0x40] sm:$0xf] }
  0x35   : > { %v2175_v57 = vshll.u32 %v6667_v40, 16  ;;  %v5299_v59 = vcombine.low %v2144_v38, %v2154_v53  ;;  %v364_v61 = vsel %vm6580_vm4, %v359_v48, %v363_v35  ;;  %v2171_v2 = vrot.slane %v2169_v51, 4 }
  0x36   : > { %v2162_v0 = vor.u32 %v2161_v50, %v2158_v49  ;;  %v369_v5 = vrot.slane %v368_v55, 4  ;;  %v376_v7 = vshrl.u32 %v235_v52, 16  ;;  %v379_v8 = vshll.u32 %v235_v52, 16 }
  0x37   : > { %v2177_v6 = vrot.slane %v2175_v57, 5  ;;  %5903 = vmatprep.mubr.msk.bf16.mxu0 %vm713_vm3, %v5299_v59  ;;  %v2172_v17 = vor.u32 %v2171_v2, %v2167_v56  ;;  %v385_v10 = vshll.u32 %v236_v58, 16  ;;  %v389_v11 = vshrl.u32 %v236_v58, 16  ;;  %v5263_v2 = vld [vmem:[%s6554_s27 + $0x48] sm:$0xf] }
  0x38   : > { %v2163_v9 = vrot.slane %v2162_v0, 4  ;;  %v374_v13 = vsel %vm6580_vm4, %v369_v5, %v373_v47  ;;  %v378_v14 = vrot.slane %v376_v7, 4  ;;  %v381_v18 = vrot.slane %v379_v8, 5  ;;  %v6707_v8 = vld [vmem:[%s6554_s27 + $0x4c] sm:$0xf] }
  0x39   : > { %v395_v19 = vshll.u32 %v264_v4, 16  ;;  %v5073_v21 = vcombine.low %v364_v61, %v374_v13  ;;  %v2173_v24 = vrot.slane %v2172_v17, 4  ;;  %v387_v25 = vrot.slane %v385_v10, 5  ;;  %v265_v61 = vld [vmem:[%s6554_s27 + $0x44] sm:$0x1] }
  0x3a   : > { %v2168_v23 = vsel %vm6580_vm4, %v2163_v9, %v2167_v56  ;;  %v382_v27 = vor.u32 %v381_v18, %v378_v14  ;;  %v391_v29 = vrot.slane %v389_v11, 4  ;;  %v2180_v35 = vshrl.u32 %v5260_v12, 16 }
  0x3b   : > { %v397_v31 = vrot.slane %v395_v19, 5  ;;  %5768 = vmatmul.mubr.msk.bf16.gmra.mrb[4].mxu1 %vm713_vm3, %v5073_v21  ;;  %v2178_v37 = vsel %vm6580_vm4, %v2173_v24, %v2177_v6  ;;  %v2183_v36 = vshll.u32 %v5260_v12, 16  ;;  %v2189_v38 = vshll.u32 %v6684_v20, 16 }
  0x3c   : > { %v2193_v39 = vshrl.u32 %v6684_v20, 16  ;;  %v5300_v43 = vcombine.low %v2168_v23, %v2178_v37  ;;  %v383_v44 = vrot.slane %v382_v27, 4  ;;  %v392_v45 = vor.u32 %v391_v29, %v387_v25  ;;  %v6715_v23 = vld [vmem:[%s6554_s27 + $0x50] sm:$0x1]  ;;  %v6719_v27 = vld [vmem:[%s6554_s27 + $0x48] sm:$0xf] }
  0x3d   : > { %v2182_v47 = vrot.slane %v2180_v35, 4  ;;  %v2185_v48 = vrot.slane %v2183_v36, 5  ;;  %v2191_v49 = vrot.slane %v2189_v38, 5  ;;  %v2199_v51 = vshll.u32 %v6689_v34, 16  ;;  %v6722_v36 = vld [vmem:[%s6554_s27 + $0x4c] sm:$0xf] }
  0x3e   : > { %v2195_v50 = vrot.slane %v2193_v39, 4  ;;  %5904 = vmatmul.mubr.msk.bf16.gmra.mrb[4].mxu0 %vm713_vm3, %v5300_v43  ;;  %v388_v52 = vsel %vm6580_vm4, %v383_v44, %v387_v25  ;;  %v393_v53 = vrot.slane %v392_v45, 4  ;;  %v400_v55 = vshrl.u32 %v237_v42, 16 }
  0x3f   : > { %v403_v56 = vshll.u32 %v237_v42, 16  ;;  %v2186_v57 = vor.u32 %v2185_v48, %v2182_v47  ;;  %v2201_v59 = vrot.slane %v2199_v51, 5  ;;  %v409_v0 = vshll.u32 %v238_v26, 16 }
  0x40   : > { %v2196_v58 = vor.u32 %v2195_v50, %v2191_v49  ;;  %v398_v4 = vsel %vm6580_vm4, %v393_v53, %v397_v31  ;;  %v402_v5 = vrot.slane %v400_v55, 4  ;;  %v413_v7 = vshrl.u32 %v238_v26, 16  ;;  %v266_v26 = vld [vmem:[%s6554_s27 + $0x50] sm:$0x1]  ;;  %v5266_v53 = vld [vmem:[%s6554_s27 + $0x54] sm:$0xf] }
  0x41   : > { %v405_v6 = vrot.slane %v403_v56, 5  ;;  %v5074_v9 = vcombine.low %v388_v52, %v398_v4  ;;  %v2187_v17 = vrot.slane %v2186_v57, 4  ;;  %v411_v11 = vrot.slane %v409_v0, 5  ;;  %v6738_v4 = vld [vmem:[%s6554_s27 + $0x58] sm:$0xf] }
  0x42   : > { %v2197_v10 = vrot.slane %v2196_v58, 4  ;;  %v415_v13 = vrot.slane %v413_v7, 4  ;;  %v419_v14 = vshll.u32 %v265_v61, 16  ;;  %v2204_v18 = vshrl.u32 %v5263_v2, 16 }
  0x43   : > { %v406_v12 = vor.u32 %v405_v6, %v402_v5  ;;  %5771 = vmatprep.mubr.msk.bf16.mxu1 %vm713_vm3, %v5074_v9  ;;  %v2192_v19 = vsel %vm6580_vm4, %v2187_v17, %v2191_v49  ;;  %v2207_v24 = vshll.u32 %v5263_v2, 16  ;;  %v2213_v25 = vshll.u32 %v6707_v8, 16 }
  0x44   : > { %v2202_v21 = vsel %vm6580_vm4, %v2197_v10, %v2201_v59  ;;  %v416_v35 = vor.u32 %v415_v13, %v411_v11  ;;  %v421_v37 = vrot.slane %v419_v14, 5  ;;  %v2206_v38 = vrot.slane %v2204_v18, 4 }
  0x45   : > { %v5301_v29 = vcombine.low %v2192_v19, %v2202_v21  ;;  %v407_v31 = vrot.slane %v406_v12, 4  ;;  %v2209_v39 = vrot.slane %v2207_v24, 5  ;;  %v2215_v42 = vrot.slane %v2213_v25, 5  ;;  %v6744_v12 = vld [vmem:[%s6554_s27 + $0x5c] sm:$0x1] }
  0x46   : > { %v2217_v43 = vshrl.u32 %v6707_v8, 16  ;;  %v417_v45 = vrot.slane %v416_v35, 4  ;;  %v2223_v47 = vshll.u32 %v6715_v23, 16  ;;  %v424_v48 = vshrl.u32 %v6719_v27, 16  ;;  %v6748_v24 = vld [vmem:[%s6554_s27 + $0x54] sm:$0xf] }
  0x47   : > { %5907 = vmatprep.mubr.msk.bf16.mxu0 %vm713_vm3, %v5301_v29  ;;  %v412_v44 = vsel %vm6580_vm4, %v407_v31, %v411_v11  ;;  %v2210_v49 = vor.u32 %v2209_v39, %v2206_v38  ;;  %v427_v51 = vshll.u32 %v6719_v27, 16  ;;  %v433_v52 = vshll.u32 %v6722_v36, 16 }
  0x48   : > { %v2219_v50 = vrot.slane %v2217_v43, 4  ;;  %v422_v55 = vsel %vm6580_vm4, %v417_v45, %v421_v37  ;;  %v2225_v56 = vrot.slane %v2223_v47, 5  ;;  %v426_v57 = vrot.slane %v424_v48, 4  ;;  %v6754_v37 = vld [vmem:[%s6554_s27 + $0x58] sm:$0xf] }
  0x49   : > { %v437_v58 = vshrl.u32 %v6722_v36, 16  ;;  %v5075_v59 = vcombine.low %v412_v44, %v422_v55  ;;  %v2211_v61 = vrot.slane %v2210_v49, 4  ;;  %v429_v2 = vrot.slane %v427_v51, 5 }
  0x4a   : > { %v2220_v0 = vor.u32 %v2219_v50, %v2215_v42  ;;  %v435_v5 = vrot.slane %v433_v52, 5  ;;  %v443_v7 = vshll.u32 %v266_v26, 16  ;;  %v2228_v9 = vshrl.u32 %v5266_v53, 16  ;;  %v267_v26 = vld [vmem:[%s6554_s27 + $0x5c] sm:$0x1] }
  0x4b   : > { %v439_v6 = vrot.slane %v437_v58, 4  ;;  %5772 = vmatmul.mubr.msk.bf16.gmra.mrb[8].mxu1 %vm713_vm3, %v5075_v59  ;;  %v2216_v17 = vsel %vm6580_vm4, %v2211_v61, %v2215_v42  ;;  %v430_v11 = vor.u32 %v429_v2, %v426_v57  ;;  %v2231_v13 = vshll.u32 %v5266_v53, 16  ;;  %v5269_v53 = vld [vmem:[%s6554_s27 + $0x60] sm:$0xf]  ;;  %v6768_v59 = vld [vmem:[%s6554_s27 + $0x64] sm:$0xf] }
  0x4c   : > { %v2221_v10 = vrot.slane %v2220_v0, 4  ;;  %v445_v18 = vrot.slane %v443_v7, 5  ;;  %v2230_v19 = vrot.slane %v2228_v9, 4  ;;  %v2237_v21 = vshll.u32 %v6738_v4, 16  ;;  %v6775_v9 = vld [vmem:[%s6554_s27 + $0x68] sm:$0x1] }
  0x4d   : > { %v440_v14 = vor.u32 %v439_v6, %v435_v5  ;;  %v431_v29 = vrot.slane %v430_v11, 4  ;;  %v2233_v31 = vrot.slane %v2231_v13, 5  ;;  %v2241_v35 = vshrl.u32 %v6738_v4, 16 }
  0x4e   : > { %v2226_v25 = vsel %vm6580_vm4, %v2221_v10, %v2225_v56  ;;  %v2239_v42 = vrot.slane %v2237_v21, 5  ;;  %v2247_v43 = vshll.u32 %v6744_v12, 16  ;;  %v448_v48 = vshrl.u32 %v6748_v24, 16 }
  0x4f   : > { %v5302_v38 = vcombine.low %v2216_v17, %v2226_v25  ;;  %v441_v39 = vrot.slane %v440_v14, 4  ;;  %v436_v44 = vsel %vm6580_vm4, %v431_v29, %v435_v5  ;;  %v2234_v45 = vor.u32 %v2233_v31, %v2230_v19  ;;  %v6779_v19 = vld [vmem:[%s6554_s27 + $0x60] sm:$0xf] }
  0x50   : > { %v2243_v47 = vrot.slane %v2241_v35, 4  ;;  %v2249_v50 = vrot.slane %v2247_v43, 5  ;;  %v451_v51 = vshll.u32 %v6748_v24, 16  ;;  %v457_v52 = vshll.u32 %v6754_v37, 16  ;;  %v6785_v35 = vld [vmem:[%s6554_s27 + $0x64] sm:$0xf] }
  0x51   : > { %5908 = vmatmul.mubr.msk.bf16.gmra.mrb[8].mxu0 %vm713_vm3, %v5302_v38  ;;  %v446_v49 = vsel %vm6580_vm4, %v441_v39, %v445_v18  ;;  %v2235_v56 = vrot.slane %v2234_v45, 4  ;;  %v450_v58 = vrot.slane %v448_v48, 4  ;;  %v461_v2 = vshrl.u32 %v6754_v37, 16 }
  0x52   : > { %v5076_v55 = vcombine.low %v436_v44, %v446_v49  ;;  %v2244_v57 = vor.u32 %v2243_v47, %v2239_v42  ;;  %v453_v61 = vrot.slane %v451_v51, 5  ;;  %v459_v0 = vrot.slane %v457_v52, 5 }
  0x53   : > { %v467_v5 = vshll.u32 %v267_v26, 16  ;;  %v2240_v6 = vsel %vm6580_vm4, %v2235_v56, %v2239_v42  ;;  %v2252_v17 = vshrl.u32 %v5269_v53, 16  ;;  %v2255_v10 = vshll.u32 %v5269_v53, 16 }
  0x54   : > { %5775 = vmatprep.mubr.msk.bf16.mxu1 %vm713_vm3, %v5076_v55  ;;  %v2245_v7 = vrot.slane %v2244_v57, 4  ;;  %v454_v11 = vor.u32 %v453_v61, %v450_v58  ;;  %v463_v13 = vrot.slane %v461_v2, 4  ;;  %v2261_v18 = vshll.u32 %v6768_v59, 16  ;;  %v5329_v58 = vld [vmem:[%s6554_s27 + $0xc] sm:$0xe] }
  0x55   : > { %v469_v14 = vrot.slane %v467_v5, 5  ;;  %v2254_v25 = vrot.slane %v2252_v17, 4  ;;  %v2257_v29 = vrot.slane %v2255_v10, 5  ;;  %v2265_v31 = vshrl.u32 %v6768_v59, 16 }
  0x56   : > { %v2250_v21 = vsel %vm6580_vm4, %v2245_v7, %v2249_v50  ;;  %v455_v39 = vrot.slane %v454_v11, 4  ;;  %v464_v42 = vor.u32 %v463_v13, %v459_v0  ;;  %v2263_v43 = vrot.slane %v2261_v18, 5  ;;  %v268_v50 = vld [vmem:[%s6554_s27 + $0x68] sm:$0x1] }
  0x57   : > { %v5303_v38 = vcombine.low %v2240_v6, %v2250_v21  ;;  %v2258_v44 = vor.u32 %v2257_v29, %v2254_v25  ;;  %v2267_v45 = vrot.slane %v2265_v31, 4  ;;  %v2271_v47 = vshll.u32 %v6775_v9, 16  ;;  %v6813_v29 = vld [vmem:[%s6554_s27 + $0x70] sm:$0xf] }
  0x58   : > { %v472_v26 = vshrl.u32 %v6779_v19, 16  ;;  %v460_v48 = vsel %vm6580_vm4, %v455_v39, %v459_v0  ;;  %v465_v49 = vrot.slane %v464_v42, 4  ;;  %v475_v51 = vshll.u32 %v6779_v19, 16  ;;  %v6800_v0 = vld [vmem:[%s6554_s27 + $0x6c] sm:$0xf] }
  0x59   : > { %5911 = vmatprep.mubr.msk.bf16.mxu0 %vm713_vm3, %v5303_v38  ;;  %v481_v52 = vshll.u32 %v6785_v35, 16  ;;  %v2259_v53 = vrot.slane %v2258_v44, 4  ;;  %v2268_v55 = vor.u32 %v2267_v45, %v2263_v43  ;;  %v2273_v56 = vrot.slane %v2271_v47, 5 }
  0x5a   : > { %v474_v57 = vrot.slane %v472_v26, 4  ;;  %v470_v61 = vsel %vm6580_vm4, %v465_v49, %v469_v14  ;;  %v477_v2 = vrot.slane %v475_v51, 5  ;;  %v485_v6 = vshrl.u32 %v6785_v35, 16  ;;  %v269_v26 = vld [vmem:[%s6554_s27 + $0x74] sm:$0x1] }
  0x5b   : > { %v483_v5 = vrot.slane %v481_v52, 5  ;;  %v5077_v7 = vcombine.low %v460_v48, %v470_v61  ;;  %v2264_v17 = vsel %vm6580_vm4, %v2259_v53, %v2263_v43  ;;  %v2269_v10 = vrot.slane %v2268_v55, 4  ;;  %v5330_v48 = vld [vmem:[%s6554_s27 + $0x18] sm:$0xe] }
  0x5c   : > { %v491_v11 = vshll.u32 %v268_v50, 16  ;;  %v478_v14 = vor.u32 %v477_v2, %v474_v57  ;;  %v487_v18 = vrot.slane %v485_v6, 4  ;;  %v5345_v21 = vrot.slane %v5329_v58, 9  ;;  %v6832_v53 = vld [vmem:[%s6554_s27 + $0x78] sm:$0xf] }
  0x5d   : > { %v2829_v25 = vrot.slane %v2827_v62, 4  ;;  %5776 = vmatmul.mubr.msk.bf16.gmra.mrb[12].mxu1 %vm713_vm3, %v5077_v7  ;;  %v2274_v31 = vsel %vm6580_vm4, %v2269_v10, %v2273_v56  ;;  %v496_v39 = vshrl.u32 %v6800_v0, 16  ;;  %v499_v42 = vshll.u32 %v6800_v0, 16  ;;  %v270_v57 = vld [vmem:[%s6554_s27 + $0x80] sm:$0x1] }
  0x5e   : > { %v493_v38 = vrot.slane %v491_v11, 5  ;;  %v5304_v43 = vcombine.low %v2264_v17, %v2274_v31  ;;  %v479_v44 = vrot.slane %v478_v14, 4  ;;  %v488_v45 = vor.u32 %v487_v18, %v483_v5  ;;  %v5331_v10 = vld [vmem:[%s6554_s27 + $0x24] sm:$0xe] }
  0x5f   : > { %v2828_v47 = vsel %vm6806_vm7, %v5345_v21, %v2827_v62  ;;  %v2831_v49 = vsel %vm6806_vm7, %v2829_v25, %v2830_v63  ;;  %v498_v50 = vrot.slane %v496_v39, 4  ;;  %v501_v51 = vrot.slane %v499_v42, 5  ;;  %v6858_v39 = vld [vmem:[%s6554_s27 + $0x84] sm:$0xf] }
  0x60   : > { %v505_v52 = vshll.u32 %v6813_v29, 16  ;;  %5912 = vmatmul.mubr.msk.bf16.gmra.mrb[12].mxu0 %vm713_vm3, %v5304_v43  ;;  %v484_v15 = vsel %vm6580_vm4, %v479_v44, %v483_v5  ;;  %v489_v62 = vrot.slane %v488_v45, 4  ;;  %v5362_v55 = vcombine.low %v2828_v47, %v2831_v49  ;;  %v6866_v43 = vld [vmem:[%s6554_s27 + $0x88] sm:$0xf] }
  0x61   : > { %v509_v56 = vshrl.u32 %v6813_v29, 16  ;;  %v502_v63 = vor.u32 %v501_v51, %v498_v50  ;;  %v515_v61 = vshll.u32 %v269_v26, 16  ;;  %v5346_v2 = vrot.slane %v5330_v48, 9 }
  0x62   : > { %v507_v58 = vrot.slane %v505_v52, 5  ;;  %v494_v6 = vsel %vm6580_vm4, %v489_v62, %v493_v38  ;;  %5933 = vmatprep.mubr.msk.bf16.mxu0 %vm713_vm3, %v5362_v55  ;;  %v2838_v5 = vsel %vm6806_vm7, %v6623_v30, %v2837_v28  ;;  %v520_v17 = vshrl.u32 %v6832_v53, 16  ;;  %v271_v52 = vld [vmem:[%s6554_s27 + $0x8c] sm:$0x1] }
  0x63   : > { %v511_v7 = vrot.slane %v509_v56, 4  ;;  %v5078_v11 = vcombine.low %v484_v15, %v494_v6  ;;  %v503_v14 = vrot.slane %v502_v63, 4  ;;  %v517_v18 = vrot.slane %v515_v61, 5 }
  0x64   : > { %v2835_v21 = vsel %vm6806_vm7, %v5346_v2, %v2834_v22  ;;  %v522_v38 = vrot.slane %v520_v17, 4  ;;  %v523_v1 = vshll.u32 %v6832_v53, 16  ;;  %v529_v30 = vshll.u32 %v6839_v16, 16  ;;  %v6871_v22 = vld [vmem:[%s8297_s1 + $0xe] sm:$0x3] }
  0x65   : > { %v512_v25 = vor.u32 %v511_v7, %v507_v58  ;;  %v5363_v31 = vcombine.low %v2835_v21, %v2838_v5  ;;  %5779 = vmatprep.mubr.msk.bf16.mxu1 %vm713_vm3, %v5078_v11  ;;  %v508_v28 = vsel %vm6580_vm4, %v503_v14, %v507_v58  ;;  %v533_v60 = vshrl.u32 %v6839_v16, 16  ;;  %v6890_v5 = vld [vmem:[%s6554_s27 + $0x90] sm:$0xf] }
  0x66   : > { %v539_v42 = vshll.u32 %v270_v57, 16  ;;  %v525_v45 = vrot.slane %v523_v1, 5  ;;  %v5347_v47 = vrot.slane %v5331_v10, 9  ;;  %v2841_v26 = vrot.slane %v6630_v46, 5  ;;  %v5332_v57 = vld [vmem:[%s6554_s27 + $0x30] sm:$0xe] }
  0x67   : > { %v513_v44 = vrot.slane %v512_v25, 4  ;;  %v531_v48 = vrot.slane %v529_v30, 5  ;;  %v535_v49 = vrot.slane %v533_v60, 4  ;;  %v2844_v51 = vrot.slane %v6639_v54, 5  ;;  %v6902_v30 = vld [vmem:[%s6554_s27 + $0x94] sm:$0xf] }
  0x68   : > { %v541_v50 = vrot.slane %v539_v42, 5  ;;  %5934 = vmatmul.mubr.msk.bf16.vlgmr.msra.gmra.mrb[0].mxu0 %vm713_vm3, %v5363_v31  ;;  %v526_v62 = vor.u32 %v525_v45, %v522_v38  ;;  %v2842_v55 = vsel %vm6806_vm7, %v5347_v47, %v2841_v26  ;;  %v2843_v56 = vrot.slane %v2841_v26, 4  ;;  %v272_v60 = vld [vmem:[%s6554_s27 + $0x98] sm:$0x1]  ;;  %v5333_v26 = vld [vmem:[%s6554_s27 + $0x3c] sm:$0xe] }
  0x69   : > { %v518_v15 = vsel %vm6580_vm4, %v513_v44, %v517_v18  ;;  %5966 = vmatpush3.bf16.msra.mxu0 %v6590_v41  ;;  %v536_v46 = vor.u32 %v535_v49, %v531_v48  ;;  %v544_v58 = vshrl.u32 %v6858_v39, 16  ;;  %v547_v54 = vshll.u32 %v6858_v39, 16 }
  0x6a   : > { %v5079_v63 = vcombine.low %v508_v28, %v518_v15  ;;  %v527_v61 = vrot.slane %v526_v62, 4  ;;  %v2845_v2 = vsel %vm6806_vm7, %v2843_v56, %v2844_v51  ;;  %v553_v6 = vshll.u32 %v6866_v43, 16  ;;  %6333 = vmatprep.subr.msk.bf16.mxu0 %vm762_vm0, %v6871_v22 }
  0x6b   : > { %v557_v7 = vshrl.u32 %v6866_v43, 16  ;;  %v537_v41 = vrot.slane %v536_v46, 4  ;;  %v5364_v17 = vcombine.low %v2842_v55, %v2845_v2  ;;  %v546_v10 = vrot.slane %v544_v58, 4  ;;  %v6922_v46 = vld [vmem:[%s6554_s27 + $0xa0] sm:$0xf] }
  0x6c   : > { %5780 = vmatmul.mubr.msk.bf16.gmra.mrb[16].mxu1 %vm713_vm3, %v5079_v63  ;;  %v549_v11 = vrot.slane %v547_v54, 5  ;;  %v532_v14 = vsel %vm6580_vm4, %v527_v61, %v531_v48  ;;  %v555_v18 = vrot.slane %v553_v6, 5  ;;  %v563_v25 = vshll.u32 %v271_v52, 16  ;;  %v6911_v52 = vld [vmem:[%s6554_s27 + $0x9c] sm:$0xf] }
  0x6d   : > { %v559_v21 = vrot.slane %v557_v7, 4  ;;  %v542_v31 = vsel %vm6580_vm4, %v537_v41, %v541_v50  ;;  %5937 = vmatprep.mubr.msk.bf16.mxu0 %vm713_vm3, %v5364_v17  ;;  %v5348_v1 = vrot.slane %v5332_v57, 9  ;;  %v2848_v28 = vrot.slane %v6659_v33, 5 }
  0x6e   : > { %v550_v38 = vor.u32 %v549_v11, %v546_v10  ;;  %v5080_v42 = vcombine.low %v532_v14, %v542_v31  ;;  %v565_v45 = vrot.slane %v563_v25, 5  ;;  %v2851_v47 = vrot.slane %v6667_v40, 5  ;;  %v273_v10 = vld [vmem:[%s6554_s27 + $0xa4] sm:$0x1]  ;;  %v5334_v11 = vld [vmem:[%s6554_s27 + $0x48] sm:$0xe] }
  0x6f   : > { %v560_v44 = vor.u32 %v559_v21, %v555_v18  ;;  %v2849_v49 = vsel %vm6806_vm7, %v5348_v1, %v2848_v28  ;;  %v2850_v50 = vrot.slane %v2848_v28, 4  ;;  %v568_v51 = vshrl.u32 %v6890_v5, 16 }
  0x70   : > { %v551_v48 = vrot.slane %v550_v38, 4  ;;  %5783 = vmatprep.mubr.msk.bf16.mxu1 %vm713_vm3, %v5080_v42  ;;  %v571_v15 = vshll.u32 %v6890_v5, 16  ;;  %v577_v62 = vshll.u32 %v6902_v30, 16  ;;  %v581_v40 = vshrl.u32 %v6902_v30, 16 }
  0x71   : > { %v561_v33 = vrot.slane %v560_v44, 4  ;;  %v2852_v56 = vsel %vm6806_vm7, %v2850_v50, %v2851_v47  ;;  %v570_v57 = vrot.slane %v568_v51, 4  ;;  %v587_v63 = vshll.u32 %v272_v60, 16 }
  0x72   : > { %v556_v55 = vsel %vm6580_vm4, %v551_v48, %v555_v18  ;;  %v5365_v54 = vcombine.low %v2849_v49, %v2852_v56  ;;  %v573_v61 = vrot.slane %v571_v15, 5  ;;  %v579_v2 = vrot.slane %v577_v62, 5  ;;  %v6948_v56 = vld [vmem:[%s6554_s27 + $0xac] sm:$0xf] }
  0x73   : > { %v566_v58 = vsel %vm6580_vm4, %v561_v33, %v565_v45  ;;  %v583_v7 = vrot.slane %v581_v40, 4  ;;  %v589_v41 = vrot.slane %v587_v63, 5  ;;  %v5349_v17 = vrot.slane %v5333_v26, 9  ;;  %v6943_v33 = vld [vmem:[%s6554_s27 + $0xa8] sm:$0xf] }
  0x74   : > { %v5081_v6 = vcombine.low %v556_v55, %v566_v58  ;;  %5938 = vmatmul.mubr.msk.bf16.gmra.mrb[4].mxu0 %vm713_vm3, %v5365_v54  ;;  %v574_v14 = vor.u32 %v573_v61, %v570_v57  ;;  %v2855_v18 = vrot.slane %v6684_v20, 5  ;;  %v2858_v21 = vrot.slane %v6689_v34, 5  ;;  %v274_v61 = vld [vmem:[%s6554_s27 + $0xb0] sm:$0x1] }
  0x75   : > { %v592_v25 = vshrl.u32 %v6911_v52, 16  ;;  %v584_v31 = vor.u32 %v583_v7, %v579_v2  ;;  %v595_v38 = vshll.u32 %v6911_v52, 16  ;;  %v601_v1 = vshll.u32 %v6922_v46, 16 }
  0x76   : > { %5784 = vmatmul.mubr.msk.bf16.gmra.mrb[20].mxu1 %vm713_vm3, %v5081_v6  ;;  %v605_v28 = vshrl.u32 %v6922_v46, 16  ;;  %v575_v60 = vrot.slane %v574_v14, 4  ;;  %v2856_v42 = vsel %vm6806_vm7, %v5349_v17, %v2855_v18  ;;  %v2857_v20 = vrot.slane %v2855_v18, 4  ;;  %v6963_v14 = vld [vmem:[%s6554_s27 + $0xb4] sm:$0xf] }
  0x77   : > { %v594_v44 = vrot.slane %v592_v25, 4  ;;  %v585_v34 = vrot.slane %v584_v31, 4  ;;  %v597_v45 = vrot.slane %v595_v38, 5  ;;  %v603_v47 = vrot.slane %v601_v1, 5 }
  0x78   : > { %v607_v26 = vrot.slane %v605_v28, 4  ;;  %v580_v48 = vsel %vm6580_vm4, %v575_v60, %v579_v2  ;;  %v2859_v49 = vsel %vm6806_vm7, %v2857_v20, %v2858_v21  ;;  %v611_v50 = vshll.u32 %v273_v10, 16  ;;  %v5335_v2 = vld [vmem:[%s6554_s27 + $0x54] sm:$0xe] }
  0x79   : > { %v5350_v51 = vrot.slane %v5334_v11, 9  ;;  %v590_v15 = vsel %vm6580_vm4, %v585_v34, %v589_v41  ;;  %v5366_v62 = vcombine.low %v2856_v42, %v2859_v49  ;;  %v598_v40 = vor.u32 %v597_v45, %v594_v44  ;;  %v6972_v42 = vld [vmem:[%s6554_s27 + $0xb8] sm:$0xf]  ;;  %v275_v49 = vld [vmem:[%s6554_s27 + $0xbc] sm:$0x1] }
  0x7a   : > { %v608_v55 = vor.u32 %v607_v26, %v603_v47  ;;  %v5082_v57 = vcombine.low %v580_v48, %v590_v15  ;;  %v613_v63 = vrot.slane %v611_v50, 5  ;;  %v2862_v58 = vrot.slane %v6707_v8, 5 }
  0x7b   : > { %v2865_v54 = vrot.slane %v6715_v23, 5  ;;  %5941 = vmatprep.mubr.msk.bf16.mxu0 %vm713_vm3, %v5366_v62  ;;  %v599_v6 = vrot.slane %v598_v40, 4  ;;  %v616_v41 = vshrl.u32 %v6943_v33, 16  ;;  %v619_v17 = vshll.u32 %v6943_v33, 16 }
  0x7c   : > { %v609_v7 = vrot.slane %v608_v55, 4  ;;  %5787 = vmatprep.mubr.msk.bf16.mxu1 %vm713_vm3, %v5082_v57  ;;  %v2863_v10 = vsel %vm6806_vm7, %v5350_v51, %v2862_v58  ;;  %v2864_v11 = vrot.slane %v2862_v58, 4  ;;  %v625_v8 = vshll.u32 %v6948_v56, 16  ;;  %v5336_v55 = vld [vmem:[%s6554_s27 + $0x60] sm:$0xe] }
  0x7d   : > { %v629_v23 = vshrl.u32 %v6948_v56, 16  ;;  %v604_v18 = vsel %vm6580_vm4, %v599_v6, %v603_v47  ;;  %v618_v25 = vrot.slane %v616_v41, 4  ;;  %v621_v31 = vrot.slane %v619_v17, 5  ;;  %v5337_v6 = vld [vmem:[%s6554_s27 + $0x6c] sm:$0xe] }
  0x7e   : > { %v614_v21 = vsel %vm6580_vm4, %v609_v7, %v613_v63  ;;  %v2866_v1 = vsel %vm6806_vm7, %v2864_v11, %v2865_v54  ;;  %v627_v28 = vrot.slane %v625_v8, 5  ;;  %v635_v34 = vshll.u32 %v274_v61, 16  ;;  %v5273_v11 = vld [vmem:[%s6554_s27 + $0x70] sm:$0xf]  ;;  %v5274_v8 = vld [vmem:[%s6554_s27 + $0x74] sm:$0x1] }
  0x7f   : > { %v5083_v38 = vcombine.low %v604_v18, %v614_v21  ;;  %v631_v60 = vrot.slane %v629_v23, 4  ;;  %v5367_v20 = vcombine.low %v2863_v10, %v2866_v1  ;;  %v622_v44 = vor.u32 %v621_v31, %v618_v25 }
  0x80   : > { %v5351_v45 = vrot.slane %v5335_v2, 9  ;;  %v2869_v26 = vrot.slane %v6738_v4, 5  ;;  %v2872_v48 = vrot.slane %v6744_v12, 5  ;;  %v640_v50 = vshrl.u32 %v6963_v14, 16 }
  0x81   : > { %5788 = vmatmul.mubr.msk.bf16.gmra.mrb[24].mxu1 %vm713_vm3, %v5083_v38  ;;  %v632_v47 = vor.u32 %v631_v60, %v627_v28  ;;  %5942 = vmatmul.mubr.msk.bf16.gmra.mrb[8].mxu0 %vm713_vm3, %v5367_v20  ;;  %v623_v51 = vrot.slane %v622_v44, 4  ;;  %v637_v15 = vrot.slane %v635_v34, 5  ;;  %v643_v62 = vshll.u32 %v6963_v14, 16 }
  0x82   : > { %v649_v40 = vshll.u32 %v6972_v42, 16  ;;  %v2870_v4 = vsel %vm6806_vm7, %v5351_v45, %v2869_v26  ;;  %v2871_v12 = vrot.slane %v2869_v26, 4  ;;  %v642_v63 = vrot.slane %v640_v50, 4 }
  0x83   : > { %v633_v57 = vrot.slane %v632_v47, 4  ;;  %v628_v58 = vsel %vm6580_vm4, %v623_v51, %v627_v28  ;;  %v645_v54 = vrot.slane %v643_v62, 5  ;;  %v653_v2 = vshrl.u32 %v6972_v42, 16  ;;  %v5338_v47 = vld [vmem:[%s6554_s27 + $0x78] sm:$0xe] }
  0x84   : > { %v651_v61 = vrot.slane %v649_v40, 5  ;;  %v2873_v41 = vsel %vm6806_vm7, %v2871_v12, %v2872_v48  ;;  %v659_v17 = vshll.u32 %v275_v49, 16  ;;  %v5352_v10 = vrot.slane %v5336_v55, 9  ;;  %v6408_v51 = vld [vmem:[%s6554_s27] sm:$0xf] }
  0x85   : > { %v638_v7 = vsel %vm6580_vm4, %v633_v57, %v637_v15  ;;  %v5368_v18 = vcombine.low %v2870_v4, %v2873_v41  ;;  %v646_v21 = vor.u32 %v645_v54, %v642_v63  ;;  %v655_v25 = vrot.slane %v653_v2, 4  ;;  %v7010_v15 = vld [vmem:[%s6554_s27 + $0x4] sm:$0xf]  ;;  %v7014_v40 = vld [vmem:[%s6554_s27 + $0x7c] sm:$0xf] }
  0x86   : > { %v5084_v23 = vcombine.low %v628_v58, %v638_v7  ;;  %v661_v31 = vrot.slane %v659_v17, 5  ;;  %v2876_v38 = vrot.slane %v6768_v59, 5  ;;  %v2879_v1 = vrot.slane %v6775_v9, 5  ;;  %v7017_v55 = vld [vmem:[%s6554_s27 + $0x80] sm:$0x1] }
  0x87   : > { %v5353_v28 = vrot.slane %v5337_v6, 9  ;;  %5945 = vmatprep.mubr.msk.bf16.mxu0 %vm713_vm3, %v5368_v18  ;;  %v647_v60 = vrot.slane %v646_v21, 4  ;;  %v656_v20 = vor.u32 %v655_v25, %v651_v61  ;;  %v2883_v44 = vrot.slane %v5273_v11, 5  ;;  %v5279_v57 = vld [vmem:[%s6554_s27 + $0x88] sm:$0xf] }
  0x88   : > { %5791 = vmatprep.mubr.msk.bf16.mxu1 %vm713_vm3, %v5084_v23  ;;  %v2886_v34 = vrot.slane %v5274_v8, 5  ;;  %v2877_v45 = vsel %vm6806_vm7, %v5352_v10, %v2876_v38  ;;  %v2878_v59 = vrot.slane %v2876_v38, 4  ;;  %v5102_v62 = vcombine.low %v6408_v51, %v7010_v15  ;;  %v5280_v54 = vld [vmem:[%s6554_s27 + $0x8c] sm:$0x1]  ;;  %v5282_v17 = vld [vmem:[%s6554_s27 + $0x94] sm:$0xf] }
  0x89   : > { %v652_v9 = vsel %vm6580_vm4, %v647_v60, %v651_v61  ;;  %v657_v26 = vrot.slane %v656_v20, 4  ;;  %v2884_v48 = vsel %vm6806_vm7, %v5353_v28, %v2883_v44  ;;  %v2885_v49 = vrot.slane %v2883_v44, 4  ;;  %v5339_v61 = vld [vmem:[%s6554_s27 + $0x84] sm:$0xe]  ;;  %v5340_v23 = vld [vmem:[%s6554_s27 + $0x90] sm:$0xe] }
  0x8a   : > { %v2880_v50 = vsel %vm6806_vm7, %v2878_v59, %v2879_v1  ;;  %v5354_v58 = vrot.slane %v5338_v47, 9  ;;  %v2890_v7 = vrot.slane %v7014_v40, 5  ;;  %v2893_v41 = vrot.slane %v7017_v55, 5  ;;  %v5283_v25 = vld [vmem:[%s6554_s27 + $0x98] sm:$0x1] }
  0x8b   : > { %v662_v4 = vsel %vm6580_vm4, %v657_v26, %v661_v31  ;;  %v5369_v12 = vcombine.low %v2877_v45, %v2880_v50  ;;  %v2887_v63 = vsel %vm6806_vm7, %v2885_v49, %v2886_v34  ;;  %v5355_v10 = vrot.slane %v5339_v61, 9  ;;  %v5285_v31 = vld [vmem:[%s6554_s27 + $0xa0] sm:$0xf]  ;;  %v5286_v60 = vld [vmem:[%s6554_s27 + $0xa4] sm:$0x1] }
  0x8c   : > { %v5085_v2 = vcombine.low %v652_v9, %v662_v4  ;;  %v5370_v6 = vcombine.low %v2884_v48, %v2887_v63  ;;  %v2897_v11 = vrot.slane %v5279_v57, 5  ;;  %v2900_v8 = vrot.slane %v5280_v54, 5  ;;  %v5341_v20 = vld [vmem:[%s6554_s27 + $0x9c] sm:$0xe]  ;;  %v6410_v44 = vld [vmem:[%s6554_s27 + $0xc] sm:$0xf] }
  0x8d   : > { %5946 = vmatmul.mubr.msk.bf16.gmra.mrb[12].mxu0 %vm713_vm3, %v5369_v12  ;;  %v2891_v18 = vsel %vm6806_vm7, %v5354_v58, %v2890_v7  ;;  %v2892_v21 = vrot.slane %v2890_v7, 4  ;;  %v2904_v28 = vrot.slane %v5282_v17, 5  ;;  %v7044_v34 = vld [vmem:[%s6554_s27 + $0x10] sm:$0xf]  ;;  %v6412_v47 = vld [vmem:[%s6554_s27 + $0x18] sm:$0xf] }
  0x8e   : > { %5792 = vmatmul.mubr.msk.bf16.gmra.mrb[28].mxu1 %vm713_vm3, %v5085_v2  ;;  %5949 = vmatprep.mubr.msk.bf16.mxu0 %vm713_vm3, %v5370_v6  ;;  %v2898_v38 = vsel %vm6806_vm7, %v5355_v10, %v2897_v11  ;;  %v2899_v1 = vrot.slane %v2897_v11, 4  ;;  %v5103_v45 = vcombine.low %v6410_v44, %v7044_v34  ;;  %v7051_v9 = vld [vmem:[%s6554_s27 + $0x1c] sm:$0xf]  ;;  %v5356_v48 = vrot.slane %v5340_v23, 9  ;;  %v5288_v57 = vld [vmem:[%s6554_s27 + $0xac] sm:$0xf] }
  0x8f   : > { %5797 = vmatprep.mubr.msk.bf16.mxu1 %vm713_vm3, %v5102_v62  ;;  %v2894_v59 = vsel %vm6806_vm7, %v2892_v21, %v2893_v41  ;;  %v5104_v26 = vcombine.low %v6412_v47, %v7051_v9  ;;  %v2906_v51 = vrot.slane %v2904_v28, 4  ;;  %v2907_v62 = vrot.slane %v5283_v25, 5  ;;  %v6414_v54 = vld [vmem:[%s8297_s1 + $0x4] sm:$0x3]  ;;  %v5291_v2 = vld [vmem:[%s6554_s27 + $0xb8] sm:$0xf] }
  0x90   : > { %v5371_v49 = vcombine.low %v2891_v18, %v2894_v59  ;;  %v2901_v50 = vsel %vm6806_vm7, %v2899_v1, %v2900_v8  ;;  %v5357_v12 = vrot.slane %v5341_v20, 9  ;;  %v2911_v63 = vrot.slane %v5285_v31, 5  ;;  %v7066_v7 = vld [vmem:[%s8297_s1 + $0x6] sm:$0x3]  ;;  %v5289_v10 = vld [vmem:[%s6554_s27 + $0xb0] sm:$0x1] }
  0x91   : > { %v5372_v4 = vcombine.low %v2898_v38, %v2901_v50  ;;  %v2914_v58 = vrot.slane %v5286_v60, 5  ;;  %v1481_v61 = vsel %vm762_vm0, %v6414_v54, 0  ;;  %v2905_v41 = vsel %vm6806_vm7, %v5356_v48, %v2904_v28  ;;  %v5342_v11 = vld [vmem:[%s6554_s27 + $0xa8] sm:$0xe]  ;;  %v5292_v25 = vld [vmem:[%s6554_s27 + $0xbc] sm:$0x1] }
  0x92   : > { %v2913_v6 = vrot.slane %v2911_v63, 4  ;;  %v2908_v17 = vsel %vm6806_vm7, %v2906_v51, %v2907_v62  ;;  %v2918_v8 = vrot.slane %v5288_v57, 5  ;;  %v2912_v23 = vsel %vm6806_vm7, %v5357_v12, %v2911_v63  ;;  %v5343_v31 = vld [vmem:[%s6554_s27 + $0xb4] sm:$0xe]  ;;  %v6415_v38 = vld [vmem:[%s6554_s27 + $0x24] sm:$0xf] }
  0x93   : > { %v2925_v21 = vrot.slane %v5291_v2, 5  ;;  %v7087_v1 = vld [vmem:[%s6554_s27 + $0x28] sm:$0xf]  ;;  %v5373_v60 = vcombine.low %v2905_v41, %v2908_v17  ;;  %v5358_v44 = vrot.slane %v5342_v11, 9  ;;  %v2921_v59 = vrot.slane %v5289_v10, 5 }
  0x94   : > { %v2915_v18 = vsel %vm6806_vm7, %v2913_v6, %v2914_v58  ;;  %v5105_v28 = vcombine.low %v6415_v38, %v7087_v1  ;;  %v6417_v47 = vld [vmem:[%s6554_s27 + $0x30] sm:$0xf]  ;;  %v2928_v51 = vrot.slane %v5292_v25, 5  ;;  %v5294_v62 = vld [vmem:[%s6554_s27 + $0xc4] sm:$0xf]  ;;  %v2313_v25 = vshrl.u32 %v7014_v40, 16 }
  0x95   : > { %5950 = vmatmul.mubr.msk.bf16.gmra.mrb[16].mxu0 %vm713_vm3, %v5371_v49  ;;  %v5374_v20 = vcombine.low %v2912_v23, %v2915_v18  ;;  %v5359_v49 = vrot.slane %v5343_v31, 9  ;;  %v2927_v50 = vrot.slane %v2925_v21, 4  ;;  %v2919_v57 = vsel %vm6806_vm7, %v5358_v44, %v2918_v8  ;;  %v5344_v12 = vld [vmem:[%s6554_s27 + $0xc0] sm:$0xe]  ;;  %v6419_v41 = vld [vmem:[%s6554_s27 + $0x3c] sm:$0xf] }
  0x96   : > { %5798 = vmatmul.mubr.msk.bf16.vlgmr.msra.gmra.mrb[0].mxu1 %vm713_vm3, %v5103_v45  ;;  %5953 = vmatprep.mubr.msk.bf16.mxu0 %vm713_vm3, %v5372_v4  ;;  %v2920_v45 = vrot.slane %v2918_v8, 4  ;;  %v2932_v63 = vrot.slane %v5294_v62, 5  ;;  %v5360_v6 = vrot.slane %v5344_v12, 9  ;;  %v7112_v17 = vld [vmem:[%s6554_s27 + $0x40] sm:$0xf]  ;;  %v5108_v18 = vcombine.low %v6719_v27, %v6722_v36  ;;  %v6371_v62 = vld [vmem:[%s6554_s27 + $0x24] sm:$0xff]  }
  0x97   : > { %5830 = vmatpush3.bf16.msra.mxu1 %v1481_v61  ;;  %5801 = vmatprep.mubr.msk.bf16.mxu1 %vm713_vm3, %v5104_v26  ;;  %v7092_v26 = vld [vmem:[%s6554_s27 + $0x34] sm:$0xf]  ;;  %v2926_v58 = vsel %vm6806_vm7, %v5359_v49, %v2925_v21  ;;  %v2929_v54 = vsel %vm6806_vm7, %v2927_v50, %v2928_v51  ;;  %v5295_v61 = vld [vmem:[%s6554_s27 + $0xc8] sm:$0x1]  ;;  %v5107_v10 = vcombine.low %v6419_v41, %v7112_v17  ;;  %v2309_v21 = vshll.u32 %v7014_v40, 16 }
  0x98   : > { %6328 = vmatprep.subr.msk.bf16.mxu1 %vm762_vm0, %v7066_v7  ;;  %v5106_v48 = vcombine.low %v6417_v47, %v7092_v26  ;;  %v2922_v4 = vsel %vm6806_vm7, %v2920_v45, %v2921_v59  ;;  %v5376_v11 = vcombine.low %v2926_v58, %v2929_v54  ;;  %v2934_v8 = vrot.slane %v2932_v63, 4  ;;  %v1219_v45 = vld [vmem:[%s6554_s27] sm:$0xe]  ;;  %v1220_v59 = vld [vmem:[%s6554_s27 + $0xc] sm:$0xe] }
  0x99   : > { %v5375_v2 = vcombine.low %v2919_v57, %v2922_v4  ;;  %v2935_v23 = vrot.slane %v5295_v61, 5  ;;  %v2933_v31 = vsel %vm6806_vm7, %v5360_v6, %v2932_v63  ;;  %v7127_v27 = vrot.slane %v2309_v21, 5  ;;  %v1223_v41 = vld [vmem:[%s6554_s27 + $0x30] sm:$0xe] }
  0x9a   : > { %v2315_v36 = vrot.slane %v2313_v25, 4  ;;  %v5110_v44 = vcombine.low %v6779_v19, %v6785_v35  ;;  %v2319_v47 = vshll.u32 %v7017_v55, 16  ;;  %v5134_v19 = vrot.slane %v1219_v45, 9 }
  0x9b   : > { %v2936_v38 = vsel %vm6806_vm7, %v2934_v8, %v2935_v23  ;;  %8318 = vst [vmem:[#allocation3_spill] sm:$0xff] %v7127_v27  ;;  %v5135_v35 = vrot.slane %v1220_v59, 9  ;;  %v1286_v4 = vrot.slane %v7051_v9, 5  ;;  %v1293_v12 = vrot.slane %v7087_v1, 5  ;;  %v1224_v8 = vld [vmem:[%s6554_s27 + $0x3c] sm:$0xe] }
  0x9c   : > { %v5377_v40 = vcombine.low %v2933_v31, %v2936_v38  ;;  %v2316_v49 = vor.u32 %v2315_v36, %v7127_v27  ;;  %v7147_v51 = vrot.slane %v2319_v47, 5  ;;  %v5111_v58 = vcombine.low %v6800_v0, %v6813_v29  ;;  %v1225_v31 = vld [vmem:[%s6554_s27 + $0x48] sm:$0xe]  ;;  %v6425_v59 = vld [vmem:[%s6554_s27 + $0x38] sm:$0x1] }
  0x9d   : > { %5954 = vmatmul.mubr.msk.bf16.gmra.mrb[20].mxu0 %vm713_vm3, %v5373_v60  ;;  %v5109_v60 = vcombine.low %v6748_v24, %v6754_v37  ;;  %v6422_v24 = vld [vmem:[%s6554_s27 + $0x14] sm:$0x1]  ;;  %v4121_v54 = vsel %vm762_vm0, %v6871_v22, 0  ;;  %v5112_v61 = vcombine.low %v6832_v53, %v6839_v16  ;;  %v5113_v6 = vcombine.low %v6858_v39, %v6866_v43  ;;  %v6423_v16 = vld [vmem:[%s6554_s27 + $0x20] sm:$0x1] }
  0x9e   : > { %5802 = vmatmul.mubr.msk.bf16.gmra.mrb[4].mxu1 %vm713_vm3, %v5105_v28  ;;  %5957 = vmatprep.mubr.msk.bf16.mxu0 %vm713_vm3, %v5374_v20  ;;  %v1279_v28 = vrot.slane %v7044_v34, 5  ;;  %v6369_v20 = vld [vmem:[%s6554_s27 + $0x18] sm:$0xff]   ;;  %v6421_v34 = vld [vmem:[%s6554_s27 + $0x8] sm:$0x1]  ;;  %v1282_v37 = vrot.slane %v6422_v24, 5  ;;  %8319 = vst [vmem:[#allocation4_spill] sm:$0xff] %v7147_v51  ;;  %v5114_v9 = vcombine.low %v6890_v5, %v6902_v30 }
  0x9f   : > { %5805 = vmatprep.mubr.msk.bf16.mxu1 %vm713_vm3, %v5106_v48  ;;  %v1272_v48 = vrot.slane %v7010_v15, 5  ;;  %v1275_v50 = vrot.slane %v6421_v34, 5  ;;  %v1221_v15 = vld [vmem:[%s6554_s27 + $0x18] sm:$0xe]  ;;  %v7152_v63 = vrot.slane %v2316_v49, 4  ;;  %v1289_v22 = vrot.slane %v6423_v16, 5 }
  0xa0   : > { %v1281_v55 = vrot.slane %v1279_v28, 4  ;;  %v5136_v1 = vrot.slane %v1221_v15, 9  ;;  %v7174_v29 = vsel %vm6806_vm7, %v5135_v35, %v1279_v28  ;;  %v1295_v25 = vrot.slane %v1293_v12, 4  ;;  %v5459_v24 = vld [vmem:[%s6554_s27 + $0x18] sm:$0xf] }
  0xa1   : > { %v1274_v57 = vrot.slane %v1272_v48, 4  ;;  %8320 = vst [vmem:[#allocation5_spill] sm:$0xff] %v7152_v63  ;;  %v7170_v0 = vsel %vm6806_vm7, %v5134_v19, %v1272_v48  ;;  %v1303_v47 = vrot.slane %v6425_v59, 5  ;;  %v7211_v49 = vsel %vm762_vm0, %v7066_v7, 0  ;;  %v5460_v7 = vld [vmem:[%s6554_s27 + $0x1c] sm:$0xf] }
  0xa2   : > { %v7178_v53 = vsel %vm6806_vm7, %v1281_v55, %v1282_v37  ;;  %v7215_v34 = vsel %vm6806_vm7, %v5136_v1, %v1286_v4  ;;  %v6375_v37 = vld [vmem:[%s6554_s27 + $0x3c] sm:$0xff]   ;;  %v5139_v35 = vrot.slane %v1224_v8, 9  ;;  %v6426_v55 = vld [vmem:[%s6554_s27 + $0x44] sm:$0x1]  ;;  %v3642_v8 = vshll.u32 %v5459_v24, 16 }
  0xa3   : > { %v7189_v23 = vsel %vm6806_vm7, %v1274_v57, %v1275_v50  ;;  %v1226_v50 = vld [vmem:[%s6554_s27 + $0x54] sm:$0xe]  ;;  %v1310_v15 = vrot.slane %v6426_v55, 5  ;;  %v5463_v39 = vld [vmem:[%s6554_s27 + $0x28] sm:$0xf] }
  0xa4   : > { %v6433_v5 = vld [vmem:[%s6554_s27 + $0x70] sm:$0xf] }
  0xa5   : > { %5958 = vmatmul.mubr.msk.bf16.gmra.mrb[24].mxu0 %vm713_vm3, %v5375_v2  ;;  %v1222_v2 = vld [vmem:[%s6554_s27 + $0x24] sm:$0xe]  ;;  %v1335_v30 = vrot.slane %v6433_v5, 5 }
  0xa6   : > { %5806 = vmatmul.mubr.msk.bf16.gmra.mrb[8].mxu1 %vm713_vm3, %v5107_v10  ;;  %5961 = vmatprep.mubr.msk.bf16.mxu0 %vm713_vm3, %v5376_v11  ;;  %v1300_v10 = vrot.slane %v7092_v26, 5  ;;  %v6373_v11 = vld [vmem:[%s6554_s27 + $0x30] sm:$0xff]   ;;  %v5137_v21 = vrot.slane %v1222_v2, 9 }
  0xa7   : > { %5809 = vmatprep.mubr.msk.bf16.mxu1 %vm713_vm3, %v5108_v18  ;;  %v7185_v26 = vld [vmem:[%s8297_s1 + $0x10] sm:$0x3]  ;;  %v1288_v18 = vrot.slane %v1286_v4, 4  ;;  %v1337_v48 = vrot.slane %v1335_v30, 4 }
  0xa8   : > { %v1302_v45 = vrot.slane %v1300_v10, 4  ;;  %v7222_v19 = vsel %vm6806_vm7, %v5137_v21, %v1293_v12  ;;  %v3652_v21 = vshrl.u32 %v5460_v7, 16 }
  0xa9   : > { %v7231_v4 = vsel %vm6806_vm7, %v1288_v18, %v1289_v22  ;;  %v3639_v22 = vshrl.u32 %v5459_v24, 16  ;;  %v3648_v18 = vshll.u32 %v5460_v7, 16  ;;  %v5462_v24 = vld [vmem:[%s6554_s27 + $0x24] sm:$0xf] }
  0xaa   : > { %v7244_v1 = vsel %vm6806_vm7, %v1302_v45, %v1303_v47 }
  0xab   : > { %v3641_v43 = vrot.slane %v3639_v22, 4  ;;  %v7286_v7 = vrot.slane %v3648_v18, 5  ;;  %v3666_v22 = vshll.u32 %v5462_v24, 16  ;;  %v3676_v18 = vshrl.u32 %v5463_v39, 16 }
  0xad   : > { %5962 = vmatmul.mubr.msk.bf16.gmra.mrb[28].mxu0 %vm713_vm3, %v5377_v40  ;;  %v6424_v40 = vld [vmem:[%s6554_s27 + $0x2c] sm:$0x1]  ;;  %v3668_v27 = vrot.slane %v3666_v22, 5 }
  0xae   : > { %5810 = vmatmul.mubr.msk.bf16.gmra.mrb[12].mxu1 %vm713_vm3, %v5109_v60  ;;  %5967 = vmatprep.mubr.msk.bf16.mxu0 %vm713_vm3, %v6369_v20  ;;  %v1296_v28 = vrot.slane %v6424_v40, 5  ;;  %v1307_v60 = vrot.slane %v7112_v17, 5  ;;  %v6429_v40 = vld [vmem:[%s6554_s27 + $0x50] sm:$0x1]  ;;  %v6434_v17 = vld [vmem:[%s6554_s27 + $0x74] sm:$0x1] }
  0xaf   : > { %5813 = vmatprep.mubr.msk.bf16.mxu1 %vm713_vm3, %v5110_v44  ;;  %v5138_v44 = vrot.slane %v1223_v41, 9  ;;  %v5141_v41 = vrot.slane %v1226_v50, 9  ;;  %v1227_v50 = vld [vmem:[%s6554_s27 + $0x60] sm:$0xe]  ;;  %v5464_v20 = vld [vmem:[%s6554_s27 + $0x2c] sm:$0x1] }
  0xb0   : > { %v1309_v12 = vrot.slane %v1307_v60, 4  ;;  %v7257_v45 = vsel %vm6806_vm7, %v5139_v35, %v1307_v60  ;;  %v6430_v35 = vld [vmem:[%s6554_s27 + $0x5c] sm:$0x1] }
  0xb1   : > { %v7240_v2 = vsel %vm6806_vm7, %v5138_v44, %v1300_v10  ;;  %v1324_v55 = vrot.slane %v6430_v35, 5  ;;  %v1228_v35 = vld [vmem:[%s6554_s27 + $0x6c] sm:$0xe] }
  0xb2   : > { %v7261_v59 = vsel %vm6806_vm7, %v1309_v12, %v1310_v15  ;;  %v6431_v15 = vld [vmem:[%s6554_s27 + $0x64] sm:$0xf]  ;;  %v3654_v12 = vrot.slane %v3652_v21, 4  ;;  %v5143_v5 = vrot.slane %v1228_v35, 9 }
  0xb3   : > { %v6381_v21 = vld [vmem:[%s6554_s27 + $0x60] sm:$0xff]  }
  0xb5   : > { %5968 = vmatmul.mubr.msk.bf16.vlgmr.msra.gmra.mrb[0].mxu0 %vm713_vm3, %v6371_v62  ;;  %v6427_v62 = vld [vmem:[%s6554_s27 + $0x4c] sm:$0xf] }
  0xb6   : > { %5814 = vmatmul.mubr.msk.bf16.gmra.mrb[16].mxu1 %vm713_vm3, %v5111_v58  ;;  %6000 = vmatpush3.bf16.msra.mxu0 %v4121_v54  ;;  %v1314_v57 = vrot.slane %v6427_v62, 5  ;;  %v7235_v58 = vsel %vm6806_vm7, %v1295_v25, %v1296_v28  ;;  %v5140_v54 = vrot.slane %v1225_v31, 9  ;;  %v1317_v28 = vrot.slane %v6429_v40, 5 }
  0xb7   : > { %5817 = vmatprep.mubr.msk.bf16.mxu1 %vm713_vm3, %v5112_v61  ;;  %5971 = vmatprep.mubr.msk.bf16.mxu0 %vm713_vm3, %v6373_v11  ;;  %v6377_v61 = vld [vmem:[%s6554_s27 + $0x48] sm:$0xff]   ;;  %v6428_v11 = vld [vmem:[%s6554_s27 + $0x58] sm:$0xf]  ;;  %v1328_v62 = vrot.slane %v6431_v15, 5  ;;  %v5466_v15 = vld [vmem:[%s6554_s27 + $0x34] sm:$0xf] }
  0xb8   : > { %6334 = vmatprep.subr.msk.bf16.mxu0 %vm762_vm0, %v7185_v26  ;;  %v1321_v16 = vrot.slane %v6428_v11, 5  ;;  %v1316_v31 = vrot.slane %v1314_v57, 4  ;;  %v7265_v47 = vsel %vm6806_vm7, %v5140_v54, %v1314_v57  ;;  %v5461_v57 = vld [vmem:[%s6554_s27 + $0x20] sm:$0x1]  ;;  %v5465_v54 = vld [vmem:[%s6554_s27 + $0x30] sm:$0xf] }
  0xb9   : > { %v5142_v11 = vrot.slane %v1227_v50, 9  ;;  %v3690_v50 = vshll.u32 %v5465_v54, 16  ;;  %v3658_v25 = vshll.u32 %v5461_v57, 16  ;;  %v3696_v36 = vshll.u32 %v5466_v15, 16 }
  0xba   : > { %v7276_v60 = vsel %vm6806_vm7, %v5141_v41, %v1321_v16  ;;  %v7292_v41 = vsel %vm6806_vm7, %v1316_v31, %v1317_v28  ;;  %v1330_v31 = vrot.slane %v1328_v62, 4  ;;  %v3687_v28 = vshrl.u32 %v5465_v54, 16 }
  0xbb   : > { %v7334_v35 = vrot.slane %v3696_v36, 5 }
  0xbd   : > { %5972 = vmatmul.mubr.msk.bf16.gmra.mrb[4].mxu0 %vm713_vm3, %v6375_v37  ;;  %v1323_v37 = vrot.slane %v1321_v16, 4  ;;  %v6432_v16 = vld [vmem:[%s6554_s27 + $0x68] sm:$0x1] }
  0xbe   : > { %5818 = vmatmul.mubr.msk.bf16.gmra.mrb[20].mxu1 %vm713_vm3, %v5113_v6  ;;  %5975 = vmatprep.mubr.msk.bf16.mxu0 %vm713_vm3, %v6377_v61  ;;  %v3644_v6 = vrot.slane %v3642_v8, 5  ;;  %v6379_v61 = vld [vmem:[%s6554_s27 + $0x54] sm:$0xff]   ;;  %v1331_v40 = vrot.slane %v6432_v16, 5  ;;  %v3672_v8 = vshll.u32 %v5463_v39, 16  ;;  %v3655_v16 = vor.u32 %v3654_v12, %v7286_v7 }
  0xbf   : > { %5821 = vmatprep.mubr.msk.bf16.mxu1 %vm713_vm3, %v5114_v9  ;;  %v3663_v9 = vshrl.u32 %v5462_v24, 16  ;;  %v7301_v44 = vsel %vm6806_vm7, %v1323_v37, %v1324_v55  ;;  %v1338_v24 = vrot.slane %v6434_v17, 5  ;;  %v3700_v39 = vshrl.u32 %v5466_v15, 16 }
  0xc0   : > { %v3645_v10 = vor.u32 %v3644_v6, %v3641_v43  ;;  %v7307_v37 = vrot.slane %v3672_v8, 5  ;;  %v3678_v55 = vrot.slane %v3676_v18, 4  ;;  %v8321_v43 = vcombine.low %v6911_v52, %v6922_v46  ;;  %v6435_v8 = vld [vmem:[%s6554_s27 + $0x7c] sm:$0xf]  ;;  %v7343_v18 = vld [vmem:[%s6554_s27 + $0x38] sm:$0x1] }
  0xc1   : > { %v3665_v38 = vrot.slane %v3663_v9, 4  ;;  %v7316_v17 = vsel %vm6806_vm7, %v5142_v11, %v1328_v62  ;;  %v7320_v57 = vsel %vm6806_vm7, %v1330_v31, %v1331_v40  ;;  %v3689_v6 = vrot.slane %v3687_v28, 4  ;;  %8323 = vst [vmem:[#allocation6_spill] sm:$0xff] %v7343_v18 }
  0xc2   : > { %v3692_v12 = vrot.slane %v3690_v50, 5  ;;  %v8322_v52 = vcombine.low %v6943_v33, %v6948_v56  ;;  %v3646_v46 = vrot.slane %v3645_v10, 4  ;;  %v3656_v54 = vrot.slane %v3655_v16, 4  ;;  %v6383_v33 = vld [vmem:[%s6554_s27 + $0x6c] sm:$0xff]   ;;  %v1230_v16 = vld [vmem:[%s6554_s27 + $0x84] sm:$0xe] }
  0xc3   : > { %v3682_v62 = vshll.u32 %v5464_v20, 16  ;;  %v7328_v11 = vsel %vm6806_vm7, %v5143_v5, %v1335_v30  ;;  %v7332_v40 = vsel %vm6806_vm7, %v1337_v48, %v1338_v24  ;;  %v3702_v9 = vrot.slane %v3700_v39, 4  ;;  %v6384_v48 = vld [vmem:[%s6554_s27 + $0x78] sm:$0xff]  }
  0xc4   : > { %v3669_v10 = vor.u32 %v3668_v27, %v3665_v38  ;;  %v3679_v20 = vor.u32 %v3678_v55, %v7307_v37  ;;  %v1342_v30 = vrot.slane %v6435_v8, 5  ;;  %v3693_v38 = vor.u32 %v3692_v12, %v3689_v6  ;;  %v5468_v5 = vld [vmem:[%s6554_s27 + $0x3c] sm:$0xf] }
  0xc5   : > { %5976 = vmatmul.mubr.msk.bf16.gmra.mrb[8].mxu0 %vm713_vm3, %v6379_v61  ;;  %v3660_v61 = vrot.slane %v3658_v25, 5  ;;  %v1229_v25 = vld [vmem:[%s6554_s27 + $0x78] sm:$0xe]  ;;  %v7359_v50 = vrot.slane %v3682_v62, 5  ;;  %v3703_v39 = vor.u32 %v3702_v9, %v7334_v35  ;;  %v3706_v55 = vshll.u32 %v7343_v18, 16 }
  0xc6   : > { %5822 = vmatmul.mubr.msk.bf16.gmra.mrb[24].mxu1 %vm713_vm3, %v8321_v43  ;;  %5979 = vmatprep.mubr.msk.bf16.mxu0 %vm713_vm3, %v6381_v21  ;;  %v3651_v21 = vsel %vm6580_vm4, %v3646_v46, %v7286_v7  ;;  %v5144_v24 = vrot.slane %v1229_v25, 9  ;;  %v6436_v43 = vld [vmem:[%s6554_s27 + $0x88] sm:$0xf]  ;;  %v7367_v7 = vld [vmem:[%s6554_s27 + $0x40] sm:$0xf]  ;;  %v3670_v12 = vrot.slane %v3669_v10, 4  ;;  %v8325_v62 = vcombine.low %v6963_v14, %v6972_v42 }
  0xc7   : > { %5825 = vmatprep.mubr.msk.bf16.mxu1 %vm713_vm3, %v8322_v52  ;;  %v3661_v31 = vsel %vm6580_vm4, %v3656_v54, %v3660_v61  ;;  %v1349_v6 = vrot.slane %v6436_v43, 5  ;;  %8324 = vst [vmem:[#allocation7_spill] sm:$0xff] %v7367_v7  ;;  %v3680_v52 = vrot.slane %v3679_v20, 4  ;;  %v1344_v46 = vrot.slane %v1342_v30, 4  ;;  %v6437_v54 = vld [vmem:[%s6554_s27 + $0x80] sm:$0x1] }
  0xc8   : > { %v1345_v61 = vrot.slane %v6437_v54, 5  ;;  %v3694_v9 = vrot.slane %v3693_v38, 4  ;;  %v5145_v25 = vrot.slane %v1230_v16, 9  ;;  %v3711_v8 = vshrl.u32 %v5468_v5, 16  ;;  %v6385_v10 = vld [vmem:[%s6554_s27 + $0x84] sm:$0xff]  }
  0xc9   : > { %v3714_v43 = vshll.u32 %v5468_v5, 16  ;;  %v7381_v20 = vcombine.low %v3651_v21, %v3661_v31  ;;  %v7385_v14 = vsel %vm762_vm0, %v7185_v26, 0  ;;  %v3724_v38 = vshrl.u32 %v7367_v7, 16  ;;  %v6386_v21 = vld [vmem:[%s6554_s27 + $0x90] sm:$0xff]   ;;  %v6442_v18 = vld [vmem:[%s6554_s27 + $0xa0] sm:$0xf] }
  0xca   : > { %v3704_v16 = vrot.slane %v3703_v39, 4  ;;  %v3708_v5 = vrot.slane %v3706_v55, 5  ;;  %v1351_v54 = vrot.slane %v1349_v6, 4  ;;  %v3675_v31 = vsel %vm6580_vm4, %v3670_v12, %v7307_v37 }
  0xcb   : > { %v3685_v26 = vsel %vm6580_vm4, %v3680_v52, %v7359_v50  ;;  %v7400_v39 = vsel %vm6806_vm7, %v5144_v24, %v1342_v30  ;;  %v7404_v55 = vsel %vm6806_vm7, %v1344_v46, %v1345_v61  ;;  %v3699_v37 = vsel %vm6580_vm4, %v3694_v9, %v7334_v35  ;;  %v5474_v30 = vld [vmem:[%s6554_s27 + $0x54] sm:$0xf]  ;;  %v7421_v24 = vld [vmem:[%s6554_s27 + $0x58] sm:$0xf]  ;;  %v7426_v61 = vld [vmem:[%s6554_s27 + $0x90] sm:$0xe] }
  0xcc   : > { %v7417_v12 = vsel %vm6806_vm7, %v5145_v25, %v1349_v6  ;;  %v3713_v50 = vrot.slane %v3711_v8, 4  ;;  %v3716_v52 = vrot.slane %v3714_v43, 5  ;;  %v3726_v46 = vrot.slane %v3724_v38, 4 }
  0xcd   : > { %5980 = vmatmul.mubr.msk.bf16.gmra.mrb[12].mxu0 %vm713_vm3, %v6383_v33  ;;  %v8326_v33 = vcombine.low %v7170_v0, %v7189_v23  ;;  %v6438_v0 = vld [vmem:[%s6554_s27 + $0x8c] sm:$0x1]  ;;  %v3709_v36 = vsel %vm6580_vm4, %v3704_v16, %v3708_v5  ;;  %v3759_v25 = vshrl.u32 %v5474_v30, 16  ;;  %v3762_v8 = vshll.u32 %v5474_v30, 16 }
  0xce   : > { %5826 = vmatmul.mubr.msk.bf16.gmra.mrb[28].mxu1 %vm713_vm3, %v8325_v62  ;;  %5983 = vmatprep.mubr.msk.bf16.mxu0 %vm713_vm3, %v6384_v48  ;;  %v3720_v48 = vshll.u32 %v7367_v7, 16  ;;  %v1352_v23 = vrot.slane %v6438_v0, 5  ;;  %v5471_v62 = vld [vmem:[%s6554_s27 + $0x48] sm:$0xf]  ;;  %v7410_v0 = vld [vmem:[%s6554_s27 + $0x4c] sm:$0xf]  ;;  %v8328_v38 = vcombine.low %v7174_v29, %v7178_v53  ;;  %v7444_v16 = vcombine.low %v3675_v31, %v3685_v26 }
  0xcf   : > { %5831 = vmatprep.mubr.msk.bf16.mxu1 %vm713_vm3, %v8326_v33  ;;  %v7407_v33 = vld [vmem:[%s6554_s27 + $0x44] sm:$0x1]  ;;  %v3735_v27 = vshrl.u32 %v5471_v62, 16  ;;  %v3738_v15 = vshll.u32 %v5471_v62, 16  ;;  %v3744_v6 = vshll.u32 %v7410_v0, 16  ;;  %v3748_v9 = vshrl.u32 %v7410_v0, 16 }
  0xd0   : > { %8327 = vst [vmem:[#allocation8_spill] sm:$0xff] %v7407_v33  ;;  %v7423_v28 = vrot.slane %v3720_v48, 5  ;;  %v7432_v35 = vsel %vm6806_vm7, %v1351_v54, %v1352_v23  ;;  %v3768_v43 = vshll.u32 %v7421_v24, 16  ;;  %v3772_v48 = vshrl.u32 %v7421_v24, 16  ;;  %v5477_v31 = vld [vmem:[%s6554_s27 + $0x60] sm:$0xf] }
  0xd1   : > { %v3730_v5 = vshll.u32 %v7407_v33, 16  ;;  %v5146_v54 = vrot.slane %v7426_v61, 9  ;;  %v8329_v23 = vcombine.low %v7215_v34, %v7231_v4  ;;  %v7455_v29 = vcombine.low %v3699_v37, %v3709_v36  ;;  %v6387_v26 = vld [vmem:[%s6554_s27 + $0x9c] sm:$0xff]   ;;  %v6388_v30 = vld [vmem:[%s6554_s27 + $0xa8] sm:$0xff]  }
  0xd2   : > { %v3717_v53 = vor.u32 %v3716_v52, %v3713_v50  ;;  %v3737_v62 = vrot.slane %v3735_v27, 4  ;;  %v7466_v34 = vrot.slane %v3744_v6, 5  ;;  %v3750_v4 = vrot.slane %v3748_v9, 4  ;;  %v6439_v36 = vld [vmem:[%s8297_s1 + $0x8] sm:$0x3] }
  0xd3   : > { %v3761_v27 = vrot.slane %v3759_v25, 4  ;;  %v3764_v37 = vrot.slane %v3762_v8, 5  ;;  %v7475_v50 = vrot.slane %v3768_v43, 5  ;;  %v3774_v52 = vrot.slane %v3772_v48, 4  ;;  %v6440_v6 = vld [vmem:[%s6554_s27 + $0x94] sm:$0xf] }
  0xd4   : > { %v7481_v9 = vld [vmem:[%s6554_s27 + $0x64] sm:$0xf]  ;;  %v3783_v61 = vshrl.u32 %v5477_v31, 16  ;;  %v7483_v22 = vrot.slane %v3717_v53, 4  ;;  %v1363_v25 = vrot.slane %v6442_v18, 5  ;;  %v3751_v43 = vor.u32 %v3750_v4, %v7466_v34 }
  0xd5   : > { %5984 = vmatmul.mubr.msk.bf16.gmra.mrb[16].mxu0 %vm713_vm3, %v6385_v10  ;;  %8330 = vst [vmem:[#allocation9_spill] sm:$0xff] %v7481_v9  ;;  %v3786_v10 = vshll.u32 %v5477_v31, 16  ;;  %v3765_v31 = vor.u32 %v3764_v37, %v3761_v27  ;;  %v3775_v53 = vor.u32 %v3774_v52, %v7475_v50  ;;  %v8331_v18 = vcombine.low %v7222_v19, %v7235_v58  ;;  %v6389_v37 = vld [vmem:[%s6554_s27 + $0xb4] sm:$0xff]  }
  0xd6   : > { %5832 = vmatmul.mubr.msk.bf16.vlgmr.msra.gmra.mrb[0].mxu1 %vm713_vm3, %v8328_v38  ;;  %5987 = vmatprep.mubr.msk.bf16.mxu0 %vm713_vm3, %v6386_v21  ;;  %v3740_v21 = vrot.slane %v3738_v15, 5  ;;  %v7464_v38 = vld [vmem:[%s6554_s27 + $0x50] sm:$0x1]  ;;  %v7473_v15 = vld [vmem:[%s6554_s27 + $0x5c] sm:$0x1]  ;;  %v8332_v27 = vcombine.low %v7240_v2, %v7244_v1  ;;  %v1365_v52 = vrot.slane %v1363_v25, 4 }
  0xd7   : > { %5864 = vmatpush3.bf16.msra.mxu1 %v7211_v49  ;;  %5835 = vmatprep.mubr.msk.bf16.mxu1 %vm713_vm3, %v8329_v23  ;;  %v3727_v49 = vor.u32 %v3726_v46, %v7423_v28  ;;  %v7477_v46 = vrot.slane %v3730_v5, 5  ;;  %v1356_v23 = vrot.slane %v6440_v6, 5  ;;  %v3754_v48 = vshll.u32 %v7464_v38, 16  ;;  %v1232_v5 = vld [vmem:[%s6554_s27 + $0x9c] sm:$0xe] }
  0xd8   : > { %6330 = vmatprep.subr.msk.bf16.mxu1 %vm762_vm0, %v6439_v36  ;;  %v6441_v36 = vld [vmem:[%s6554_s27 + $0x98] sm:$0x1]  ;;  %v3741_v7 = vor.u32 %v3740_v21, %v3737_v62  ;;  %v3778_v6 = vshll.u32 %v7473_v15, 16  ;;  %v3796_v62 = vshrl.u32 %v7481_v9, 16  ;;  %v3788_v4 = vrot.slane %v3786_v10, 5 }
  0xd9   : > { %v1359_v33 = vrot.slane %v6441_v36, 5  ;;  %v3728_v8 = vrot.slane %v3727_v49, 4  ;;  %v3792_v36 = vshll.u32 %v7481_v9, 16  ;;  %v7502_v21 = vsel %vm6806_vm7, %v5146_v54, %v1356_v23  ;;  %v7513_v2 = vld [vmem:[%s6554_s27 + $0x68] sm:$0x1] }
  0xda   : > { %v3785_v49 = vrot.slane %v3783_v61, 4  ;;  %v3742_v19 = vrot.slane %v3741_v7, 4  ;;  %v5147_v58 = vrot.slane %v1232_v5, 9  ;;  %v3752_v3 = vrot.slane %v3751_v43, 4  ;;  %8333 = vst [vmem:[#allocation10_spill] sm:$0xff] %v7513_v2  ;;  %v6390_v5 = vld [vmem:[%s6554_s27 + $0xc0] sm:$0xff]  }
  0xdb   : > { %v3756_v54 = vrot.slane %v3754_v48, 5  ;;  %v3780_v63 = vrot.slane %v3778_v6, 5  ;;  %v1370_v61 = vrot.slane %v6948_v56, 5  ;;  %v3766_v10 = vrot.slane %v3765_v31, 4  ;;  %v1234_v31 = vld [vmem:[%s6554_s27 + $0xb4] sm:$0xe] }
  0xdc   : > { %v3776_v51 = vrot.slane %v3775_v53, 4  ;;  %v7515_v1 = vrot.slane %v3792_v36, 5  ;;  %v3798_v7 = vrot.slane %v3796_v62, 4  ;;  %v3723_v43 = vsel %vm6580_vm4, %v7483_v22, %v7423_v28  ;;  %v6444_v62 = vld [vmem:[%s6554_s27 + $0xb0] sm:$0x1] }
  0xdd   : > { %5988 = vmatmul.mubr.msk.bf16.gmra.mrb[20].mxu0 %vm713_vm3, %v6387_v26  ;;  %v1358_v26 = vrot.slane %v1356_v23, 4  ;;  %v1233_v23 = vld [vmem:[%s6554_s27 + $0xa8] sm:$0xe]  ;;  %v3733_v48 = vsel %vm6580_vm4, %v3728_v8, %v7477_v46  ;;  %v3789_v6 = vor.u32 %v3788_v4, %v3785_v49  ;;  %v3747_v53 = vsel %vm6580_vm4, %v3742_v19, %v7466_v34  ;;  %v5480_v46 = vld [vmem:[%s6554_s27 + $0x6c] sm:$0xf] }
  0xde   : > { %5836 = vmatmul.mubr.msk.bf16.gmra.mrb[4].mxu1 %vm713_vm3, %v8331_v18  ;;  %5991 = vmatprep.mubr.msk.bf16.mxu0 %vm713_vm3, %v6388_v30  ;;  %v6443_v18 = vld [vmem:[%s6554_s27 + $0xa4] sm:$0x1]  ;;  %v7535_v36 = vsel %vm6806_vm7, %v5147_v58, %v1363_v25  ;;  %v5148_v28 = vrot.slane %v1233_v23, 9  ;;  %v1372_v8 = vrot.slane %v1370_v61, 4  ;;  %v3802_v49 = vshll.u32 %v7513_v2, 16 }
  0xdf   : > { %5839 = vmatprep.mubr.msk.bf16.mxu1 %vm713_vm3, %v8332_v27  ;;  %v1366_v30 = vrot.slane %v6443_v18, 5  ;;  %v7527_v56 = vsel %vm6806_vm7, %v1358_v26, %v1359_v33  ;;  %v3757_v33 = vsel %vm6580_vm4, %v3752_v3, %v3756_v54  ;;  %v1373_v26 = vrot.slane %v6444_v62, 5  ;;  %v5483_v18 = vld [vmem:[%s6554_s27 + $0x78] sm:$0xf]  ;;  %v7590_v54 = vld [vmem:[%s6554_s27 + $0xbc] sm:$0x1] }
  0xe0   : > { %v3771_v34 = vsel %vm6580_vm4, %v3766_v10, %v7475_v50  ;;  %v3781_v25 = vsel %vm6580_vm4, %v3776_v51, %v3780_v63  ;;  %v3799_v4 = vor.u32 %v3798_v7, %v7515_v1  ;;  %v5149_v27 = vrot.slane %v1234_v31, 9  ;;  %v7564_v51 = vld [vmem:[%s6554_s27 + $0x70] sm:$0xf]  ;;  %v7594_v10 = vld [vmem:[%s6554_s27 + $0x7c] sm:$0xf] }
  0xe1   : > { %v7539_v22 = vsel %vm6806_vm7, %v1365_v52, %v1366_v30  ;;  %v8335_v3 = vcombine.low %v7257_v45, %v7261_v59  ;;  %v7560_v19 = vrot.slane %v3789_v6, 4  ;;  %v1377_v50 = vrot.slane %v6972_v42, 5  ;;  %8336 = vst [vmem:[#allocation12_spill] sm:$0xff] %v7564_v51  ;;  %8338 = vst [vmem:[#allocation13_spill] sm:$0xff] %v7594_v10  ;;  %v5486_v7 = vld [vmem:[%s6554_s27 + $0x84] sm:$0xf] }
  0xe2   : > { %8334 = vst [vmem:[#allocation11_spill] sm:$0xff] %v7539_v22  ;;  %v3807_v63 = vshrl.u32 %v5480_v46, 16  ;;  %v8337_v45 = vcombine.low %v7265_v47, %v7292_v41  ;;  %v7572_v58 = vcombine.low %v3747_v53, %v3757_v33  ;;  %v7578_v42 = vsel %vm6806_vm7, %v5148_v28, %v1370_v61  ;;  %v6391_v61 = vld [vmem:[%s6554_s27 + $0xcc] sm:$0xff]   ;;  %v7606_v31 = vld [vmem:[%s6554_s27 + $0x88] sm:$0xf] }
  0xe3   : > { %v7581_v30 = vcombine.low %v3771_v34, %v3781_v25  ;;  %v7585_v47 = vsel %vm6806_vm7, %v1372_v8, %v1373_v26  ;;  %v7587_v41 = vrot.slane %v3802_v49, 5  ;;  %v3816_v6 = vshll.u32 %v7564_v51, 16  ;;  %8339 = vst [vmem:[#allocation14_spill] sm:$0xff] %v7606_v31  ;;  %v5489_v62 = vld [vmem:[%s6554_s27 + $0x90] sm:$0xf] }
  0xe4   : > { %v7612_v28 = vrot.slane %v1377_v50, 4  ;;  %v7614_v33 = vrot.slane %v3807_v63, 4  ;;  %v3820_v8 = vshrl.u32 %v7564_v51, 16  ;;  %v3831_v26 = vshrl.u32 %v5483_v18, 16  ;;  %v7621_v25 = vld [vmem:[%s6554_s27 + $0x94] sm:$0xf] }
  0xe5   : > { %5992 = vmatmul.mubr.msk.bf16.gmra.mrb[24].mxu0 %vm713_vm3, %v6389_v37  ;;  %v7558_v37 = vcombine.low %v3723_v43, %v3733_v48  ;;  %v7602_v43 = vsel %vm6806_vm7, %v5149_v27, %v1377_v50  ;;  %v3810_v48 = vshll.u32 %v5480_v46, 16  ;;  %v3834_v49 = vshll.u32 %v5483_v18, 16  ;;  %8340 = vst [vmem:[#allocation15_spill] sm:$0xff] %v7621_v25  ;;  %v7659_v2 = vld [vmem:[%s6554_s27 + $0x8c] sm:$0x1] }
  0xe6   : > { %5840 = vmatmul.mubr.msk.bf16.gmra.mrb[8].mxu1 %vm713_vm3, %v8335_v3  ;;  %5995 = vmatprep.mubr.msk.bf16.mxu0 %vm713_vm3, %v6390_v5  ;;  %v7598_v5 = vrot.slane %v3799_v4, 4  ;;  %v3840_v46 = vshll.u32 %v7594_v10, 16  ;;  %v3844_v34 = vshrl.u32 %v7594_v10, 16  ;;  %v3855_v4 = vshrl.u32 %v5486_v7, 16 }
  0xe7   : > { %5843 = vmatprep.mubr.msk.bf16.mxu1 %vm713_vm3, %v8337_v45  ;;  %v3858_v27 = vshll.u32 %v5486_v7, 16  ;;  %v3864_v3 = vshll.u32 %v7606_v31, 16  ;;  %v3868_v50 = vshrl.u32 %v7606_v31, 16  ;;  %v7631_v45 = vld [vmem:[%s6554_s27 + $0x74] sm:$0x1]  ;;  %v3812_v18 = vrot.slane %v3810_v48, 5 }
  0xe8   : > { %v3879_v52 = vshrl.u32 %v5489_v62, 16  ;;  %v3882_v53 = vshll.u32 %v5489_v62, 16  ;;  %v8341_v7 = vcombine.low %v7276_v60, %v7301_v44  ;;  %v3822_v59 = vrot.slane %v3820_v8, 4  ;;  %v5492_v48 = vld [vmem:[%s6554_s27 + $0x9c] sm:$0xf] }
  0xe9   : > { %v3888_v63 = vshll.u32 %v7621_v25, 16  ;;  %v3892_v23 = vshrl.u32 %v7621_v25, 16  ;;  %v8342_v62 = vcombine.low %v7316_v17, %v7320_v57  ;;  %v7649_v44 = vld [vmem:[%s6554_s27 + $0x80] sm:$0x1]  ;;  %v3833_v60 = vrot.slane %v3831_v26, 4 }
  0xea   : > { %8343 = vst [vmem:[#allocation16_spill] sm:$0xff] %v7649_v44  ;;  %v3857_v31 = vrot.slane %v3855_v4, 4  ;;  %v3860_v8 = vrot.slane %v3858_v27, 5  ;;  %v7653_v10 = vrot.slane %v3864_v3, 5  ;;  %v3870_v51 = vrot.slane %v3868_v50, 4 }
  0xeb   : > { %v7656_v25 = vld [vmem:[%s6554_s27 + $0xa0] sm:$0xf]  ;;  %v3881_v17 = vrot.slane %v3879_v52, 4  ;;  %v3884_v57 = vrot.slane %v3882_v53, 5  ;;  %v3906_v9 = vshll.u32 %v5492_v48, 16  ;;  %v3813_v26 = vor.u32 %v3812_v18, %v7614_v33 }
  0xec   : > { %v3850_v27 = vshll.u32 %v7649_v44, 16  ;;  %v7668_v3 = vld [vmem:[%s6554_s27 + $0x98] sm:$0x1]  ;;  %v3912_v50 = vshll.u32 %v7656_v25, 16  ;;  %v3916_v52 = vshrl.u32 %v7656_v25, 16  ;;  %v3861_v22 = vor.u32 %v3860_v8, %v3857_v31 }
  0xed   : > { %5996 = vmatmul.mubr.msk.bf16.gmra.mrb[28].mxu0 %vm713_vm3, %v6391_v61  ;;  %v7639_v61 = vrot.slane %v3816_v6, 5  ;;  %v3846_v6 = vrot.slane %v3844_v34, 4  ;;  %v3894_v34 = vrot.slane %v3892_v23, 4  ;;  %v3874_v33 = vshll.u32 %v7659_v2, 16 }
  0xee   : > { %5844 = vmatmul.mubr.msk.bf16.gmra.mrb[12].mxu1 %vm713_vm3, %v8341_v7  ;;  %6001 = vmatprep.mubr.msk.bf16.mxu0 %vm713_vm3, %v7381_v20  ;;  %v3836_v7 = vrot.slane %v3834_v49, 5  ;;  %v7651_v20 = vrot.slane %v3840_v46, 5  ;;  %v3826_v49 = vshll.u32 %v7631_v45, 16  ;;  %v7663_v46 = vrot.slane %v3888_v63, 5 }
  0xef   : > { %5847 = vmatprep.mubr.msk.bf16.mxu1 %vm713_vm3, %v8342_v62  ;;  %v3903_v62 = vshrl.u32 %v5492_v48, 16  ;;  %v3823_v4 = vor.u32 %v3822_v59, %v7639_v61  ;;  %v3871_v23 = vor.u32 %v3870_v51, %v7653_v10  ;;  %v3885_v59 = vor.u32 %v3884_v57, %v3881_v17  ;;  %v7701_v57 = vld [vmem:[%s6554_s27 + $0xa4] sm:$0x1] }
  0xf0   : > { %v3837_v53 = vor.u32 %v3836_v7, %v3833_v60  ;;  %v3847_v48 = vor.u32 %v3846_v6, %v7651_v20  ;;  %v3908_v18 = vrot.slane %v3906_v9, 5  ;;  %v8344_v44 = vcombine.low %v7328_v11, %v7332_v40 }
  0xf1   : > { %v3905_v63 = vrot.slane %v3903_v62, 4  ;;  %v8345_v31 = vrot.slane %v7590_v54, 5  ;;  %v3828_v51 = vrot.slane %v3826_v49, 5  ;;  %v3895_v60 = vor.u32 %v3894_v34, %v7663_v46  ;;  %v7704_v34 = vld [vmem:[%s6554_s27 + $0xac] sm:$0xf] }
  0xf2   : > { %v3898_v9 = vshll.u32 %v7668_v3, 16  ;;  %v8346_v11 = vcombine.low %v7400_v39, %v7404_v55  ;;  %v3814_v40 = vrot.slane %v3813_v26, 4  ;;  %v7697_v54 = vrot.slane %v3912_v50, 5 }
  0xf3   : > { %v3838_v7 = vrot.slane %v3837_v53, 4  ;;  %v3848_v6 = vrot.slane %v3847_v48, 4  ;;  %v3852_v8 = vrot.slane %v3850_v27, 5  ;;  %v3876_v17 = vrot.slane %v3874_v33, 5  ;;  %v7714_v48 = vld [vmem:[%s6554_s27 + $0xb0] sm:$0x1] }
  0xf4   : > { %v3862_v39 = vrot.slane %v3861_v22, 4  ;;  %v3872_v55 = vrot.slane %v3871_v23, 4  ;;  %v3886_v62 = vrot.slane %v3885_v59, 4  ;;  %v3909_v49 = vor.u32 %v3908_v18, %v3905_v63 }
  0xf5   : > { %6002 = vmatmul.mubr.msk.bf16.vlgmr.msra.gmra.mrb[0].mxu0 %vm713_vm3, %v7444_v16  ;;  %v7687_v16 = vsel %vm6806_vm7, %v7612_v28, %v8345_v31  ;;  %v3918_v28 = vrot.slane %v3916_v52, 4  ;;  %v3900_v26 = vrot.slane %v3898_v9, 5  ;;  %v3819_v52 = vsel %vm6580_vm4, %v3814_v40, %v7639_v61 }
  0xf6   : > { %5848 = vmatmul.mubr.msk.bf16.gmra.mrb[16].mxu1 %vm713_vm3, %v8344_v44  ;;  %6034 = vmatpush3.bf16.msra.mxu0 %v7385_v14  ;;  %v3824_v14 = vrot.slane %v3823_v4, 4  ;;  %v5495_v44 = vld [vmem:[%s6554_s27 + $0xa8] sm:$0xf]  ;;  %v3922_v22 = vshll.u32 %v7701_v57, 16  ;;  %v3843_v33 = vsel %vm6580_vm4, %v3838_v7, %v7651_v20  ;;  %v3853_v23 = vsel %vm6580_vm4, %v3848_v6, %v3852_v8 }
  0xf7   : > { %5851 = vmatprep.mubr.msk.bf16.mxu1 %vm713_vm3, %v8346_v11  ;;  %6005 = vmatprep.mubr.msk.bf16.mxu0 %vm713_vm3, %v7455_v29  ;;  %v3896_v29 = vrot.slane %v3895_v60, 4  ;;  %v3927_v4 = vshrl.u32 %v5495_v44, 16  ;;  %v3930_v50 = vshll.u32 %v5495_v44, 16  ;;  %v3919_v53 = vor.u32 %v3918_v28, %v7697_v54  ;;  %v5544_v11 = vld [vmem:[%s6554_s27 + $0x48] sm:$0xe] }
  0xf8   : > { %v3829_v27 = vsel %vm6580_vm4, %v3824_v14, %v3828_v51  ;;  %v3936_v59 = vshll.u32 %v7704_v34, 16  ;;  %v3940_v61 = vshrl.u32 %v7704_v34, 16  ;;  %v3867_v63 = vsel %vm6580_vm4, %v3862_v39, %v7653_v10  ;;  %v7779_v39 = vld [vmem:[%s6554_s27 + $0xb8] sm:$0xf] }
  0xf9   : > { %v3877_v18 = vsel %vm6580_vm4, %v3872_v55, %v3876_v17  ;;  %v3891_v20 = vsel %vm6580_vm4, %v3886_v62, %v7663_v46  ;;  %v3910_v31 = vrot.slane %v3909_v49, 4  ;;  %v8347_v51 = vcombine.low %v7417_v12, %v7432_v35 }
  0xfa   : > { %v3929_v10 = vrot.slane %v3927_v4, 4  ;;  %v3932_v60 = vrot.slane %v3930_v50, 5  ;;  %v3946_v9 = vshll.u32 %v7714_v48, 16  ;;  %v8348_v46 = vcombine.low %v7502_v21, %v7527_v56  ;;  %v5498_v21 = vld [vmem:[%s6554_s27 + $0xb4] sm:$0xf] }
  0xfb   : > { %v5165_v12 = vcombine.low %v7578_v42, %v7585_v47  ;;  %v8349_v35 = vsel %vm6580_vm4, %v7598_v5, %v7587_v41  ;;  %v3920_v14 = vrot.slane %v3919_v53, 4  ;;  %v3924_v28 = vrot.slane %v3922_v22, 5  ;;  %v5546_v4 = vld [vmem:[%s6554_s27 + $0x60] sm:$0xe]  ;;  %v5547_v53 = vld [vmem:[%s6554_s27 + $0x6c] sm:$0xe] }
  0xfc   : > { %v5166_v56 = vcombine.low %v7602_v43, %v7687_v16  ;;  %v7762_v44 = vcombine.low %v3819_v52, %v3829_v27  ;;  %v7764_v42 = vrot.slane %v3936_v59, 5  ;;  %v3942_v47 = vrot.slane %v3940_v61, 4  ;;  %v8358_v16 = vld [vmem:[#allocation4_spill] sm:$0xff] }
  0xfd   : > { %6006 = vmatmul.mubr.msk.bf16.gmra.mrb[4].mxu0 %vm713_vm3, %v7558_v37  ;;  %v3901_v37 = vsel %vm6580_vm4, %v3896_v29, %v3900_v26  ;;  %v7766_v41 = vcombine.low %v3843_v33, %v3853_v23  ;;  %v7768_v5 = vcombine.low %v3867_v63, %v3877_v18  ;;  %v3915_v6 = vsel %vm6580_vm4, %v3910_v31, %v7697_v54  ;;  %v8351_v23 = vld [vmem:[#allocation11_spill] sm:$0xff]  ;;  %v5501_v63 = vld [vmem:[%s6554_s27 + $0xc0] sm:$0xf]  ;;  %v8353_v18 = vld [vmem:[#allocation9_spill] sm:$0xff] }
  0xfe   : > { %5852 = vmatmul.mubr.msk.bf16.gmra.mrb[20].mxu1 %vm713_vm3, %v8347_v51  ;;  %6009 = vmatprep.mubr.msk.bf16.mxu0 %vm713_vm3, %v7572_v58  ;;  %v8350_v58 = vsel %vm6580_vm4, %v7560_v19, %v7515_v1  ;;  %v7770_v7 = vcombine.low %v3891_v20, %v3901_v37  ;;  %v5560_v1 = vrot.slane %v5544_v11, 9  ;;  %v5545_v19 = vld [vmem:[%s6554_s27 + $0x54] sm:$0xe]  ;;  %v3933_v8 = vor.u32 %v3932_v60, %v3929_v10  ;;  %v8354_v31 = vld [vmem:[#allocation10_spill] sm:$0xff] }
  0xff   : > { %5855 = vmatprep.mubr.msk.bf16.mxu1 %vm713_vm3, %v8348_v46  ;;  %v5514_v40 = vcombine.low %v8350_v58, %v8349_v35  ;;  %v7776_v17 = vrot.slane %v3946_v9, 5  ;;  %v3951_v55 = vshrl.u32 %v5498_v21, 16  ;;  %v3925_v62 = vsel %vm6580_vm4, %v3920_v14, %v3924_v28  ;;  %v8355_v9 = vld [vmem:[#allocation12_spill] sm:$0xff]  ;;  %v7828_v35 = vld [vmem:[%s6554_s27 + $0xbc] sm:$0x1] }
 0x100   : > { %v3954_v49 = vshll.u32 %v5498_v21, 16  ;;  %v4410_v29 = vrot.slane %v7410_v0, 5  ;;  %v4413_v26 = vrot.slane %v7464_v38, 5  ;;  %v3943_v50 = vor.u32 %v3942_v47, %v7764_v42  ;;  %v7831_v58 = vld [vmem:[%s6554_s27 + $0xc4] sm:$0xf] }
 0x101   : > { %v5561_v52 = vrot.slane %v5545_v19, 9  ;;  %v4417_v54 = vrot.slane %v7421_v24, 5  ;;  %v4420_v27 = vrot.slane %v7473_v15, 5  ;;  %v3960_v22 = vshll.u32 %v7779_v39, 16  ;;  %v5548_v19 = vld [vmem:[%s6554_s27 + $0x78] sm:$0xe] }
 0x102   : > { %v3964_v33 = vshrl.u32 %v7779_v39, 16  ;;  %v7796_v0 = vsel %vm6806_vm7, %v5560_v1, %v4410_v29  ;;  %v4412_v38 = vrot.slane %v4410_v29, 4  ;;  %v8352_v59 = vcombine.low %v7535_v36, %v8351_v23  ;;  %v8356_v23 = vld [vmem:[#allocation13_spill] sm:$0xff] }
 0x103   : > { %v7803_v24 = vcombine.low %v3915_v6, %v3925_v62  ;;  %v7807_v15 = vsel %vm6806_vm7, %v5561_v52, %v4417_v54  ;;  %v5562_v61 = vrot.slane %v5546_v4, 9  ;;  %v4424_v20 = vrot.slane %v8353_v18, 5  ;;  %v6392_v6 = vld [vmem:[%s6554_s27 + $0xc] sm:$0xff]  }
 0x104   : > { %v7813_v36 = vsel %vm6806_vm7, %v4412_v38, %v4413_v26  ;;  %v4427_v51 = vrot.slane %v8354_v31, 5  ;;  %v5563_v37 = vrot.slane %v5547_v53, 9  ;;  %v4431_v11 = vrot.slane %v8355_v9, 5 }
 0x105   : > { %6010 = vmatmul.mubr.msk.bf16.gmra.mrb[8].mxu0 %vm713_vm3, %v7581_v30  ;;  %v4419_v30 = vrot.slane %v4417_v54, 4  ;;  %v5577_v10 = vcombine.low %v7796_v0, %v7813_v36  ;;  %v4434_v46 = vrot.slane %v7631_v45, 5  ;;  %v7837_v14 = vsel %vm6806_vm7, %v5562_v61, %v4424_v20 }
 0x106   : > { %5856 = vmatmul.mubr.msk.bf16.gmra.mrb[24].mxu1 %vm713_vm3, %v8352_v59  ;;  %6013 = vmatprep.mubr.msk.bf16.mxu0 %vm713_vm3, %v5514_v40  ;;  %v4426_v28 = vrot.slane %v4424_v20, 4  ;;  %v7839_v21 = vrot.slane %v3951_v55, 4  ;;  %v3975_v47 = vshrl.u32 %v5501_v63, 16  ;;  %v7843_v45 = vsel %vm6806_vm7, %v5563_v37, %v4431_v11  ;;  %v5275_v55 = vld [vmem:[%s6554_s27 + $0x78] sm:$0xf]  ;;  %v8357_v59 = vld [vmem:[#allocation16_spill] sm:$0xff] }
 0x107   : > { %5859 = vmatprep.mubr.msk.bf16.mxu1 %vm713_vm3, %v5165_v12  ;;  %v7821_v60 = vsel %vm6806_vm7, %v4419_v30, %v4420_v27  ;;  %v7825_v12 = vrot.slane %v3933_v8, 4  ;;  %v4433_v1 = vrot.slane %v4431_v11, 4  ;;  %v7847_v8 = vrot.slane %v3943_v50, 4 }
 0x108   : > { %v5578_v40 = vcombine.low %v7807_v15, %v7821_v60  ;;  %v7849_v62 = vrot.slane %v3954_v49, 5  ;;  %v3978_v29 = vshll.u32 %v5501_v63, 16  ;;  %v7853_v26 = vsel %vm6806_vm7, %v4426_v28, %v4427_v51  ;;  %v8360_v28 = vld [vmem:[#allocation14_spill] sm:$0xff] }
 0x109   : > { %v7856_v4 = vrot.slane %v3960_v22, 5  ;;  %v7858_v52 = vrot.slane %v3964_v33, 4  ;;  %v5579_v54 = vcombine.low %v7837_v14, %v7853_v26  ;;  %v7864_v27 = vsel %vm6806_vm7, %v4433_v1, %v4434_v46  ;;  %v5549_v33 = vld [vmem:[%s6554_s27 + $0x84] sm:$0xe]  ;;  %v6393_v1 = vld [vmem:[%s6554_s27 + $0x18] sm:$0xff]  }
 0x10a   : > { %v3970_v49 = vshll.u32 %v7828_v35, 16  ;;  %v3984_v50 = vshll.u32 %v7831_v58, 16  ;;  %v5580_v53 = vcombine.low %v7843_v45, %v7864_v27  ;;  %v5564_v22 = vrot.slane %v5548_v19, 9  ;;  %v6455_v60 = vld [vmem:[%s6554_s27 + $0xa0] sm:$0xf] }
 0x10b   : > { %v3977_v38 = vrot.slane %v3975_v47, 4  ;;  %v4441_v30 = vrot.slane %v8357_v59, 5  ;;  %v2300_v61 = vshrl.u32 %v5275_v55, 16  ;;  %v3980_v63 = vrot.slane %v3978_v29, 5  ;;  %v5504_v29 = vld [vmem:[%s6554_s27 + $0xcc] sm:$0xf] }
 0x10c   : > { %v3988_v18 = vshrl.u32 %v7831_v58, 16  ;;  %v2303_v43 = vshll.u32 %v5275_v55, 16  ;;  %v5565_v37 = vrot.slane %v5549_v33, 9  ;;  %v3939_v9 = vsel %vm6580_vm4, %v7825_v12, %v7764_v42  ;;  %v7907_v55 = vld [vmem:[%s6554_s27 + $0xd0] sm:$0xf] }
 0x10d   : > { %6014 = vmatmul.mubr.msk.bf16.gmra.mrb[12].mxu0 %vm713_vm3, %v7762_v44  ;;  %v4438_v44 = vrot.slane %v8356_v23, 5  ;;  %v2302_v51 = vrot.slane %v2300_v61, 4  ;;  %v3957_v11 = vor.u32 %v7849_v62, %v7839_v21  ;;  %v4445_v47 = vrot.slane %v8360_v28, 5  ;;  %v6394_v21 = vld [vmem:[%s6554_s27 + $0x24] sm:$0xff]   ;;  %v6459_v27 = vld [vmem:[%s6554_s27 + $0xac] sm:$0xf] }
 0x10e   : > { %5860 = vmatmul.mubr.msk.bf16.gmra.mrb[28].mxu1 %vm713_vm3, %v5166_v56  ;;  %6017 = vmatprep.mubr.msk.bf16.mxu0 %vm713_vm3, %v7766_v41  ;;  %v8359_v56 = vld [vmem:[#allocation5_spill] sm:$0xff]  ;;  %v2305_v46 = vrot.slane %v2303_v43, 5  ;;  %v3949_v19 = vsel %vm6580_vm4, %v7847_v8, %v7776_v17  ;;  %v4448_v12 = vrot.slane %v7659_v2, 5  ;;  %v7915_v62 = vrot.slane %v3984_v50, 5  ;;  %v5550_v8 = vld [vmem:[%s6554_s27 + $0x90] sm:$0xe] }
 0x10f   : > { %5865 = vmatprep.mubr.msk.bf16.mxu1 %vm713_vm3, %v6392_v6  ;;  %v2322_v41 = vsel %vm6580_vm4, %v8359_v56, %v8358_v16  ;;  %v7889_v20 = vsel %vm6806_vm7, %v5564_v22, %v4438_v44  ;;  %v4440_v31 = vrot.slane %v4438_v44, 4  ;;  %v3967_v6 = vor.u32 %v7858_v52, %v7856_v4  ;;  %v7921_v52 = vld [vmem:[%s6554_s27 + $0xc8] sm:$0x1]  ;;  %v8362_v16 = vld [vmem:[#allocation2_spill] sm:$0xff] }
 0x110   : > { %v3990_v22 = vrot.slane %v3988_v18, 4  ;;  %v2306_v17 = vor.u32 %v2305_v46, %v2302_v51  ;;  %v3972_v23 = vrot.slane %v3970_v49, 5  ;;  %v3981_v44 = vor.u32 %v3980_v63, %v3977_v38  ;;  %v8363_v51 = vld [vmem:[#allocation3_spill] sm:$0xff] }
 0x111   : > { %v7911_v42 = vsel %vm6806_vm7, %v4440_v31, %v4441_v30  ;;  %v7925_v59 = vsel %vm6806_vm7, %v5565_v37, %v4445_v47  ;;  %v4447_v30 = vrot.slane %v4445_v47, 4  ;;  %v3999_v2 = vshrl.u32 %v5504_v29, 16 }
 0x112   : > { %v5581_v33 = vcombine.low %v7889_v20, %v7911_v42  ;;  %v4002_v50 = vshll.u32 %v5504_v29, 16  ;;  %v4008_v61 = vshll.u32 %v7907_v55, 16  ;;  %v2307_v18 = vrot.slane %v2306_v17, 4  ;;  %v6395_v29 = vld [vmem:[%s6554_s27 + $0x30] sm:$0xff]  }
 0x113   : > { %v4012_v49 = vshrl.u32 %v7907_v55, 16  ;;  %v7936_v38 = vsel %vm6806_vm7, %v4447_v30, %v4448_v12  ;;  %v5566_v63 = vrot.slane %v5550_v8, 9  ;;  %v3991_v56 = vor.u32 %v3990_v22, %v7915_v62 }
 0x114   : > { %v3994_v31 = vshll.u32 %v7921_v52, 16  ;;  %v5582_v37 = vcombine.low %v7925_v59, %v7936_v38  ;;  %v5520_v46 = vcombine.low %v3939_v9, %v3949_v19  ;;  %v3958_v28 = vrot.slane %v3957_v11, 4  ;;  %v5551_v11 = vld [vmem:[%s6554_s27 + $0x9c] sm:$0xe] }
 0x115   : > { %6018 = vmatmul.mubr.msk.bf16.gmra.mrb[16].mxu0 %vm713_vm3, %v7768_v5  ;;  %v8361_v5 = vld [vmem:[#allocation15_spill] sm:$0xff]  ;;  %v3968_v47 = vrot.slane %v3967_v6, 4  ;;  %v3982_v12 = vrot.slane %v3981_v44, 4  ;;  %v4455_v8 = vrot.slane %v7668_v3, 5  ;;  %v4001_v30 = vrot.slane %v3999_v2, 4  ;;  %v6396_v19 = vld [vmem:[%s6554_s27 + $0x3c] sm:$0xff]  }
 0x116   : > { %5866 = vmatmul.mubr.msk.bf16.vlgmr.msra.gmra.mrb[0].mxu1 %vm713_vm3, %v6393_v1  ;;  %6021 = vmatprep.mubr.msk.bf16.mxu0 %vm713_vm3, %v7770_v7  ;;  %v4452_v43 = vrot.slane %v8361_v5, 5  ;;  %v2312_v7 = vsel %vm6580_vm4, %v2307_v18, %v8363_v51  ;;  %v4004_v18 = vrot.slane %v4002_v50, 5  ;;  %v7959_v5 = vrot.slane %v4008_v61, 5 }
 0x117   : > { %6068 = vmatpush3.bf16.msra.mxu1 %v8362_v16  ;;  %5869 = vmatprep.mubr.msk.bf16.mxu1 %vm713_vm3, %v6394_v21  ;;  %v7948_v1 = vcombine.low %v2312_v7, %v2322_v41  ;;  %v7952_v21 = vld [vmem:[%s6554_s27 + $0xd4] sm:$0x1]  ;;  %v4014_v9 = vrot.slane %v4012_v49, 4  ;;  %v3992_v41 = vrot.slane %v3991_v56, 4  ;;  %v3996_v6 = vrot.slane %v3994_v31, 5 }
 0x118   : > { %v7956_v22 = vsel %vm6806_vm7, %v5566_v63, %v4452_v43  ;;  %v4454_v17 = vrot.slane %v4452_v43, 4  ;;  %v3963_v63 = vsel %vm6580_vm4, %v3958_v28, %v7856_v4  ;;  %v3973_v2 = vsel %vm6580_vm4, %v3968_v47, %v3972_v23  ;;  %v6446_v16 = vld [vmem:[%s6554_s27 + $0x1c] sm:$0xf]  ;;  %v5552_v28 = vld [vmem:[%s6554_s27 + $0xa8] sm:$0xe] }
 0x119   : > { %v4018_v50 = vshll.u32 %v7952_v21, 16  ;;  %v5567_v61 = vrot.slane %v5551_v11, 9  ;;  %v4459_v49 = vrot.slane %v7656_v25, 5  ;;  %v3987_v4 = vsel %vm6580_vm4, %v3982_v12, %v7915_v62  ;;  %v5540_v62 = vld [vmem:[%s6554_s27 + $0x18] sm:$0xe]  ;;  %v6397_v47 = vld [vmem:[%s6554_s27 + $0x48] sm:$0xff]  }
 0x11a   : > { %v7965_v44 = vsel %vm6806_vm7, %v4454_v17, %v4455_v8  ;;  %v4015_v43 = vor.u32 %v4014_v9, %v7959_v5  ;;  %v4462_v23 = vrot.slane %v7701_v57, 5  ;;  %v3997_v25 = vsel %vm6580_vm4, %v3992_v41, %v3996_v6  ;;  %v6447_v11 = vld [vmem:[%s6554_s27 + $0x20] sm:$0x1] }
 0x11b   : > { %v5583_v3 = vcombine.low %v7956_v22, %v7965_v44  ;;  %v4382_v56 = vrot.slane %v6446_v16, 5  ;;  %v7991_v31 = vsel %vm6806_vm7, %v5567_v61, %v4459_v49  ;;  %v4461_v51 = vrot.slane %v4459_v49, 4  ;;  %v5553_v49 = vld [vmem:[%s6554_s27 + $0xb4] sm:$0xe] }
 0x11c   : > { %v5521_v7 = vcombine.low %v3963_v63, %v3973_v2  ;;  %v4016_v17 = vrot.slane %v4015_v43, 4  ;;  %v5568_v41 = vrot.slane %v5552_v28, 9  ;;  %v4466_v6 = vrot.slane %v7704_v34, 5  ;;  %v5541_v2 = vld [vmem:[%s6554_s27 + $0x24] sm:$0xe] }
 0x11d   : > { %6022 = vmatmul.mubr.msk.bf16.gmra.mrb[20].mxu0 %vm713_vm3, %v7803_v24  ;;  %v4005_v24 = vor.u32 %v4004_v18, %v4001_v30  ;;  %v7996_v57 = vsel %vm6806_vm7, %v4461_v51, %v4462_v23  ;;  %v6398_v30 = vld [vmem:[%s6554_s27 + $0x54] sm:$0xff]   ;;  %v5556_v18 = vrot.slane %v5540_v62, 9  ;;  %v4384_v9 = vrot.slane %v4382_v56, 4  ;;  %v6450_v28 = vld [vmem:[%s6554_s27 + $0x2c] sm:$0x1] }
 0x11e   : > { %5870 = vmatmul.mubr.msk.bf16.gmra.mrb[4].mxu1 %vm713_vm3, %v6395_v29  ;;  %6025 = vmatprep.mubr.msk.bf16.mxu0 %vm713_vm3, %v5520_v46  ;;  %v4020_v46 = vrot.slane %v4018_v50, 5  ;;  %v5522_v29 = vcombine.low %v3987_v4, %v3997_v25  ;;  %v5584_v8 = vcombine.low %v7991_v31, %v7996_v57  ;;  %v4469_v63 = vrot.slane %v7714_v48, 5  ;;  %v6448_v50 = vld [vmem:[%s6554_s27 + $0x28] sm:$0xf]  ;;  %v5542_v25 = vld [vmem:[%s6554_s27 + $0x30] sm:$0xe] }
 0x11f   : > { %5873 = vmatprep.mubr.msk.bf16.mxu1 %vm713_vm3, %v6396_v19  ;;  %v4006_v12 = vrot.slane %v4005_v24, 4  ;;  %v4385_v19 = vrot.slane %v6447_v11, 5  ;;  %v4389_v61 = vrot.slane %v6448_v50, 5  ;;  %v8019_v48 = vsel %vm6806_vm7, %v5568_v41, %v4466_v6  ;;  %v6400_v11 = vld [vmem:[%s6554_s27 + $0x6c] sm:$0xff]   ;;  %v8364_v41 = vld [vmem:[#allocation6_spill] sm:$0xff] }
 0x120   : > { %v4021_v34 = vsel %vm6580_vm4, %v4016_v17, %v4020_v46  ;;  %v4468_v24 = vrot.slane %v4466_v6, 4  ;;  %v4383_v43 = vsel %vm6806_vm7, %v5556_v18, %v4382_v56  ;;  %v5557_v51 = vrot.slane %v5541_v2, 9  ;;  %v5554_v50 = vld [vmem:[%s6554_s27 + $0xc0] sm:$0xe]  ;;  %v6464_v31 = vld [vmem:[%s6554_s27 + $0xc8] sm:$0x1] }
 0x121   : > { %v4011_v4 = vsel %vm6580_vm4, %v4006_v12, %v7959_v5  ;;  %v4386_v23 = vsel %vm6806_vm7, %v4384_v9, %v4385_v19  ;;  %v6449_v5 = vld [vmem:[%s6554_s27 + $0x34] sm:$0xf]  ;;  %v6399_v12 = vld [vmem:[%s6554_s27 + $0x60] sm:$0xff]   ;;  %v5558_v18 = vrot.slane %v5542_v25, 9  ;;  %v4476_v9 = vrot.slane %v7828_v35, 5 }
 0x122   : > { %v4396_v16 = vrot.slane %v6449_v5, 5  ;;  %v8030_v62 = vsel %vm6806_vm7, %v4468_v24, %v4469_v63  ;;  %v5523_v46 = vcombine.low %v4011_v4, %v4021_v34  ;;  %v5573_v17 = vcombine.low %v4383_v43, %v4386_v23  ;;  %v5543_v24 = vld [vmem:[%s6554_s27 + $0x3c] sm:$0xe] }
 0x123   : > { %v5585_v56 = vcombine.low %v8019_v48, %v8030_v62  ;;  %v4399_v6 = vrot.slane %v8364_v41, 5  ;;  %v4390_v35 = vsel %vm6806_vm7, %v5557_v51, %v4389_v61  ;;  %v5570_v5 = vrot.slane %v5554_v50, 9 }
 0x124   : > { %v4398_v19 = vrot.slane %v4396_v16, 4  ;;  %v4397_v23 = vsel %vm6806_vm7, %v5558_v18, %v4396_v16  ;;  %v4483_v51 = vrot.slane %v7921_v52, 5  ;;  %v2463_v57 = vshll.u32 %v6464_v31, 16 }
 0x125   : > { %6026 = vmatmul.mubr.msk.bf16.gmra.mrb[24].mxu0 %vm713_vm3, %v5521_v7  ;;  %v5569_v7 = vrot.slane %v5553_v49, 9 }
 0x126   : > { %5874 = vmatmul.mubr.msk.bf16.gmra.mrb[8].mxu1 %vm713_vm3, %v6397_v47  ;;  %6029 = vmatprep.mubr.msk.bf16.mxu0 %vm713_vm3, %v5522_v29  ;;  %v4392_v47 = vrot.slane %v6450_v28, 5  ;;  %v4473_v29 = vrot.slane %v7779_v39, 5  ;;  %v8365_v39 = vld [vmem:[#allocation7_spill] sm:$0xff]  ;;  %v4400_v25 = vsel %vm6806_vm7, %v4398_v19, %v4399_v6  ;;  %v5559_v28 = vrot.slane %v5543_v24, 9 }
 0x127   : > { %5877 = vmatprep.mubr.msk.bf16.mxu1 %vm713_vm3, %v6398_v30  ;;  %v4391_v30 = vrot.slane %v4389_v61, 4  ;;  %v4403_v49 = vrot.slane %v8365_v39, 5  ;;  %v4480_v61 = vrot.slane %v7831_v58, 5  ;;  %v6451_v39 = vld [vmem:[%s6554_s27 + $0x70] sm:$0xf]  ;;  %v4487_v24 = vrot.slane %v7907_v55, 5 }
 0x128   : > { %v8042_v63 = vsel %vm6806_vm7, %v5569_v7, %v4473_v29  ;;  %v4475_v2 = vrot.slane %v4473_v29, 4  ;;  %v5272_v7 = vld [vmem:[%s6554_s27 + $0x6c] sm:$0xf]  ;;  %v8366_v29 = vld [vmem:[#allocation8_spill] sm:$0xff] }
 0x129   : > { %v4393_v34 = vsel %vm6806_vm7, %v4391_v30, %v4392_v47  ;;  %v4405_v47 = vrot.slane %v4403_v49, 4  ;;  %v6401_v30 = vld [vmem:[%s6554_s27 + $0x78] sm:$0xff]   ;;  %v8073_v16 = vsel %vm6806_vm7, %v5570_v5, %v4480_v61  ;;  %v4482_v18 = vrot.slane %v4480_v61, 4 }
 0x12a   : > { %v8049_v4 = vsel %vm6806_vm7, %v4475_v2, %v4476_v9  ;;  %v5575_v9 = vcombine.low %v4397_v23, %v4400_v25  ;;  %v2276_v19 = vshrl.u32 %v5272_v7, 16  ;;  %v2279_v41 = vshll.u32 %v5272_v7, 16 }
 0x12b   : > { %v5586_v43 = vcombine.low %v8042_v63, %v8049_v4  ;;  %v8078_v58 = vsel %vm6806_vm7, %v4482_v18, %v4483_v51  ;;  %v4404_v6 = vsel %vm6806_vm7, %v5559_v28, %v4403_v49  ;;  %v4490_v49 = vrot.slane %v7952_v21, 5  ;;  %v6403_v51 = vld [vmem:[%s6554_s27 + $0x90] sm:$0xff]   ;;  %v6404_v21 = vld [vmem:[%s6554_s27 + $0x9c] sm:$0xff]  }
 0x12c   : > { %v5587_v50 = vcombine.low %v8073_v16, %v8078_v58  ;;  %v2278_v23 = vrot.slane %v2276_v19, 4  ;;  %v2281_v25 = vrot.slane %v2279_v41, 5  ;;  %v4489_v7 = vrot.slane %v4487_v24, 4 }
 0x12d   : > { %6030 = vmatmul.mubr.msk.bf16.gmra.mrb[28].mxu0 %vm713_vm3, %v5523_v46  ;;  %v5574_v46 = vcombine.low %v4390_v35, %v4393_v34  ;;  %v2285_v35 = vshll.u32 %v6451_v39, 16  ;;  %v2289_v34 = vshrl.u32 %v6451_v39, 16 }
 0x12e   : > { %5878 = vmatmul.mubr.msk.bf16.gmra.mrb[12].mxu1 %vm713_vm3, %v6399_v12  ;;  %6035 = vmatprep.mubr.msk.bf16.mxu0 %vm713_vm3, %v5573_v17  ;;  %v4406_v12 = vrot.slane %v8366_v29, 5  ;;  %v5555_v17 = vld [vmem:[%s6554_s27 + $0xcc] sm:$0xe]  ;;  %v8100_v55 = vsel %vm6806_vm7, %v4489_v7, %v4490_v49 }
 0x12f   : > { %5881 = vmatprep.mubr.msk.bf16.mxu1 %vm713_vm3, %v6400_v11  ;;  %v6402_v11 = vld [vmem:[%s6554_s27 + $0x84] sm:$0xff]   ;;  %v5571_v52 = vrot.slane %v5555_v17, 9  ;;  %v2291_v28 = vrot.slane %v2289_v34, 4  ;;  %v6452_v17 = vld [vmem:[%s6554_s27 + $0x74] sm:$0x1] }
 0x130   : > { %v4407_v2 = vsel %vm6806_vm7, %v4405_v47, %v4406_v12  ;;  %v5278_v47 = vld [vmem:[%s6554_s27 + $0x84] sm:$0xf]  ;;  %v2282_v12 = vor.u32 %v2281_v25, %v2278_v23  ;;  %v6406_v34 = vld [vmem:[%s6554_s27 + $0xb4] sm:$0xff]  }
 0x131   : > { %v8095_v5 = vsel %vm6806_vm7, %v5571_v52, %v4487_v24  ;;  %v5576_v61 = vcombine.low %v4404_v6, %v4407_v2  ;;  %v2327_v18 = vshll.u32 %v5278_v47, 16  ;;  %v5281_v6 = vld [vmem:[%s6554_s27 + $0x90] sm:$0xf]  ;;  %v6405_v2 = vld [vmem:[%s6554_s27 + $0xa8] sm:$0xff]  }
 0x132   : > { %v5588_v29 = vcombine.low %v8095_v5, %v8100_v55  ;;  %v2283_v52 = vrot.slane %v2282_v12, 4  ;;  %v2348_v23 = vshrl.u32 %v5281_v6, 16  ;;  %v2351_v25 = vshll.u32 %v5281_v6, 16 }
 0x133   : > { %v2381_v12 = vshll.u32 %v6455_v60, 16 }
 0x134   : > { %v2353_v14 = vrot.slane %v2351_v25, 5  ;;  %v6458_v25 = vld [vmem:[%s6554_s27 + $0xa4] sm:$0x1] }
 0x135   : > { %6036 = vmatmul.mubr.msk.bf16.vlgmr.msra.gmra.mrb[0].mxu0 %vm713_vm3, %v5574_v46  ;;  %v2287_v46 = vrot.slane %v2285_v35, 5  ;;  %v5284_v35 = vld [vmem:[%s6554_s27 + $0x9c] sm:$0xf]  ;;  %v8142_v6 = vrot.slane %v2381_v12, 5 }
 0x136   : > { %5882 = vmatmul.mubr.msk.bf16.gmra.mrb[16].mxu1 %vm713_vm3, %v6401_v30  ;;  %6039 = vmatprep.mubr.msk.bf16.mxu0 %vm713_vm3, %v5575_v9  ;;  %v2295_v30 = vshll.u32 %v6452_v17, 16  ;;  %v2324_v9 = vshrl.u32 %v5278_v47, 16  ;;  %v2375_v47 = vshll.u32 %v5284_v35, 16  ;;  %v6456_v17 = vld [vmem:[%s6554_s27 + $0x8c] sm:$0x1] }
 0x137   : > { %5885 = vmatprep.mubr.msk.bf16.mxu1 %vm713_vm3, %v6402_v11  ;;  %v2292_v13 = vor.u32 %v2291_v28, %v2287_v46  ;;  %v6453_v11 = vld [vmem:[%s6554_s27 + $0x88] sm:$0xf]  ;;  %v2288_v7 = vsel %vm6580_vm4, %v2283_v52, %v2287_v46 }
 0x138   : > { %v2333_v19 = vshll.u32 %v6453_v11, 16  ;;  %v2337_v41 = vshrl.u32 %v6453_v11, 16  ;;  %v2297_v0 = vrot.slane %v2295_v30, 5  ;;  %v2326_v36 = vrot.slane %v2324_v9, 4 }
 0x139   : > { %v2293_v39 = vrot.slane %v2292_v13, 4  ;;  %v2343_v30 = vshll.u32 %v6456_v17, 16  ;;  %v2350_v9 = vrot.slane %v2348_v23, 4  ;;  %v2377_v11 = vrot.slane %v2375_v47, 5 }
 0x13a   : > { %v8119_v24 = vrot.slane %v2333_v19, 5  ;;  %v2339_v49 = vrot.slane %v2337_v41, 4  ;;  %v6407_v19 = vld [vmem:[%s6554_s27 + $0xc0] sm:$0xff]  }
 0x13b   : > { %v2298_v46 = vsel %vm6580_vm4, %v2293_v39, %v2297_v0  ;;  %v5287_v39 = vld [vmem:[%s6554_s27 + $0xa8] sm:$0xf] }
 0x13c   : > { %v2340_v13 = vor.u32 %v2339_v49, %v8119_v24  ;;  %v5305_v41 = vcombine.low %v2288_v7, %v2298_v46  ;;  %v2391_v7 = vshll.u32 %v6458_v25, 16  ;;  %v2399_v45 = vshll.u32 %v5287_v39, 16 }
 0x13d   : > { %6040 = vmatmul.mubr.msk.bf16.gmra.mrb[4].mxu0 %vm713_vm3, %v5576_v61  ;;  %v6454_v61 = vld [vmem:[%s6554_s27 + $0x94] sm:$0xf] }
 0x13e   : > { %5886 = vmatmul.mubr.msk.bf16.gmra.mrb[20].mxu1 %vm713_vm3, %v6403_v51  ;;  %6043 = vmatprep.mubr.msk.bf16.mxu0 %vm713_vm3, %v5577_v10  ;;  %v2329_v10 = vrot.slane %v2327_v18, 5  ;;  %v2357_v51 = vshll.u32 %v6454_v61, 16  ;;  %v2361_v28 = vshrl.u32 %v6454_v61, 16  ;;  %v2341_v0 = vrot.slane %v2340_v13, 4 }
 0x13f   : > { %5889 = vmatprep.mubr.msk.bf16.mxu1 %vm713_vm3, %v6404_v21  ;;  %v2372_v21 = vshrl.u32 %v5284_v35, 16  ;;  %v6457_v35 = vld [vmem:[%s6554_s27 + $0x98] sm:$0x1]  ;;  %v2396_v61 = vshrl.u32 %v5287_v39, 16  ;;  %v5293_v39 = vld [vmem:[%s6554_s27 + $0xc0] sm:$0xf] }
 0x140   : > { %v2330_v15 = vor.u32 %v2329_v10, %v2326_v36  ;;  %v8139_v26 = vrot.slane %v2357_v51, 5  ;;  %v2345_v36 = vrot.slane %v2343_v30, 5  ;;  %v2354_v10 = vor.u32 %v2353_v14, %v2350_v9  ;;  %v5290_v51 = vld [vmem:[%s6554_s27 + $0xb4] sm:$0xf] }
 0x141   : > { %v2374_v18 = vrot.slane %v2372_v21, 4  ;;  %v2409_v21 = vshrl.u32 %v6459_v27, 16  ;;  %v2420_v20 = vshrl.u32 %v5290_v51, 16  ;;  %v2423_v42 = vshll.u32 %v5290_v51, 16 }
 0x142   : > { %v2331_v52 = vrot.slane %v2330_v15, 4  ;;  %v2346_v46 = vsel %vm6580_vm4, %v2341_v0, %v2345_v36  ;;  %v2355_v15 = vrot.slane %v2354_v10, 4  ;;  %v2393_v30 = vrot.slane %v2391_v7, 5 }
 0x143   : > { %v2378_v23 = vor.u32 %v2377_v11, %v2374_v18  ;;  %v2398_v9 = vrot.slane %v2396_v61, 4  ;;  %v2411_v11 = vrot.slane %v2409_v21, 4  ;;  %v6463_v61 = vld [vmem:[%s6554_s27 + $0xbc] sm:$0x1] }
 0x144   : > { %v2336_v47 = vsel %vm6580_vm4, %v2331_v52, %v8119_v24  ;;  %v2360_v0 = vsel %vm6580_vm4, %v2355_v15, %v8139_v26  ;;  %v2439_v22 = vshll.u32 %v6463_v61, 16 }
 0x145   : > { %6044 = vmatmul.mubr.msk.bf16.gmra.mrb[8].mxu0 %vm713_vm3, %v5578_v40  ;;  %v2385_v40 = vshrl.u32 %v6455_v60, 16  ;;  %v2379_v17 = vrot.slane %v2378_v23, 4  ;;  %v5307_v24 = vcombine.low %v2336_v47, %v2346_v46 }
 0x146   : > { %5890 = vmatmul.mubr.msk.bf16.gmra.mrb[24].mxu1 %vm713_vm3, %v6405_v2  ;;  %6047 = vmatprep.mubr.msk.bf16.mxu0 %vm713_vm3, %v5579_v54  ;;  %v2363_v54 = vrot.slane %v2361_v28, 4 }
 0x147   : > { %5893 = vmatprep.mubr.msk.bf16.mxu1 %vm713_vm3, %v6406_v34  ;;  %v2387_v2 = vrot.slane %v2385_v40, 4  ;;  %v2367_v34 = vshll.u32 %v6457_v35, 16  ;;  %v2384_v10 = vsel %vm6580_vm4, %v2379_v17, %v8142_v6  ;;  %v2465_v17 = vrot.slane %v2463_v57, 5 }
 0x148   : > { %v2364_v49 = vor.u32 %v2363_v54, %v8139_v26  ;;  %v2401_v54 = vrot.slane %v2399_v45, 5  ;;  %v6461_v26 = vld [vmem:[%s6554_s27 + $0xb0] sm:$0x1] }
 0x149   : > { %v2388_v28 = vor.u32 %v2387_v2, %v8142_v6  ;;  %v2369_v60 = vrot.slane %v2367_v34, 5  ;;  %v2415_v35 = vshll.u32 %v6461_v26, 16  ;;  %v2444_v34 = vshrl.u32 %v5293_v39, 16 }
 0x14a   : > { %v2365_v13 = vrot.slane %v2364_v49, 4  ;;  %v2402_v38 = vor.u32 %v2401_v54, %v2398_v9  ;;  %v2447_v6 = vshll.u32 %v5293_v39, 16  ;;  %v6462_v49 = vld [vmem:[%s6554_s27 + $0xc4] sm:$0xf] }
 0x14b   : > { %v2389_v14 = vrot.slane %v2388_v28, 4  ;;  %v2453_v23 = vshll.u32 %v6462_v49, 16  ;;  %v2457_v25 = vshrl.u32 %v6462_v49, 16  ;;  %v2417_v45 = vrot.slane %v2415_v35, 5 }
 0x14c   : > { %v2370_v36 = vsel %vm6580_vm4, %v2365_v13, %v2369_v60  ;;  %v2403_v51 = vrot.slane %v2402_v38, 4  ;;  %v2441_v60 = vrot.slane %v2439_v22, 5 }
 0x14d   : > { %6048 = vmatmul.mubr.msk.bf16.gmra.mrb[12].mxu0 %vm713_vm3, %v5580_v53  ;;  %v2405_v53 = vshll.u32 %v6459_v27, 16  ;;  %v2394_v59 = vsel %vm6580_vm4, %v2389_v14, %v2393_v30  ;;  %v5308_v44 = vcombine.low %v2360_v0, %v2370_v36  ;;  %v2446_v27 = vrot.slane %v2444_v34, 4 }
 0x14e   : > { %5894 = vmatmul.mubr.msk.bf16.gmra.mrb[28].mxu1 %vm713_vm3, %v6407_v19  ;;  %6051 = vmatprep.mubr.msk.bf16.mxu0 %vm713_vm3, %v5581_v33  ;;  %v6460_v33 = vld [vmem:[%s6554_s27 + $0xb8] sm:$0xf]  ;;  %v2422_v19 = vrot.slane %v2420_v20, 4  ;;  %v2455_v21 = vrot.slane %v2453_v23, 5  ;;  %v2459_v47 = vrot.slane %v2457_v25, 4 }
 0x14f   : > { %5915 = vmatprep.mubr.msk.bf16.mxu1 %vm713_vm3, %v5305_v41  ;;  %v2429_v12 = vshll.u32 %v6460_v33, 16  ;;  %v2433_v40 = vshrl.u32 %v6460_v33, 16  ;;  %v2407_v18 = vrot.slane %v2405_v53, 5  ;;  %v2425_v41 = vrot.slane %v2423_v42, 5 }
 0x150   : > { %v2449_v53 = vrot.slane %v2447_v6, 5 }
 0x151   : > { %v2431_v52 = vrot.slane %v2429_v12, 5  ;;  %v2435_v2 = vrot.slane %v2433_v40, 4  ;;  %v2408_v20 = vsel %vm6580_vm4, %v2403_v51, %v2407_v18  ;;  %v2460_v12 = vor.u32 %v2459_v47, %v2455_v21 }
 0x152   : > { %v2450_v33 = vor.u32 %v2449_v53, %v2446_v27 }
 0x153   : > { %v2436_v7 = vor.u32 %v2435_v2, %v2431_v52  ;;  %v2461_v13 = vrot.slane %v2460_v12, 4 }
 0x154   : > { %v2451_v40 = vrot.slane %v2450_v33, 4 }
 0x155   : > { %6052 = vmatmul.mubr.msk.bf16.gmra.mrb[16].mxu0 %vm713_vm3, %v5582_v37  ;;  %v2412_v37 = vor.u32 %v2411_v11, %v2407_v18  ;;  %v2437_v15 = vrot.slane %v2436_v7, 4  ;;  %v2466_v9 = vsel %vm6580_vm4, %v2461_v13, %v2465_v17 }
 0x156   : > { %5916 = vmatmul.mubr.msk.bf16.vlgmr.msra.gmra.mrb[16].mxu1 %vm713_vm3, %v7948_v1  ;;  %6055 = vmatprep.mubr.msk.bf16.mxu0 %vm713_vm3, %v5583_v3  ;;  %v2426_v1 = vor.u32 %v2425_v41, %v2422_v19  ;;  %v5309_v3 = vcombine.low %v2384_v10, %v2394_v59  ;;  %v2456_v30 = vsel %vm6580_vm4, %v2451_v40, %v2455_v21 }
 0x157   : > { %5919 = vmatprep.mubr.msk.bf16.mxu1 %vm713_vm3, %v5307_v24  ;;  %v2413_v28 = vrot.slane %v2412_v37, 4  ;;  %v2442_v48 = vsel %vm6580_vm4, %v2437_v15, %v2441_v60  ;;  %v5312_v14 = vcombine.low %v2456_v30, %v2466_v9 }
 0x158   : > { %v2427_v46 = vrot.slane %v2426_v1, 4 }
 0x159   : > { %v2418_v42 = vsel %vm6580_vm4, %v2413_v28, %v2417_v45 }
 0x15a   : > { %v5310_v62 = vcombine.low %v2408_v20, %v2418_v42 }
 0x15d   : > { %6056 = vmatmul.mubr.msk.bf16.gmra.mrb[20].mxu0 %vm713_vm3, %v5584_v8  ;;  %v2432_v8 = vsel %vm6580_vm4, %v2427_v46, %v2431_v52 }
 0x15e   : > { %5920 = vmatmul.mubr.msk.bf16.gmra.mrb[20].mxu1 %vm713_vm3, %v5308_v44  ;;  %6059 = vmatprep.mubr.msk.bf16.mxu0 %vm713_vm3, %v5585_v56  ;;  %v5311_v56 = vcombine.low %v2432_v8, %v2442_v48 }
 0x15f   : > { %5923 = vmatprep.mubr.msk.bf16.mxu1 %vm713_vm3, %v5309_v3 }
 0x165   : > { %6060 = vmatmul.mubr.msk.bf16.gmra.mrb[24].mxu0 %vm713_vm3, %v5586_v43 }
 0x166   : > { %5924 = vmatmul.mubr.msk.bf16.gmra.mrb[24].mxu1 %vm713_vm3, %v5310_v62  ;;  %6063 = vmatprep.mubr.msk.bf16.mxu0 %vm713_vm3, %v5587_v50 }
 0x167   : > { %5927 = vmatprep.mubr.msk.bf16.mxu1 %vm713_vm3, %v5311_v56 }
 0x16d   : > { %6064 = vmatmul.mubr.msk.bf16.gmra.mrb[28].mxu0 %vm713_vm3, %v5588_v29 }
 0x16e   : > { %5928 = vmatmul.mubr.msk.bf16.gmra.mrb[28].mxu1 %vm713_vm3, %v5312_v14 }
 0x1e9   : > { %v5867_v63 = vpop.f32.mrb[0].mxu1 }
 0x1ea   : > { %v1876_v4 = vpop.f32.mrb[1].mxu1 }
 0x1eb   : > { %v5868_v43 = vpop.f32.mrb[2].mxu1 }
 0x1ec   : > { %v1879_v16 = vpop.f32.mrb[3].mxu1 }
 0x1f1   : > { %v5871_v58 = vpop.f32.mrb[4].mxu1 }
 0x1f2   : > { %v1892_v50 = vpop.f32.mrb[5].mxu1 }
 0x1f3   : > { %v5872_v54 = vpop.f32.mrb[6].mxu1 }
 0x1f4   : > { %v1895_v18 = vpop.f32.mrb[7].mxu1 }
 0x1f9   : > { %v5875_v11 = vpop.f32.mrb[8].mxu1 }
 0x1fa   : > { %v1908_v32 = vpop.f32.mrb[9].mxu1 }
 0x1fb   : > { %v5876_v24 = vpop.f32.mrb[10].mxu1 }
 0x1fc   : > { %v8230_v19 = vpop.f32.mrb[11].mxu1 }
 0x201   : > { %v8232_v41 = vpop.f32.mrb[12].mxu1 }
 0x202   : > { %v8234_v5 = vpop.f32.mrb[13].mxu1 }
 0x203   : > { %v8236_v55 = vpop.f32.mrb[14].mxu1 }
 0x204   : > { %v8238_v29 = vpop.f32.mrb[15].mxu1 }
 0x208   : > { %v6037_v52 = vpop.f32.mrb[0].mxu0 }
 0x209   : > { %v6069_v2 = vadd.f32 %v6037_v52, %v5867_v63  ;;  %v4627_v39 = vpop.f32.mrb[1].mxu0 }
 0x20a   : > { %v6070_v0 = vadd.f32 %v4627_v39, %v1876_v4  ;;  %v6038_v36 = vpop.f32.mrb[2].mxu0 }
 0x20b   : > { %4788 = vst [vmem:[%s8244_s22 + $0x10] sm:$0xff] %v6069_v2  ;;  %v6071_v10 = vadd.f32 %v6038_v36, %v5868_v43  ;;  %v4630_v59 = vpop.f32.mrb[3].mxu0  ;;  %v4857_v34 = vmul.f32 %v6069_v2, %v6069_v2 }
 0x20c   : > { %4786 = vst [vmem:[%s8244_s22] sm:$0xff] %v6070_v0  ;;  %v6072_v38 = vadd.f32 %v4630_v59, %v1879_v16  ;;  %v4855_v37 = vmul.f32 %v6070_v0, %v6070_v0 }
 0x20d   : > { %4789 = vst [vmem:[%s8244_s22 + $0x18] sm:$0xff] %v6071_v10  ;;  %v4858_v7 = vmul.f32 %v6071_v10, %v6071_v10 }
 0x20e   : > { %4787 = vst [vmem:[%s8244_s22 + $0x8] sm:$0xff] %v6072_v38  ;;  %v4818_v26 = vadd.f32 %v6072_v38, %v6070_v0  ;;  %v4856_v35 = vmul.f32 %v6072_v38, %v6072_v38 }
 0x210   : > { %v4819_v6 = vadd.f32 %v6069_v2, %v4818_v26  ;;  %v4887_v49 = vadd.f32 %v4856_v35, %v4855_v37  ;;  %v6041_v23 = vpop.f32.mrb[4].mxu0 }
 0x211   : > { %v6073_v25 = vadd.f32 %v6041_v23, %v5871_v58  ;;  %v4643_v1 = vpop.f32.mrb[5].mxu0 }
 0x212   : > { %v4888_v61 = vadd.f32 %v4887_v49, %v4857_v34  ;;  %v6074_v22 = vadd.f32 %v4643_v1, %v1892_v50  ;;  %v4820_v44 = vadd.f32 %v6071_v10, %v4819_v6  ;;  %v6042_v3 = vpop.f32.mrb[6].mxu0 }
 0x213   : > { %4792 = vst [vmem:[%s8244_s22 + $0x30] sm:$0xff] %v6073_v25  ;;  %v6075_v51 = vadd.f32 %v6042_v3, %v5872_v54  ;;  %v4646_v28 = vpop.f32.mrb[7].mxu0  ;;  %v4861_v60 = vmul.f32 %v6073_v25, %v6073_v25 }
 0x214   : > { %4790 = vst [vmem:[%s8244_s22 + $0x20] sm:$0xff] %v6074_v22  ;;  %v4821_v45 = vadd.f32 %v6074_v22, %v4820_v44  ;;  %v4859_v27 = vmul.f32 %v6074_v22, %v6074_v22  ;;  %v4889_v53 = vadd.f32 %v4888_v61, %v4858_v7  ;;  %v6076_v21 = vadd.f32 %v4646_v28, %v1895_v18 }
 0x215   : > { %4793 = vst [vmem:[%s8244_s22 + $0x38] sm:$0xff] %v6075_v51  ;;  %v4862_v57 = vmul.f32 %v6075_v51, %v6075_v51 }
 0x216   : > { %v4890_v47 = vadd.f32 %v4889_v53, %v4859_v27  ;;  %4791 = vst [vmem:[%s8244_s22 + $0x28] sm:$0xff] %v6076_v21  ;;  %v4822_v46 = vadd.f32 %v6076_v21, %v4821_v45  ;;  %v4860_v15 = vmul.f32 %v6076_v21, %v6076_v21 }
 0x218   : > { %v4823_v20 = vadd.f32 %v6073_v25, %v4822_v46  ;;  %v4891_v42 = vadd.f32 %v4890_v47, %v4860_v15  ;;  %v6045_v33 = vpop.f32.mrb[8].mxu0 }
 0x219   : > { %v6077_v12 = vadd.f32 %v6045_v33, %v5875_v11  ;;  %v4659_v31 = vpop.f32.mrb[9].mxu0 }
 0x21a   : > { %v4892_v8 = vadd.f32 %v4891_v42, %v4861_v60  ;;  %v6078_v48 = vadd.f32 %v4659_v31, %v1908_v32  ;;  %v4824_v62 = vadd.f32 %v6075_v51, %v4823_v20  ;;  %v6046_v56 = vpop.f32.mrb[10].mxu0 }
 0x21b   : > { %4796 = vst [vmem:[%s8244_s22 + $0x50] sm:$0xff] %v6077_v12  ;;  %v6079_v40 = vadd.f32 %v6046_v56, %v5876_v24  ;;  %v4662_v13 = vpop.f32.mrb[11].mxu0  ;;  %v4865_v16 = vmul.f32 %v6077_v12, %v6077_v12 }
 0x21c   : > { %4794 = vst [vmem:[%s8244_s22 + $0x40] sm:$0xff] %v6078_v48  ;;  %v4825_v17 = vadd.f32 %v6078_v48, %v4824_v62  ;;  %v4863_v30 = vmul.f32 %v6078_v48, %v6078_v48  ;;  %v4893_v9 = vadd.f32 %v4892_v8, %v4862_v57  ;;  %v6080_v14 = vadd.f32 %v4662_v13, %v8230_v19 }
 0x21d   : > { %4797 = vst [vmem:[%s8244_s22 + $0x58] sm:$0xff] %v6079_v40  ;;  %v4866_v32 = vmul.f32 %v6079_v40, %v6079_v40 }
 0x21e   : > { %v4894_v63 = vadd.f32 %v4893_v9, %v4863_v30  ;;  %4795 = vst [vmem:[%s8244_s22 + $0x48] sm:$0xff] %v6080_v14  ;;  %v4826_v4 = vadd.f32 %v6080_v14, %v4825_v17  ;;  %v4864_v43 = vmul.f32 %v6080_v14, %v6080_v14 }
 0x220   : > { %v4827_v58 = vadd.f32 %v6077_v12, %v4826_v4  ;;  %v4895_v50 = vadd.f32 %v4894_v63, %v4864_v43  ;;  %v6049_v54 = vpop.f32.mrb[12].mxu0 }
 0x221   : > { %v6081_v18 = vadd.f32 %v6049_v54, %v8232_v41  ;;  %v4675_v11 = vpop.f32.mrb[13].mxu0 }
 0x222   : > { %v4896_v24 = vadd.f32 %v4895_v50, %v4865_v16  ;;  %v6082_v19 = vadd.f32 %v4675_v11, %v8234_v5  ;;  %v4828_v52 = vadd.f32 %v6079_v40, %v4827_v58  ;;  %v6050_v2 = vpop.f32.mrb[14].mxu0 }
 0x223   : > { %4800 = vst [vmem:[%s8244_s22 + $0x70] sm:$0xff] %v6081_v18  ;;  %v6083_v39 = vadd.f32 %v6050_v2, %v8236_v55  ;;  %v4678_v0 = vpop.f32.mrb[15].mxu0  ;;  %v4869_v35 = vmul.f32 %v6081_v18, %v6081_v18 }
 0x224   : > { %4798 = vst [vmem:[%s8244_s22 + $0x60] sm:$0xff] %v6082_v19  ;;  %v4829_v36 = vadd.f32 %v6082_v19, %v4828_v52  ;;  %v4867_v10 = vmul.f32 %v6082_v19, %v6082_v19  ;;  %v4897_v59 = vadd.f32 %v4896_v24, %v4866_v32  ;;  %v6084_v38 = vadd.f32 %v4678_v0, %v8238_v29 }
 0x225   : > { %4801 = vst [vmem:[%s8244_s22 + $0x78] sm:$0xff] %v6083_v39  ;;  %v4870_v23 = vmul.f32 %v6083_v39, %v6083_v39 }
 0x226   : > { %v4898_v41 = vadd.f32 %v4897_v59, %v4867_v10  ;;  %4799 = vst [vmem:[%s8244_s22 + $0x68] sm:$0xff] %v6084_v38  ;;  %v4830_v37 = vadd.f32 %v6084_v38, %v4829_v36  ;;  %v4868_v26 = vmul.f32 %v6084_v38, %v6084_v38 }
 0x228   : > { %v4831_v5 = vadd.f32 %v6081_v18, %v4830_v37  ;;  %v4899_v34 = vadd.f32 %v4898_v41, %v4868_v26  ;;  %v6053_v6 = vpop.f32.mrb[16].mxu0 }
 0x229   : > { %v5917_v49 = vpop.f32.mrb[16].mxu1  ;;  %v4691_v55 = vpop.f32.mrb[17].mxu0 }
 0x22a   : > { %v4900_v25 = vadd.f32 %v4899_v34, %v4869_v35  ;;  %v6085_v1 = vadd.f32 %v6053_v6, %v5917_v49  ;;  %v2666_v7 = vpop.f32.mrb[17].mxu1  ;;  %v4832_v29 = vadd.f32 %v6083_v39, %v4831_v5  ;;  %v6054_v61 = vpop.f32.mrb[18].mxu0 }
 0x22b   : > { %v6086_v22 = vadd.f32 %v4691_v55, %v2666_v7  ;;  %v5918_v44 = vpop.f32.mrb[18].mxu1  ;;  %v4694_v3 = vpop.f32.mrb[19].mxu0 }
 0x22c   : > { %4804 = vst [vmem:[%s8244_s22 + $0x90] sm:$0xff] %v6085_v1  ;;  %v4901_v51 = vadd.f32 %v4900_v25, %v4870_v23  ;;  %v6087_v28 = vadd.f32 %v6054_v61, %v5918_v44  ;;  %v2669_v45 = vpop.f32.mrb[19].mxu1  ;;  %v4873_v20 = vmul.f32 %v6085_v1, %v6085_v1 }
 0x22d   : > { %4802 = vst [vmem:[%s8244_s22 + $0x80] sm:$0xff] %v6086_v22  ;;  %v4833_v27 = vadd.f32 %v6086_v22, %v4832_v29  ;;  %v4871_v53 = vmul.f32 %v6086_v22, %v6086_v22  ;;  %v6088_v21 = vadd.f32 %v4694_v3, %v2669_v45 }
 0x22e   : > { %4805 = vst [vmem:[%s8244_s22 + $0x98] sm:$0xff] %v6087_v28  ;;  %v4874_v62 = vmul.f32 %v6087_v28, %v6087_v28 }
 0x22f   : > { %v4902_v47 = vadd.f32 %v4901_v51, %v4871_v53  ;;  %4803 = vst [vmem:[%s8244_s22 + $0x88] sm:$0xff] %v6088_v21  ;;  %v4834_v46 = vadd.f32 %v6088_v21, %v4833_v27  ;;  %v4872_v15 = vmul.f32 %v6088_v21, %v6088_v21 }
 0x230   : > { %v6057_v60 = vpop.f32.mrb[20].mxu0 }
 0x231   : > { %v4835_v42 = vadd.f32 %v6085_v1, %v4834_v46  ;;  %v4903_v33 = vadd.f32 %v4902_v47, %v4872_v15  ;;  %v5921_v12 = vpop.f32.mrb[20].mxu1  ;;  %v4707_v31 = vpop.f32.mrb[21].mxu0 }
 0x232   : > { %v6089_v57 = vadd.f32 %v6057_v60, %v5921_v12  ;;  %v2682_v8 = vpop.f32.mrb[21].mxu1  ;;  %v6058_v48 = vpop.f32.mrb[22].mxu0 }
 0x233   : > { %v4904_v56 = vadd.f32 %v4903_v33, %v4873_v20  ;;  %v6090_v40 = vadd.f32 %v4707_v31, %v2682_v8  ;;  %v4836_v13 = vadd.f32 %v6087_v28, %v4835_v42  ;;  %v5922_v17 = vpop.f32.mrb[22].mxu1  ;;  %v4710_v30 = vpop.f32.mrb[23].mxu0 }
 0x234   : > { %4808 = vst [vmem:[%s8244_s22 + $0xb0] sm:$0xff] %v6089_v57  ;;  %v6091_v9 = vadd.f32 %v6058_v48, %v5922_v17  ;;  %v2685_v14 = vpop.f32.mrb[23].mxu1  ;;  %v4877_v11 = vmul.f32 %v6089_v57, %v6089_v57 }
 0x235   : > { %4806 = vst [vmem:[%s8244_s22 + $0xa0] sm:$0xff] %v6090_v40  ;;  %v4837_v63 = vadd.f32 %v6090_v40, %v4836_v13  ;;  %v4875_v4 = vmul.f32 %v6090_v40, %v6090_v40  ;;  %v4905_v43 = vadd.f32 %v4904_v56, %v4874_v62  ;;  %v6092_v16 = vadd.f32 %v4710_v30, %v2685_v14 }
 0x236   : > { %4809 = vst [vmem:[%s8244_s22 + $0xb8] sm:$0xff] %v6091_v9  ;;  %v4878_v36 = vmul.f32 %v6091_v9, %v6091_v9 }
 0x237   : > { %v4906_v58 = vadd.f32 %v4905_v43, %v4875_v4  ;;  %4807 = vst [vmem:[%s8244_s22 + $0xa8] sm:$0xff] %v6092_v16  ;;  %v4838_v50 = vadd.f32 %v6092_v16, %v4837_v63  ;;  %v4876_v54 = vmul.f32 %v6092_v16, %v6092_v16 }
 0x238   : > { %v6061_v18 = vpop.f32.mrb[24].mxu0 }
 0x239   : > { %v4839_v32 = vadd.f32 %v6089_v57, %v4838_v50  ;;  %v4907_v24 = vadd.f32 %v4906_v58, %v4876_v54  ;;  %v5925_v19 = vpop.f32.mrb[24].mxu1  ;;  %v4723_v52 = vpop.f32.mrb[25].mxu0 }
 0x23a   : > { %v6093_v2 = vadd.f32 %v6061_v18, %v5925_v19  ;;  %v2698_v39 = vpop.f32.mrb[25].mxu1  ;;  %v6062_v0 = vpop.f32.mrb[26].mxu0 }
 0x23b   : > { %v4908_v10 = vadd.f32 %v4907_v24, %v4877_v11  ;;  %v6094_v59 = vadd.f32 %v4723_v52, %v2698_v39  ;;  %v4840_v38 = vadd.f32 %v6091_v9, %v4839_v32  ;;  %v5926_v41 = vpop.f32.mrb[26].mxu1  ;;  %v4726_v37 = vpop.f32.mrb[27].mxu0 }
 0x23c   : > { %4812 = vst [vmem:[%s8244_s22 + $0xd0] sm:$0xff] %v6093_v2  ;;  %v6095_v26 = vadd.f32 %v6062_v0, %v5926_v41  ;;  %v2701_v35 = vpop.f32.mrb[27].mxu1  ;;  %v4881_v7 = vmul.f32 %v6093_v2, %v6093_v2 }
 0x23d   : > { %4810 = vst [vmem:[%s8244_s22 + $0xc0] sm:$0xff] %v6094_v59  ;;  %v4841_v5 = vadd.f32 %v6094_v59, %v4840_v38  ;;  %v4879_v34 = vmul.f32 %v6094_v59, %v6094_v59  ;;  %v4909_v6 = vadd.f32 %v4908_v10, %v4878_v36  ;;  %v6096_v49 = vadd.f32 %v4726_v37, %v2701_v35 }
 0x23e   : > { %4813 = vst [vmem:[%s8244_s22 + $0xd8] sm:$0xff] %v6095_v26  ;;  %v4882_v45 = vmul.f32 %v6095_v26, %v6095_v26 }
 0x23f   : > { %v4910_v55 = vadd.f32 %v4909_v6, %v4879_v34  ;;  %4811 = vst [vmem:[%s8244_s22 + $0xc8] sm:$0xff] %v6096_v49  ;;  %v4842_v23 = vadd.f32 %v6096_v49, %v4841_v5  ;;  %v4880_v25 = vmul.f32 %v6096_v49, %v6096_v49 }
 0x240   : > { %v6065_v1 = vpop.f32.mrb[28].mxu0 }
 0x241   : > { %v4843_v29 = vadd.f32 %v6093_v2, %v4842_v23  ;;  %v4911_v61 = vadd.f32 %v4910_v55, %v4880_v25  ;;  %v5929_v22 = vpop.f32.mrb[28].mxu1  ;;  %v4739_v44 = vpop.f32.mrb[29].mxu0 }
 0x242   : > { %v6097_v3 = vadd.f32 %v6065_v1, %v5929_v22  ;;  %v2714_v51 = vpop.f32.mrb[29].mxu1  ;;  %v6066_v28 = vpop.f32.mrb[30].mxu0 }
 0x243   : > { %v4912_v27 = vadd.f32 %v4911_v61, %v4881_v7  ;;  %v6098_v53 = vadd.f32 %v4739_v44, %v2714_v51  ;;  %v4844_v21 = vadd.f32 %v6095_v26, %v4843_v29  ;;  %v5930_v47 = vpop.f32.mrb[30].mxu1  ;;  %v4742_v46 = vpop.f32.mrb[31].mxu0 }
 0x244   : > { %4816 = vst [vmem:[%s8244_s22 + $0xf0] sm:$0xff] %v6097_v3  ;;  %v6099_v15 = vadd.f32 %v6066_v28, %v5930_v47  ;;  %v2717_v60 = vpop.f32.mrb[31].mxu1  ;;  %v4885_v48 = vmul.f32 %v6097_v3, %v6097_v3 }
 0x245   : > { %4814 = vst [vmem:[%s8244_s22 + $0xe0] sm:$0xff] %v6098_v53  ;;  %v4845_v20 = vadd.f32 %v6098_v53, %v4844_v21  ;;  %v4883_v42 = vmul.f32 %v6098_v53, %v6098_v53  ;;  %v4913_v33 = vadd.f32 %v4912_v27, %v4882_v45  ;;  %v6100_v12 = vadd.f32 %v4742_v46, %v2717_v60 }
 0x246   : > { %4817 = vst [vmem:[%s8244_s22 + $0xf8] sm:$0xff] %v6099_v15  ;;  %v4886_v40 = vmul.f32 %v6099_v15, %v6099_v15 }
 0x247   : > { %v4914_v31 = vadd.f32 %v4913_v33, %v4883_v42  ;;  %4815 = vst [vmem:[%s8244_s22 + $0xe8] sm:$0xff] %v6100_v12  ;;  %v4846_v57 = vadd.f32 %v6100_v12, %v4845_v20  ;;  %v4884_v8 = vmul.f32 %v6100_v12, %v6100_v12 }
 0x249   : > { %v4847_v62 = vadd.f32 %v6097_v3, %v4846_v57  ;;  %v4915_v56 = vadd.f32 %v4914_v31, %v4884_v8 }
 0x24b   : > { %v4848_v13 = vadd.f32 %v6099_v15, %v4847_v62  ;;  %v4916_v17 = vadd.f32 %v4915_v56, %v4885_v48 }
 0x24d   : > { %v4849_v30 = vrot.slane %v4848_v13, 4  ;;  %v4917_v9 = vadd.f32 %v4916_v17, %v4886_v40 }
 0x24f   : > { %v4850_v14 = vadd.f32 %v4849_v30, %v4848_v13  ;;  %v4918_v63 = vrot.slane %v4917_v9, 4 }
 0x251   : > { %v4851_v4 = vrot.slane %v4850_v14, 2  ;;  %v4919_v43 = vadd.f32 %v4918_v63, %v4917_v9 }
 0x253   : > { %v4852_v16 = vadd.f32 %v4851_v4, %v4850_v14  ;;  %v4920_v58 = vrot.slane %v4919_v43, 2 }
 0x255   : > { %v4853_v50 = vrot.slane %v4852_v16, 1  ;;  %v4921_v54 = vadd.f32 %v4920_v58, %v4919_v43 }
 0x257   : > { %v4922_v18 = vrot.slane %v4921_v54, 1  ;;  %v4854_v11 = vadd.f32 %v4853_v50, %v4852_v16 }
 0x259   : > { %v4923_v32 = vadd.f32 %v4922_v18, %v4921_v54 }
 0x25b   : > { %v4925_v24 = vsel %vm4924_vm8, %v4854_v11, %v4923_v32 }
 0x25c   : > { %4926 = vst [vmem:[%s225_s26] sm:$0x3] %v4925_v24 }
 0x25d PF: > { %s14_s14 = sadd.s32 1, %s6487_s14   ;;  %s8367_s12 = smov %s6483_s13 }
 0x25e   : > { %p11_p5 = scmp.ge.s32.totalorder %s14_s14, 4   ;;  %s8368_s13 = smov %s8370_s15 }
 0x260   :  { %13 = sbr.rel (!%p11_p5) target bundleno = 2 (0x2), region = 80 }

// kernel: double_conv.6
= control target key start
LH: loop header
LB: loop body
LE: loop exit
PB: predicated region body
PF: predicated region fallthrough
CT: control target
= control target key end

     0   :  { %s7085_s12 = smov 0   ;;  %s7087_s13 = smov 0   ;;  %s8933_s0 = inlined_call_operand.vmem [shape: bf16[2,1,18,18,128], index: 0, kind: input, shape index: {}]   ;;  %s8934_s1 = inlined_call_operand.vmem [shape: bf16[9,128,128], index: 1, kind: input, shape index: {}]   ;;  %s8935_s2 = inlined_call_operand.vmem [shape: f32[2,1,256,128], index: 2, kind: output, shape index: {0}]   ;;  %s8936_s3 = inlined_call_operand.vmem [shape: f32[2,1,2,128], index: 3, kind: output, shape index: {1}]  }
   0x1   :  { %s7089_s14 = smov 0  }
   0x2 LB: > { %s26_s15 = sadd.s32 1, %s7059_s13  ;;  %p5314_p0 = scmp.ge.s32.totalorder %s7063_s14, 1  ;;  %s7063_s14 = sphi %s7089_s14, %s14_s14   ;;  %s7059_s13 = sphi %s7087_s13, %s9004_s13   ;;  %s7055_s12 = sphi %s7085_s12, %s9003_s12  }
   0x3   : > { %p28_p1 = scmp.ge.s32.totalorder %s26_s15, 2  ;;  %p162_p2 = scmp.lt.s32.totalorder %s7063_s14, 3 }
   0x5   : > { %s9006_s15 = smov (%p28_p1, %s26_s15), 0  ;;  %p163_p3 = pnand %p5314_p0, %p162_p2 }
   0x7   : > { %166 = sbr.rel (%p163_p3) target bundleno = 605 (0x25d), region = 28 }
   0xe   : > { %v6851_v0 = vld [vmem:[%s8934_s1 + $0x40] sm:$0xff]   ;;  %p201_p4 = scmp.lt.s32.totalorder %s7055_s12, 1  ;;  %v6853_v2 = vld [vmem:[%s8934_s1 + $0x48] sm:$0xff]   ;;  %v6855_v4 = vld [vmem:[%s8934_s1 + $0x50] sm:$0xff]   ;;  %vm291_vm0 = vsmask.f32 3328 }
   0xf   : > { %v6852_v1 = vld [vmem:[%s8934_s1 + $0x100] sm:$0xff]   ;;  %6122 = vmatprep.subr.bf16.mxu1 %v6851_v0  ;;  %v6854_v3 = vld [vmem:[%s8934_s1 + $0x108] sm:$0xff]   ;;  %v6856_v5 = vld [vmem:[%s8934_s1 + $0x110] sm:$0xff]   ;;  %vm292_vm1 = vsmask.f32 7440  ;;  %vm1321_vm3 = vcmask 1042432  }
  0x10   : > { %6314 = vmatprep.subr.bf16.mxu0 %v6852_v1  ;;  %6123 = vmatpush3.bf16.msra.mxu1 %v6851_v0  ;;  %s9008_s12 = smov (!%p201_p4, %s7055_s12), 1  ;;  %v6857_v6 = vld [vmem:[%s8934_s1 + $0x58] sm:$0xff]   ;;  %v6859_v8 = vld [vmem:[%s8934_s1 + $0x60] sm:$0xff]   ;;  %v6861_v10 = vld [vmem:[%s8934_s1 + $0x68] sm:$0xff]   ;;  %vm1322_vm4 = vcmask 1046532   ;;  %vm5174_vm6 = vcmask 1040384  }
  0x11   : > { %6315 = vmatpush3.bf16.msra.mxu0 %v6852_v1  ;;  %6124 = vmatprep.subr.bf16.mxu1 %v6853_v2  ;;  %v6858_v7 = vld [vmem:[%s8934_s1 + $0x118] sm:$0xff]   ;;  %s6826_s5 = smul.u32 216, %s9008_s12  ;;  %v6860_v9 = vld [vmem:[%s8934_s1 + $0x120] sm:$0xff]   ;;  %v6862_v11 = vld [vmem:[%s8934_s1 + $0x128] sm:$0xff]   ;;  %s5318_s28 = sshll.u32 %s9008_s12, 1 }
  0x12   : > { %6316 = vmatprep.subr.bf16.mxu0 %v6854_v3  ;;  %v6863_v25 = vld [vmem:[%s8934_s1 + $0x70] sm:$0xff]   ;;  %v6865_v36 = vld [vmem:[%s8934_s1 + $0x78] sm:$0xff]   ;;  %vm7171_vm2 = vmor %vm291_vm0, %vm292_vm1  ;;  %s225_s4 = scalar_lea.vmem %s8936_s3, %s5318_s28 }
  0x13   : > { %s7139_s16 = scalar_lea.vmem %s8933_s0, %s6826_s5  ;;  %v6864_v30 = vld [vmem:[%s8934_s1 + $0x130] sm:$0xff]   ;;  %v6866_v51 = vld [vmem:[%s8934_s1 + $0x138] sm:$0xff]   ;;  %vm7417_vm5 = vmor %vm1321_vm3, %vm1322_vm4 }
  0x14   : > { %6125 = vmatpush3.bf16.msra.mxu1 %v6853_v2  ;;  %v227_v12 = vld [vmem:[%s7139_s16] sm:$0xf]  ;;  %v228_v13 = vld [vmem:[%s7139_s16 + $0x4] sm:$0xf]  ;;  %v275_v14 = vld [vmem:[%s7139_s16 + $0x8] sm:$0x1] }
  0x15   : > { %6317 = vmatpush3.bf16.msra.mxu0 %v6854_v3  ;;  %6126 = vmatprep.subr.bf16.mxu1 %v6855_v4  ;;  %v295_v15 = vshrl.u32 %v227_v12, 16  ;;  %v298_v16 = vshll.u32 %v227_v12, 16  ;;  %v304_v17 = vshll.u32 %v228_v13, 16  ;;  %v308_v18 = vshrl.u32 %v228_v13, 16  ;;  %v5511_v20 = vld [vmem:[%s7139_s16 + $0xc] sm:$0xf] }
  0x16   : > { %6318 = vmatprep.subr.bf16.mxu0 %v6856_v5  ;;  %v314_v19 = vshll.u32 %v275_v14, 16  ;;  %v7152_v23 = vld [vmem:[%s7139_s16 + $0x10] sm:$0xf]  ;;  %v7155_v24 = vld [vmem:[%s7139_s16 + $0x14] sm:$0x1]  ;;  %v2194_v29 = vshrl.u32 %v5511_v20, 16 }
  0x17   : > { %v297_v21 = vrot.slane %v295_v15, 4  ;;  %v300_v22 = vrot.slane %v298_v16, 5  ;;  %v306_v26 = vrot.slane %v304_v17, 5  ;;  %v310_v27 = vrot.slane %v308_v18, 4  ;;  %v229_v35 = vld [vmem:[%s7139_s16 + $0xc] sm:$0xf] }
  0x18   : > { %6127 = vmatpush3.bf16.msra.mxu1 %v6855_v4  ;;  %v316_v28 = vrot.slane %v314_v19, 5  ;;  %v2197_v32 = vshll.u32 %v5511_v20, 16  ;;  %v2203_v33 = vshll.u32 %v7152_v23, 16  ;;  %v2207_v34 = vshrl.u32 %v7152_v23, 16  ;;  %v230_v42 = vld [vmem:[%s7139_s16 + $0x10] sm:$0xf] }
  0x19   : > { %6319 = vmatpush3.bf16.msra.mxu0 %v6856_v5  ;;  %6128 = vmatprep.subr.bf16.mxu1 %v6857_v6  ;;  %v301_v31 = vor.u32 %v300_v22, %v297_v21  ;;  %v311_v38 = vor.u32 %v310_v27, %v306_v26  ;;  %v2196_v39 = vrot.slane %v2194_v29, 4  ;;  %v2213_v40 = vshll.u32 %v7155_v24, 16  ;;  %v276_v55 = vld [vmem:[%s7139_s16 + $0x14] sm:$0x1]  ;;  %v5514_v57 = vld [vmem:[%s7139_s16 + $0x18] sm:$0xf] }
  0x1a   : > { %6320 = vmatprep.subr.bf16.mxu0 %v6858_v7  ;;  %v2968_v41 = vrot.slane %v7155_v24, 5  ;;  %v2199_v44 = vrot.slane %v2197_v32, 5  ;;  %v2205_v45 = vrot.slane %v2203_v33, 5  ;;  %v2209_v46 = vrot.slane %v2207_v34, 4  ;;  %v7188_v62 = vld [vmem:[%s7139_s16 + $0x1c] sm:$0xf] }
  0x1b   : > { %v302_v43 = vrot.slane %v301_v31, 4  ;;  %v312_v47 = vrot.slane %v311_v38, 4  ;;  %v2215_v48 = vrot.slane %v2213_v40, 5  ;;  %v319_v49 = vshrl.u32 %v229_v35, 16  ;;  %v6867_v3 = vld [vmem:[%s8934_s1] sm:$0xff]  }
  0x1c   : > { %6129 = vmatpush3.bf16.msra.mxu1 %v6857_v6  ;;  %v322_v50 = vshll.u32 %v229_v35, 16  ;;  %v2200_v53 = vor.u32 %v2199_v44, %v2196_v39  ;;  %v2210_v54 = vor.u32 %v2209_v46, %v2205_v45  ;;  %v328_v56 = vshll.u32 %v230_v42, 16  ;;  %v7196_v4 = vld [vmem:[%s8934_s1 + $0x140] sm:$0xff]   ;;  %v231_v21 = vld [vmem:[%s7139_s16 + $0x18] sm:$0xf]  ;;  %v6870_v46 = vld [vmem:[%s8934_s1 + $0x8] sm:$0xff]  }
  0x1d   : > { %6321 = vmatpush3.bf16.msra.mxu0 %v6858_v7  ;;  %6130 = vmatprep.subr.bf16.mxu1 %v6859_v8  ;;  %v307_v52 = vsel %vm7171_vm2, %v302_v43, %v306_v26  ;;  %v317_v58 = vsel %vm7171_vm2, %v312_v47, %v316_v28  ;;  %v321_v59 = vrot.slane %v319_v49, 4  ;;  %v332_v61 = vshrl.u32 %v230_v42, 16  ;;  %v232_v28 = vld [vmem:[%s7139_s16 + $0x1c] sm:$0xf]  ;;  %v277_v33 = vld [vmem:[%s7139_s16 + $0x20] sm:$0x1] }
  0x1e   : > { %6322 = vmatprep.subr.bf16.mxu0 %v6860_v9  ;;  %v324_v60 = vrot.slane %v322_v50, 5  ;;  %v5335_v63 = vcombine.low %v307_v52, %v317_v58  ;;  %v2201_v0 = vrot.slane %v2200_v53, 4  ;;  %v2211_v1 = vrot.slane %v2210_v54, 4  ;;  %v5517_v39 = vld [vmem:[%s7139_s16 + $0x24] sm:$0xf] }
  0x1f   : > { %v330_v2 = vrot.slane %v328_v56, 5  ;;  %v334_v6 = vrot.slane %v332_v61, 4  ;;  %v338_v7 = vshll.u32 %v276_v55, 16  ;;  %v2221_v12 = vshll.u32 %v5514_v57, 16  ;;  %v233_v52 = vld [vmem:[%s7139_s16 + $0x24] sm:$0xf] }
  0x20   : > { %6131 = vmatpush3.bf16.msra.mxu1 %v6859_v8  ;;  %v325_v5 = vor.u32 %v324_v60, %v321_v59  ;;  %v7199_v8 = vld [vmem:[%s7139_s16 + $0x20] sm:$0x1]  ;;  %6138 = vmatprep.mubr.bf16.mxu1 %v5335_v63  ;;  %v2227_v19 = vshll.u32 %v7188_v62, 16  ;;  %v2231_v20 = vshrl.u32 %v7188_v62, 16  ;;  %v2972_v27 = vrot.slane %v7188_v62, 5  ;;  %v6869_v63 = vld [vmem:[%s8934_s1 + $0x148] sm:$0xff]  }
  0x21   : > { %6323 = vmatpush3.bf16.msra.mxu0 %v6860_v9  ;;  %6132 = vmatprep.subr.bf16.mxu1 %v6861_v10  ;;  %v2206_v9 = vsel %vm7171_vm2, %v2201_v0, %v2205_v45  ;;  %v335_v15 = vor.u32 %v334_v6, %v330_v2  ;;  %v340_v16 = vrot.slane %v338_v7, 5  ;;  %v2223_v18 = vrot.slane %v2221_v12, 5  ;;  %v7224_v45 = vld [vmem:[%s7139_s16 + $0x28] sm:$0xf] }
  0x22   : > { %6324 = vmatprep.subr.bf16.mxu0 %v6862_v11  ;;  %v326_v14 = vrot.slane %v325_v5, 4  ;;  %v2237_v26 = vshll.u32 %v7199_v8, 16  ;;  %v2233_v31 = vrot.slane %v2231_v20, 4  ;;  %v2975_v32 = vrot.slane %v7199_v8, 5  ;;  %v234_v5 = vld [vmem:[%s7139_s16 + $0x28] sm:$0xf] }
  0x23   : > { %v343_v38 = vshrl.u32 %v231_v21, 16  ;;  %v346_v44 = vshll.u32 %v231_v21, 16  ;;  %v356_v49 = vshrl.u32 %v232_v28, 16  ;;  %v362_v50 = vshll.u32 %v277_v33, 16  ;;  %v7255_v33 = vld [vmem:[%s7139_s16 + $0x34] sm:$0xf] }
  0x24   : > { %6133 = vmatpush3.bf16.msra.mxu1 %v6861_v10  ;;  %v2216_v10 = vsel %vm7171_vm2, %v2211_v1, %v2215_v48  ;;  %v331_v22 = vsel %vm7171_vm2, %v326_v14, %v330_v2  ;;  %v2239_v35 = vrot.slane %v2237_v26, 5  ;;  %v352_v48 = vshll.u32 %v232_v28, 16 }
  0x25   : > { %6325 = vmatpush3.bf16.msra.mxu0 %v6862_v11  ;;  %6134 = vmatprep.subr.bf16.mxu1 %v6863_v25  ;;  %v2218_v11 = vshrl.u32 %v5514_v57, 16  ;;  %v5575_v13 = vcombine.low %v2206_v9, %v2216_v10  ;;  %v345_v47 = vrot.slane %v343_v38, 4  ;;  %v348_v55 = vrot.slane %v346_v44, 5 }
  0x26   : > { %6326 = vmatprep.subr.bf16.mxu0 %v6864_v30  ;;  %v2242_v56 = vshrl.u32 %v5517_v39, 16  ;;  %v354_v57 = vrot.slane %v352_v48, 5  ;;  %v358_v58 = vrot.slane %v356_v49, 4  ;;  %v364_v59 = vrot.slane %v362_v50, 5  ;;  %v6872_v48 = vld [vmem:[%s8934_s1 + $0x158] sm:$0xff]  }
  0x27   : > { %v2220_v17 = vrot.slane %v2218_v11, 4  ;;  %6330 = vmatprep.mubr.bf16.mxu0 %v5575_v13  ;;  %v2245_v60 = vshll.u32 %v5517_v39, 16  ;;  %v349_v0 = vor.u32 %v348_v55, %v345_v47  ;;  %v2251_v2 = vshll.u32 %v7224_v45, 16  ;;  %v278_v11 = vld [vmem:[%s7139_s16 + $0x2c] sm:$0x1] }
  0x28   : > { %6135 = vmatpush3.bf16.msra.mxu1 %v6863_v25  ;;  %v336_v25 = vrot.slane %v335_v15, 4  ;;  %v2244_v1 = vrot.slane %v2242_v56, 4  ;;  %v359_v7 = vor.u32 %v358_v58, %v354_v57  ;;  %v2255_v10 = vshrl.u32 %v7224_v45, 16 }
  0x29   : > { %6327 = vmatpush3.bf16.msra.mxu0 %v6864_v30  ;;  %6136 = vmatprep.subr.bf16.mxu1 %v6865_v36  ;;  %v2224_v29 = vor.u32 %v2223_v18, %v2220_v17  ;;  %v2229_v30 = vrot.slane %v2227_v19, 5  ;;  %v2247_v9 = vrot.slane %v2245_v60, 5  ;;  %v350_v12 = vrot.slane %v349_v0, 4  ;;  %v6879_v60 = vld [vmem:[%s8934_s1 + $0x20] sm:$0xff]  }
  0x2a   : > { %6328 = vmatprep.subr.bf16.mxu0 %v6866_v51  ;;  %v341_v34 = vsel %vm7171_vm2, %v336_v25, %v340_v16  ;;  %v2253_v13 = vrot.slane %v2251_v2, 5  ;;  %v367_v15 = vshrl.u32 %v233_v52, 16  ;;  %v5520_v16 = vld [vmem:[%s7139_s16 + $0x30] sm:$0xf]  ;;  %v360_v17 = vrot.slane %v359_v7, 4 }
  0x2b   : > { %v5336_v40 = vcombine.low %v331_v22, %v341_v34  ;;  %v2225_v42 = vrot.slane %v2224_v29, 4  ;;  %v2234_v43 = vor.u32 %v2233_v31, %v2229_v30  ;;  %v2248_v18 = vor.u32 %v2247_v9, %v2244_v1  ;;  %v6876_v34 = vld [vmem:[%s8934_s1 + $0x18] sm:$0xff]  }
  0x2c   : > { %6137 = vmatpush3.bf16.msra.mxu1 %v6865_v36  ;;  %v7220_v36 = vrot.slane %v2972_v27, 4  ;;  %v2257_v19 = vrot.slane %v2255_v10, 4  ;;  %v370_v20 = vshll.u32 %v233_v52, 16  ;;  %v355_v21 = vsel %vm7171_vm2, %v350_v12, %v354_v57  ;;  %v279_v2 = vld [vmem:[%s7139_s16 + $0x38] sm:$0x1] }
  0x2d   : > { %6329 = vmatpush3.bf16.msra.mxu0 %v6866_v51  ;;  %6170 = vmatprep.subr.bf16.mxu1 %v6867_v3  ;;  %v7230_v51 = vld [vmem:[%s7139_s16 + $0x2c] sm:$0x1]  ;;  %v2230_v53 = vsel %vm7171_vm2, %v2225_v42, %v2229_v30  ;;  %v2235_v54 = vrot.slane %v2234_v43, 4  ;;  %v369_v25 = vrot.slane %v367_v15, 4  ;;  %v376_v26 = vshll.u32 %v234_v5, 16 }
  0x2e   : > { %6362 = vmatprep.subr.bf16.mxu0 %v7196_v4  ;;  %v2261_v14 = vshll.u32 %v7230_v51, 16  ;;  %v365_v28 = vsel %vm7171_vm2, %v360_v17, %v364_v59  ;;  %v2249_v29 = vrot.slane %v2248_v18, 4  ;;  %v2258_v30 = vor.u32 %v2257_v19, %v2253_v13  ;;  %v236_v59 = vld [vmem:[%s7139_s16 + $0x34] sm:$0xf]  ;;  %v5523_v9 = vld [vmem:[%s7139_s16 + $0x3c] sm:$0xf] }
  0x2f   : > { %6139 = vmatmul.mubr.bf16.vlgmr.msra.gmra.mrb[0].mxu1 %v5336_v40  ;;  %v2240_v61 = vsel %vm7171_vm2, %v2235_v54, %v2239_v35  ;;  %v372_v31 = vrot.slane %v370_v20, 5  ;;  %v5337_v35 = vcombine.low %v355_v21, %v365_v28  ;;  %v378_v38 = vrot.slane %v376_v26, 5  ;;  %v235_v54 = vld [vmem:[%s7139_s16 + $0x30] sm:$0xf]  ;;  %v7289_v19 = vld [vmem:[%s7139_s16 + $0x40] sm:$0xf] }
  0x30   : > { %6171 = vmatpush3.bf16.msra.mxu1 %v6867_v3  ;;  %v6873_v3 = vld [vmem:[%s8934_s1 + $0x10] sm:$0xff]   ;;  %v5576_v6 = vcombine.low %v2230_v53, %v2240_v61  ;;  %v2263_v22 = vrot.slane %v2261_v14, 5  ;;  %v380_v39 = vshrl.u32 %v234_v5, 16  ;;  %v386_v40 = vshll.u32 %v278_v11, 16  ;;  %v6881_v14 = vld [vmem:[%s8934_s1 + $0x28] sm:$0xff]   ;;  %v6874_v20 = vld [vmem:[%s8934_s1 + $0x160] sm:$0xff]  }
  0x31   : > { %6172 = vmatprep.subr.bf16.mxu1 %v6870_v46  ;;  %v2254_v42 = vsel %vm7171_vm2, %v2249_v29, %v2253_v13  ;;  %v2259_v43 = vrot.slane %v2258_v30, 4  ;;  %v373_v44 = vor.u32 %v372_v31, %v369_v25  ;;  %v2266_v47 = vshrl.u32 %v5520_v16, 16  ;;  %6142 = vmatprep.mubr.bf16.mxu1 %v5337_v35  ;;  %v7297_v28 = vld [vmem:[%s7139_s16 + $0x44] sm:$0x1]  ;;  %v6883_v35 = vld [vmem:[%s8934_s1 + $0x30] sm:$0xff]  }
  0x32   : > { %6331 = vmatmul.mubr.bf16.vlgmr.msra.gmra.mrb[0].mxu0 %v5576_v6  ;;  %v382_v49 = vrot.slane %v380_v39, 4  ;;  %v388_v50 = vrot.slane %v386_v40, 5  ;;  %v2269_v52 = vshll.u32 %v5520_v16, 16  ;;  %v2275_v53 = vshll.u32 %v7255_v33, 16 }
  0x33   : > { %6363 = vmatpush3.bf16.msra.mxu0 %v7196_v4  ;;  %v6871_v4 = vld [vmem:[%s8934_s1 + $0x150] sm:$0xff]   ;;  %v2264_v55 = vsel %vm7171_vm2, %v2259_v43, %v2263_v22  ;;  %v374_v56 = vrot.slane %v373_v44, 4  ;;  %v2268_v57 = vrot.slane %v2266_v47, 4  ;;  %v2279_v58 = vshrl.u32 %v7255_v33, 16 }
  0x34   : > { %6173 = vmatpush3.bf16.msra.mxu1 %v6870_v46  ;;  %6364 = vmatprep.subr.bf16.mxu0 %v6869_v63  ;;  %v7266_v46 = vld [vmem:[%s7139_s16 + $0x38] sm:$0x1]  ;;  %v5577_v61 = vcombine.low %v2254_v42, %v2264_v55  ;;  %v2271_v0 = vrot.slane %v2269_v52, 5  ;;  %v2277_v1 = vrot.slane %v2275_v53, 5  ;;  %v391_v7 = vshrl.u32 %v235_v54, 16 }
  0x35   : > { %6174 = vmatprep.subr.bf16.mxu1 %v6873_v3  ;;  %v379_v5 = vsel %vm7171_vm2, %v374_v56, %v378_v38  ;;  %v2285_v6 = vshll.u32 %v7266_v46, 16  ;;  %v394_v12 = vshll.u32 %v235_v54, 16  ;;  %v400_v13 = vshll.u32 %v236_v59, 16  ;;  %v238_v55 = vld [vmem:[%s7139_s16 + $0x40] sm:$0xf] }
  0x36   : > { %6334 = vmatprep.mubr.bf16.mxu0 %v5577_v61  ;;  %v2272_v11 = vor.u32 %v2271_v0, %v2268_v57  ;;  %v393_v17 = vrot.slane %v391_v7, 4  ;;  %v404_v18 = vshrl.u32 %v236_v59, 16  ;;  %v2290_v40 = vshrl.u32 %v5523_v9, 16 }
  0x37   : > { %6365 = vmatpush3.bf16.msra.mxu0 %v6869_v63  ;;  %v383_v63 = vor.u32 %v382_v49, %v378_v38  ;;  %v2287_v16 = vrot.slane %v2285_v6, 5  ;;  %v396_v25 = vrot.slane %v394_v12, 5  ;;  %v402_v26 = vrot.slane %v400_v13, 5 }
  0x38   : > { %6175 = vmatpush3.bf16.msra.mxu1 %v6873_v3  ;;  %6366 = vmatprep.subr.bf16.mxu0 %v6871_v4  ;;  %v2281_v3 = vrot.slane %v2279_v58, 4  ;;  %v2273_v22 = vrot.slane %v2272_v11, 4  ;;  %v406_v31 = vrot.slane %v404_v18, 4  ;;  %v2293_v42 = vshll.u32 %v5523_v9, 16  ;;  %v5526_v9 = vld [vmem:[%s7139_s16 + $0x48] sm:$0xf] }
  0x39   : > { %6176 = vmatprep.subr.bf16.mxu1 %v6876_v34  ;;  %v384_v10 = vrot.slane %v383_v63, 4  ;;  %v397_v39 = vor.u32 %v396_v25, %v393_v17  ;;  %v2299_v49 = vshll.u32 %v7289_v19, 16  ;;  %v2292_v53 = vrot.slane %v2290_v40, 4  ;;  %v280_v63 = vld [vmem:[%s7139_s16 + $0x44] sm:$0x1] }
  0x3a   : > { %v2282_v15 = vor.u32 %v2281_v3, %v2277_v1  ;;  %v2278_v38 = vsel %vm7171_vm2, %v2273_v22, %v2277_v1  ;;  %v407_v44 = vor.u32 %v406_v31, %v402_v26  ;;  %v2295_v54 = vrot.slane %v2293_v42, 5  ;;  %v7330_v22 = vld [vmem:[%s7139_s16 + $0x50] sm:$0x1]  ;;  %v6878_v31 = vld [vmem:[%s8934_s1 + $0x178] sm:$0xff]  }
  0x3b   : > { %6367 = vmatpush3.bf16.msra.mxu0 %v6871_v4  ;;  %v389_v21 = vsel %vm7171_vm2, %v384_v10, %v388_v50  ;;  %v410_v4 = vshll.u32 %v279_v2, 16  ;;  %v398_v52 = vrot.slane %v397_v39, 4  ;;  %v2301_v57 = vrot.slane %v2299_v49, 5  ;;  %v6885_v2 = vld [vmem:[%s8934_s1 + $0x38] sm:$0xff]  }
  0x3c   : > { %6177 = vmatpush3.bf16.msra.mxu1 %v6876_v34  ;;  %6368 = vmatprep.subr.bf16.mxu0 %v6872_v48  ;;  %v5338_v29 = vcombine.low %v379_v5, %v389_v21  ;;  %v2283_v30 = vrot.slane %v2282_v15, 4  ;;  %v237_v34 = vld [vmem:[%s7139_s16 + $0x3c] sm:$0xf]  ;;  %v408_v56 = vrot.slane %v407_v44, 4  ;;  %v2303_v58 = vshrl.u32 %v7289_v19, 16  ;;  %v6877_v15 = vld [vmem:[%s8934_s1 + $0x170] sm:$0xff]  }
  0x3d   : > { %6178 = vmatprep.subr.bf16.mxu1 %v6879_v60  ;;  %v412_v47 = vrot.slane %v410_v4, 5  ;;  %v2309_v59 = vshll.u32 %v7297_v28, 16  ;;  %v2296_v61 = vor.u32 %v2295_v54, %v2292_v53  ;;  %v415_v0 = vshrl.u32 %v237_v34, 16  ;;  %v7341_v4 = vld [vmem:[%s8934_s1 + $0x80] sm:$0xff]   ;;  %v240_v53 = vld [vmem:[%s7139_s16 + $0x4c] sm:$0xf] }
  0x3e   : > { %6143 = vmatmul.mubr.bf16.gmra.mrb[4].mxu1 %v5338_v29  ;;  %v2288_v43 = vsel %vm7171_vm2, %v2283_v30, %v2287_v16  ;;  %v418_v1 = vshll.u32 %v237_v34, 16  ;;  %v2305_v3 = vrot.slane %v2303_v58, 4  ;;  %v424_v7 = vshll.u32 %v238_v55, 16  ;;  %v239_v30 = vld [vmem:[%s7139_s16 + $0x48] sm:$0xf] }
  0x3f   : > { %6369 = vmatpush3.bf16.msra.mxu0 %v6872_v48  ;;  %v5578_v50 = vcombine.low %v2278_v38, %v2288_v43  ;;  %v6875_v48 = vld [vmem:[%s8934_s1 + $0x168] sm:$0xff]   ;;  %v413_v5 = vsel %vm7171_vm2, %v408_v56, %v412_v47  ;;  %v2311_v6 = vrot.slane %v2309_v59, 5  ;;  %v2297_v11 = vrot.slane %v2296_v61, 4  ;;  %v281_v54 = vld [vmem:[%s7139_s16 + $0x50] sm:$0x1] }
  0x40   : > { %6179 = vmatpush3.bf16.msra.mxu1 %v6879_v60  ;;  %6370 = vmatprep.subr.bf16.mxu0 %v6874_v20  ;;  %v403_v60 = vsel %vm7171_vm2, %v398_v52, %v402_v26  ;;  %v417_v12 = vrot.slane %v415_v0, 4  ;;  %v420_v13 = vrot.slane %v418_v1, 5  ;;  %v2306_v16 = vor.u32 %v2305_v3, %v2301_v57  ;;  %v5529_v58 = vld [vmem:[%s7139_s16 + $0x54] sm:$0xf]  ;;  %v7355_v0 = vld [vmem:[%s7139_s16 + $0x58] sm:$0xf] }
  0x41   : > { %6180 = vmatprep.subr.bf16.mxu1 %v6881_v14  ;;  %6335 = vmatmul.mubr.bf16.gmra.mrb[4].mxu0 %v5578_v50  ;;  %v5339_v10 = vcombine.low %v403_v60, %v413_v5  ;;  %v426_v17 = vrot.slane %v424_v7, 5  ;;  %v428_v18 = vshrl.u32 %v238_v55, 16  ;;  %v434_v21 = vshll.u32 %v280_v63, 16 }
  0x42   : > { %v421_v25 = vor.u32 %v420_v13, %v417_v12  ;;  %v2314_v26 = vshrl.u32 %v5526_v9, 16  ;;  %v2317_v29 = vshll.u32 %v5526_v9, 16  ;;  %v2307_v34 = vrot.slane %v2306_v16, 4 }
  0x43   : > { %6371 = vmatpush3.bf16.msra.mxu0 %v6874_v20  ;;  %6146 = vmatprep.mubr.bf16.mxu1 %v5339_v10  ;;  %v2302_v20 = vsel %vm7171_vm2, %v2297_v11, %v2301_v57  ;;  %v436_v38 = vrot.slane %v434_v21, 5  ;;  %v2333_v52 = vshll.u32 %v7330_v22, 16  ;;  %v439_v61 = vshrl.u32 %v239_v30, 16 }
  0x44   : > { %6181 = vmatpush3.bf16.msra.mxu1 %v6881_v14  ;;  %v7324_v14 = vld [vmem:[%s7139_s16 + $0x4c] sm:$0xf]  ;;  %6372 = vmatprep.subr.bf16.mxu0 %v6875_v48  ;;  %v422_v40 = vrot.slane %v421_v25, 4  ;;  %v2316_v42 = vrot.slane %v2314_v26, 4  ;;  %v2319_v43 = vrot.slane %v2317_v29, 5  ;;  %v2312_v47 = vsel %vm7171_vm2, %v2307_v34, %v2311_v6  ;;  %v7360_v6 = vld [vmem:[%s8934_s1 + $0x180] sm:$0xff]  }
  0x45   : > { %6182 = vmatprep.subr.bf16.mxu1 %v6883_v35  ;;  %v2323_v39 = vshll.u32 %v7324_v14, 16  ;;  %v2327_v44 = vshrl.u32 %v7324_v14, 16  ;;  %v5579_v55 = vcombine.low %v2302_v20, %v2312_v47  ;;  %v2335_v60 = vrot.slane %v2333_v52, 5  ;;  %v7367_v20 = vld [vmem:[%s7139_s16 + $0x5c] sm:$0x1] }
  0x46   : > { %v2320_v56 = vor.u32 %v2319_v43, %v2316_v42  ;;  %v442_v63 = vshll.u32 %v239_v30, 16  ;;  %v452_v3 = vshrl.u32 %v240_v53, 16  ;;  %v441_v9 = vrot.slane %v439_v61, 4  ;;  %v242_v43 = vld [vmem:[%s7139_s16 + $0x58] sm:$0xf] }
  0x47   : > { %6373 = vmatpush3.bf16.msra.mxu0 %v6875_v48  ;;  %v2325_v50 = vrot.slane %v2323_v39, 5  ;;  %v427_v48 = vsel %vm7171_vm2, %v422_v40, %v426_v17  ;;  %v2329_v57 = vrot.slane %v2327_v44, 4  ;;  %6338 = vmatprep.mubr.bf16.mxu0 %v5579_v55  ;;  %v458_v11 = vshll.u32 %v281_v54, 16  ;;  %v5532_v52 = vld [vmem:[%s7139_s16 + $0x60] sm:$0xf] }
  0x48   : > { %6183 = vmatpush3.bf16.msra.mxu1 %v6883_v35  ;;  %v430_v35 = vrot.slane %v428_v18, 4  ;;  %6374 = vmatprep.subr.bf16.mxu0 %v6877_v15  ;;  %v2321_v1 = vrot.slane %v2320_v56, 4  ;;  %v444_v10 = vrot.slane %v442_v63, 5  ;;  %v454_v18 = vrot.slane %v452_v3, 4 }
  0x49   : > { %6184 = vmatprep.subr.bf16.mxu1 %v6885_v2  ;;  %v2330_v5 = vor.u32 %v2329_v57, %v2325_v50  ;;  %v460_v21 = vrot.slane %v458_v11, 5  ;;  %v2338_v25 = vshrl.u32 %v5529_v58, 16  ;;  %v2341_v29 = vshll.u32 %v5529_v58, 16 }
  0x4a   : > { %v431_v49 = vor.u32 %v430_v35, %v426_v17  ;;  %v2326_v13 = vsel %vm7171_vm2, %v2321_v1, %v2325_v50  ;;  %v445_v17 = vor.u32 %v444_v10, %v441_v9  ;;  %v2347_v30 = vshll.u32 %v7355_v0, 16  ;;  %v241_v35 = vld [vmem:[%s7139_s16 + $0x54] sm:$0xf]  ;;  %v282_v50 = vld [vmem:[%s7139_s16 + $0x5c] sm:$0x1] }
  0x4b   : > { %6375 = vmatpush3.bf16.msra.mxu0 %v6877_v15  ;;  %v2331_v15 = vrot.slane %v2330_v5, 4  ;;  %v2351_v34 = vshrl.u32 %v7355_v0, 16  ;;  %v2340_v42 = vrot.slane %v2338_v25, 4  ;;  %v463_v55 = vshrl.u32 %v241_v35, 16  ;;  %v7395_v25 = vld [vmem:[%s7139_s16 + $0x60] sm:$0xf] }
  0x4c   : > { %6185 = vmatpush3.bf16.msra.mxu1 %v6885_v2  ;;  %v432_v59 = vrot.slane %v431_v49, 4  ;;  %v448_v2 = vshll.u32 %v240_v53, 16  ;;  %6376 = vmatprep.subr.bf16.mxu0 %v6878_v31  ;;  %v446_v39 = vrot.slane %v445_v17, 4  ;;  %v2349_v44 = vrot.slane %v2347_v30, 5  ;;  %v7391_v17 = vld [vmem:[%s7139_s16 + $0x68] sm:$0x1] }
  0x4d   : > { %6218 = vmatprep.subr.bf16.mxu1 %v7341_v4  ;;  %v2336_v26 = vsel %vm7171_vm2, %v2331_v15, %v2335_v60  ;;  %v2353_v47 = vrot.slane %v2351_v34, 4  ;;  %v2357_v49 = vshll.u32 %v7367_v20, 16  ;;  %v7382_v60 = vld [vmem:[%s7139_s16 + $0x64] sm:$0xf]  ;;  %v465_v63 = vrot.slane %v463_v55, 4 }
  0x4e   : > { %v437_v7 = vsel %vm7171_vm2, %v432_v59, %v436_v38  ;;  %v450_v16 = vrot.slane %v448_v2, 5  ;;  %v5580_v38 = vcombine.low %v2326_v13, %v2336_v26  ;;  %v472_v59 = vshll.u32 %v242_v43, 16 }
  0x4f   : > { %v5340_v12 = vcombine.low %v427_v48, %v437_v7  ;;  %6377 = vmatpush3.bf16.msra.mxu0 %v6878_v31  ;;  %v2343_v31 = vrot.slane %v2341_v29, 5  ;;  %v466_v48 = vshll.u32 %v241_v35, 16  ;;  %v2354_v57 = vor.u32 %v2353_v47, %v2349_v44  ;;  %v7398_v35 = vld [vmem:[%s7139_s16 + $0x64] sm:$0xf] }
  0x50   : > { %6410 = vmatprep.subr.bf16.mxu0 %v7360_v6  ;;  %v455_v40 = vor.u32 %v454_v18, %v450_v16  ;;  %6339 = vmatmul.mubr.bf16.gmra.mrb[8].mxu0 %v5580_v38  ;;  %v451_v53 = vsel %vm7171_vm2, %v446_v39, %v450_v16  ;;  %v2359_v58 = vrot.slane %v2357_v49, 5  ;;  %v476_v5 = vshrl.u32 %v242_v43, 16  ;;  %v283_v43 = vld [vmem:[%s7139_s16 + $0x68] sm:$0x1] }
  0x51   : > { %6147 = vmatmul.mubr.bf16.gmra.mrb[8].mxu1 %v5340_v12  ;;  %v2344_v56 = vor.u32 %v2343_v31, %v2340_v42  ;;  %v468_v1 = vrot.slane %v466_v48, 5  ;;  %v2355_v7 = vrot.slane %v2354_v57, 4  ;;  %v474_v9 = vrot.slane %v472_v59, 5 }
  0x52   : > { %v456_v54 = vrot.slane %v455_v40, 4  ;;  %v478_v11 = vrot.slane %v476_v5, 4  ;;  %v482_v12 = vshll.u32 %v282_v50, 16  ;;  %v2362_v13 = vshrl.u32 %v5532_v52, 16  ;;  %v5599_v50 = vld [vmem:[%s7139_s16 + $0xc] sm:$0xe] }
  0x53   : > { %v2345_v3 = vrot.slane %v2344_v56, 4  ;;  %v469_v10 = vor.u32 %v468_v1, %v465_v63  ;;  %v2360_v16 = vsel %vm7171_vm2, %v2355_v7, %v2359_v58  ;;  %v2365_v18 = vshll.u32 %v5532_v52, 16  ;;  %v7413_v5 = vld [vmem:[%s7139_s16 + $0x6c] sm:$0xf] }
  0x54   : > { %v461_v61 = vsel %vm7171_vm2, %v456_v54, %v460_v21  ;;  %v2371_v21 = vshll.u32 %v7382_v60, 16  ;;  %v479_v30 = vor.u32 %v478_v11, %v474_v9  ;;  %v484_v34 = vrot.slane %v482_v12, 5 }
  0x55   : > { %v5341_v2 = vcombine.low %v451_v53, %v461_v61  ;;  %v2350_v15 = vsel %vm7171_vm2, %v2345_v3, %v2349_v44  ;;  %v470_v29 = vrot.slane %v469_v10, 4  ;;  %v2364_v38 = vrot.slane %v2362_v13, 4 }
  0x56   : > { %v5581_v26 = vcombine.low %v2350_v15, %v2360_v16  ;;  %v2367_v39 = vrot.slane %v2365_v18, 5  ;;  %v2373_v40 = vrot.slane %v2371_v21, 5  ;;  %v2375_v42 = vshrl.u32 %v7382_v60, 16  ;;  %v7425_v21 = vld [vmem:[%s7139_s16 + $0x70] sm:$0xf] }
  0x57   : > { %6150 = vmatprep.mubr.bf16.mxu1 %v5341_v2  ;;  %v475_v31 = vsel %vm7171_vm2, %v470_v29, %v474_v9  ;;  %v480_v44 = vrot.slane %v479_v30, 4  ;;  %v2381_v47 = vshll.u32 %v7391_v17, 16  ;;  %v487_v49 = vshrl.u32 %v7395_v25, 16  ;;  %v6969_v9 = vld [vmem:[%s7139_s16 + $0xb4] sm:$0xff]  }
  0x58   : > { %6342 = vmatprep.mubr.bf16.mxu0 %v5581_v26  ;;  %v2368_v52 = vor.u32 %v2367_v39, %v2364_v38  ;;  %v2377_v53 = vrot.slane %v2375_v42, 4  ;;  %v490_v54 = vshll.u32 %v7395_v25, 16  ;;  %v496_v55 = vshll.u32 %v7398_v35, 16 }
  0x59   : > { %v485_v48 = vsel %vm7171_vm2, %v480_v44, %v484_v34  ;;  %v2383_v56 = vrot.slane %v2381_v47, 5  ;;  %v489_v57 = vrot.slane %v487_v49, 4  ;;  %v500_v58 = vshrl.u32 %v7398_v35, 16  ;;  %v7436_v47 = vld [vmem:[%s7139_s16 + $0x78] sm:$0xf] }
  0x5a   : > { %v5342_v59 = vcombine.low %v475_v31, %v485_v48  ;;  %v2369_v61 = vrot.slane %v2368_v52, 4  ;;  %v2378_v63 = vor.u32 %v2377_v53, %v2373_v40  ;;  %v492_v1 = vrot.slane %v490_v54, 5  ;;  %v7447_v54 = vld [vmem:[%s7139_s16 + $0x7c] sm:$0xf] }
  0x5b   : > { %v498_v2 = vrot.slane %v496_v55, 5  ;;  %v502_v3 = vrot.slane %v500_v58, 4  ;;  %v506_v7 = vshll.u32 %v283_v43, 16  ;;  %v5615_v10 = vrot.slane %v5599_v50, 9  ;;  %v285_v58 = vld [vmem:[%s7139_s16 + $0x80] sm:$0x1] }
  0x5c   : > { %6151 = vmatmul.mubr.bf16.gmra.mrb[12].mxu1 %v5342_v59  ;;  %v2374_v11 = vsel %vm7171_vm2, %v2369_v61, %v2373_v40  ;;  %v2379_v12 = vrot.slane %v2378_v63, 4  ;;  %v493_v13 = vor.u32 %v492_v1, %v489_v57  ;;  %v2965_v15 = vrot.slane %v7152_v23, 5  ;;  %v284_v40 = vld [vmem:[%s7139_s16 + $0x74] sm:$0x1]  ;;  %v5600_v23 = vld [vmem:[%s7139_s16 + $0x18] sm:$0xe] }
  0x5d   : > { %v503_v16 = vor.u32 %v502_v3, %v498_v2  ;;  %v508_v18 = vrot.slane %v506_v7, 5  ;;  %v511_v26 = vshrl.u32 %v7413_v5, 16  ;;  %v514_v29 = vshll.u32 %v7413_v5, 16 }
  0x5e   : > { %v2384_v30 = vsel %vm7171_vm2, %v2379_v12, %v2383_v56  ;;  %v494_v34 = vrot.slane %v493_v13, 4  ;;  %v2966_v38 = vsel %vm7417_vm5, %v5615_v10, %v2965_v15  ;;  %v2967_v39 = vrot.slane %v2965_v15, 4  ;;  %v5601_v13 = vld [vmem:[%s7139_s16 + $0x24] sm:$0xe] }
  0x5f   : > { %v5582_v42 = vcombine.low %v2374_v11, %v2384_v30  ;;  %v504_v43 = vrot.slane %v503_v16, 4  ;;  %v513_v31 = vrot.slane %v511_v26, 4  ;;  %v516_v44 = vrot.slane %v514_v29, 5  ;;  %v7469_v16 = vld [vmem:[%s7139_s16 + $0x84] sm:$0xf]  ;;  %v6882_v29 = vld [vmem:[%s8934_s1 + $0x188] sm:$0xff]  }
  0x60   : > { %v499_v49 = vsel %vm7171_vm2, %v494_v34, %v498_v2  ;;  %v2969_v50 = vsel %vm7417_vm5, %v2967_v39, %v2968_v41  ;;  %v520_v52 = vshll.u32 %v7425_v21, 16  ;;  %v524_v53 = vshrl.u32 %v7425_v21, 16 }
  0x61   : > { %6343 = vmatmul.mubr.bf16.gmra.mrb[12].mxu0 %v5582_v42  ;;  %v509_v55 = vsel %vm7171_vm2, %v504_v43, %v508_v18  ;;  %v5647_v48 = vcombine.low %v2966_v38, %v2969_v50  ;;  %v517_v56 = vor.u32 %v516_v44, %v513_v31  ;;  %v530_v57 = vshll.u32 %v284_v40, 16  ;;  %v7477_v40 = vld [vmem:[%s7139_s16 + $0x88] sm:$0xf]  ;;  %v286_v31 = vld [vmem:[%s7139_s16 + $0x8c] sm:$0x1] }
  0x62   : > { %v5343_v59 = vcombine.low %v499_v49, %v509_v55  ;;  %v522_v24 = vrot.slane %v520_v52, 5  ;;  %v526_v61 = vrot.slane %v524_v53, 4  ;;  %v5616_v63 = vrot.slane %v5600_v23, 9 }
  0x63   : > { %6378 = vmatprep.mubr.bf16.mxu0 %v5647_v48  ;;  %v518_v41 = vrot.slane %v517_v56, 4  ;;  %v532_v1 = vrot.slane %v530_v57, 5  ;;  %v2976_v2 = vsel %vm7417_vm5, %v7220_v36, %v2975_v32  ;;  %v535_v3 = vshrl.u32 %v7436_v47, 16 }
  0x64   : > { %6154 = vmatprep.mubr.bf16.mxu1 %v5343_v59  ;;  %v527_v7 = vor.u32 %v526_v61, %v522_v24  ;;  %v2973_v10 = vsel %vm7417_vm5, %v5616_v63, %v2972_v27  ;;  %v538_v11 = vshll.u32 %v7436_v47, 16  ;;  %v544_v12 = vshll.u32 %v7447_v54, 16 }
  0x65   : > { %v523_v8 = vsel %vm7171_vm2, %v518_v41, %v522_v24  ;;  %v5648_v15 = vcombine.low %v2973_v10, %v2976_v2  ;;  %v537_v32 = vrot.slane %v535_v3, 4  ;;  %v548_v36 = vshrl.u32 %v7447_v54, 16  ;;  %v7498_v2 = vld [vmem:[%s7139_s16 + $0x90] sm:$0xf]  ;;  %v7501_v3 = vld [vmem:[%s7139_s16 + $0x94] sm:$0xf] }
  0x66   : > { %v528_v62 = vrot.slane %v527_v7, 4  ;;  %v540_v18 = vrot.slane %v538_v11, 5  ;;  %v546_v26 = vrot.slane %v544_v12, 5  ;;  %v554_v27 = vshll.u32 %v285_v58, 16 }
  0x67   : > { %v550_v30 = vrot.slane %v548_v36, 4  ;;  %v5617_v34 = vrot.slane %v5601_v13, 9  ;;  %v2979_v38 = vrot.slane %v7224_v45, 5  ;;  %v2982_v39 = vrot.slane %v7230_v51, 5  ;;  %v5602_v45 = vld [vmem:[%s7139_s16 + $0x30] sm:$0xe] }
  0x68   : > { %v533_v23 = vsel %vm7171_vm2, %v528_v62, %v532_v1  ;;  %v541_v42 = vor.u32 %v540_v18, %v537_v32  ;;  %v556_v43 = vrot.slane %v554_v27, 5  ;;  %v559_v44 = vshrl.u32 %v7469_v16, 16  ;;  %v287_v62 = vld [vmem:[%s7139_s16 + $0x98] sm:$0x1] }
  0x69   : > { %v5344_v49 = vcombine.low %v523_v8, %v533_v23  ;;  %6379 = vmatmul.mubr.bf16.vlgmr.msra.gmra.mrb[0].mxu0 %v5648_v15  ;;  %v551_v50 = vor.u32 %v550_v30, %v546_v26  ;;  %v2980_v52 = vsel %vm7417_vm5, %v5617_v34, %v2979_v38  ;;  %v2981_v53 = vrot.slane %v2979_v38, 4  ;;  %v6886_v30 = vld [vmem:[%s8934_s1 + $0x198] sm:$0xff]  }
  0x6a   : > { %6411 = vmatpush3.bf16.msra.mxu0 %v7360_v6  ;;  %v542_v51 = vrot.slane %v541_v42, 4  ;;  %v561_v55 = vrot.slane %v559_v44, 4  ;;  %v562_v48 = vshll.u32 %v7469_v16, 16  ;;  %v568_v56 = vshll.u32 %v7477_v40, 16  ;;  %v6884_v6 = vld [vmem:[%s8934_s1 + $0x190] sm:$0xff]  }
  0x6b   : > { %6155 = vmatmul.mubr.bf16.gmra.mrb[16].mxu1 %v5344_v49  ;;  %v552_v57 = vrot.slane %v551_v50, 4  ;;  %v2983_v58 = vsel %vm7417_vm5, %v2981_v53, %v2982_v39  ;;  %v572_v59 = vshrl.u32 %v7477_v40, 16  ;;  %v578_v24 = vshll.u32 %v286_v31, 16  ;;  %6412 = vmatprep.subr.bf16.mxu0 %v6882_v29  ;;  %v5603_v38 = vld [vmem:[%s7139_s16 + $0x3c] sm:$0xe] }
  0x6c   : > { %v547_v61 = vsel %vm7171_vm2, %v542_v51, %v546_v26  ;;  %v5649_v63 = vcombine.low %v2980_v52, %v2983_v58  ;;  %v564_v41 = vrot.slane %v562_v48, 5  ;;  %v570_v1 = vrot.slane %v568_v56, 5  ;;  %v7519_v31 = vld [vmem:[%s7139_s16 + $0x9c] sm:$0xf]  ;;  %v7528_v48 = vld [vmem:[%s7139_s16 + $0xa0] sm:$0xf] }
  0x6d   : > { %v557_v7 = vsel %vm7171_vm2, %v552_v57, %v556_v43  ;;  %v574_v10 = vrot.slane %v572_v59, 4  ;;  %v580_v11 = vrot.slane %v578_v24, 5  ;;  %v5618_v12 = vrot.slane %v5602_v45, 9  ;;  %v6890_v56 = vld [vmem:[%s8934_s1 + $0x1a0] sm:$0xff]  }
  0x6e   : > { %v5345_v13 = vcombine.low %v547_v61, %v557_v7  ;;  %6382 = vmatprep.mubr.bf16.mxu0 %v5649_v63  ;;  %v565_v8 = vor.u32 %v564_v41, %v561_v55  ;;  %v2986_v15 = vrot.slane %v7255_v33, 5  ;;  %v2989_v32 = vrot.slane %v7266_v46, 5  ;;  %6413 = vmatpush3.bf16.msra.mxu0 %v6882_v29  ;;  %v288_v61 = vld [vmem:[%s7139_s16 + $0xa4] sm:$0x1] }
  0x6f   : > { %v575_v36 = vor.u32 %v574_v10, %v570_v1  ;;  %v583_v18 = vshrl.u32 %v7498_v2, 16  ;;  %v586_v26 = vshll.u32 %v7498_v2, 16  ;;  %v592_v27 = vshll.u32 %v7501_v3, 16  ;;  %6414 = vmatprep.subr.bf16.mxu0 %v6884_v6 }
  0x70   : > { %6158 = vmatprep.mubr.bf16.mxu1 %v5345_v13  ;;  %v566_v34 = vrot.slane %v565_v8, 4  ;;  %v2987_v33 = vsel %vm7417_vm5, %v5618_v12, %v2986_v15  ;;  %v2988_v46 = vrot.slane %v2986_v15, 4  ;;  %v596_v29 = vshrl.u32 %v7501_v3, 16  ;;  %v5604_v15 = vld [vmem:[%s7139_s16 + $0x48] sm:$0xe] }
  0x71   : > { %v576_v39 = vrot.slane %v575_v36, 4  ;;  %v585_v23 = vrot.slane %v583_v18, 4  ;;  %v588_v42 = vrot.slane %v586_v26, 5  ;;  %v594_v43 = vrot.slane %v592_v27, 5  ;;  %v7553_v27 = vld [vmem:[%s7139_s16 + $0xa8] sm:$0xf] }
  0x72   : > { %v571_v44 = vsel %vm7171_vm2, %v566_v34, %v570_v1  ;;  %v2990_v49 = vsel %vm7417_vm5, %v2988_v46, %v2989_v32  ;;  %v598_v50 = vrot.slane %v596_v29, 4  ;;  %v602_v52 = vshll.u32 %v287_v62, 16  ;;  %6415 = vmatpush3.bf16.msra.mxu0 %v6884_v6  ;;  %v6894_v32 = vld [vmem:[%s8934_s1 + $0x1a8] sm:$0xff]  }
  0x73   : > { %v581_v53 = vsel %vm7171_vm2, %v576_v39, %v580_v11  ;;  %v5650_v45 = vcombine.low %v2987_v33, %v2990_v49  ;;  %v589_v51 = vor.u32 %v588_v42, %v585_v23  ;;  %v5619_v55 = vrot.slane %v5603_v38, 9  ;;  %6416 = vmatprep.subr.bf16.mxu0 %v6886_v30  ;;  %v7556_v29 = vld [vmem:[%s7139_s16 + $0xac] sm:$0xf] }
  0x74   : > { %v5346_v57 = vcombine.low %v571_v44, %v581_v53  ;;  %v599_v58 = vor.u32 %v598_v50, %v594_v43  ;;  %v604_v59 = vrot.slane %v602_v52, 5  ;;  %v2993_v24 = vrot.slane %v7289_v19, 5  ;;  %v5605_v53 = vld [vmem:[%s7139_s16 + $0x54] sm:$0xe] }
  0x75   : > { %6383 = vmatmul.mubr.bf16.gmra.mrb[4].mxu0 %v5650_v45  ;;  %v590_v6 = vrot.slane %v589_v51, 4  ;;  %v2996_v63 = vrot.slane %v7297_v28, 5  ;;  %v607_v41 = vshrl.u32 %v7519_v31, 16  ;;  %v610_v1 = vshll.u32 %v7519_v31, 16  ;;  %v6898_v45 = vld [vmem:[%s8934_s1 + $0x1b0] sm:$0xff]  }
  0x76   : > { %6159 = vmatmul.mubr.bf16.gmra.mrb[20].mxu1 %v5346_v57  ;;  %v600_v7 = vrot.slane %v599_v58, 4  ;;  %v2994_v10 = vsel %vm7417_vm5, %v5619_v55, %v2993_v24  ;;  %v2995_v11 = vrot.slane %v2993_v24, 4  ;;  %v616_v12 = vshll.u32 %v7528_v48, 16  ;;  %6417 = vmatpush3.bf16.msra.mxu0 %v6886_v30 }
  0x77   : > { %v595_v19 = vsel %vm7171_vm2, %v590_v6, %v594_v43  ;;  %v609_v13 = vrot.slane %v607_v41, 4  ;;  %v612_v28 = vrot.slane %v610_v1, 5  ;;  %v620_v8 = vshrl.u32 %v7528_v48, 16  ;;  %6418 = vmatprep.subr.bf16.mxu0 %v6890_v56  ;;  %v289_v43 = vld [vmem:[%s7139_s16 + $0xb0] sm:$0x1] }
  0x78   : > { %v605_v36 = vsel %vm7171_vm2, %v600_v7, %v604_v59  ;;  %v2997_v62 = vsel %vm7417_vm5, %v2995_v11, %v2996_v63  ;;  %v618_v18 = vrot.slane %v616_v12, 5  ;;  %v626_v26 = vshll.u32 %v288_v61, 16  ;;  %v7576_v41 = vld [vmem:[%s7139_s16 + $0xb4] sm:$0xf]  ;;  %v7581_v12 = vld [vmem:[%s7139_s16 + $0xb8] sm:$0xf] }
  0x79   : > { %v5347_v30 = vcombine.low %v595_v19, %v605_v36  ;;  %v5651_v34 = vcombine.low %v2994_v10, %v2997_v62  ;;  %v613_v33 = vor.u32 %v612_v28, %v609_v13  ;;  %v622_v46 = vrot.slane %v620_v8, 4  ;;  %v290_v19 = vld [vmem:[%s7139_s16 + $0xbc] sm:$0x1] }
  0x7a   : > { %v628_v38 = vrot.slane %v626_v26, 5  ;;  %v5620_v39 = vrot.slane %v5604_v15, 9  ;;  %v3000_v23 = vrot.slane %v7324_v14, 5  ;;  %v3003_v42 = vrot.slane %v7330_v22, 5  ;;  %6419 = vmatpush3.bf16.msra.mxu0 %v6890_v56  ;;  %v6902_v13 = vld [vmem:[%s8934_s1 + $0x1b8] sm:$0xff]  }
  0x7b   : > { %6162 = vmatprep.mubr.bf16.mxu1 %v5347_v30  ;;  %6386 = vmatprep.mubr.bf16.mxu0 %v5651_v34  ;;  %v614_v44 = vrot.slane %v613_v33, 4  ;;  %v623_v49 = vor.u32 %v622_v46, %v618_v18  ;;  %v631_v50 = vshrl.u32 %v7553_v27, 16  ;;  %v634_v52 = vshll.u32 %v7553_v27, 16  ;;  %v5606_v30 = vld [vmem:[%s7139_s16 + $0x60] sm:$0xe] }
  0x7c   : > { %v3001_v14 = vsel %vm7417_vm5, %v5620_v39, %v3000_v23  ;;  %v3002_v22 = vrot.slane %v3000_v23, 4  ;;  %v640_v51 = vshll.u32 %v7556_v29, 16  ;;  %v644_v55 = vshrl.u32 %v7556_v29, 16  ;;  %6420 = vmatprep.subr.bf16.mxu0 %v6894_v32  ;;  %v5536_v39 = vld [vmem:[%s7139_s16 + $0x70] sm:$0xf] }
  0x7d   : > { %v619_v56 = vsel %vm7171_vm2, %v614_v44, %v618_v18  ;;  %v624_v57 = vrot.slane %v623_v49, 4  ;;  %v633_v58 = vrot.slane %v631_v50, 4  ;;  %v636_v59 = vrot.slane %v634_v52, 5  ;;  %v7603_v44 = vld [vmem:[%s8934_s1 + $0x1c0] sm:$0xff]  }
  0x7e   : > { %v3004_v24 = vsel %vm7417_vm5, %v3002_v22, %v3003_v42  ;;  %v642_v61 = vrot.slane %v640_v51, 5  ;;  %v646_v6 = vrot.slane %v644_v55, 4  ;;  %v650_v63 = vshll.u32 %v289_v43, 16  ;;  %6421 = vmatpush3.bf16.msra.mxu0 %v6894_v32  ;;  %v5607_v43 = vld [vmem:[%s7139_s16 + $0x6c] sm:$0xe] }
  0x7f   : > { %v629_v1 = vsel %vm7171_vm2, %v624_v57, %v628_v38  ;;  %v5652_v7 = vcombine.low %v3001_v14, %v3004_v24  ;;  %v637_v10 = vor.u32 %v636_v59, %v633_v58  ;;  %v5621_v11 = vrot.slane %v5605_v53, 9  ;;  %6422 = vmatprep.subr.bf16.mxu0 %v6898_v45  ;;  %v5537_v55 = vld [vmem:[%s7139_s16 + $0x74] sm:$0x1]  ;;  %v5608_v24 = vld [vmem:[%s7139_s16 + $0x78] sm:$0xe] }
  0x80   : > { %v5348_v28 = vcombine.low %v619_v56, %v629_v1  ;;  %v647_v8 = vor.u32 %v646_v6, %v642_v61  ;;  %v652_v15 = vrot.slane %v650_v63, 5  ;;  %v3007_v32 = vrot.slane %v7355_v0, 5 }
  0x81   : > { %6387 = vmatmul.mubr.bf16.gmra.mrb[8].mxu0 %v5652_v7  ;;  %v638_v36 = vrot.slane %v637_v10, 4  ;;  %v3010_v62 = vrot.slane %v7367_v20, 5  ;;  %v655_v18 = vshrl.u32 %v7576_v41, 16  ;;  %v658_v26 = vshll.u32 %v7576_v41, 16 }
  0x82   : > { %6163 = vmatmul.mubr.bf16.gmra.mrb[24].mxu1 %v5348_v28  ;;  %v648_v34 = vrot.slane %v647_v8, 4  ;;  %v3008_v33 = vsel %vm7417_vm5, %v5621_v11, %v3007_v32  ;;  %v3009_v46 = vrot.slane %v3007_v32, 4  ;;  %v664_v38 = vshll.u32 %v7581_v12, 16  ;;  %6423 = vmatpush3.bf16.msra.mxu0 %v6898_v45  ;;  %v7616_v11 = vld [vmem:[%s7139_s16 + $0x7c] sm:$0xf] }
  0x83   : > { %v643_v0 = vsel %vm7171_vm2, %v638_v36, %v642_v61  ;;  %v657_v20 = vrot.slane %v655_v18, 4  ;;  %v660_v23 = vrot.slane %v658_v26, 5  ;;  %v668_v42 = vshrl.u32 %v7581_v12, 16  ;;  %6424 = vmatprep.subr.bf16.mxu0 %v6902_v13  ;;  %v6971_v36 = vld [vmem:[%s7139_s16] sm:$0xf] }
  0x84   : > { %v653_v49 = vsel %vm7171_vm2, %v648_v34, %v652_v15  ;;  %v3011_v50 = vsel %vm7417_vm5, %v3009_v46, %v3010_v62  ;;  %v666_v52 = vrot.slane %v664_v38, 5  ;;  %v674_v53 = vshll.u32 %v290_v19, 16  ;;  %v5542_v15 = vld [vmem:[%s7139_s16 + $0x88] sm:$0xf]  ;;  %v7631_v62 = vld [vmem:[%s7139_s16 + $0x4] sm:$0xf] }
  0x85   : > { %v5349_v45 = vcombine.low %v643_v0, %v653_v49  ;;  %v5653_v14 = vcombine.low %v3008_v33, %v3011_v50  ;;  %v661_v22 = vor.u32 %v660_v23, %v657_v20  ;;  %v670_v51 = vrot.slane %v668_v42, 4  ;;  %v5543_v26 = vld [vmem:[%s7139_s16 + $0x8c] sm:$0x1]  ;;  %v5546_v23 = vld [vmem:[%s7139_s16 + $0x98] sm:$0x1] }
  0x86   : > { %v676_v56 = vrot.slane %v674_v53, 5  ;;  %v5622_v57 = vrot.slane %v5606_v30, 9  ;;  %v3014_v58 = vrot.slane %v7382_v60, 5  ;;  %v3017_v59 = vrot.slane %v7391_v17, 5  ;;  %6425 = vmatpush3.bf16.msra.mxu0 %v6902_v13  ;;  %v7619_v17 = vld [vmem:[%s7139_s16 + $0x80] sm:$0x1] }
  0x87   : > { %6166 = vmatprep.mubr.bf16.mxu1 %v5349_v45  ;;  %6390 = vmatprep.mubr.bf16.mxu0 %v5653_v14  ;;  %v662_v61 = vrot.slane %v661_v22, 4  ;;  %v671_v6 = vor.u32 %v670_v51, %v666_v52  ;;  %v5623_v63 = vrot.slane %v5607_v43, 9  ;;  %v3021_v1 = vrot.slane %v5536_v39, 5  ;;  %v5609_v30 = vld [vmem:[%s7139_s16 + $0x84] sm:$0xe] }
  0x88   : > { %v3015_v7 = vsel %vm7417_vm5, %v5622_v57, %v3014_v58  ;;  %v3016_v10 = vrot.slane %v3014_v58, 4  ;;  %v3024_v60 = vrot.slane %v5537_v55, 5  ;;  %6458 = vmatprep.subr.bf16.mxu0 %v7603_v44  ;;  %v5359_v18 = vcombine.low %v6971_v36, %v7631_v62  ;;  %v5545_v39 = vld [vmem:[%s7139_s16 + $0x94] sm:$0xf]  ;;  %v5610_v42 = vld [vmem:[%s7139_s16 + $0x90] sm:$0xe] }
  0x89   : > { %v667_v19 = vsel %vm7171_vm2, %v662_v61, %v666_v52  ;;  %v672_v13 = vrot.slane %v671_v6, 4  ;;  %v3022_v28 = vsel %vm7417_vm5, %v5623_v63, %v3021_v1  ;;  %v3023_v8 = vrot.slane %v3021_v1, 4  ;;  %v5611_v50 = vld [vmem:[%s7139_s16 + $0x9c] sm:$0xe]  ;;  %v5548_v14 = vld [vmem:[%s7139_s16 + $0xa0] sm:$0xf] }
  0x8a   : > { %v3018_v32 = vsel %vm7417_vm5, %v3016_v10, %v3017_v59  ;;  %v5624_v38 = vrot.slane %v5608_v24, 9  ;;  %v3028_v43 = vrot.slane %v7616_v11, 5  ;;  %v3031_v49 = vrot.slane %v7619_v17, 5  ;;  %v5549_v22 = vld [vmem:[%s7139_s16 + $0xa4] sm:$0x1] }
  0x8b   : > { %v677_v34 = vsel %vm7171_vm2, %v672_v13, %v676_v56  ;;  %v5654_v33 = vcombine.low %v3015_v7, %v3018_v32  ;;  %v3025_v46 = vsel %vm7417_vm5, %v3023_v8, %v3024_v60  ;;  %v5625_v52 = vrot.slane %v5609_v30, 9  ;;  %v5551_v59 = vld [vmem:[%s7139_s16 + $0xac] sm:$0xf]  ;;  %v7655_v61 = vld [vmem:[%s7139_s16 + $0x10] sm:$0xf] }
  0x8c   : > { %v5350_v0 = vcombine.low %v667_v19, %v677_v34  ;;  %v5655_v20 = vcombine.low %v3022_v28, %v3025_v46  ;;  %v3035_v53 = vrot.slane %v5542_v15, 5  ;;  %v3038_v45 = vrot.slane %v5543_v26, 5  ;;  %v6973_v24 = vld [vmem:[%s7139_s16 + $0xc] sm:$0xf]  ;;  %v6975_v8 = vld [vmem:[%s7139_s16 + $0x18] sm:$0xf] }
  0x8d   : > { %6391 = vmatmul.mubr.bf16.gmra.mrb[12].mxu0 %v5654_v33  ;;  %v3029_v51 = vsel %vm7417_vm5, %v5624_v38, %v3028_v43  ;;  %v3030_v55 = vrot.slane %v3028_v43, 4  ;;  %v3042_v58 = vrot.slane %v5545_v39, 5  ;;  %v5360_v6 = vcombine.low %v6973_v24, %v7655_v61  ;;  %v6893_v19 = vld [vmem:[%s8934_s1 + $0x88] sm:$0xff]   ;;  %v7667_v15 = vld [vmem:[%s7139_s16 + $0x1c] sm:$0xf] }
  0x8e   : > { %6167 = vmatmul.mubr.bf16.gmra.mrb[28].mxu1 %v5350_v0  ;;  %6394 = vmatprep.mubr.bf16.mxu0 %v5655_v20  ;;  %v3036_v56 = vsel %vm7417_vm5, %v5625_v52, %v3035_v53  ;;  %v3037_v57 = vrot.slane %v3035_v53, 4  ;;  %v5626_v1 = vrot.slane %v5610_v42, 9  ;;  %v3045_v7 = vrot.slane %v5546_v23, 5  ;;  %v5552_v30 = vld [vmem:[%s7139_s16 + $0xb0] sm:$0x1] }
  0x8f   : > { %6186 = vmatprep.mubr.bf16.mxu1 %v5359_v18  ;;  %v3032_v63 = vsel %vm7417_vm5, %v3030_v55, %v3031_v49  ;;  %v3044_v13 = vrot.slane %v3042_v58, 4  ;;  %v5627_v28 = vrot.slane %v5611_v50, 9  ;;  %v5361_v32 = vcombine.low %v6975_v8, %v7667_v15  ;;  %v5612_v34 = vld [vmem:[%s7139_s16 + $0xa8] sm:$0xe]  ;;  %v5554_v33 = vld [vmem:[%s7139_s16 + $0xb8] sm:$0xf] }
  0x90   : > { %v5656_v10 = vcombine.low %v3029_v51, %v3032_v63  ;;  %v3039_v60 = vsel %vm7417_vm5, %v3037_v57, %v3038_v45  ;;  %v3049_v18 = vrot.slane %v5548_v14, 5  ;;  %v3052_v26 = vrot.slane %v5549_v22, 5  ;;  %v5555_v20 = vld [vmem:[%s7139_s16 + $0xbc] sm:$0x1]  ;;  %v5613_v23 = vld [vmem:[%s7139_s16 + $0xb4] sm:$0xe] }
  0x91   : > { %v5657_v36 = vcombine.low %v3036_v56, %v3039_v60  ;;  %v3056_v38 = vrot.slane %v5551_v59, 5  ;;  %v3043_v39 = vsel %vm7417_vm5, %v5626_v1, %v3042_v58  ;;  %v3046_v0 = vsel %vm7417_vm5, %v3044_v13, %v3045_v7  ;;  %v6897_v50 = vld [vmem:[%s8934_s1 + $0x90] sm:$0xff]   ;;  %v5557_v53 = vld [vmem:[%s7139_s16 + $0xc4] sm:$0xf]  ;;  %v7690_v51 = vld [vmem:[%s7139_s16 + $0x28] sm:$0xf] }
  0x92   : > { %v3051_v46 = vrot.slane %v3049_v18, 4  ;;  %v3050_v42 = vsel %vm7417_vm5, %v5627_v28, %v3049_v18  ;;  %v3063_v49 = vrot.slane %v5554_v33, 5  ;;  %v5628_v52 = vrot.slane %v5612_v34, 9  ;;  %v6977_v22 = vld [vmem:[%s7139_s16 + $0x24] sm:$0xf]  ;;  %v6901_v1 = vld [vmem:[%s8934_s1 + $0x98] sm:$0xff]  }
  0x93   : > { %v5658_v45 = vcombine.low %v3043_v39, %v3046_v0  ;;  %v3058_v14 = vrot.slane %v3056_v38, 4  ;;  %v5362_v55 = vcombine.low %v6977_v22, %v7690_v51  ;;  %v6979_v57 = vld [vmem:[%s7139_s16 + $0x30] sm:$0xf]  ;;  %v7695_v58 = vld [vmem:[%s7139_s16 + $0x34] sm:$0xf]  ;;  %v5629_v24 = vrot.slane %v5613_v23, 9 }
  0x94   : > { %v3053_v43 = vsel %vm7417_vm5, %v3051_v46, %v3052_v26  ;;  %v5363_v59 = vcombine.low %v6979_v57, %v7695_v58  ;;  %v3066_v63 = vrot.slane %v5555_v20, 5  ;;  %v5614_v7 = vld [vmem:[%s7139_s16 + $0xc0] sm:$0xe]  ;;  %v3057_v60 = vsel %vm7417_vm5, %v5628_v52, %v3056_v38  ;;  %v5558_v8 = vld [vmem:[%s7139_s16 + $0xc8] sm:$0x1]  ;;  %v6904_v22 = vld [vmem:[%s7139_s16 + $0x18] sm:$0xff]  }
  0x95   : > { %6395 = vmatmul.mubr.bf16.gmra.mrb[16].mxu0 %v5656_v10  ;;  %v5659_v56 = vcombine.low %v3050_v42, %v3053_v43  ;;  %v3070_v10 = vrot.slane %v5557_v53, 5  ;;  %v3064_v13 = vsel %vm7417_vm5, %v5629_v24, %v3063_v49  ;;  %v5630_v18 = vrot.slane %v5614_v7, 9  ;;  %v6981_v26 = vld [vmem:[%s7139_s16 + $0x3c] sm:$0xf]  ;;  %v6983_v39 = vld [vmem:[%s7139_s16 + $0x48] sm:$0xf] }
  0x96   : > { %6187 = vmatmul.mubr.bf16.vlgmr.msra.gmra.mrb[0].mxu1 %v5360_v6  ;;  %6398 = vmatprep.mubr.bf16.mxu0 %v5657_v36  ;;  %v3065_v6 = vrot.slane %v3063_v49, 4  ;;  %v3073_v38 = vrot.slane %v5558_v8, 5  ;;  %v7721_v0 = vld [vmem:[%s7139_s16 + $0x4c] sm:$0xf]  ;;  %v6918_v49 = vld [vmem:[%s8934_s1 + $0xb0] sm:$0xff]   ;;  %v2423_v52 = vshrl.u32 %v7616_v11, 16 }
  0x97   : > { %6219 = vmatpush3.bf16.msra.mxu1 %v7341_v4  ;;  %6190 = vmatprep.mubr.bf16.mxu1 %v5361_v32  ;;  %v3059_v4 = vrot.slane %v5552_v30, 5  ;;  %v6906_v32 = vld [vmem:[%s8934_s1 + $0xa0] sm:$0xff]   ;;  %v3072_v46 = vrot.slane %v3070_v10, 4  ;;  %v5365_v20 = vcombine.low %v6983_v39, %v7721_v0  ;;  %v6912_v23 = vld [vmem:[%s8934_s1 + $0xa8] sm:$0xff]   ;;  %v3071_v42 = vsel %vm7417_vm5, %v5630_v18, %v3070_v10  ;;  %v6910_v18 = vld [vmem:[%s7139_s16 + $0x30] sm:$0xff]  }
  0x98   : > { %6220 = vmatprep.subr.bf16.mxu1 %v6893_v19  ;;  %v3067_v28 = vsel %vm7417_vm5, %v3065_v6, %v3066_v63  ;;  %v7716_v30 = vld [vmem:[%s7139_s16 + $0x40] sm:$0xf]  ;;  %v7749_v57 = vrot.slane %v2423_v52, 4  ;;  %v6907_v6 = vld [vmem:[%s7139_s16 + $0x24] sm:$0xff]   ;;  %v1333_v7 = vrot.slane %v7655_v61, 5  ;;  %v2429_v8 = vshll.u32 %v7619_v17, 16 }
  0x99   : > { %v5364_v34 = vcombine.low %v6981_v26, %v7716_v30  ;;  %v5661_v33 = vcombine.low %v3064_v13, %v3067_v28  ;;  %v3074_v43 = vsel %vm7417_vm5, %v3072_v46, %v3073_v38  ;;  %v1273_v63 = vld [vmem:[%s7139_s16] sm:$0xe]  ;;  %v1274_v10 = vld [vmem:[%s7139_s16 + $0xc] sm:$0xe]  ;;  %v1340_v13 = vrot.slane %v7667_v15, 5 }
  0x9a   : > { %v5662_v53 = vcombine.low %v3071_v42, %v3074_v43  ;;  %v1276_v61 = vld [vmem:[%s7139_s16 + $0x24] sm:$0xe]  ;;  %v5370_v15 = vcombine.low %v7469_v16, %v7477_v40  ;;  %v5371_v26 = vcombine.low %v7498_v2, %v7501_v3  ;;  %v5383_v17 = vrot.slane %v1273_v63, 9  ;;  %v6989_v38 = vld [vmem:[%s7139_s16 + $0x20] sm:$0x1]  ;;  %v6919_v2 = vld [vmem:[%s7139_s16 + $0x54] sm:$0xff]  }
  0x9b   : > { %6221 = vmatpush3.bf16.msra.mxu1 %v6893_v19  ;;  %v3060_v19 = vsel %vm7417_vm5, %v3058_v14, %v3059_v4  ;;  %v7738_v14 = vld [vmem:[%s7139_s16 + $0x58] sm:$0xf]  ;;  %v1342_v46 = vrot.slane %v1340_v13, 4  ;;  %v1343_v39 = vrot.slane %v6989_v38, 5  ;;  %v6990_v43 = vld [vmem:[%s7139_s16 + $0x2c] sm:$0x1] }
  0x9c   : > { %6222 = vmatprep.subr.bf16.mxu1 %v6897_v50  ;;  %v5660_v36 = vcombine.low %v3057_v60, %v3060_v19  ;;  %v7764_v60 = vld [vmem:[%s8934_s1 + $0xc0] sm:$0xff]   ;;  %v1275_v19 = vld [vmem:[%s7139_s16 + $0x18] sm:$0xe]  ;;  %v6993_v38 = vld [vmem:[%s7139_s16 + $0x50] sm:$0x1]  ;;  %v1375_v16 = vrot.slane %v7738_v14, 5 }
  0x9d   : > { %6399 = vmatmul.mubr.bf16.gmra.mrb[20].mxu0 %v5658_v45  ;;  %v6985_v45 = vld [vmem:[%s7139_s16 + $0x54] sm:$0xf]  ;;  %v7887_v40 = vld [vmem:[%s7139_s16 + $0x64] sm:$0xf] }
  0x9e   : > { %6191 = vmatmul.mubr.bf16.gmra.mrb[4].mxu1 %v5362_v55  ;;  %6402 = vmatprep.mubr.bf16.mxu0 %v5659_v56  ;;  %v5366_v4 = vcombine.low %v6985_v45, %v7738_v14  ;;  %v5367_v55 = vcombine.low %v7395_v25, %v7398_v35  ;;  %v6924_v56 = vld [vmem:[%s8934_s1 + $0xb8] sm:$0xff]   ;;  %v6988_v25 = vld [vmem:[%s7139_s16 + $0x14] sm:$0x1]  ;;  %v6922_v3 = vld [vmem:[%s7139_s16 + $0x60] sm:$0xff]  }
  0x9f   : > { %6194 = vmatprep.mubr.bf16.mxu1 %v5363_v59  ;;  %6223 = vmatpush3.bf16.msra.mxu1 %v6897_v50  ;;  %v2419_v50 = vshll.u32 %v7616_v11, 16  ;;  %v7752_v59 = vld [vmem:[%s7139_s16 + $0x8] sm:$0x1]  ;;  %v1336_v35 = vrot.slane %v6988_v25, 5 }
  0xa0   : > { %6224 = vmatprep.subr.bf16.mxu1 %v6901_v1  ;;  %v1329_v24 = vrot.slane %v7752_v59, 5 }
  0xa1   : > { %v7747_v11 = vrot.slane %v2419_v50, 5 }
  0xa3   : > { %6225 = vmatpush3.bf16.msra.mxu1 %v6901_v1  ;;  %v1326_v1 = vrot.slane %v7631_v62, 5  ;;  %v5368_v62 = vcombine.low %v7413_v5, %v7425_v21  ;;  %v5384_v21 = vrot.slane %v1274_v10, 9  ;;  %v5743_v10 = vld [vmem:[%s7139_s16 + $0x18] sm:$0xf] }
  0xa4   : > { %6226 = vmatprep.subr.bf16.mxu1 %v6906_v32 }
  0xa5   : > { %6403 = vmatmul.mubr.bf16.gmra.mrb[24].mxu0 %v5660_v36  ;;  %v5369_v36 = vcombine.low %v7436_v47, %v7447_v54  ;;  %v1328_v5 = vrot.slane %v1326_v1, 4  ;;  %v6914_v47 = vld [vmem:[%s8934_s1 + $0x1c8] sm:$0xff]   ;;  %v5385_v54 = vrot.slane %v1275_v19, 9  ;;  %v7807_v59 = vsel %vm7417_vm5, %v5383_v17, %v1326_v1  ;;  %v5744_v19 = vld [vmem:[%s7139_s16 + $0x1c] sm:$0xf] }
  0xa6   : > { %6195 = vmatmul.mubr.bf16.gmra.mrb[8].mxu1 %v5364_v34  ;;  %6406 = vmatprep.mubr.bf16.mxu0 %v5661_v33  ;;  %v1354_v34 = vrot.slane %v7695_v58, 5  ;;  %v1335_v33 = vrot.slane %v1333_v7, 4  ;;  %v5386_v58 = vrot.slane %v1276_v61, 9  ;;  %v1368_v1 = vrot.slane %v7721_v0, 5  ;;  %v6916_v0 = vld [vmem:[%s7139_s16 + $0x48] sm:$0xff]  }
  0xa7   : > { %6198 = vmatprep.mubr.bf16.mxu1 %v5365_v20  ;;  %6227 = vmatpush3.bf16.msra.mxu1 %v6906_v32  ;;  %v1347_v32 = vrot.slane %v7690_v51, 5  ;;  %v1277_v51 = vld [vmem:[%s7139_s16 + $0x30] sm:$0xe]  ;;  %v5372_v20 = vcombine.low %v7519_v31, %v7528_v48  ;;  %v7815_v25 = vsel %vm7417_vm5, %v1328_v5, %v1329_v24  ;;  %v7823_v63 = vsel %vm7417_vm5, %v5385_v54, %v1340_v13  ;;  %v1279_v13 = vld [vmem:[%s7139_s16 + $0x48] sm:$0xe] }
  0xa8   : > { %6228 = vmatprep.subr.bf16.mxu1 %v6912_v23  ;;  %v5387_v50 = vrot.slane %v1277_v51, 9  ;;  %v1356_v52 = vrot.slane %v1354_v34, 4  ;;  %v3833_v5 = vshrl.u32 %v5743_v10, 16  ;;  %v3846_v51 = vshrl.u32 %v5744_v19, 16  ;;  %v6925_v48 = vld [vmem:[%s7139_s16 + $0x6c] sm:$0xff]  }
  0xa9   : > { %v1349_v42 = vrot.slane %v1347_v32, 4  ;;  %v7835_v24 = vsel %vm7417_vm5, %v5386_v58, %v1347_v32  ;;  %v6992_v32 = vld [vmem:[%s7139_s16 + $0x44] sm:$0x1]  ;;  %v5389_v54 = vrot.slane %v1279_v13, 9  ;;  %v5747_v13 = vld [vmem:[%s7139_s16 + $0x28] sm:$0xf] }
  0xaa   : > { %v7845_v61 = vsel %vm7417_vm5, %v5387_v50, %v1354_v34  ;;  %v1364_v17 = vrot.slane %v6992_v32, 5  ;;  %v5745_v50 = vld [vmem:[%s7139_s16 + $0x20] sm:$0x1]  ;;  %v1281_v32 = vld [vmem:[%s7139_s16 + $0x60] sm:$0xe] }
  0xab   : > { %6229 = vmatpush3.bf16.msra.mxu1 %v6912_v23  ;;  %v5373_v23 = vcombine.low %v7553_v27, %v7556_v29 }
  0xac   : > { %6230 = vmatprep.subr.bf16.mxu1 %v6918_v49 }
  0xad   : > { %6407 = vmatmul.mubr.bf16.gmra.mrb[28].mxu0 %v5662_v53  ;;  %v6991_v53 = vld [vmem:[%s7139_s16 + $0x38] sm:$0x1] }
  0xae   : > { %6199 = vmatmul.mubr.bf16.gmra.mrb[12].mxu1 %v5366_v4  ;;  %6426 = vmatprep.mubr.bf16.mxu0 %v6904_v22  ;;  %v1357_v45 = vrot.slane %v6991_v53, 5  ;;  %v1278_v4 = vld [vmem:[%s7139_s16 + $0x3c] sm:$0xe]  ;;  %v1361_v22 = vrot.slane %v7716_v30, 5  ;;  %v7811_v30 = vsel %vm7417_vm5, %v5384_v21, %v1333_v7  ;;  %v3836_v21 = vshll.u32 %v5743_v10, 16  ;;  %v6930_v53 = vld [vmem:[%s8934_s1 + $0x1e0] sm:$0xff]  }
  0xaf   : > { %6202 = vmatprep.mubr.bf16.mxu1 %v5367_v55  ;;  %6231 = vmatpush3.bf16.msra.mxu1 %v6918_v49  ;;  %v1350_v49 = vrot.slane %v6990_v43, 5  ;;  %v7798_v55 = vrot.slane %v2429_v8, 5  ;;  %v6913_v7 = vld [vmem:[%s7139_s16 + $0x3c] sm:$0xff]   ;;  %v7831_v8 = vsel %vm7417_vm5, %v1342_v46, %v1343_v39  ;;  %v1370_v46 = vrot.slane %v1368_v1, 4  ;;  %v5749_v43 = vld [vmem:[%s7139_s16 + $0x30] sm:$0xf] }
  0xb0   : > { %6232 = vmatprep.subr.bf16.mxu1 %v6924_v56  ;;  %v1371_v39 = vrot.slane %v6993_v38, 5  ;;  %v3835_v10 = vrot.slane %v3833_v5, 4 }
  0xb1   : > { %8955 = vst [vmem:[#allocation2_spill] sm:$0xff] %v7798_v55 }
  0xb3   : > { %6233 = vmatpush3.bf16.msra.mxu1 %v6924_v56  ;;  %v6920_v56 = vld [vmem:[%s8934_s1 + $0x1d0] sm:$0xff]  }
  0xb4   : > { %6266 = vmatprep.subr.bf16.mxu1 %v7764_v60 }
  0xb5   : > { %6427 = vmatmul.mubr.bf16.vlgmr.msra.gmra.mrb[0].mxu0 %v6907_v6  ;;  %v7819_v6 = vsel %vm7417_vm5, %v1335_v33, %v1336_v35  ;;  %v7839_v35 = vsel %vm7417_vm5, %v1349_v42, %v1350_v49  ;;  %v3842_v33 = vshll.u32 %v5744_v19, 16  ;;  %v3838_v19 = vrot.slane %v3836_v21, 5  ;;  %v1282_v21 = vld [vmem:[%s7139_s16 + $0x6c] sm:$0xe] }
  0xb6   : > { %6203 = vmatmul.mubr.bf16.gmra.mrb[16].mxu1 %v5368_v62  ;;  %6459 = vmatpush3.bf16.msra.mxu0 %v7603_v44  ;;  %v5388_v62 = vrot.slane %v1278_v4, 9  ;;  %v5392_v58 = vrot.slane %v1282_v21, 9 }
  0xb7   : > { %6206 = vmatprep.mubr.bf16.mxu1 %v5369_v36  ;;  %6430 = vmatprep.mubr.bf16.mxu0 %v6910_v18  ;;  %v7849_v36 = vsel %vm7417_vm5, %v1356_v52, %v1357_v45  ;;  %v1363_v18 = vrot.slane %v1361_v22, 4  ;;  %v5746_v52 = vld [vmem:[%s7139_s16 + $0x24] sm:$0xf]  ;;  %v3870_v45 = vshrl.u32 %v5747_v13, 16 }
  0xb8   : > { %6460 = vmatprep.subr.bf16.mxu0 %v6914_v47  ;;  %v7866_v49 = vsel %vm7417_vm5, %v5388_v62, %v1361_v22  ;;  %v7883_v22 = vld [vmem:[%s7139_s16 + $0x54] sm:$0xe]  ;;  %v3848_v62 = vrot.slane %v3846_v51, 4  ;;  %v3857_v38 = vshrl.u32 %v5746_v52, 16  ;;  %v3860_v28 = vshll.u32 %v5746_v52, 16 }
  0xb9   : > { %v7880_v4 = vsel %vm7417_vm5, %v1363_v18, %v1364_v17  ;;  %v3852_v17 = vshll.u32 %v5745_v50, 16  ;;  %v5390_v5 = vrot.slane %v7883_v22, 9  ;;  %v6934_v50 = vld [vmem:[%s8934_s1 + $0x1e8] sm:$0xff]   ;;  %v1377_v52 = vrot.slane %v1375_v16, 4 }
  0xba   : > { %6461 = vmatpush3.bf16.msra.mxu0 %v6914_v47  ;;  %v6926_v47 = vld [vmem:[%s8934_s1 + $0x1d8] sm:$0xff]   ;;  %v3839_v22 = vor.u32 %v3838_v19, %v3835_v10  ;;  %v3859_v34 = vrot.slane %v3857_v38, 4  ;;  %v3862_v44 = vrot.slane %v3860_v28, 5  ;;  %v6998_v10 = vld [vmem:[%s7139_s16 + $0x74] sm:$0x1]  ;;  %v3872_v28 = vrot.slane %v3870_v45, 4 }
  0xbb   : > { %6462 = vmatprep.subr.bf16.mxu0 %v6920_v56  ;;  %v7921_v42 = vrot.slane %v3852_v17, 5  ;;  %v1392_v19 = vrot.slane %v6998_v10, 5  ;;  %v3881_v38 = vshrl.u32 %v5749_v43, 16  ;;  %v7946_v27 = vsel %vm7417_vm5, %v5390_v5, %v1375_v16 }
  0xbc   : > { %v3840_v21 = vrot.slane %v3839_v22, 4 }
  0xbd   : > { %6431 = vmatmul.mubr.bf16.gmra.mrb[4].mxu0 %v6913_v7  ;;  %v7893_v7 = vrot.slane %v3842_v33, 5  ;;  %v6996_v33 = vld [vmem:[%s7139_s16 + $0x70] sm:$0xf] }
  0xbe   : > { %6207 = vmatmul.mubr.bf16.gmra.mrb[20].mxu1 %v5370_v15  ;;  %6434 = vmatprep.mubr.bf16.mxu0 %v6916_v0  ;;  %v1382_v15 = vrot.slane %v7887_v40, 5  ;;  %v6995_v0 = vld [vmem:[%s7139_s16 + $0x5c] sm:$0x1]  ;;  %v1389_v51 = vrot.slane %v6996_v33, 5 }
  0xbf   : > { %6210 = vmatprep.mubr.bf16.mxu1 %v5371_v26  ;;  %6463 = vmatpush3.bf16.msra.mxu0 %v6920_v56  ;;  %v1378_v18 = vrot.slane %v6995_v0, 5  ;;  %v7902_v26 = vsel %vm7417_vm5, %v5389_v54, %v1368_v1  ;;  %v7906_v56 = vsel %vm7417_vm5, %v1370_v46, %v1371_v39  ;;  %v6997_v1 = vld [vmem:[%s7139_s16 + $0x68] sm:$0x1]  ;;  %v3866_v0 = vshll.u32 %v5747_v13, 16  ;;  %v6942_v40 = vld [vmem:[%s8934_s1 + $0x1f8] sm:$0xff]  }
  0xc0   : > { %6464 = vmatprep.subr.bf16.mxu0 %v6926_v47  ;;  %v1385_v54 = vrot.slane %v6997_v1, 5  ;;  %v5391_v46 = vrot.slane %v1281_v32, 9  ;;  %v1384_v39 = vrot.slane %v1382_v15, 4  ;;  %v3849_v33 = vor.u32 %v3848_v62, %v7893_v7  ;;  %v5750_v1 = vld [vmem:[%s7139_s16 + $0x34] sm:$0xf] }
  0xc1   : > { %v1391_v32 = vrot.slane %v1389_v51, 4  ;;  %v5748_v62 = vld [vmem:[%s7139_s16 + $0x2c] sm:$0x1]  ;;  %v7933_v17 = vrot.slane %v3866_v0, 5  ;;  %v3890_v13 = vshll.u32 %v5750_v1, 16  ;;  %v3894_v31 = vshrl.u32 %v5750_v1, 16 }
  0xc2   : > { %v3850_v10 = vrot.slane %v3849_v33, 4  ;;  %v7950_v29 = vsel %vm7417_vm5, %v1377_v52, %v1378_v18  ;;  %v7957_v45 = vsel %vm7417_vm5, %v5391_v46, %v1382_v15  ;;  %v7961_v14 = vsel %vm7417_vm5, %v1384_v39, %v1385_v54  ;;  %v1283_v18 = vld [vmem:[%s7139_s16 + $0x78] sm:$0xe] }
  0xc3   : > { %6465 = vmatpush3.bf16.msra.mxu0 %v6926_v47  ;;  %v7965_v16 = vsel %vm7417_vm5, %v5392_v58, %v1389_v51  ;;  %v7975_v15 = vsel %vm7417_vm5, %v1391_v32, %v1392_v19  ;;  %v3873_v5 = vor.u32 %v3872_v28, %v7933_v17  ;;  %v3883_v52 = vrot.slane %v3881_v38, 4  ;;  %v5752_v58 = vld [vmem:[%s7139_s16 + $0x3c] sm:$0xf]  ;;  %v5753_v51 = vld [vmem:[%s7139_s16 + $0x40] sm:$0xf] }
  0xc4   : > { %6466 = vmatprep.subr.bf16.mxu0 %v6930_v53  ;;  %v3845_v0 = vsel %vm7171_vm2, %v3840_v21, %v7893_v7  ;;  %v3855_v46 = vsel %vm7171_vm2, %v3850_v10, %v7921_v42  ;;  %v7986_v39 = vrot.slane %v3890_v13, 5  ;;  %v3896_v22 = vrot.slane %v3894_v31, 4  ;;  %v7000_v19 = vld [vmem:[%s7139_s16 + $0x80] sm:$0x1]  ;;  %v8145_v47 = vld [vmem:[%s7139_s16 + $0x68] sm:$0x1] }
  0xc5   : > { %6435 = vmatmul.mubr.bf16.gmra.mrb[8].mxu0 %v6919_v2  ;;  %v3884_v2 = vshll.u32 %v5749_v43, 16  ;;  %v3876_v43 = vshll.u32 %v5748_v62, 16  ;;  %v5393_v32 = vrot.slane %v1283_v18, 9  ;;  %v1284_v62 = vld [vmem:[%s7139_s16 + $0x84] sm:$0xe]  ;;  %v3905_v28 = vshrl.u32 %v5752_v58, 16 }
  0xc6   : > { %6211 = vmatmul.mubr.bf16.gmra.mrb[24].mxu1 %v5372_v20  ;;  %6438 = vmatprep.mubr.bf16.mxu0 %v6922_v3  ;;  %v6938_v20 = vld [vmem:[%s8934_s1 + $0x1f0] sm:$0xff]   ;;  %v6999_v3 = vld [vmem:[%s7139_s16 + $0x7c] sm:$0xf]  ;;  %v3908_v7 = vshll.u32 %v5752_v58, 16  ;;  %v3914_v38 = vshll.u32 %v5753_v51, 16  ;;  %v8956_v42 = vcombine.low %v7576_v41, %v7581_v12  ;;  %v7997_v13 = vrot.slane %v3873_v5, 4 }
  0xc7   : > { %6214 = vmatprep.mubr.bf16.mxu1 %v5373_v23  ;;  %6467 = vmatpush3.bf16.msra.mxu0 %v6930_v53  ;;  %v3863_v23 = vor.u32 %v3862_v44, %v3859_v34  ;;  %v6927_v53 = vld [vmem:[%s7139_s16 + $0x78] sm:$0xff]   ;;  %v1396_v44 = vrot.slane %v6999_v3, 5  ;;  %v3886_v54 = vrot.slane %v3884_v2, 5  ;;  %v7990_v1 = vrot.slane %v3876_v43, 5  ;;  %v8002_v21 = vld [vmem:[%s8934_s1 + $0x200] sm:$0xff]   ;;  %8964 = vst [vmem:[#allocation5_spill] sm:$0xff] %v8145_v47 }
  0xc8   : > { %6468 = vmatprep.subr.bf16.mxu0 %v6934_v50  ;;  %v5751_v34 = vld [vmem:[%s7139_s16 + $0x38] sm:$0x1]  ;;  %v3918_v2 = vshrl.u32 %v5753_v51, 16  ;;  %v6929_v43 = vld [vmem:[%s7139_s16 + $0x84] sm:$0xff]   ;;  %v3897_v12 = vor.u32 %v3896_v22, %v7986_v39  ;;  %v3910_v58 = vrot.slane %v3908_v7, 5  ;;  %v8024_v51 = vrot.slane %v3914_v38, 5 }
  0xc9   : > { %v7988_v33 = vrot.slane %v3863_v23, 4  ;;  %v1398_v10 = vrot.slane %v1396_v44, 4  ;;  %v3887_v31 = vor.u32 %v3886_v54, %v3883_v52  ;;  %v8957_v23 = vcombine.low %v7807_v59, %v7815_v25  ;;  %v7001_v18 = vld [vmem:[%s7139_s16 + $0x88] sm:$0xf]  ;;  %v5754_v5 = vld [vmem:[%s7139_s16 + $0x44] sm:$0x1] }
  0xca   : > { %v1403_v3 = vrot.slane %v7001_v18, 5  ;;  %v8015_v59 = vcombine.low %v3845_v0, %v3855_v46  ;;  %v5755_v52 = vld [vmem:[%s7139_s16 + $0x48] sm:$0xf]  ;;  %v3907_v54 = vrot.slane %v3905_v28, 4  ;;  %v3920_v22 = vrot.slane %v3918_v2, 4 }
  0xcb   : > { %6469 = vmatpush3.bf16.msra.mxu0 %v6934_v50  ;;  %v1399_v50 = vrot.slane %v7000_v19, 5  ;;  %v6931_v19 = vld [vmem:[%s7139_s16 + $0x90] sm:$0xff]   ;;  %v3869_v0 = vsel %vm7171_vm2, %v7988_v33, %v7933_v17  ;;  %v3888_v46 = vrot.slane %v3887_v31, 4  ;;  %v3879_v28 = vsel %vm7171_vm2, %v7997_v13, %v7990_v1  ;;  %v8046_v33 = vld [vmem:[%s7139_s16 + $0x58] sm:$0xf]  ;;  %v6932_v31 = vld [vmem:[%s8934_s1 + $0xc8] sm:$0xff]  }
  0xcc   : > { %6470 = vmatprep.subr.bf16.mxu0 %v6938_v20  ;;  %v3898_v38 = vrot.slane %v3897_v12, 4  ;;  %v1405_v2 = vrot.slane %v1403_v3, 4  ;;  %v5758_v17 = vld [vmem:[%s7139_s16 + $0x54] sm:$0xf]  ;;  %v3924_v1 = vshll.u32 %v5754_v5, 16  ;;  %v3929_v13 = vshrl.u32 %v5755_v52, 16 }
  0xcd   : > { %6439 = vmatmul.mubr.bf16.gmra.mrb[12].mxu0 %v6925_v48  ;;  %v3900_v48 = vshll.u32 %v5751_v34, 16  ;;  %v8042_v7 = vsel %vm7417_vm5, %v1398_v10, %v1399_v50  ;;  %v3932_v50 = vshll.u32 %v5755_v52, 16  ;;  %v3911_v10 = vor.u32 %v3910_v58, %v3907_v54  ;;  %v6933_v54 = vld [vmem:[%s7139_s16 + $0x9c] sm:$0xff]   ;;  %v7007_v41 = vld [vmem:[%s7139_s16 + $0xac] sm:$0xf] }
  0xce   : > { %6215 = vmatmul.mubr.bf16.gmra.mrb[28].mxu1 %v8956_v42  ;;  %6442 = vmatprep.mubr.bf16.mxu0 %v6927_v53  ;;  %v5394_v53 = vrot.slane %v1284_v62, 9  ;;  %v7002_v42 = vld [vmem:[%s7139_s16 + $0x8c] sm:$0x1]  ;;  %v3962_v5 = vshll.u32 %v8046_v33, 16  ;;  %v8959_v52 = vcombine.low %v7823_v63, %v7831_v8  ;;  %v8082_v63 = vld [vmem:[%s7139_s16 + $0x50] sm:$0x1] }
  0xcf   : > { %6234 = vmatprep.mubr.bf16.mxu1 %v8957_v23  ;;  %6471 = vmatpush3.bf16.msra.mxu0 %v6938_v20  ;;  %v8021_v20 = vsel %vm7417_vm5, %v5393_v32, %v1396_v44  ;;  %v3902_v62 = vrot.slane %v3900_v48, 5  ;;  %v1406_v23 = vrot.slane %v7002_v42, 5  ;;  %v1285_v44 = vld [vmem:[%s7139_s16 + $0x90] sm:$0xe]  ;;  %v8034_v32 = vld [vmem:[%s7139_s16 + $0x4c] sm:$0xf]  ;;  %v3921_v48 = vor.u32 %v3920_v22, %v8024_v51 }
  0xd0   : > { %6472 = vmatprep.subr.bf16.mxu0 %v6942_v40  ;;  %v3938_v12 = vshll.u32 %v8034_v32, 16  ;;  %v3942_v18 = vshrl.u32 %v8034_v32, 16  ;;  %v8958_v42 = vcombine.low %v7811_v30, %v7819_v6  ;;  %v6936_v30 = vld [vmem:[%s8934_s1 + $0xd0] sm:$0xff]   ;;  %v3893_v6 = vsel %vm7171_vm2, %v3888_v46, %v7986_v39  ;;  %v6935_v8 = vld [vmem:[%s7139_s16 + $0xa8] sm:$0xff]   ;;  %v8089_v39 = vld [vmem:[%s7139_s16 + $0x5c] sm:$0x1] }
  0xd1   : > { %v3903_v58 = vsel %vm7171_vm2, %v3898_v38, %v3902_v62  ;;  %v5395_v22 = vrot.slane %v1285_v44, 9  ;;  %v3934_v25 = vrot.slane %v3932_v50, 5  ;;  %8960 = vst [vmem:[#allocation3_spill] sm:$0xff] %v8089_v39  ;;  %v3912_v46 = vrot.slane %v3911_v10, 4 }
  0xd2   : > { %v3922_v62 = vrot.slane %v3921_v48, 4  ;;  %v8091_v38 = vrot.slane %v3938_v12, 5  ;;  %v8093_v34 = vrot.slane %v3962_v5, 5  ;;  %v8098_v50 = vcombine.low %v3869_v0, %v3879_v28  ;;  %v5761_v28 = vld [vmem:[%s7139_s16 + $0x60] sm:$0xf] }
  0xd3   : > { %6473 = vmatpush3.bf16.msra.mxu0 %v6942_v40  ;;  %v8054_v40 = vsel %vm7417_vm5, %v5394_v53, %v1403_v3  ;;  %v3953_v53 = vshrl.u32 %v5758_v17, 16  ;;  %v3956_v3 = vshll.u32 %v5758_v17, 16  ;;  %v7003_v17 = vld [vmem:[%s7139_s16 + $0x94] sm:$0xf]  ;;  %v8102_v48 = vcombine.low %v3893_v6, %v3903_v58 }
  0xd4   : > { %6506 = vmatprep.subr.bf16.mxu0 %v8002_v21  ;;  %v3948_v0 = vshll.u32 %v8082_v63, 16  ;;  %v3917_v6 = vsel %vm7171_vm2, %v3912_v46, %v8024_v51  ;;  %v8963_v46 = vcombine.low %v7845_v61, %v7849_v36 }
  0xd5   : > { %6443 = vmatmul.mubr.bf16.gmra.mrb[16].mxu0 %v6929_v43  ;;  %v3966_v43 = vshrl.u32 %v8046_v33, 16  ;;  %v3955_v44 = vrot.slane %v3953_v53, 4  ;;  %v7004_v53 = vld [vmem:[%s7139_s16 + $0x98] sm:$0x1] }
  0xd6   : > { %6235 = vmatmul.mubr.bf16.vlgmr.msra.gmra.mrb[0].mxu1 %v8958_v42  ;;  %6446 = vmatprep.mubr.bf16.mxu0 %v6931_v19  ;;  %v8085_v19 = vrot.slane %v3924_v1, 5  ;;  %v1410_v42 = vrot.slane %v7003_v17, 5  ;;  %v7005_v17 = vld [vmem:[%s7139_s16 + $0xa0] sm:$0xf]  ;;  %v3950_v36 = vrot.slane %v3948_v0, 5 }
  0xd7   : > { %6267 = vmatpush3.bf16.msra.mxu1 %v7764_v60  ;;  %6238 = vmatprep.mubr.bf16.mxu1 %v8959_v52  ;;  %v8079_v60 = vsel %vm7417_vm5, %v1405_v2, %v1406_v23  ;;  %v3931_v52 = vrot.slane %v3929_v13, 4  ;;  %v3944_v23 = vrot.slane %v3942_v18, 4  ;;  %v3958_v2 = vrot.slane %v3956_v3, 5  ;;  %v6940_v13 = vld [vmem:[%s8934_s1 + $0xd8] sm:$0xff]  }
  0xd8   : > { %6268 = vmatprep.subr.bf16.mxu1 %v6932_v31  ;;  %v3968_v1 = vrot.slane %v3966_v43, 4  ;;  %v1286_v18 = vld [vmem:[%s7139_s16 + $0x9c] sm:$0xe]  ;;  %v1413_v3 = vrot.slane %v7004_v53, 5  ;;  %v8115_v43 = vld [vmem:[%s7139_s16 + $0x64] sm:$0xf] }
  0xd9   : > { %v3935_v5 = vor.u32 %v3934_v25, %v3931_v52  ;;  %8961 = vst [vmem:[#allocation4_spill] sm:$0xff] %v8115_v43  ;;  %v3945_v58 = vor.u32 %v3944_v23, %v8091_v38  ;;  %v1417_v12 = vrot.slane %v7005_v17, 5  ;;  %v8962_v25 = vcombine.low %v7835_v24, %v7839_v35  ;;  %v6937_v23 = vld [vmem:[%s7139_s16 + $0xb4] sm:$0xff]   ;;  %v6943_v24 = vld [vmem:[%s8934_s1 + $0xe0] sm:$0xff]   ;;  %v5764_v17 = vld [vmem:[%s7139_s16 + $0x6c] sm:$0xf] }
  0xda   : > { %v1412_v52 = vrot.slane %v1410_v42, 4  ;;  %v3959_v53 = vor.u32 %v3958_v2, %v3955_v44  ;;  %v3969_v51 = vor.u32 %v3968_v1, %v8093_v34  ;;  %v3977_v35 = vshrl.u32 %v5761_v28, 16  ;;  %v7006_v2 = vld [vmem:[%s7139_s16 + $0xa4] sm:$0x1] }
  0xdb   : > { %6269 = vmatpush3.bf16.msra.mxu1 %v6932_v31  ;;  %v8109_v31 = vsel %vm7417_vm5, %v5395_v22, %v1410_v42  ;;  %v3972_v22 = vshll.u32 %v8089_v39, 16  ;;  %v3990_v42 = vshrl.u32 %v8115_v43, 16  ;;  %v3936_v61 = vrot.slane %v3935_v5, 4  ;;  %v8284_v39 = vld [vmem:[%s7139_s16 + $0x98] sm:$0x1] }
  0xdc   : > { %6270 = vmatprep.subr.bf16.mxu1 %v6936_v30  ;;  %v5396_v44 = vrot.slane %v1286_v18, 9  ;;  %v1420_v1 = vrot.slane %v7006_v2, 5  ;;  %v3960_v5 = vrot.slane %v3959_v53, 4  ;;  %v3970_v18 = vrot.slane %v3969_v51, 4  ;;  %8977 = vst [vmem:[#allocation14_spill] sm:$0xff] %v8284_v39 }
  0xdd   : > { %6447 = vmatmul.mubr.bf16.gmra.mrb[20].mxu0 %v6933_v54  ;;  %v3927_v54 = vsel %vm7171_vm2, %v3922_v62, %v8085_v19  ;;  %v3986_v19 = vshll.u32 %v8115_v43, 16  ;;  %v6939_v62 = vld [vmem:[%s7139_s16 + $0xc0] sm:$0xff]   ;;  %v3974_v10 = vrot.slane %v3972_v22, 5  ;;  %v8151_v43 = vsel %vm7417_vm5, %v1412_v52, %v1413_v3 }
  0xde   : > { %6239 = vmatmul.mubr.bf16.gmra.mrb[4].mxu1 %v8962_v25  ;;  %6450 = vmatprep.mubr.bf16.mxu0 %v6935_v8  ;;  %v3980_v8 = vshll.u32 %v5761_v28, 16  ;;  %v3946_v25 = vrot.slane %v3945_v58, 4  ;;  %v1424_v28 = vrot.slane %v7007_v41, 5  ;;  %v8147_v55 = vcombine.low %v3917_v6, %v3927_v54  ;;  %v6945_v41 = vld [vmem:[%s8934_s1 + $0xe8] sm:$0xff]  }
  0xdf   : > { %6242 = vmatprep.mubr.bf16.mxu1 %v8963_v46  ;;  %6271 = vmatpush3.bf16.msra.mxu1 %v6936_v30  ;;  %v1287_v30 = vld [vmem:[%s7139_s16 + $0xa8] sm:$0xe]  ;;  %v1419_v46 = vrot.slane %v1417_v12, 4  ;;  %v3979_v0 = vrot.slane %v3977_v35, 4  ;;  %v8153_v58 = vrot.slane %v3986_v19, 5  ;;  %v3992_v22 = vrot.slane %v3990_v42, 4 }
  0xe0   : > { %6272 = vmatprep.subr.bf16.mxu1 %v6940_v13  ;;  %v3982_v2 = vrot.slane %v3980_v8, 5  ;;  %v3941_v3 = vsel %vm7171_vm2, %v3936_v61, %v8091_v38  ;;  %v8163_v6 = vsel %vm7417_vm5, %v5396_v44, %v1417_v12  ;;  %v4001_v54 = vshrl.u32 %v5764_v17, 16  ;;  %v7008_v38 = vld [vmem:[%s7139_s16 + $0xb0] sm:$0x1]  ;;  %v1288_v19 = vld [vmem:[%s7139_s16 + $0xb4] sm:$0xe] }
  0xe1   : > { %v4004_v52 = vshll.u32 %v5764_v17, 16  ;;  %v3951_v53 = vsel %vm7171_vm2, %v3946_v25, %v3950_v36  ;;  %v8172_v51 = vsel %vm7417_vm5, %v1419_v46, %v1420_v1  ;;  %v5397_v35 = vrot.slane %v1287_v30, 9  ;;  %v8194_v30 = vld [vmem:[%s7139_s16 + $0x74] sm:$0x1]  ;;  %v7009_v25 = vld [vmem:[%s7139_s16 + $0xb8] sm:$0xf] }
  0xe2   : > { %v1427_v8 = vrot.slane %v7008_v38, 5  ;;  %v8966_v12 = vcombine.low %v7866_v49, %v7880_v4  ;;  %v3965_v42 = vsel %vm7171_vm2, %v3960_v5, %v8093_v34  ;;  %v3975_v61 = vsel %vm7171_vm2, %v3970_v18, %v3974_v10  ;;  %v6941_v4 = vld [vmem:[%s7139_s16 + $0xcc] sm:$0xff]   ;;  %8968 = vst [vmem:[#allocation7_spill] sm:$0xff] %v8194_v30  ;;  %v5770_v38 = vld [vmem:[%s7139_s16 + $0x84] sm:$0xf] }
  0xe3   : > { %6273 = vmatpush3.bf16.msra.mxu1 %v6940_v13  ;;  %v8166_v13 = vld [vmem:[%s7139_s16 + $0x70] sm:$0xf]  ;;  %v1426_v36 = vrot.slane %v1424_v28, 4  ;;  %v3996_v44 = vshll.u32 %v8145_v47, 16  ;;  %v8967_v49 = vcombine.low %v7902_v26, %v7906_v56  ;;  %v3993_v1 = vor.u32 %v3992_v22, %v8153_v58  ;;  %v8211_v22 = vld [vmem:[%s7139_s16 + $0x7c] sm:$0xf] }
  0xe4   : > { %6274 = vmatprep.subr.bf16.mxu1 %v6943_v24  ;;  %8965 = vst [vmem:[#allocation6_spill] sm:$0xff] %v8166_v13  ;;  %v4010_v34 = vshll.u32 %v8166_v13, 16  ;;  %v4014_v10 = vshrl.u32 %v8166_v13, 16  ;;  %v5398_v17 = vrot.slane %v1288_v19, 9  ;;  %v1431_v46 = vrot.slane %v7009_v25, 5  ;;  %8969 = vst [vmem:[#allocation8_spill] sm:$0xff] %v8211_v22 }
  0xe5   : > { %6451 = vmatmul.mubr.bf16.gmra.mrb[24].mxu0 %v6937_v23  ;;  %v6947_v23 = vld [vmem:[%s8934_s1 + $0xf0] sm:$0xff]   ;;  %v4003_v26 = vrot.slane %v4001_v54, 4  ;;  %v4006_v56 = vrot.slane %v4004_v52, 5  ;;  %v8202_v18 = vcombine.low %v3941_v3, %v3951_v53  ;;  %v8214_v19 = vcombine.low %v3965_v42, %v3975_v61  ;;  %v7010_v3 = vld [vmem:[%s7139_s16 + $0xbc] sm:$0x1] }
  0xe6   : > { %6243 = vmatmul.mubr.bf16.gmra.mrb[8].mxu1 %v8966_v12  ;;  %6454 = vmatprep.mubr.bf16.mxu0 %v6939_v62  ;;  %v3983_v62 = vor.u32 %v3982_v2, %v3979_v0  ;;  %v8208_v2 = vsel %vm7417_vm5, %v5397_v35, %v1424_v28  ;;  %v8218_v54 = vsel %vm7417_vm5, %v1426_v36, %v1427_v8  ;;  %v8220_v52 = vrot.slane %v3996_v44, 5  ;;  %v6949_v12 = vld [vmem:[%s8934_s1 + $0xf8] sm:$0xff]   ;;  %v8227_v28 = vld [vmem:[%s7139_s16 + $0x88] sm:$0xf] }
  0xe7   : > { %6246 = vmatprep.mubr.bf16.mxu1 %v8967_v49  ;;  %6275 = vmatpush3.bf16.msra.mxu1 %v6943_v24  ;;  %v5767_v24 = vld [vmem:[%s7139_s16 + $0x78] sm:$0xf]  ;;  %v1434_v53 = vrot.slane %v7010_v3, 5  ;;  %8970 = vst [vmem:[#allocation9_spill] sm:$0xff] %v8227_v28  ;;  %v8231_v42 = vrot.slane %v3993_v1, 4  ;;  %v8233_v61 = vrot.slane %v4010_v34, 5  ;;  %v8237_v36 = vsel %vm7417_vm5, %v5398_v17, %v1431_v46 }
  0xe8   : > { %6276 = vmatprep.subr.bf16.mxu1 %v6945_v41  ;;  %v8229_v35 = vrot.slane %v3983_v62, 4  ;;  %v4016_v8 = vrot.slane %v4014_v10, 4  ;;  %v1433_v44 = vrot.slane %v1431_v46, 4  ;;  %v4007_v49 = vor.u32 %v4006_v56, %v4003_v26  ;;  %v5773_v3 = vld [vmem:[%s7139_s16 + $0x90] sm:$0xf] }
  0xe9   : > { %v4020_v25 = vshll.u32 %v8194_v30, 16  ;;  %v4028_v0 = vshll.u32 %v5767_v24, 16  ;;  %v4034_v62 = vshll.u32 %v8211_v22, 16  ;;  %v4038_v1 = vshrl.u32 %v8211_v22, 16  ;;  %v8244_v34 = vld [vmem:[%s7139_s16 + $0x94] sm:$0xf] }
  0xea   : > { %8971 = vst [vmem:[#allocation10_spill] sm:$0xff] %v8244_v34  ;;  %v8972_v10 = vcombine.low %v7946_v27, %v7950_v29  ;;  %v4049_v17 = vshrl.u32 %v5770_v38, 16  ;;  %v4052_v46 = vshll.u32 %v5770_v38, 16  ;;  %v4062_v26 = vshrl.u32 %v8227_v28, 16  ;;  %v5776_v38 = vld [vmem:[%s7139_s16 + $0x9c] sm:$0xf] }
  0xeb   : > { %6277 = vmatpush3.bf16.msra.mxu1 %v6945_v41  ;;  %v4025_v41 = vshrl.u32 %v5767_v24, 16  ;;  %v8973_v56 = vcombine.low %v7957_v45, %v7961_v14  ;;  %v4017_v29 = vor.u32 %v4016_v8, %v8233_v61  ;;  %v4076_v24 = vshll.u32 %v5773_v3, 16  ;;  %v8266_v45 = vld [vmem:[%s7139_s16 + $0x80] sm:$0x1] }
  0xec   : > { %6278 = vmatprep.subr.bf16.mxu1 %v6947_v23  ;;  %v8263_v5 = vrot.slane %v4020_v25, 5  ;;  %8974 = vst [vmem:[#allocation11_spill] sm:$0xff] %v8266_v45  ;;  %v4082_v14 = vshll.u32 %v8244_v34, 16  ;;  %v4030_v27 = vrot.slane %v4028_v0, 5  ;;  %v4040_v8 = vrot.slane %v4038_v1, 4 }
  0xed   : > { %6455 = vmatmul.mubr.bf16.gmra.mrb[28].mxu0 %v6941_v4  ;;  %v4058_v4 = vshll.u32 %v8227_v28, 16  ;;  %v8270_v28 = vrot.slane %v4034_v62, 5  ;;  %v8276_v22 = vld [vmem:[%s7139_s16 + $0xa0] sm:$0xf]  ;;  %v4051_v25 = vrot.slane %v4049_v17, 4  ;;  %v4054_v30 = vrot.slane %v4052_v46, 5 }
  0xee   : > { %6247 = vmatmul.mubr.bf16.gmra.mrb[12].mxu1 %v8972_v10  ;;  %6474 = vmatprep.mubr.bf16.mxu0 %v8015_v59  ;;  %v4073_v59 = vshrl.u32 %v5773_v3, 16  ;;  %v8261_v10 = vrot.slane %v4007_v49, 4  ;;  %v8273_v3 = vld [vmem:[%s7139_s16 + $0x8c] sm:$0x1]  ;;  %8976 = vst [vmem:[#allocation13_spill] sm:$0xff] %v8276_v22  ;;  %v4064_v47 = vrot.slane %v4062_v26, 4  ;;  %v8293_v62 = vsel %vm7417_vm5, %v1433_v44, %v1434_v53 }
  0xef   : > { %6250 = vmatprep.mubr.bf16.mxu1 %v8973_v56  ;;  %6279 = vmatpush3.bf16.msra.mxu1 %v6947_v23  ;;  %v4086_v23 = vshrl.u32 %v8244_v34, 16  ;;  %v4027_v56 = vrot.slane %v4025_v41, 4  ;;  %8975 = vst [vmem:[#allocation12_spill] sm:$0xff] %v8273_v3  ;;  %v6946_v49 = vld [vmem:[%s8934_s1 + $0x208] sm:$0xff]   ;;  %v8281_v13 = vrot.slane %v4058_v4, 5  ;;  %v4078_v34 = vrot.slane %v4076_v24, 5 }
  0xf0   : > { %6280 = vmatprep.subr.bf16.mxu1 %v6949_v12  ;;  %v5779_v41 = vld [vmem:[%s7139_s16 + $0xa8] sm:$0xf]  ;;  %v4075_v1 = vrot.slane %v4073_v59, 4  ;;  %v8298_v17 = vld [vmem:[%s8934_s1 + $0x100] sm:$0xff]   ;;  %v8301_v46 = vrot.slane %v4082_v14, 5  ;;  %v4097_v26 = vshrl.u32 %v5776_v38, 16  ;;  %v8979_v24 = vcombine.low %v7965_v16, %v7975_v15 }
  0xf1   : > { %8978 = vst [vmem:[#allocation15_spill] sm:$0xff] %v8298_v17  ;;  %v4088_v4 = vrot.slane %v4086_v23, 4  ;;  %v4100_v0 = vshll.u32 %v5776_v38, 16  ;;  %v8304_v53 = vrot.slane %v4017_v29, 4  ;;  %v4106_v44 = vshll.u32 %v8276_v22, 16  ;;  %v6948_v16 = vld [vmem:[%s8934_s1 + $0x210] sm:$0xff]  }
  0xf2   : > { %v4110_v59 = vshrl.u32 %v8276_v22, 16  ;;  %v4031_v14 = vor.u32 %v4030_v27, %v4027_v56  ;;  %v4041_v38 = vor.u32 %v4040_v8, %v8270_v28  ;;  %v4055_v23 = vor.u32 %v4054_v30, %v4051_v25  ;;  %v8316_v29 = vld [vmem:[%s7139_s16 + $0xac] sm:$0xf]  ;;  %v8329_v25 = vld [vmem:[%s7139_s16 + $0xa4] sm:$0x1] }
  0xf3   : > { %6281 = vmatpush3.bf16.msra.mxu1 %v6949_v12  ;;  %v4044_v12 = vshll.u32 %v8266_v45, 16  ;;  %8980 = vst [vmem:[#allocation16_spill] sm:$0xff] %v8316_v29  ;;  %v4065_v15 = vor.u32 %v4064_v47, %v8281_v13  ;;  %v4121_v27 = vshrl.u32 %v5779_v41, 16  ;;  %v4124_v30 = vshll.u32 %v5779_v41, 16 }
  0xf4   : > { %6554 = vmatprep.subr.bf16.mxu1 %v8298_v17  ;;  %v8981_v17 = vcombine.low %v8021_v20, %v8042_v7  ;;  %v4079_v56 = vor.u32 %v4078_v34, %v4075_v1  ;;  %v4089_v8 = vor.u32 %v4088_v4, %v8301_v46  ;;  %v4099_v20 = vrot.slane %v4097_v26, 4 }
  0xf5   : > { %6475 = vmatmul.mubr.bf16.vlgmr.msra.gmra.mrb[0].mxu0 %v8098_v50  ;;  %v4068_v50 = vshll.u32 %v8273_v3, 16  ;;  %v4102_v7 = vrot.slane %v4100_v0, 5  ;;  %v4134_v22 = vshrl.u32 %v8316_v29, 16  ;;  %v4032_v47 = vrot.slane %v4031_v14, 4  ;;  %v6950_v0 = vld [vmem:[%s8934_s1 + $0x218] sm:$0xff]  }
  0xf6   : > { %6251 = vmatmul.mubr.bf16.gmra.mrb[16].mxu1 %v8979_v24  ;;  %6507 = vmatpush3.bf16.msra.mxu0 %v8002_v21  ;;  %v4092_v21 = vshll.u32 %v8284_v39, 16  ;;  %v4130_v24 = vshll.u32 %v8316_v29, 16  ;;  %v4042_v39 = vrot.slane %v4041_v38, 4  ;;  %v4046_v3 = vrot.slane %v4044_v12, 5 }
  0xf7   : > { %6254 = vmatprep.mubr.bf16.mxu1 %v8981_v17  ;;  %6478 = vmatprep.mubr.bf16.mxu0 %v8102_v48  ;;  %v8331_v17 = vrot.slane %v4106_v44, 5  ;;  %v4112_v48 = vrot.slane %v4110_v59, 4  ;;  %v4070_v41 = vrot.slane %v4068_v50, 5  ;;  %v4056_v34 = vrot.slane %v4055_v23, 4 }
  0xf8   : > { %6508 = vmatprep.subr.bf16.mxu0 %v6946_v49  ;;  %v4066_v1 = vrot.slane %v4065_v15, 4  ;;  %v4123_v4 = vrot.slane %v4121_v27, 4  ;;  %v4126_v45 = vrot.slane %v4124_v30, 5  ;;  %v4080_v26 = vrot.slane %v4079_v56, 4  ;;  %v8397_v27 = vld [vmem:[%s7139_s16 + $0xbc] sm:$0x1] }
  0xf9   : > { %v4094_v44 = vrot.slane %v4092_v21, 5  ;;  %v4103_v59 = vor.u32 %v4102_v7, %v4099_v20  ;;  %v4116_v29 = vshll.u32 %v8329_v25, 16  ;;  %v4113_v12 = vor.u32 %v4112_v48, %v8331_v17  ;;  %v8364_v21 = vld [vmem:[%s7139_s16 + $0xb0] sm:$0x1] }
  0xfa   : > { %6509 = vmatpush3.bf16.msra.mxu0 %v6946_v49  ;;  %v4090_v49 = vrot.slane %v4089_v8, 4  ;;  %v8341_v14 = vrot.slane %v4130_v24, 5  ;;  %v4136_v38 = vrot.slane %v4134_v22, 4  ;;  %v8982_v23 = vor.u32 %v7749_v57, %v7747_v11 }
  0xfb   : > { %6510 = vmatprep.subr.bf16.mxu0 %v6948_v16  ;;  %v8983_v15 = vcombine.low %v8054_v40, %v8079_v60  ;;  %v4023_v22 = vsel %vm7171_vm2, %v8304_v53, %v8263_v5  ;;  %v4037_v57 = vsel %vm7171_vm2, %v4032_v47, %v8270_v28  ;;  %v8984_v40 = vcombine.low %v8109_v31, %v8151_v43  ;;  %v6953_v31 = vld [vmem:[%s8934_s1 + $0x220] sm:$0xff]  }
  0xfc   : > { %v8346_v50 = vrot.slane %v8982_v23, 4  ;;  %v4047_v60 = vsel %vm7171_vm2, %v4042_v39, %v4046_v3  ;;  %v4127_v5 = vor.u32 %v4126_v45, %v4123_v4  ;;  %v4071_v28 = vsel %vm7171_vm2, %v4066_v1, %v4070_v41  ;;  %v5835_v41 = vld [vmem:[%s7139_s16 + $0x48] sm:$0xe] }
  0xfd   : > { %6479 = vmatmul.mubr.bf16.gmra.mrb[4].mxu0 %v8147_v55  ;;  %v4013_v55 = vsel %vm7171_vm2, %v8261_v10, %v8233_v61  ;;  %v5782_v61 = vld [vmem:[%s7139_s16 + $0xb4] sm:$0xf]  ;;  %v8376_v10 = vld [vmem:[%s7139_s16 + $0xb8] sm:$0xf]  ;;  %v4085_v39 = vsel %vm7171_vm2, %v4080_v26, %v8301_v46  ;;  %v8386_v43 = vrot.slane %v4103_v59, 4  ;;  %v8388_v3 = vrot.slane %v4116_v29, 5 }
  0xfe   : > { %6255 = vmatmul.mubr.bf16.gmra.mrb[20].mxu1 %v8983_v15  ;;  %6482 = vmatprep.mubr.bf16.mxu0 %v8202_v18  ;;  %v4061_v18 = vsel %vm7171_vm2, %v4056_v34, %v8281_v13  ;;  %v4095_v13 = vsel %vm7171_vm2, %v4090_v49, %v4094_v44  ;;  %v8392_v45 = vrot.slane %v4113_v12, 4  ;;  %v4137_v53 = vor.u32 %v4136_v38, %v8341_v14  ;;  %v5836_v26 = vld [vmem:[%s7139_s16 + $0x54] sm:$0xe] }
  0xff   : > { %6258 = vmatprep.mubr.bf16.mxu1 %v8984_v40  ;;  %6511 = vmatpush3.bf16.msra.mxu0 %v6948_v16  ;;  %v4140_v16 = vshll.u32 %v8364_v21, 16  ;;  %v8985_v46 = vsel %vm7171_vm2, %v8231_v42, %v8220_v52  ;;  %v8986_v29 = vsel %vm7171_vm2, %v8229_v35, %v8153_v58  ;;  %v4145_v56 = vshrl.u32 %v5782_v61, 16 }
 0x100   : > { %6512 = vmatprep.subr.bf16.mxu0 %v6950_v0  ;;  %v5813_v30 = vcombine.low %v8986_v29, %v8985_v46  ;;  %v4148_v8 = vshll.u32 %v5782_v61, 16  ;;  %v4154_v20 = vshll.u32 %v8376_v10, 16  ;;  %v5429_v7 = vcombine.low %v8208_v2, %v8218_v54  ;;  %v6956_v2 = vld [vmem:[%s8934_s1 + $0x228] sm:$0xff]   ;;  %v5785_v54 = vld [vmem:[%s7139_s16 + $0xc0] sm:$0xf]  ;;  %v8990_v29 = vld [vmem:[#allocation5_spill] sm:$0xff] }
 0x101   : > { %v5430_v48 = vcombine.low %v8237_v36, %v8293_v62  ;;  %v5814_v24 = vcombine.low %v4013_v55, %v4023_v22  ;;  %v8414_v52 = vrot.slane %v4127_v5, 4  ;;  %v5815_v42 = vcombine.low %v4037_v57, %v4047_v60 }
 0x102   : > { %v8416_v58 = vcombine.low %v4061_v18, %v4071_v28  ;;  %v8418_v35 = vcombine.low %v4085_v39, %v4095_v13  ;;  %v4109_v47 = vsel %vm7171_vm2, %v8386_v43, %v8331_v17  ;;  %v4119_v34 = vsel %vm7171_vm2, %v8392_v45, %v8388_v3  ;;  %v5838_v28 = vld [vmem:[%s7139_s16 + $0x6c] sm:$0xe] }
 0x103   : > { %6513 = vmatpush3.bf16.msra.mxu0 %v6950_v0  ;;  %v8434_v1 = vrot.slane %v4137_v53, 4  ;;  %v8436_v4 = vrot.slane %v4140_v16, 5  ;;  %v4158_v0 = vshrl.u32 %v8376_v10, 16  ;;  %v8987_v44 = vcombine.low %v8163_v6, %v8172_v51  ;;  %v6959_v6 = vld [vmem:[%s8934_s1 + $0x230] sm:$0xff]   ;;  %v8458_v51 = vld [vmem:[%s7139_s16 + $0xc4] sm:$0xf] }
 0x104   : > { %6514 = vmatprep.subr.bf16.mxu0 %v6953_v31  ;;  %v8443_v59 = vrot.slane %v4145_v56, 4  ;;  %v8447_v49 = vrot.slane %v4154_v20, 5  ;;  %v4164_v12 = vshll.u32 %v8397_v27, 16  ;;  %v4133_v38 = vsel %vm7171_vm2, %v8414_v52, %v8341_v14  ;;  %v5837_v14 = vld [vmem:[%s7139_s16 + $0x60] sm:$0xe]  ;;  %v8988_v39 = vld [vmem:[#allocation3_spill] sm:$0xff] }
 0x105   : > { %6483 = vmatmul.mubr.bf16.gmra.mrb[8].mxu0 %v8214_v19  ;;  %v8445_v19 = vrot.slane %v4148_v8, 5  ;;  %v4169_v23 = vshrl.u32 %v5785_v54, 16  ;;  %v5851_v15 = vrot.slane %v5835_v41, 9  ;;  %v4632_v55 = vrot.slane %v8034_v32, 5  ;;  %v6951_v13 = vld [vmem:[%s7139_s16 + $0xc] sm:$0xff]   ;;  %v6962_v56 = vld [vmem:[%s8934_s1 + $0x238] sm:$0xff]  }
 0x106   : > { %6259 = vmatmul.mubr.bf16.gmra.mrb[24].mxu1 %v8987_v44  ;;  %6486 = vmatprep.mubr.bf16.mxu0 %v5813_v30  ;;  %v4172_v22 = vshll.u32 %v5785_v54, 16  ;;  %v4635_v57 = vrot.slane %v8082_v63, 5  ;;  %v5852_v40 = vrot.slane %v5836_v26, 9  ;;  %v4639_v60 = vrot.slane %v8046_v33, 5  ;;  %v8989_v16 = vld [vmem:[#allocation4_spill] sm:$0xff]  ;;  %v8991_v52 = vld [vmem:[#allocation6_spill] sm:$0xff] }
 0x107   : > { %6262 = vmatprep.mubr.bf16.mxu1 %v5429_v7  ;;  %6515 = vmatpush3.bf16.msra.mxu0 %v6953_v31  ;;  %v4143_v18 = vsel %vm7171_vm2, %v8434_v1, %v8436_v4  ;;  %v8468_v5 = vrot.slane %v4158_v0, 4  ;;  %v8472_v61 = vsel %vm7417_vm5, %v5851_v15, %v4632_v55  ;;  %v4634_v32 = vrot.slane %v4632_v55, 4  ;;  %v8992_v4 = vld [vmem:[#allocation7_spill] sm:$0xff] }
 0x108   : > { %6516 = vmatprep.subr.bf16.mxu0 %v6956_v2  ;;  %v4178_v31 = vshll.u32 %v8458_v51, 16  ;;  %v8478_v63 = vsel %vm7417_vm5, %v5852_v40, %v4639_v60  ;;  %v4641_v33 = vrot.slane %v4639_v60, 4  ;;  %v4642_v3 = vrot.slane %v8988_v39, 5  ;;  %v8509_v26 = vld [vmem:[%s7139_s16 + $0xc8] sm:$0x1]  ;;  %v6952_v40 = vld [vmem:[%s7139_s16 + $0x18] sm:$0xff]  }
 0x109   : > { %v8484_v45 = vsel %vm7417_vm5, %v4634_v32, %v4635_v57  ;;  %v5853_v53 = vrot.slane %v5837_v14, 9  ;;  %v4646_v46 = vrot.slane %v8989_v16, 5  ;;  %v4649_v30 = vrot.slane %v8990_v29, 5  ;;  %v6954_v39 = vld [vmem:[%s7139_s16 + $0x24] sm:$0xff]  }
 0x10a   : > { %v5883_v8 = vcombine.low %v8472_v61, %v8484_v45  ;;  %v8495_v20 = vsel %vm7417_vm5, %v4641_v33, %v4642_v3  ;;  %v5854_v7 = vrot.slane %v5838_v28, 9  ;;  %v4656_v0 = vrot.slane %v8992_v4, 5  ;;  %v8994_v28 = vld [vmem:[#allocation11_spill] sm:$0xff]  ;;  %v5544_v61 = vld [vmem:[%s7139_s16 + $0x90] sm:$0xf] }
 0x10b   : > { %6517 = vmatpush3.bf16.msra.mxu0 %v6956_v2  ;;  %v4653_v2 = vrot.slane %v8991_v52, 5  ;;  %v5884_v54 = vcombine.low %v8478_v63, %v8495_v20  ;;  %v8502_v41 = vsel %vm7417_vm5, %v5853_v53, %v4646_v46  ;;  %v4648_v1 = vrot.slane %v4646_v46, 4  ;;  %v8995_v53 = vld [vmem:[#allocation2_spill] sm:$0xff]  ;;  %v6968_v45 = vld [vmem:[%s7139_s16 + $0xa8] sm:$0xff]  }
 0x10c   : > { %6518 = vmatprep.subr.bf16.mxu0 %v6959_v6  ;;  %v8511_v44 = vrot.slane %v4169_v23, 4  ;;  %v8524_v36 = vcombine.low %v4109_v47, %v4119_v34  ;;  %v4151_v62 = vor.u32 %v8445_v19, %v8443_v59  ;;  %v5839_v23 = vld [vmem:[%s7139_s16 + $0x78] sm:$0xe]  ;;  %v8536_v57 = vrot.slane %v4164_v12, 5  ;;  %v5788_v12 = vld [vmem:[%s7139_s16 + $0xcc] sm:$0xf] }
 0x10d   : > { %6487 = vmatmul.mubr.bf16.gmra.mrb[12].mxu0 %v5814_v24  ;;  %v8513_v24 = vrot.slane %v4172_v22, 5  ;;  %v8517_v15 = vsel %vm7417_vm5, %v5854_v7, %v4653_v2  ;;  %v4655_v55 = vrot.slane %v4653_v2, 4  ;;  %v8534_v22 = vcombine.low %v4133_v38, %v4143_v18  ;;  %v5538_v47 = vld [vmem:[%s7139_s16 + $0x78] sm:$0xf]  ;;  %v8993_v18 = vld [vmem:[#allocation8_spill] sm:$0xff] }
 0x10e   : > { %6263 = vmatmul.mubr.bf16.gmra.mrb[28].mxu1 %v5430_v48  ;;  %6490 = vmatprep.mubr.bf16.mxu0 %v5815_v42  ;;  %v4182_v48 = vshrl.u32 %v8458_v51, 16  ;;  %v8531_v42 = vsel %vm7417_vm5, %v4648_v1, %v4649_v30  ;;  %v4161_v34 = vor.u32 %v8468_v5, %v8447_v49  ;;  %v8547_v59 = vrot.slane %v4178_v31, 5  ;;  %v8561_v31 = vld [vmem:[%s7139_s16 + $0xd0] sm:$0xf]  ;;  %v8996_v1 = vld [vmem:[#allocation9_spill] sm:$0xff] }
 0x10f   : > { %6282 = vmatprep.mubr.bf16.mxu1 %v6951_v13  ;;  %6519 = vmatpush3.bf16.msra.mxu0 %v6959_v6  ;;  %v5885_v17 = vcombine.low %v8502_v41, %v8531_v42  ;;  %v8542_v43 = vsel %vm7417_vm5, %v4655_v55, %v4656_v0  ;;  %v4188_v19 = vshll.u32 %v8509_v26, 16  ;;  %v5840_v6 = vld [vmem:[%s7139_s16 + $0x84] sm:$0xe]  ;;  %v4175_v60 = vor.u32 %v8513_v24, %v8511_v44  ;;  %v8997_v24 = vld [vmem:[#allocation12_spill] sm:$0xff]  ;;  %v7032_v63 = vld [vmem:[%s7139_s16 + $0x8c] sm:$0x1] }
 0x110   : > { %6520 = vmatprep.subr.bf16.mxu0 %v6962_v56  ;;  %v5886_v38 = vcombine.low %v8517_v15, %v8542_v43  ;;  %v5855_v14 = vrot.slane %v5839_v23, 9  ;;  %v4660_v32 = vrot.slane %v8993_v18, 5  ;;  %v4663_v33 = vrot.slane %v8994_v28, 5 }
 0x111   : > { %v4184_v5 = vrot.slane %v4182_v48, 4  ;;  %v2410_v3 = vshrl.u32 %v5538_v47, 16  ;;  %v2413_v13 = vshll.u32 %v5538_v47, 16  ;;  %v2432_v16 = vsel %vm7171_vm2, %v8346_v50, %v8995_v53 }
 0x112   : > { %v4193_v46 = vshrl.u32 %v5788_v12, 16  ;;  %v8569_v29 = vsel %vm7417_vm5, %v5855_v14, %v4660_v32  ;;  %v4662_v30 = vrot.slane %v4660_v32, 4  ;;  %v5856_v7 = vrot.slane %v5840_v6, 9  ;;  %v7012_v6 = vld [vmem:[%s8934_s1 + $0x108] sm:$0xff]  }
 0x113   : > { %6521 = vmatpush3.bf16.msra.mxu0 %v6962_v56  ;;  %v4196_v52 = vshll.u32 %v5788_v12, 16  ;;  %v2412_v2 = vrot.slane %v2410_v3, 4  ;;  %v2415_v56 = vrot.slane %v2413_v13, 5  ;;  %v4667_v4 = vrot.slane %v8996_v1, 5  ;;  %v5841_v12 = vld [vmem:[%s7139_s16 + $0x90] sm:$0xe] }
 0x114   : > { %v4202_v50 = vshll.u32 %v8561_v31, 16  ;;  %v4206_v0 = vshrl.u32 %v8561_v31, 16  ;;  %v8578_v44 = vsel %vm7417_vm5, %v4662_v30, %v4663_v33  ;;  %v4670_v55 = vrot.slane %v8997_v24, 5  ;;  %v6955_v3 = vld [vmem:[%s7139_s16 + $0x30] sm:$0xff]  }
 0x115   : > { %6491 = vmatmul.mubr.bf16.gmra.mrb[16].mxu0 %v8416_v58  ;;  %v8998_v58 = vld [vmem:[#allocation15_spill] sm:$0xff]  ;;  %v4185_v48 = vor.u32 %v4184_v5, %v8547_v59  ;;  %v2416_v23 = vor.u32 %v2415_v56, %v2412_v2  ;;  %v4669_v47 = vrot.slane %v4667_v4, 4  ;;  %v4162_v14 = vrot.slane %v4161_v34, 4  ;;  %v8599_v13 = vld [vmem:[%s7139_s16 + $0xd4] sm:$0x1]  ;;  %v8999_v2 = vld [vmem:[#allocation10_spill] sm:$0xff] }
 0x116   : > { %6283 = vmatmul.mubr.bf16.vlgmr.msra.gmra.mrb[0].mxu1 %v6952_v40  ;;  %6494 = vmatprep.mubr.bf16.mxu0 %v8418_v35  ;;  %v5887_v35 = vcombine.low %v8569_v29, %v8578_v44  ;;  %v4152_v40 = vrot.slane %v4151_v62, 4  ;;  %v4190_v18 = vrot.slane %v4188_v19, 5  ;;  %v8591_v32 = vsel %vm7417_vm5, %v5856_v7, %v4667_v4  ;;  %v6957_v19 = vld [vmem:[%s7139_s16 + $0x3c] sm:$0xff]   ;;  %v7013_v1 = vld [vmem:[%s8934_s1 + $0x110] sm:$0xff]  }
 0x117   : > { %6562 = vmatpush3.bf16.msra.mxu1 %v8998_v58  ;;  %6286 = vmatprep.mubr.bf16.mxu1 %v6954_v39  ;;  %v4195_v28 = vrot.slane %v4193_v46, 4  ;;  %v4198_v33 = vrot.slane %v4196_v52, 5  ;;  %v2417_v39 = vrot.slane %v2416_v23, 4  ;;  %v8595_v5 = vsel %vm7417_vm5, %v4669_v47, %v4670_v55  ;;  %v7014_v47 = vld [vmem:[%s7139_s16 + $0x1c] sm:$0xf] }
 0x118   : > { %6555 = vmatprep.subr.bf16.mxu1 %v7012_v6  ;;  %v8601_v53 = vrot.slane %v4202_v50, 5  ;;  %v4208_v30 = vrot.slane %v4206_v0, 4  ;;  %v5888_v62 = vcombine.low %v8591_v32, %v8595_v5  ;;  %v5857_v34 = vrot.slane %v5841_v12, 9 }
 0x119   : > { %v4176_v7 = vrot.slane %v4175_v60, 4  ;;  %v4186_v46 = vrot.slane %v4185_v48, 4  ;;  %v2422_v52 = vsel %vm7171_vm2, %v2417_v39, %v7747_v11  ;;  %v4674_v56 = vrot.slane %v8999_v2, 5  ;;  %v9000_v11 = vld [vmem:[#allocation14_spill] sm:$0xff]  ;;  %v6958_v39 = vld [vmem:[%s7139_s16 + $0x48] sm:$0xff]  }
 0x11a   : > { %v4157_v4 = vsel %vm7171_vm2, %v4152_v40, %v8447_v49  ;;  %v4167_v60 = vsel %vm7171_vm2, %v4162_v14, %v8536_v57  ;;  %v8619_v50 = vcombine.low %v2422_v52, %v2432_v16  ;;  %v4677_v0 = vrot.slane %v9000_v11, 5  ;;  %v5831_v57 = vld [vmem:[%s7139_s16 + $0x18] sm:$0xe]  ;;  %v5842_v16 = vld [vmem:[%s7139_s16 + $0x9c] sm:$0xe] }
 0x11b   : > { %6563 = vmatpush3.bf16.msra.mxu1 %v7012_v6  ;;  %v4199_v24 = vor.u32 %v4198_v33, %v4195_v28  ;;  %v4212_v55 = vshll.u32 %v8599_v13, 16  ;;  %v8626_v58 = vsel %vm7417_vm5, %v5857_v34, %v4674_v56  ;;  %v4676_v48 = vrot.slane %v4674_v56, 4  ;;  %v7015_v40 = vld [vmem:[%s8934_s1 + $0x118] sm:$0xff]   ;;  %v7016_v2 = vld [vmem:[%s7139_s16 + $0x20] sm:$0x1] }
 0x11c   : > { %6556 = vmatprep.subr.bf16.mxu1 %v7013_v1  ;;  %v4209_v49 = vor.u32 %v4208_v30, %v8601_v53  ;;  %v4191_v23 = vsel %vm7171_vm2, %v4186_v46, %v4190_v18  ;;  %v4604_v12 = vrot.slane %v7014_v47, 5  ;;  %v5820_v6 = vcombine.low %v4157_v4, %v4167_v60  ;;  %v9001_v34 = vld [vmem:[#allocation13_spill] sm:$0xff]  ;;  %v5843_v11 = vld [vmem:[%s7139_s16 + $0xa8] sm:$0xe] }
 0x11d   : > { %6495 = vmatmul.mubr.bf16.gmra.mrb[20].mxu0 %v8524_v36  ;;  %v4181_v36 = vsel %vm7171_vm2, %v4176_v7, %v8547_v59  ;;  %v4200_v14 = vrot.slane %v4199_v24, 4  ;;  %v4214_v28 = vrot.slane %v4212_v55, 5  ;;  %v5847_v18 = vrot.slane %v5831_v57, 9  ;;  %v6960_v46 = vld [vmem:[%s7139_s16 + $0x54] sm:$0xff]   ;;  %v5832_v55 = vld [vmem:[%s7139_s16 + $0x24] sm:$0xe] }
 0x11e   : > { %6287 = vmatmul.mubr.bf16.gmra.mrb[4].mxu1 %v6955_v3  ;;  %6498 = vmatprep.mubr.bf16.mxu0 %v8534_v22  ;;  %v8640_v22 = vsel %vm7417_vm5, %v4676_v48, %v4677_v0  ;;  %v5858_v33 = vrot.slane %v5842_v16, 9  ;;  %v5821_v3 = vcombine.low %v4181_v36, %v4191_v23  ;;  %v4210_v30 = vrot.slane %v4209_v49, 4  ;;  %v7018_v48 = vld [vmem:[%s7139_s16 + $0x28] sm:$0xf]  ;;  %v7019_v36 = vld [vmem:[%s7139_s16 + $0x34] sm:$0xf] }
 0x11f   : > { %6290 = vmatprep.mubr.bf16.mxu1 %v6957_v19  ;;  %6564 = vmatpush3.bf16.msra.mxu1 %v7013_v1  ;;  %v5889_v59 = vcombine.low %v8626_v58, %v8640_v22  ;;  %v4681_v19 = vrot.slane %v9001_v34, 5  ;;  %v4684_v7 = vrot.slane %v8329_v25, 5  ;;  %v4606_v52 = vrot.slane %v4604_v12, 4  ;;  %v7017_v1 = vld [vmem:[%s8934_s1 + $0x120] sm:$0xff]  }
 0x120   : > { %6557 = vmatprep.subr.bf16.mxu1 %v7015_v40  ;;  %v4607_v56 = vrot.slane %v7016_v2, 5  ;;  %v4605_v25 = vsel %vm7417_vm5, %v5847_v18, %v4604_v12  ;;  %v4205_v0 = vsel %vm7171_vm2, %v4200_v14, %v8601_v53  ;;  %v4215_v24 = vsel %vm7171_vm2, %v4210_v30, %v4214_v28  ;;  %v5833_v12 = vld [vmem:[%s7139_s16 + $0x30] sm:$0xe]  ;;  %v6961_v30 = vld [vmem:[%s7139_s16 + $0x60] sm:$0xff]  }
 0x121   : > { %v8657_v4 = vsel %vm7417_vm5, %v5858_v33, %v4681_v19  ;;  %v4683_v60 = vrot.slane %v4681_v19, 4  ;;  %v4611_v49 = vrot.slane %v7018_v48, 5  ;;  %v4618_v23 = vrot.slane %v7019_v36, 5  ;;  %v7021_v33 = vld [vmem:[%s7139_s16 + $0x2c] sm:$0x1] }
 0x122   : > { %v4608_v16 = vsel %vm7417_vm5, %v4606_v52, %v4607_v56  ;;  %v5859_v47 = vrot.slane %v5843_v11, 9  ;;  %v5822_v28 = vcombine.low %v4205_v0, %v4215_v24  ;;  %v5848_v18 = vrot.slane %v5832_v55, 9  ;;  %v6963_v52 = vld [vmem:[%s7139_s16 + $0x6c] sm:$0xff]   ;;  %v5844_v11 = vld [vmem:[%s7139_s16 + $0xb4] sm:$0xe] }
 0x123   : > { %6565 = vmatpush3.bf16.msra.mxu1 %v7015_v40  ;;  %v8671_v57 = vsel %vm7417_vm5, %v4683_v60, %v4684_v7  ;;  %v9002_v40 = vld [vmem:[#allocation16_spill] sm:$0xff]  ;;  %v5879_v34 = vcombine.low %v4605_v25, %v4608_v16  ;;  %v4613_v19 = vrot.slane %v4611_v49, 4  ;;  %v5849_v2 = vrot.slane %v5833_v12, 9  ;;  %v5834_v0 = vld [vmem:[%s7139_s16 + $0x3c] sm:$0xe] }
 0x124   : > { %6558 = vmatprep.subr.bf16.mxu1 %v7017_v1  ;;  %v5890_v53 = vcombine.low %v8657_v4, %v8671_v57  ;;  %v4688_v14 = vrot.slane %v9002_v40, 5  ;;  %v4620_v56 = vrot.slane %v4618_v23, 4  ;;  %v7023_v24 = vld [vmem:[%s7139_s16 + $0x40] sm:$0xf]  ;;  %v4612_v48 = vsel %vm7417_vm5, %v5848_v18, %v4611_v49  ;;  %v7025_v18 = vld [vmem:[%s7139_s16 + $0x44] sm:$0x1] }
 0x125   : > { %6499 = vmatmul.mubr.bf16.gmra.mrb[24].mxu0 %v5820_v6  ;;  %v7020_v6 = vld [vmem:[%s8934_s1 + $0x128] sm:$0xff]   ;;  %v4625_v55 = vrot.slane %v7023_v24, 5  ;;  %v4695_v12 = vrot.slane %v8376_v10, 5  ;;  %v4619_v49 = vsel %vm7417_vm5, %v5849_v2, %v4618_v23  ;;  %v7026_v10 = vld [vmem:[%s8934_s1 + $0x138] sm:$0xff]   ;;  %v5845_v23 = vld [vmem:[%s7139_s16 + $0xc0] sm:$0xe] }
 0x126   : > { %6291 = vmatmul.mubr.bf16.gmra.mrb[8].mxu1 %v6958_v39  ;;  %6502 = vmatprep.mubr.bf16.mxu0 %v5821_v3  ;;  %v4614_v39 = vrot.slane %v7021_v33, 5  ;;  %v4691_v3 = vrot.slane %v8364_v21, 5  ;;  %v8688_v7 = vsel %vm7417_vm5, %v5859_v47, %v4688_v14  ;;  %v7024_v21 = vld [vmem:[%s8934_s1 + $0x130] sm:$0xff]   ;;  %v5860_v47 = vrot.slane %v5844_v11, 9 }
 0x127   : > { %6294 = vmatprep.mubr.bf16.mxu1 %v6960_v46  ;;  %6566 = vmatpush3.bf16.msra.mxu1 %v7017_v1  ;;  %v4690_v46 = vrot.slane %v4688_v14, 4  ;;  %v7022_v1 = vld [vmem:[%s7139_s16 + $0x38] sm:$0x1]  ;;  %v5850_v14 = vrot.slane %v5834_v0, 9  ;;  %v4628_v33 = vrot.slane %v7025_v18, 5  ;;  %v4702_v11 = vrot.slane %v8458_v51, 5 }
 0x128   : > { %6559 = vmatprep.subr.bf16.mxu1 %v7020_v6  ;;  %v4621_v60 = vrot.slane %v7022_v1, 5  ;;  %v4615_v36 = vsel %vm7417_vm5, %v4613_v19, %v4614_v39  ;;  %v4697_v39 = vrot.slane %v4695_v12, 4  ;;  %v5535_v19 = vld [vmem:[%s7139_s16 + $0x6c] sm:$0xf]  ;;  %v6966_v18 = vld [vmem:[%s7139_s16 + $0x90] sm:$0xff]   ;;  %v2453_v20 = vshll.u32 %v7032_v63, 16 }
 0x129   : > { %v8700_v25 = vsel %vm7417_vm5, %v4690_v46, %v4691_v3  ;;  %v5880_v3 = vcombine.low %v4612_v48, %v4615_v36  ;;  %v4626_v1 = vsel %vm7417_vm5, %v5850_v14, %v4625_v55  ;;  %v2386_v0 = vshrl.u32 %v5535_v19, 16  ;;  %v5846_v51 = vld [vmem:[%s7139_s16 + $0xcc] sm:$0xe] }
 0x12a   : > { %v5891_v16 = vcombine.low %v8688_v7, %v8700_v25  ;;  %v4622_v40 = vsel %vm7417_vm5, %v4620_v56, %v4621_v60  ;;  %v5861_v56 = vrot.slane %v5845_v23, 9  ;;  %v2389_v24 = vshll.u32 %v5535_v19, 16 }
 0x12b   : > { %6567 = vmatpush3.bf16.msra.mxu1 %v7020_v6  ;;  %v4698_v6 = vrot.slane %v8397_v27, 5  ;;  %v8720_v27 = vsel %vm7417_vm5, %v5860_v47, %v4695_v12  ;;  %v4705_v36 = vrot.slane %v8509_v26, 5  ;;  %v4704_v12 = vrot.slane %v4702_v11, 4 }
 0x12c   : > { %6560 = vmatprep.subr.bf16.mxu1 %v7024_v21  ;;  %v2391_v26 = vrot.slane %v2389_v24, 5  ;;  %v4712_v23 = vrot.slane %v8599_v13, 5 }
 0x12d   : > { %6503 = vmatmul.mubr.bf16.gmra.mrb[28].mxu0 %v5822_v28  ;;  %v4627_v28 = vrot.slane %v4625_v55, 4  ;;  %v8727_v46 = vsel %vm7417_vm5, %v4697_v39, %v4698_v6  ;;  %v8741_v55 = vsel %vm7417_vm5, %v5861_v56, %v4702_v11  ;;  %v4709_v39 = vrot.slane %v8561_v31, 5  ;;  %v7028_v56 = vld [vmem:[%s7139_s16 + $0x74] sm:$0x1] }
 0x12e   : > { %6295 = vmatmul.mubr.bf16.gmra.mrb[12].mxu1 %v6961_v30  ;;  %6522 = vmatprep.mubr.bf16.mxu0 %v5879_v34  ;;  %v6964_v30 = vld [vmem:[%s7139_s16 + $0x78] sm:$0xff]   ;;  %v5881_v34 = vcombine.low %v4619_v49, %v4622_v40  ;;  %v5892_v2 = vcombine.low %v8720_v27, %v8727_v46  ;;  %v8746_v49 = vsel %vm7417_vm5, %v4704_v12, %v4705_v36  ;;  %v2388_v40 = vrot.slane %v2386_v0, 4  ;;  %v7029_v0 = vld [vmem:[%s7139_s16 + $0x88] sm:$0xf] }
 0x12f   : > { %6298 = vmatprep.mubr.bf16.mxu1 %v6963_v52  ;;  %6568 = vmatpush3.bf16.msra.mxu1 %v7024_v21  ;;  %v6965_v52 = vld [vmem:[%s7139_s16 + $0x84] sm:$0xff]   ;;  %v4629_v60 = vsel %vm7417_vm5, %v4627_v28, %v4628_v33  ;;  %v7027_v21 = vld [vmem:[%s7139_s16 + $0x70] sm:$0xf]  ;;  %v5893_v28 = vcombine.low %v8741_v55, %v8746_v49  ;;  %v4711_v19 = vrot.slane %v4709_v39, 4  ;;  %v2443_v24 = vshll.u32 %v7029_v0, 16 }
 0x130   : > { %6561 = vmatprep.subr.bf16.mxu1 %v7026_v10  ;;  %v2395_v48 = vshll.u32 %v7027_v21, 16  ;;  %v2399_v47 = vshrl.u32 %v7027_v21, 16  ;;  %v5882_v6 = vcombine.low %v4626_v1, %v4629_v60  ;;  %v2405_v1 = vshll.u32 %v7028_v56, 16 }
 0x131   : > { %v8768_v11 = vsel %vm7417_vm5, %v4711_v19, %v4712_v23  ;;  %v2447_v21 = vshrl.u32 %v7029_v0, 16  ;;  %v7031_v19 = vld [vmem:[%s7139_s16 + $0xa0] sm:$0xf] }
 0x132   : > { %v8748_v14 = vrot.slane %v2395_v48, 5  ;;  %v2401_v33 = vrot.slane %v2399_v47, 4  ;;  %v2495_v56 = vshrl.u32 %v7031_v19, 16 }
 0x133   : > { %6569 = vmatpush3.bf16.msra.mxu1 %v7026_v10  ;;  %v5862_v10 = vrot.slane %v5846_v51, 9 }
 0x134   : > { %v2402_v31 = vor.u32 %v2401_v33, %v8748_v14  ;;  %v2461_v33 = vshll.u32 %v5544_v61, 16 }
 0x135   : > { %6523 = vmatmul.mubr.bf16.vlgmr.msra.gmra.mrb[0].mxu0 %v5880_v3  ;;  %v6967_v3 = vld [vmem:[%s7139_s16 + $0x9c] sm:$0xff]  }
 0x136   : > { %6299 = vmatmul.mubr.bf16.gmra.mrb[16].mxu1 %v6964_v30  ;;  %6526 = vmatprep.mubr.bf16.mxu0 %v5881_v34  ;;  %v5541_v30 = vld [vmem:[%s7139_s16 + $0x84] sm:$0xf]  ;;  %v8759_v34 = vsel %vm7417_vm5, %v5862_v10, %v4709_v39  ;;  %v2403_v47 = vrot.slane %v2402_v31, 4  ;;  %v7030_v10 = vld [vmem:[%s7139_s16 + $0x94] sm:$0xf]  ;;  %v2463_v0 = vrot.slane %v2461_v33, 5 }
 0x137   : > { %6302 = vmatprep.mubr.bf16.mxu1 %v6965_v52  ;;  %v2392_v52 = vor.u32 %v2391_v26, %v2388_v40  ;;  %v2434_v13 = vshrl.u32 %v5541_v30, 16  ;;  %v2437_v60 = vshll.u32 %v5541_v30, 16  ;;  %v5894_v48 = vcombine.low %v8759_v34, %v8768_v11 }
 0x138   : > { %v8777_v40 = vrot.slane %v2443_v24, 5  ;;  %v2449_v26 = vrot.slane %v2447_v21, 4  ;;  %v2467_v39 = vshll.u32 %v7030_v10, 16  ;;  %v2471_v23 = vshrl.u32 %v7030_v10, 16  ;;  %v7034_v10 = vld [vmem:[%s7139_s16 + $0xa4] sm:$0x1] }
 0x139   : > { %v2393_v36 = vrot.slane %v2392_v52, 4  ;;  %v2436_v12 = vrot.slane %v2434_v13, 4  ;;  %v2439_v51 = vrot.slane %v2437_v60, 5  ;;  %v2491_v52 = vshll.u32 %v7031_v19, 16  ;;  %v7035_v19 = vld [vmem:[%s7139_s16 + $0xac] sm:$0xf] }
 0x13a   : > { %v2450_v13 = vor.u32 %v2449_v26, %v8777_v40  ;;  %v8794_v41 = vrot.slane %v2467_v39, 5  ;;  %v2473_v42 = vrot.slane %v2471_v23, 4  ;;  %v2497_v21 = vrot.slane %v2495_v56, 4  ;;  %v5553_v23 = vld [vmem:[%s7139_s16 + $0xb4] sm:$0xf] }
 0x13b   : > { %v2501_v39 = vshll.u32 %v7034_v10, 16  ;;  %v2519_v15 = vshrl.u32 %v7035_v19, 16  ;;  %v2533_v63 = vshll.u32 %v5553_v23, 16 }
 0x13c   : > { %v2474_v26 = vor.u32 %v2473_v42, %v8794_v41 }
 0x13d   : > { %6527 = vmatmul.mubr.bf16.gmra.mrb[4].mxu0 %v5882_v6  ;;  %v5547_v6 = vld [vmem:[%s7139_s16 + $0x9c] sm:$0xf] }
 0x13e   : > { %6303 = vmatmul.mubr.bf16.gmra.mrb[20].mxu1 %v6966_v18  ;;  %6530 = vmatprep.mubr.bf16.mxu0 %v5883_v8  ;;  %v2407_v8 = vrot.slane %v2405_v1, 5  ;;  %v2458_v18 = vshrl.u32 %v5544_v61, 16  ;;  %v2485_v30 = vshll.u32 %v5547_v6, 16  ;;  %v2398_v1 = vsel %vm7171_vm2, %v2393_v36, %v8748_v14  ;;  %v6970_v61 = vld [vmem:[%s7139_s16 + $0xc0] sm:$0xff]  }
 0x13f   : > { %6306 = vmatprep.mubr.bf16.mxu1 %v6967_v3  ;;  %v2482_v3 = vshrl.u32 %v5547_v6, 16  ;;  %v8796_v14 = vrot.slane %v2491_v52, 5  ;;  %v2515_v52 = vshll.u32 %v7035_v19, 16 }
 0x140   : > { %v2408_v31 = vsel %vm7171_vm2, %v2403_v47, %v2407_v8  ;;  %v2460_v60 = vrot.slane %v2458_v18, 4  ;;  %v2487_v24 = vrot.slane %v2485_v30, 5  ;;  %v2455_v8 = vrot.slane %v2453_v20, 5  ;;  %v7036_v20 = vld [vmem:[%s7139_s16 + $0xb8] sm:$0xf] }
 0x141   : > { %v2451_v47 = vrot.slane %v2450_v13, 4  ;;  %v2498_v33 = vor.u32 %v2497_v21, %v8796_v14  ;;  %v2539_v29 = vshll.u32 %v7036_v20, 16  ;;  %v2543_v44 = vshrl.u32 %v7036_v20, 16 }
 0x143   : > { %v2499_v13 = vrot.slane %v2498_v33, 4 }
 0x145   : > { %6531 = vmatmul.mubr.bf16.gmra.mrb[8].mxu0 %v5884_v54  ;;  %v2440_v54 = vor.u32 %v2439_v51, %v2436_v12  ;;  %v2464_v12 = vor.u32 %v2463_v0, %v2460_v60  ;;  %v7033_v51 = vld [vmem:[%s7139_s16 + $0x98] sm:$0x1]  ;;  %v2503_v60 = vrot.slane %v2501_v39, 5 }
 0x146   : > { %6307 = vmatmul.mubr.bf16.gmra.mrb[24].mxu1 %v6968_v45  ;;  %6534 = vmatprep.mubr.bf16.mxu0 %v5885_v17  ;;  %v2484_v17 = vrot.slane %v2482_v3, 4  ;;  %v5583_v45 = vcombine.low %v2398_v1, %v2408_v31  ;;  %v2477_v6 = vshll.u32 %v7033_v51, 16  ;;  %v2530_v31 = vshrl.u32 %v5553_v23, 16 }
 0x147   : > { %6310 = vmatprep.mubr.bf16.mxu1 %v6969_v9  ;;  %v2441_v36 = vrot.slane %v2440_v54, 4  ;;  %v5550_v9 = vld [vmem:[%s7139_s16 + $0xa8] sm:$0xf]  ;;  %v2465_v56 = vrot.slane %v2464_v12, 4  ;;  %v2504_v32 = vsel %vm7171_vm2, %v2499_v13, %v2503_v60 }
 0x148   : > { %v2488_v18 = vor.u32 %v2487_v24, %v2484_v17  ;;  %v2506_v3 = vshrl.u32 %v5550_v9, 16  ;;  %v2509_v30 = vshll.u32 %v5550_v9, 16  ;;  %v2479_v1 = vrot.slane %v2477_v6, 5 }
 0x149   : > { %v2446_v43 = vsel %vm7171_vm2, %v2441_v36, %v8777_v40  ;;  %v2517_v17 = vrot.slane %v2515_v52, 5  ;;  %v2521_v24 = vrot.slane %v2519_v15, 4  ;;  %v2532_v21 = vrot.slane %v2530_v31, 4  ;;  %v5556_v36 = vld [vmem:[%s7139_s16 + $0xc0] sm:$0xf] }
 0x14a   : > { %v2489_v54 = vrot.slane %v2488_v18, 4  ;;  %v2508_v0 = vrot.slane %v2506_v3, 4  ;;  %v2511_v42 = vrot.slane %v2509_v30, 5  ;;  %v2554_v9 = vshrl.u32 %v5556_v36, 16  ;;  %v7038_v18 = vld [vmem:[%s7139_s16 + $0xc4] sm:$0xf] }
 0x14b   : > { %v2563_v33 = vshll.u32 %v7038_v18, 16 }
 0x14c   : > { %v2494_v51 = vsel %vm7171_vm2, %v2489_v54, %v8796_v14  ;;  %v2512_v5 = vor.u32 %v2511_v42, %v2508_v0  ;;  %v2567_v14 = vshrl.u32 %v7038_v18, 16  ;;  %v2556_v19 = vrot.slane %v2554_v9, 4 }
 0x14d   : > { %6535 = vmatmul.mubr.bf16.gmra.mrb[12].mxu0 %v5886_v38  ;;  %v2456_v38 = vsel %vm7171_vm2, %v2451_v47, %v2455_v8  ;;  %v2545_v8 = vrot.slane %v2543_v44, 4  ;;  %v2470_v47 = vsel %vm7171_vm2, %v2465_v56, %v8794_v41  ;;  %v7037_v41 = vld [vmem:[%s7139_s16 + $0xb0] sm:$0x1]  ;;  %v5587_v58 = vcombine.low %v2494_v51, %v2504_v32  ;;  %v7040_v44 = vld [vmem:[%s7139_s16 + $0xc8] sm:$0x1] }
 0x14e   : > { %6311 = vmatmul.mubr.bf16.gmra.mrb[28].mxu1 %v6970_v61  ;;  %6538 = vmatprep.mubr.bf16.mxu0 %v5887_v35  ;;  %v2475_v35 = vrot.slane %v2474_v26, 4  ;;  %v5585_v40 = vcombine.low %v2446_v43, %v2456_v38  ;;  %v2535_v61 = vrot.slane %v2533_v63, 5  ;;  %v2525_v6 = vshll.u32 %v7037_v41, 16 }
 0x14f   : > { %6346 = vmatprep.mubr.bf16.mxu1 %v5583_v45  ;;  %v2541_v45 = vrot.slane %v2539_v29, 5  ;;  %v2557_v26 = vshll.u32 %v5556_v36, 16  ;;  %v2513_v22 = vrot.slane %v2512_v5, 4  ;;  %v2565_v15 = vrot.slane %v2563_v33, 5 }
 0x150   : > { %v2480_v12 = vsel %vm7171_vm2, %v2475_v35, %v2479_v1  ;;  %v2536_v10 = vor.u32 %v2535_v61, %v2532_v21  ;;  %v2527_v30 = vrot.slane %v2525_v6, 5  ;;  %v2569_v43 = vrot.slane %v2567_v14, 4 }
 0x151   : > { %v2546_v39 = vor.u32 %v2545_v8, %v2541_v45  ;;  %v5586_v3 = vcombine.low %v2470_v47, %v2480_v12  ;;  %v2559_v52 = vrot.slane %v2557_v26, 5  ;;  %v2518_v31 = vsel %vm7171_vm2, %v2513_v22, %v2517_v17 }
 0x152   : > { %v2537_v38 = vrot.slane %v2536_v10, 4  ;;  %v2570_v29 = vor.u32 %v2569_v43, %v2565_v15  ;;  %v2573_v35 = vshll.u32 %v7040_v44, 16 }
 0x153   : > { %v2547_v56 = vrot.slane %v2546_v39, 4  ;;  %v2560_v20 = vor.u32 %v2559_v52, %v2556_v19 }
 0x154   : > { %v2542_v4 = vsel %vm7171_vm2, %v2537_v38, %v2541_v45  ;;  %v2575_v54 = vrot.slane %v2573_v35, 5 }
 0x155   : > { %6539 = vmatmul.mubr.bf16.gmra.mrb[16].mxu0 %v5888_v62  ;;  %v2522_v62 = vor.u32 %v2521_v24, %v2517_v17  ;;  %v2561_v25 = vrot.slane %v2560_v20, 4 }
 0x156   : > { %6347 = vmatmul.mubr.bf16.vlgmr.msra.gmra.mrb[16].mxu1 %v8619_v50  ;;  %6542 = vmatprep.mubr.bf16.mxu0 %v5889_v59  ;;  %v7039_v50 = vld [vmem:[%s7139_s16 + $0xbc] sm:$0x1]  ;;  %s5905_s16 = sshll.u32 %s9008_s12, 8 }
 0x157   : > { %6350 = vmatprep.mubr.bf16.mxu1 %v5585_v40  ;;  %v2549_v23 = vshll.u32 %v7039_v50, 16  ;;  %v2523_v59 = vrot.slane %v2522_v62, 4  ;;  %v2566_v13 = vsel %vm7171_vm2, %v2561_v25, %v2565_v15  ;;  %s8881_s27 = scalar_lea.vmem %s8935_s2, %s5905_s16 }
 0x159   : > { %v2551_v1 = vrot.slane %v2549_v23, 5  ;;  %v2528_v63 = vsel %vm7171_vm2, %v2523_v59, %v2527_v30 }
 0x15b   : > { %v2552_v57 = vsel %vm7171_vm2, %v2547_v56, %v2551_v1 }
 0x15c   : > { %v5589_v7 = vcombine.low %v2542_v4, %v2552_v57 }
 0x15d   : > { %6543 = vmatmul.mubr.bf16.gmra.mrb[20].mxu0 %v5890_v53  ;;  %v5588_v53 = vcombine.low %v2518_v31, %v2528_v63 }
 0x15e   : > { %6351 = vmatmul.mubr.bf16.gmra.mrb[20].mxu1 %v5586_v3  ;;  %6546 = vmatprep.mubr.bf16.mxu0 %v5891_v16  ;;  %v2571_v16 = vrot.slane %v2570_v29, 4 }
 0x15f   : > { %6354 = vmatprep.mubr.bf16.mxu1 %v5587_v58 }
 0x160   : > { %v2576_v60 = vsel %vm7171_vm2, %v2571_v16, %v2575_v54 }
 0x161   : > { %v5590_v0 = vcombine.low %v2566_v13, %v2576_v60 }
 0x165   : > { %6547 = vmatmul.mubr.bf16.gmra.mrb[24].mxu0 %v5892_v2 }
 0x166   : > { %6355 = vmatmul.mubr.bf16.gmra.mrb[24].mxu1 %v5588_v53  ;;  %6550 = vmatprep.mubr.bf16.mxu0 %v5893_v28 }
 0x167   : > { %6358 = vmatprep.mubr.bf16.mxu1 %v5589_v7 }
 0x16d   : > { %6551 = vmatmul.mubr.bf16.gmra.mrb[28].mxu0 %v5894_v48 }
 0x16e   : > { %6359 = vmatmul.mubr.bf16.gmra.mrb[28].mxu1 %v5590_v0 }
 0x1e9   : > { %v6284_v27 = vpop.f32.mrb[0].mxu1 }
 0x1ea   : > { %v1986_v46 = vpop.f32.mrb[1].mxu1 }
 0x1eb   : > { %v6285_v2 = vpop.f32.mrb[2].mxu1 }
 0x1ec   : > { %v1989_v42 = vpop.f32.mrb[3].mxu1 }
 0x1f1   : > { %v6288_v55 = vpop.f32.mrb[4].mxu1 }
 0x1f2   : > { %v2002_v49 = vpop.f32.mrb[5].mxu1 }
 0x1f3   : > { %v6289_v28 = vpop.f32.mrb[6].mxu1 }
 0x1f4   : > { %v2005_v17 = vpop.f32.mrb[7].mxu1 }
 0x1f9   : > { %v6292_v24 = vpop.f32.mrb[8].mxu1 }
 0x1fa   : > { %v2018_v40 = vpop.f32.mrb[9].mxu1 }
 0x1fb   : > { %v6293_v21 = vpop.f32.mrb[10].mxu1 }
 0x1fc   : > { %v8867_v37 = vpop.f32.mrb[11].mxu1 }
 0x201   : > { %v8869_v61 = vpop.f32.mrb[12].mxu1 }
 0x202   : > { %v8871_v45 = vpop.f32.mrb[13].mxu1 }
 0x203   : > { %v8873_v34 = vpop.f32.mrb[14].mxu1 }
 0x204   : > { %v8875_v11 = vpop.f32.mrb[15].mxu1 }
 0x208   : > { %v6524_v48 = vpop.f32.mrb[0].mxu0 }
 0x209   : > { %v6570_v8 = vadd.f32 %v6524_v48, %v6284_v27  ;;  %v4877_v36 = vpop.f32.mrb[1].mxu0 }
 0x20a   : > { %v6571_v47 = vadd.f32 %v4877_v36, %v1986_v46  ;;  %v6525_v12 = vpop.f32.mrb[2].mxu0 }
 0x20b   : > { %5038 = vst [vmem:[%s8881_s27 + $0x10] sm:$0xff] %v6570_v8  ;;  %v6572_v51 = vadd.f32 %v6525_v12, %v6285_v2  ;;  %v4880_v32 = vpop.f32.mrb[3].mxu0  ;;  %v5107_v9 = vmul.f32 %v6570_v8, %v6570_v8 }
 0x20c   : > { %5036 = vst [vmem:[%s8881_s27] sm:$0xff] %v6571_v47  ;;  %v6573_v5 = vadd.f32 %v4880_v32, %v1989_v42  ;;  %v5105_v62 = vmul.f32 %v6571_v47, %v6571_v47 }
 0x20d   : > { %5039 = vst [vmem:[%s8881_s27 + $0x18] sm:$0xff] %v6572_v51  ;;  %v5108_v39 = vmul.f32 %v6572_v51, %v6572_v51 }
 0x20e   : > { %5037 = vst [vmem:[%s8881_s27 + $0x8] sm:$0xff] %v6573_v5  ;;  %v5068_v41 = vadd.f32 %v6573_v5, %v6571_v47  ;;  %v5106_v6 = vmul.f32 %v6573_v5, %v6573_v5 }
 0x210   : > { %v5069_v26 = vadd.f32 %v6570_v8, %v5068_v41  ;;  %v5137_v18 = vadd.f32 %v5106_v6, %v5105_v62  ;;  %v6528_v33 = vpop.f32.mrb[4].mxu0 }
 0x211   : > { %v6574_v14 = vadd.f32 %v6528_v33, %v6288_v55  ;;  %v4893_v10 = vpop.f32.mrb[5].mxu0 }
 0x212   : > { %v5138_v50 = vadd.f32 %v5137_v18, %v5107_v9  ;;  %v6575_v23 = vadd.f32 %v4893_v10, %v2002_v49  ;;  %v5070_v3 = vadd.f32 %v6572_v51, %v5069_v26  ;;  %v6529_v58 = vpop.f32.mrb[6].mxu0 }
 0x213   : > { %5042 = vst [vmem:[%s8881_s27 + $0x30] sm:$0xff] %v6574_v14  ;;  %v6576_v22 = vadd.f32 %v6529_v58, %v6289_v28  ;;  %v4896_v59 = vpop.f32.mrb[7].mxu0  ;;  %v5111_v1 = vmul.f32 %v6574_v14, %v6574_v14 }
 0x214   : > { %5040 = vst [vmem:[%s8881_s27 + $0x20] sm:$0xff] %v6575_v23  ;;  %v5071_v30 = vadd.f32 %v6575_v23, %v5070_v3  ;;  %v5109_v19 = vmul.f32 %v6575_v23, %v6575_v23  ;;  %v5139_v52 = vadd.f32 %v5138_v50, %v5108_v39  ;;  %v6577_v15 = vadd.f32 %v4896_v59, %v2005_v17 }
 0x215   : > { %5043 = vst [vmem:[%s8881_s27 + $0x38] sm:$0xff] %v6576_v22  ;;  %v5112_v35 = vmul.f32 %v6576_v22, %v6576_v22 }
 0x216   : > { %v5140_v43 = vadd.f32 %v5139_v52, %v5109_v19  ;;  %5041 = vst [vmem:[%s8881_s27 + $0x28] sm:$0xff] %v6577_v15  ;;  %v5072_v38 = vadd.f32 %v6577_v15, %v5071_v30  ;;  %v5110_v56 = vmul.f32 %v6577_v15, %v6577_v15 }
 0x218   : > { %v5073_v31 = vadd.f32 %v6574_v14, %v5072_v38  ;;  %v5141_v63 = vadd.f32 %v5140_v43, %v5110_v56  ;;  %v6532_v20 = vpop.f32.mrb[8].mxu0 }
 0x219   : > { %v6578_v29 = vadd.f32 %v6532_v20, %v6292_v24  ;;  %v4909_v44 = vpop.f32.mrb[9].mxu0 }
 0x21a   : > { %v5142_v4 = vadd.f32 %v5141_v63, %v5111_v1  ;;  %v6579_v57 = vadd.f32 %v4909_v44, %v2018_v40  ;;  %v5074_v53 = vadd.f32 %v6576_v22, %v5073_v31  ;;  %v6533_v7 = vpop.f32.mrb[10].mxu0 }
 0x21b   : > { %5046 = vst [vmem:[%s8881_s27 + $0x50] sm:$0xff] %v6578_v29  ;;  %v6580_v25 = vadd.f32 %v6533_v7, %v6293_v21  ;;  %v4912_v16 = vpop.f32.mrb[11].mxu0  ;;  %v5115_v42 = vmul.f32 %v6578_v29, %v6578_v29 }
 0x21c   : > { %5044 = vst [vmem:[%s8881_s27 + $0x40] sm:$0xff] %v6579_v57  ;;  %v5075_v54 = vadd.f32 %v6579_v57, %v5074_v53  ;;  %v5113_v13 = vmul.f32 %v6579_v57, %v6579_v57  ;;  %v5143_v60 = vadd.f32 %v5142_v4, %v5112_v35  ;;  %v6581_v0 = vadd.f32 %v4912_v16, %v8867_v37 }
 0x21d   : > { %5047 = vst [vmem:[%s8881_s27 + $0x58] sm:$0xff] %v6580_v25  ;;  %v5116_v40 = vmul.f32 %v6580_v25, %v6580_v25 }
 0x21e   : > { %v5144_v27 = vadd.f32 %v5143_v60, %v5113_v13  ;;  %5045 = vst [vmem:[%s8881_s27 + $0x48] sm:$0xff] %v6581_v0  ;;  %v5076_v46 = vadd.f32 %v6581_v0, %v5075_v54  ;;  %v5114_v2 = vmul.f32 %v6581_v0, %v6581_v0 }
 0x220   : > { %v5077_v55 = vadd.f32 %v6578_v29, %v5076_v46  ;;  %v5145_v49 = vadd.f32 %v5144_v27, %v5114_v2  ;;  %v6536_v28 = vpop.f32.mrb[12].mxu0 }
 0x221   : > { %v6582_v17 = vadd.f32 %v6536_v28, %v8869_v61  ;;  %v4925_v24 = vpop.f32.mrb[13].mxu0 }
 0x222   : > { %v5146_v21 = vadd.f32 %v5145_v49, %v5115_v42  ;;  %v6583_v37 = vadd.f32 %v4925_v24, %v8871_v45  ;;  %v5078_v48 = vadd.f32 %v6580_v25, %v5077_v55  ;;  %v6537_v8 = vpop.f32.mrb[14].mxu0 }
 0x223   : > { %5050 = vst [vmem:[%s8881_s27 + $0x70] sm:$0xff] %v6582_v17  ;;  %v6584_v36 = vadd.f32 %v6537_v8, %v8873_v34  ;;  %v4928_v47 = vpop.f32.mrb[15].mxu0  ;;  %v5119_v6 = vmul.f32 %v6582_v17, %v6582_v17 }
 0x224   : > { %5048 = vst [vmem:[%s8881_s27 + $0x60] sm:$0xff] %v6583_v37  ;;  %v5079_v12 = vadd.f32 %v6583_v37, %v5078_v48  ;;  %v5117_v51 = vmul.f32 %v6583_v37, %v6583_v37  ;;  %v5147_v32 = vadd.f32 %v5146_v21, %v5116_v40  ;;  %v6585_v5 = vadd.f32 %v4928_v47, %v8875_v11 }
 0x225   : > { %5051 = vst [vmem:[%s8881_s27 + $0x78] sm:$0xff] %v6584_v36  ;;  %v5120_v33 = vmul.f32 %v6584_v36, %v6584_v36 }
 0x226   : > { %v5148_v61 = vadd.f32 %v5147_v32, %v5117_v51  ;;  %5049 = vst [vmem:[%s8881_s27 + $0x68] sm:$0xff] %v6585_v5  ;;  %v5080_v62 = vadd.f32 %v6585_v5, %v5079_v12  ;;  %v5118_v41 = vmul.f32 %v6585_v5, %v6585_v5 }
 0x228   : > { %v5081_v45 = vadd.f32 %v6582_v17, %v5080_v62  ;;  %v5149_v9 = vadd.f32 %v5148_v61, %v5118_v41  ;;  %v6540_v26 = vpop.f32.mrb[16].mxu0 }
 0x229   : > { %v6348_v18 = vpop.f32.mrb[16].mxu1  ;;  %v4941_v34 = vpop.f32.mrb[17].mxu0 }
 0x22a   : > { %v5150_v14 = vadd.f32 %v5149_v9, %v5119_v6  ;;  %v6586_v10 = vadd.f32 %v6540_v26, %v6348_v18  ;;  %v2804_v39 = vpop.f32.mrb[17].mxu1  ;;  %v5082_v11 = vadd.f32 %v6584_v36, %v5081_v45  ;;  %v6541_v50 = vpop.f32.mrb[18].mxu0 }
 0x22b   : > { %v6587_v23 = vadd.f32 %v4941_v34, %v2804_v39  ;;  %v6349_v3 = vpop.f32.mrb[18].mxu1  ;;  %v4944_v58 = vpop.f32.mrb[19].mxu0 }
 0x22c   : > { %5054 = vst [vmem:[%s8881_s27 + $0x90] sm:$0xff] %v6586_v10  ;;  %v5151_v22 = vadd.f32 %v5150_v14, %v5120_v33  ;;  %v6588_v59 = vadd.f32 %v6541_v50, %v6349_v3  ;;  %v2807_v30 = vpop.f32.mrb[19].mxu1  ;;  %v5123_v31 = vmul.f32 %v6586_v10, %v6586_v10 }
 0x22d   : > { %5052 = vst [vmem:[%s8881_s27 + $0x80] sm:$0xff] %v6587_v23  ;;  %v5083_v19 = vadd.f32 %v6587_v23, %v5082_v11  ;;  %v5121_v52 = vmul.f32 %v6587_v23, %v6587_v23  ;;  %v6589_v15 = vadd.f32 %v4944_v58, %v2807_v30 }
 0x22e   : > { %5055 = vst [vmem:[%s8881_s27 + $0x98] sm:$0xff] %v6588_v59  ;;  %v5124_v53 = vmul.f32 %v6588_v59, %v6588_v59 }
 0x22f   : > { %v5152_v43 = vadd.f32 %v5151_v22, %v5121_v52  ;;  %5053 = vst [vmem:[%s8881_s27 + $0x88] sm:$0xff] %v6589_v15  ;;  %v5084_v38 = vadd.f32 %v6589_v15, %v5083_v19  ;;  %v5122_v56 = vmul.f32 %v6589_v15, %v6589_v15 }
 0x230   : > { %v6544_v1 = vpop.f32.mrb[20].mxu0 }
 0x231   : > { %v5085_v63 = vadd.f32 %v6586_v10, %v5084_v38  ;;  %v5153_v20 = vadd.f32 %v5152_v43, %v5122_v56  ;;  %v6352_v29 = vpop.f32.mrb[20].mxu1  ;;  %v4957_v44 = vpop.f32.mrb[21].mxu0 }
 0x232   : > { %v6590_v35 = vadd.f32 %v6544_v1, %v6352_v29  ;;  %v2820_v4 = vpop.f32.mrb[21].mxu1  ;;  %v6545_v57 = vpop.f32.mrb[22].mxu0 }
 0x233   : > { %v5154_v7 = vadd.f32 %v5153_v20, %v5123_v31  ;;  %v6591_v25 = vadd.f32 %v4957_v44, %v2820_v4  ;;  %v5086_v16 = vadd.f32 %v6588_v59, %v5085_v63  ;;  %v6353_v54 = vpop.f32.mrb[22].mxu1  ;;  %v4960_v13 = vpop.f32.mrb[23].mxu0 }
 0x234   : > { %5058 = vst [vmem:[%s8881_s27 + $0xb0] sm:$0xff] %v6590_v35  ;;  %v6592_v60 = vadd.f32 %v6545_v57, %v6353_v54  ;;  %v2823_v0 = vpop.f32.mrb[23].mxu1  ;;  %v5127_v24 = vmul.f32 %v6590_v35, %v6590_v35 }
 0x235   : > { %5056 = vst [vmem:[%s8881_s27 + $0xa0] sm:$0xff] %v6591_v25  ;;  %v5087_v27 = vadd.f32 %v6591_v25, %v5086_v16  ;;  %v5125_v46 = vmul.f32 %v6591_v25, %v6591_v25  ;;  %v5155_v2 = vadd.f32 %v5154_v7, %v5124_v53  ;;  %v6593_v42 = vadd.f32 %v4960_v13, %v2823_v0 }
 0x236   : > { %5059 = vst [vmem:[%s8881_s27 + $0xb8] sm:$0xff] %v6592_v60  ;;  %v5128_v12 = vmul.f32 %v6592_v60, %v6592_v60 }
 0x237   : > { %v5156_v55 = vadd.f32 %v5155_v2, %v5125_v46  ;;  %5057 = vst [vmem:[%s8881_s27 + $0xa8] sm:$0xff] %v6593_v42  ;;  %v5088_v49 = vadd.f32 %v6593_v42, %v5087_v27  ;;  %v5126_v28 = vmul.f32 %v6593_v42, %v6593_v42 }
 0x238   : > { %v6548_v17 = vpop.f32.mrb[24].mxu0 }
 0x239   : > { %v5089_v40 = vadd.f32 %v6590_v35, %v5088_v49  ;;  %v5157_v21 = vadd.f32 %v5156_v55, %v5126_v28  ;;  %v6356_v37 = vpop.f32.mrb[24].mxu1  ;;  %v4973_v48 = vpop.f32.mrb[25].mxu0 }
 0x23a   : > { %v6594_v8 = vadd.f32 %v6548_v17, %v6356_v37  ;;  %v2836_v36 = vpop.f32.mrb[25].mxu1  ;;  %v6549_v47 = vpop.f32.mrb[26].mxu0 }
 0x23b   : > { %v5158_v51 = vadd.f32 %v5157_v21, %v5127_v24  ;;  %v6595_v32 = vadd.f32 %v4973_v48, %v2836_v36  ;;  %v5090_v5 = vadd.f32 %v6592_v60, %v5089_v40  ;;  %v6357_v61 = vpop.f32.mrb[26].mxu1  ;;  %v4976_v62 = vpop.f32.mrb[27].mxu0 }
 0x23c   : > { %5062 = vst [vmem:[%s8881_s27 + $0xd0] sm:$0xff] %v6594_v8  ;;  %v6596_v41 = vadd.f32 %v6549_v47, %v6357_v61  ;;  %v2839_v6 = vpop.f32.mrb[27].mxu1  ;;  %v5131_v39 = vmul.f32 %v6594_v8, %v6594_v8 }
 0x23d   : > { %5060 = vst [vmem:[%s8881_s27 + $0xc0] sm:$0xff] %v6595_v32  ;;  %v5091_v45 = vadd.f32 %v6595_v32, %v5090_v5  ;;  %v5129_v9 = vmul.f32 %v6595_v32, %v6595_v32  ;;  %v5159_v26 = vadd.f32 %v5158_v51, %v5128_v12  ;;  %v6597_v18 = vadd.f32 %v4976_v62, %v2839_v6 }
 0x23e   : > { %5063 = vst [vmem:[%s8881_s27 + $0xd8] sm:$0xff] %v6596_v41  ;;  %v5132_v30 = vmul.f32 %v6596_v41, %v6596_v41 }
 0x23f   : > { %v5160_v34 = vadd.f32 %v5159_v26, %v5129_v9  ;;  %5061 = vst [vmem:[%s8881_s27 + $0xc8] sm:$0xff] %v6597_v18  ;;  %v5092_v33 = vadd.f32 %v6597_v18, %v5091_v45  ;;  %v5130_v14 = vmul.f32 %v6597_v18, %v6597_v18 }
 0x240   : > { %v6552_v10 = vpop.f32.mrb[28].mxu0 }
 0x241   : > { %v5093_v11 = vadd.f32 %v6594_v8, %v5092_v33  ;;  %v5161_v50 = vadd.f32 %v5160_v34, %v5130_v14  ;;  %v6360_v23 = vpop.f32.mrb[28].mxu1  ;;  %v4989_v3 = vpop.f32.mrb[29].mxu0 }
 0x242   : > { %v6598_v58 = vadd.f32 %v6552_v10, %v6360_v23  ;;  %v2852_v22 = vpop.f32.mrb[29].mxu1  ;;  %v6553_v59 = vpop.f32.mrb[30].mxu0 }
 0x243   : > { %v5162_v19 = vadd.f32 %v5161_v50, %v5131_v39  ;;  %v6599_v52 = vadd.f32 %v4989_v3, %v2852_v22  ;;  %v5094_v15 = vadd.f32 %v6596_v41, %v5093_v11  ;;  %v6361_v43 = vpop.f32.mrb[30].mxu1  ;;  %v4992_v38 = vpop.f32.mrb[31].mxu0 }
 0x244   : > { %5066 = vst [vmem:[%s8881_s27 + $0xf0] sm:$0xff] %v6598_v58  ;;  %v6600_v56 = vadd.f32 %v6553_v59, %v6361_v43  ;;  %v2855_v1 = vpop.f32.mrb[31].mxu1  ;;  %v5135_v57 = vmul.f32 %v6598_v58, %v6598_v58 }
 0x245   : > { %5064 = vst [vmem:[%s8881_s27 + $0xe0] sm:$0xff] %v6599_v52  ;;  %v5095_v31 = vadd.f32 %v6599_v52, %v5094_v15  ;;  %v5133_v63 = vmul.f32 %v6599_v52, %v6599_v52  ;;  %v5163_v20 = vadd.f32 %v5162_v19, %v5132_v30  ;;  %v6601_v29 = vadd.f32 %v4992_v38, %v2855_v1 }
 0x246   : > { %5067 = vst [vmem:[%s8881_s27 + $0xf8] sm:$0xff] %v6600_v56  ;;  %v5136_v25 = vmul.f32 %v6600_v56, %v6600_v56 }
 0x247   : > { %v5164_v44 = vadd.f32 %v5163_v20, %v5133_v63  ;;  %5065 = vst [vmem:[%s8881_s27 + $0xe8] sm:$0xff] %v6601_v29  ;;  %v5096_v35 = vadd.f32 %v6601_v29, %v5095_v31  ;;  %v5134_v4 = vmul.f32 %v6601_v29, %v6601_v29 }
 0x249   : > { %v5097_v53 = vadd.f32 %v6598_v58, %v5096_v35  ;;  %v5165_v7 = vadd.f32 %v5164_v44, %v5134_v4 }
 0x24b   : > { %v5098_v16 = vadd.f32 %v6600_v56, %v5097_v53  ;;  %v5166_v54 = vadd.f32 %v5165_v7, %v5135_v57 }
 0x24d   : > { %v5099_v13 = vrot.slane %v5098_v16, 4  ;;  %v5167_v60 = vadd.f32 %v5166_v54, %v5136_v25 }
 0x24f   : > { %v5100_v0 = vadd.f32 %v5099_v13, %v5098_v16  ;;  %v5168_v27 = vrot.slane %v5167_v60, 4 }
 0x251   : > { %v5101_v46 = vrot.slane %v5100_v0, 2  ;;  %v5169_v2 = vadd.f32 %v5168_v27, %v5167_v60 }
 0x253   : > { %v5102_v42 = vadd.f32 %v5101_v46, %v5100_v0  ;;  %v5170_v55 = vrot.slane %v5169_v2, 2 }
 0x255   : > { %v5103_v49 = vrot.slane %v5102_v42, 1  ;;  %v5171_v28 = vadd.f32 %v5170_v55, %v5169_v2 }
 0x257   : > { %v5172_v17 = vrot.slane %v5171_v28, 1  ;;  %v5104_v24 = vadd.f32 %v5103_v49, %v5102_v42 }
 0x259   : > { %v5173_v40 = vadd.f32 %v5172_v17, %v5171_v28 }
 0x25b   : > { %v5175_v21 = vsel %vm5174_vm6, %v5104_v24, %v5173_v40 }
 0x25c   : > { %5176 = vst [vmem:[%s225_s4] sm:$0x3] %v5175_v21 }
 0x25d PF: > { %s14_s14 = sadd.s32 1, %s7063_s14   ;;  %s9003_s12 = smov %s7059_s13 }
 0x25e   : > { %p11_p5 = scmp.ge.s32.totalorder %s14_s14, 4   ;;  %s9004_s13 = smov %s9006_s15 }
 0x260   :  { %13 = sbr.rel (!%p11_p5) target bundleno = 2 (0x2), region = 80 }

</bundles_post_ra>
